<compile_context>
chip_gen: v7x
topology: tpu7x:2x2x1
jax: 0.10.0
libtpu: 0.0.40
codegen_flags: <defaults>
</compile_context>

<pallas_src>
import math
from typing import NamedTuple

import jax
import jax.numpy as jnp
from jax.experimental import pallas as pl
from jax.experimental.pallas import tpu as pltpu

NEG_SLOPE = 0.1
BN_EPS = 1e-5


def _leaky(y):
    return jnp.where(y >= 0, y, NEG_SLOPE * y)


# --------------------------- fused conv kernel -------------------------------


class ConvCfg(NamedTuple):
    stride: int
    H: int           # input spatial height (pre-pad)
    W: int           # input spatial width (pre-pad)
    Ho: int
    Wo: int
    Cin: int
    Cout: int
    has_pre: bool    # fused BN1 + LeakyReLU pre-activation on the input
    has_post: bool   # fused BN2 scale/bias on the output
    act_out: bool    # LeakyReLU on the main output
    has_res: bool    # fused residual add
    has_sc: bool     # second output = 1x1 convShortcut (centre tap)
    mix_alpha: float  # "pn" batch mix strength (0.0 -> disabled)


def _make_conv_kernel(cfg: ConvCfg):
    s, H, W = cfg.stride, cfg.H, cfg.W
    Ho, Wo, Cin, Cout = cfg.Ho, cfg.Wo, cfg.Cin, cfg.Cout

    def kernel(*refs):
        it = iter(refs)
        x_ref = next(it)
        x_roll_ref = next(it) if cfg.mix_alpha != 0.0 else None
        w_ref = next(it)
        wsc_ref = next(it) if cfg.has_sc else None
        pre_s_ref = pre_b_ref = post_s_ref = post_b_ref = res_ref = None
        if cfg.has_pre:
            pre_s_ref = next(it)
            pre_b_ref = next(it)
        if cfg.has_post:
            post_s_ref = next(it)
            post_b_ref = next(it)
        if cfg.has_res:
            res_ref = next(it)
        o_ref = next(it)
        osc_ref = next(it) if cfg.has_sc else None
        pad_ref = next(it) if s == 1 else None

        if s == 1:
            # In-kernel padding: zero the haloed VMEM scratch, write the
            # (optionally mixed / pre-activated) interior.  The border stays
            # zero, which exactly matches "pad after activation".
            pad_ref[...] = jnp.zeros_like(pad_ref)
            xv = x_ref[0].astype(jnp.float32)
            if cfg.mix_alpha != 0.0:
                a = cfg.mix_alpha
                xv = (1.0 - a) * xv + a * x_roll_ref[0].astype(jnp.float32)
            if cfg.has_pre:
                xv = _leaky(xv * pre_s_ref[...].reshape(1, 1, Cin)
                            + pre_b_ref[...].reshape(1, 1, Cin))
            pad_ref[1:H + 1, 1:W + 1, :] = xv

            def tap_window(kh, kw):
                win = pad_ref[kh:kh + Ho, kw:kw + Wo, :]
                return win.reshape(Ho * Wo, Cin).astype(jnp.bfloat16)
        else:
            # Phase-decomposed padded input: tap (kh, kw) is a contiguous
            # (Ho, Wo) window of phase (kh % s, kw % s) at offset (kh//s, kw//s).
            xmix = None
            if cfg.mix_alpha != 0.0:
                a = cfg.mix_alpha
                xmix = ((1.0 - a) * x_ref[...].astype(jnp.float32)
                        + a * x_roll_ref[...].astype(jnp.float32)
                        ).astype(jnp.bfloat16)

            def tap_window(kh, kw):
                ph = (kh % s) * s + (kw % s)
                oh, ow = kh // s, kw // s
                if xmix is not None:
                    win = xmix[ph, oh:oh + Ho, ow:ow + Wo, :]
                else:
                    win = x_ref[ph, oh:oh + Ho, ow:ow + Wo, :]
                return win.reshape(Ho * Wo, Cin)

        # 9 shifted-tap matmuls accumulated in f32 (implicit 3x3 conv).
        acc = jnp.zeros((Ho * Wo, Cout), jnp.float32)
        centre = None
        for kh in range(3):
            for kw in range(3):
                win = tap_window(kh, kw)
                if kh == 1 and kw == 1:
                    centre = win            # reused by the 1x1 shortcut
                t = kh * 3 + kw
                acc = acc + jnp.dot(win, w_ref[t * Cin:(t + 1) * Cin, :],
                                    preferred_element_type=jnp.float32)

        y = acc
        if cfg.has_post:
            y = y * post_s_ref[...] + post_b_ref[...]
        if cfg.act_out:
            y = _leaky(y)
        if cfg.has_res:
            y = y + res_ref[...]
        o_ref[...] = y

        if cfg.has_sc:
            osc_ref[...] = jnp.dot(centre, wsc_ref[...],
                                   preferred_element_type=jnp.float32)

    return kernel


def _phase_pack(x_nhwc, stride):
    """Pad spatially by 1, decompose into stride^2 phases, cast to bf16."""
    N, H, W, C = x_nhwc.shape
    s = stride
    xp = jnp.pad(x_nhwc, ((0, 0), (1, 1), (1, 1), (0, 0)))
    Hp, Wp = H + 2, W + 2
    Hs, Ws = -(-Hp // s), -(-Wp // s)
    xp = jnp.pad(xp, ((0, 0), (0, s * Hs - Hp), (0, s * Ws - Wp), (0, 0)))
    x6 = xp.reshape(N, Hs, s, Ws, s, C)
    xph = jnp.transpose(x6, (0, 2, 4, 1, 3, 5)).reshape(N * s * s, Hs, Ws, C)
    return xph.astype(jnp.bfloat16), (Hs, Ws)


def fused_conv3x3(x_nhwc, w1, *, stride=1, wsc=None, pre=None, post=None,
                  act_out=False, residual=None, mix_alpha=0.0):
    """Implicit 3x3 conv (pad=1, no bias) with fused BN/LeakyReLU/residual/mix.

    x_nhwc:   [N, H, W, Cin] float32 activations.
    w1:       [9*Cin, Cout] bf16, rows ordered (tap, cin).
    wsc:      optional [Cin, Cout] bf16 1x1 shortcut (second kernel output).
    pre:      optional (scale, bias), each [1, Cin]  -> BN1+LeakyReLU on input.
    post:     optional (scale, bias), each [1, Cout] -> BN2 on output.
    residual: optional [N*Ho*Wo, Cout] f32, added before the store.
    mix_alpha: if nonzero, the input is mixed with its batch-rolled neighbour.
    Returns (out [N*Ho*Wo, Cout] f32, shortcut_or_None, (Ho, Wo)).
    """
    N, H, W, Cin = x_nhwc.shape
    Cout = w1.shape[1]
    s = stride
    Ho = (H + 2 - 3) // s + 1
    Wo = (W + 2 - 3) // s + 1
    assert pre is None or s == 1, "pre-activation fusion needs stride == 1"

    cfg = ConvCfg(stride=s, H=H, W=W, Ho=Ho, Wo=Wo, Cin=Cin, Cout=Cout,
                  has_pre=pre is not None, has_post=post is not None,
                  act_out=act_out, has_res=residual is not None,
                  has_sc=wsc is not None, mix_alpha=float(mix_alpha))

    in_specs, args, scratch_shapes = [], [], []
    if s == 1:
        x_in = x_nhwc.astype(jnp.float32)
        in_specs.append(pl.BlockSpec((1, H, W, Cin), lambda b: (b, 0, 0, 0)))
        scratch_shapes.append(pltpu.VMEM((H + 2, W + 2, Cin), jnp.float32))
        if cfg.mix_alpha != 0.0:
            in_specs.append(pl.BlockSpec((1, H, W, Cin),
                                         lambda b: ((b + 1) % N, 0, 0, 0)))
    else:
        x_in, (Hs, Ws) = _phase_pack(x_nhwc, s)
        s2 = s * s
        in_specs.append(pl.BlockSpec((s2, Hs, Ws, Cin), lambda b: (b, 0, 0, 0)))
        if cfg.mix_alpha != 0.0:
            in_specs.append(pl.BlockSpec((s2, Hs, Ws, Cin),
                                         lambda b: ((b + 1) % N, 0, 0, 0)))
    args.append(x_in)
    if cfg.mix_alpha != 0.0:
        args.append(x_in)

    def vec_spec(c):
        return pl.BlockSpec((1, c), lambda b: (0, 0))

    in_specs.append(pl.BlockSpec((9 * Cin, Cout), lambda b: (0, 0)))
    args.append(w1)
    if wsc is not None:
        in_specs.append(pl.BlockSpec((Cin, Cout), lambda b: (0, 0)))
        args.append(wsc)
    if pre is not None:
        in_specs += [vec_spec(Cin), vec_spec(Cin)]
        args += [pre[0], pre[1]]
    if post is not None:
        in_specs += [vec_spec(Cout), vec_spec(Cout)]
        args += [post[0], post[1]]
    if residual is not None:
        in_specs.append(pl.BlockSpec((Ho * Wo, Cout), lambda b: (b, 0)))
        args.append(residual)

    out_sds = jax.ShapeDtypeStruct((N * Ho * Wo, Cout), jnp.float32)
    out_spec = pl.BlockSpec((Ho * Wo, Cout), lambda b: (b, 0))
    if wsc is not None:
        out_shape, out_specs = (out_sds, out_sds), (out_spec, out_spec)
    else:
        out_shape, out_specs = out_sds, out_spec

    flops = 2 * N * Ho * Wo * 9 * Cin * Cout
    if wsc is not None:
        flops += 2 * N * Ho * Wo * Cin * Cout
    in_bytes = int(x_in.size) * x_in.dtype.itemsize
    if cfg.mix_alpha != 0.0:
        in_bytes *= 2
    bytes_accessed = int(
        in_bytes + w1.size * 2
        + (wsc.size * 2 if wsc is not None else 0)
        + N * Ho * Wo * Cout * 4 * (2 if wsc is not None else 1)
        + (residual.size * 4 if residual is not None else 0))

    outs = pl.pallas_call(
        _make_conv_kernel(cfg),
        out_shape=out_shape,
        grid=(N,),
        in_specs=in_specs,
        out_specs=out_specs,
        scratch_shapes=scratch_shapes,
        compiler_params=pltpu.CompilerParams(
            dimension_semantics=("parallel",)),
        cost_estimate=pl.CostEstimate(flops=int(flops), transcendentals=0,
                                      bytes_accessed=bytes_accessed),
    )(*args)

    if wsc is not None:
        out, sc = outs
    else:
        out, sc = outs, None
    return out, sc, (Ho, Wo)


# ------------------------------- tail kernel ---------------------------------

def _head_kernel(x_ref, s_ref, b_ref, w_ref, fb_ref, o_ref):
    x = x_ref[...]                                          # (N, HW, C) f32
    c = x.shape[-1]
    y = x * s_ref[...].reshape(1, 1, c) + b_ref[...].reshape(1, 1, c)
    y = _leaky(y)
    pooled = jnp.mean(y, axis=1)                            # (N, C)
    o_ref[...] = (jnp.dot(pooled, w_ref[...],
                          preferred_element_type=jnp.float32) + fb_ref[...])


def _head(x2d, N, HW, C, scale, bias, w_fc, b_fc):
    nc = w_fc.shape[1]
    x3 = x2d.reshape(N, HW, C)
    return pl.pallas_call(
        _head_kernel,
        out_shape=jax.ShapeDtypeStruct((N, nc), jnp.float32),
        grid=(1,),
        in_specs=[pl.BlockSpec((N, HW, C), lambda i: (0, 0, 0)),
                  pl.BlockSpec((1, C), lambda i: (0, 0)),
                  pl.BlockSpec((1, C), lambda i: (0, 0)),
                  pl.BlockSpec((C, nc), lambda i: (0, 0)),
                  pl.BlockSpec((1, nc), lambda i: (0, 0))],
        out_specs=pl.BlockSpec((N, nc), lambda i: (0, 0)),
    )(x3, scale, bias, w_fc, b_fc)


# ------------------------------ model forward --------------------------------

def _run_block(x2d, N, H, W, Cin, a, p, mix_alpha):
    cout = a["cout"]
    s = a["stride"]

    if mix_alpha != 0.0 and a["equal"]:
        # Fallback (never hit in this architecture): an equal block's residual
        # path must also see the mixed tensor, so materialise the mix in XLA.
        x3 = x2d.reshape(N, H * W, Cin)
        x3 = (1.0 - mix_alpha) * x3 + mix_alpha * jnp.roll(x3, -1, axis=0)
        x2d = x3.reshape(N * H * W, Cin)
        mix_alpha = 0.0

    x4 = x2d.reshape(N, H, W, Cin)
    if a["equal"]:
        # conv1 with fused BN1+LeakyReLU pre-act and BN2+LeakyReLU post-act.
        act2d, _, (Ho, Wo) = fused_conv3x3(
            x4, p["w1"], stride=s,
            pre=(p["pre_scale"], p["pre_bias"]),
            post=(p["post1_scale"], p["post1_bias"]),
            act_out=True)
        res2d = x2d
    else:
        # conv1 (3x3) and convShortcut (1x1) share one kernel; the shortcut is
        # the second output, computed from the centre-tap window.
        pre = (p["pre_scale"], p["pre_bias"]) if a["abr"] else None
        act2d, res2d, (Ho, Wo) = fused_conv3x3(
            x4, p["w1"], stride=s, wsc=p["wsc"], pre=pre,
            post=(p["post1_scale"], p["post1_bias"]),
            act_out=True, mix_alpha=mix_alpha)

    # drop_rate = 0.0 in the reference default -> dropout is the identity.
    act4 = act2d.reshape(N, Ho, Wo, cout)
    out2d, _, _ = fused_conv3x3(act4, p["w2"], stride=1, residual=res2d)
    return out2d, Ho, Wo, cout


def wideresnet_forward(prepped, arch, x_nchw, pn_strength=0.1):
    x = jnp.transpose(x_nchw, (0, 2, 3, 1)).astype(jnp.float32)  # NCHW -> NHWC
    N, H, W, _ = x.shape
    out2d, _, (H, W) = fused_conv3x3(x, prepped["w_stem"], stride=1)
    C = arch["stem_cout"]

    for stage in ("block1", "block2", "block3"):
        for bi, (a, p) in enumerate(zip(arch[stage], prepped[stage])):
            # The "pn" batch mix sits between block2 and block3; it is folded
            # into the input load of block3's first conv kernel.
            mix = pn_strength if (stage == "block3" and bi == 0) else 0.0
            out2d, H, W, C = _run_block(out2d, N, H, W, C, a, p, mix)

    return _head(out2d, N, H * W, C,
                 prepped["fin_scale"], prepped["fin_bias"],
                 prepped["w_fc"], prepped["b_fc"])


# ---------------------- parameter prep (done once) ---------------------------

def _fold_bn(bn):
    inv = bn["gamma"] / jnp.sqrt(bn["var"] + BN_EPS)
    scale = inv.reshape(1, -1).astype(jnp.float32)
    bias = (bn["beta"] - bn["mean"] * inv).reshape(1, -1).astype(jnp.float32)
    return scale, bias


def _conv3_mat(w):
    # [Cout, Cin, 3, 3] -> [9*Cin, Cout] bf16, row index = (kh*3+kw)*Cin + cin
    cout, cin = w.shape[0], w.shape[1]
    return jnp.transpose(w, (2, 3, 1, 0)).reshape(9 * cin, cout).astype(jnp.bfloat16)


def prepare_params(params):
    arch = {"stem_cout": int(params["conv1"].shape[0])}
    prepped = {"w_stem": _conv3_mat(params["conv1"])}

    for name in ("block1", "block2", "block3"):
        arch[name] = []
        prepped[name] = []
        for blk in params[name]:
            bp = blk["p"]
            cout, cin = int(bp["conv1"].shape[0]), int(bp["conv1"].shape[1])
            a = dict(stride=int(blk["stride"]), equal=bool(blk["equal"]),
                     abr=bool(blk["abr"]), cin=cin, cout=cout)
            s1, b1 = _fold_bn(bp["bn1"])
            s2, b2 = _fold_bn(bp["bn2"])
            p = {"w1": _conv3_mat(bp["conv1"]),
                 "w2": _conv3_mat(bp["conv2"]),
                 "post1_scale": s2, "post1_bias": b2}
            if a["equal"]:
                p["pre_scale"], p["pre_bias"] = s1, b1
            else:
                p["wsc"] = (bp["convShortcut"].reshape(cout, cin).T
                            .astype(jnp.bfloat16))
                if a["abr"]:
                    p["pre_scale"], p["pre_bias"] = s1, b1
            arch[name].append(a)
            prepped[name].append(p)

    fs, fb = _fold_bn(params["bn_final"])
    prepped["fin_scale"], prepped["fin_bias"] = fs, fb
    prepped["w_fc"] = params["fc_w"].T.astype(jnp.float32)
    prepped["b_fc"] = params["fc_b"].reshape(1, -1).astype(jnp.float32)
    return arch, prepped


# ------------------------------ parameter init --------------------------------

def _kaiming_conv(key, cout, cin, kh, kw):
    fan_out = cout * kh * kw
    std = math.sqrt(2.0) / math.sqrt(fan_out)   # kaiming_normal_, fan_out
    return std * jax.random.normal(key, (cout, cin, kh, kw), dtype=jnp.float32)


def _bn_init(c):
    return dict(gamma=jnp.ones((c,), jnp.float32),
                beta=jnp.zeros((c,), jnp.float32),
                mean=jnp.zeros((c,), jnp.float32),
                var=jnp.ones((c,), jnp.float32))


def _basic_block_init(key, cin, cout):
    k1, k2, k3 = jax.random.split(key, 3)
    p = dict(bn1=_bn_init(cin),
             conv1=_kaiming_conv(k1, cout, cin, 3, 3),
             bn2=_bn_init(cout),
             conv2=_kaiming_conv(k2, cout, cout, 3, 3))
    if cin != cout:
        p["convShortcut"] = _kaiming_conv(k3, cout, cin, 1, 1)
    return p


def init_params(key, num_classes=10, depth=10, widen_factor=2):
    assert (depth - 4) % 6 == 0
    n = (depth - 4) // 6
    ch = [16, 16 * widen_factor, 32 * widen_factor, 64 * widen_factor]
    keys = jax.random.split(key, 2 + 3 * n + 1)
    ki = iter(keys)

    params = {"conv1": _kaiming_conv(next(ki), ch[0], 3, 3, 3)}

    def make_stage(cin, cout, stride, abr):
        blocks = []
        for i in range(n):
            bcin = cin if i == 0 else cout
            bstride = stride if i == 0 else 1
            blocks.append(dict(p=_basic_block_init(next(ki), bcin, cout),
                               stride=bstride, equal=(bcin == cout), abr=abr))
        return blocks

    params["block1"] = make_stage(ch[0], ch[1], 1, True)
    params["block2"] = make_stage(ch[1], ch[2], 2, False)
    params["block3"] = make_stage(ch[2], ch[3], 2, False)
    params["bn_final"] = _bn_init(ch[3])

    kfc = next(ki)
    xavier_std = math.sqrt(2.0 / (ch[3] + num_classes))
    params["fc_w"] = xavier_std * jax.random.normal(
        kfc, (num_classes, ch[3]), dtype=jnp.float32)
    params["fc_b"] = jnp.zeros((num_classes,), jnp.float32)
    return params


# ----------------------------------- main -------------------------------------

if __name__ == "__main__":
    key = jax.random.PRNGKey(0)
    pkey, xkey = jax.random.split(key)

    num_classes = 10
    raw_params = init_params(pkey, num_classes=num_classes, depth=10,
                             widen_factor=2)
    arch, prepped = prepare_params(raw_params)

    # PyTorch-style NCHW input: batch=2, 3 channels, 16x16 spatial.
    x = jax.random.normal(xkey, (2, 3, 16, 16), dtype=jnp.float32)

    fwd = jax.jit(lambda p, xx: wideresnet_forward(p, arch, xx,
                                                   pn_strength=0.1))
    logits = fwd(prepped, x)
    logits = jax.block_until_ready(logits)

    assert logits.shape == (2, num_classes), logits.shape
    assert bool(jnp.all(jnp.isfinite(logits)))
    print("KERNEL_OK")
</pallas_src>

<mosaic_0001>
module attributes {stable_mosaic.version = 11 : i64} {
  func.func @kernel(%arg0: i32, %arg1: memref<1x16x16x3xf32, #tpu.memory_space<vmem>>, %arg2: memref<27x16xbf16, #tpu.memory_space<vmem>>, %arg3: memref<256x16xf32, #tpu.memory_space<vmem>>, %arg4: memref<18x18x3xf32, #tpu.memory_space<vmem>>) attributes {dimension_semantics = [#tpu.dimension_semantics<parallel>], iteration_bounds = array<i64: 2>, scalar_prefetch = 0 : i64, scratch_operands = 1 : i64, tpu.core_type = #tpu.core_type<tc>, window_params = [{transform_indices = @transform_0, window_bounds = array<i64: 1, 16, 16, 3>}, {pipeline_mode = #tpu.pipeline_mode<synchronous>, transform_indices = @transform_1, window_bounds = array<i64: 27, 16>}, {transform_indices = @transform_2, window_bounds = array<i64: 256, 16>}]} {
    %cst = arith.constant 0.000000e+00 : f32
    %0 = vector.broadcast %cst : f32 to vector<18x18x3xf32>
    %c0 = arith.constant 0 : index
    %c0_0 = arith.constant 0 : index
    %c0_1 = arith.constant 0 : index
    %1 = vector.load %arg4[%c0, %c0_0, %c0_1] : memref<18x18x3xf32, #tpu.memory_space<vmem>>, vector<18x18x3xf32>
    tpu.vector_store %arg4[%c0, %c0_0, %c0_1], %0 {strides = array<i32>} : memref<18x18x3xf32, #tpu.memory_space<vmem>>, vector<18x18x3xf32>,
    %c0_2 = arith.constant 0 : index
    %c0_3 = arith.constant 0 : index
    %c0_4 = arith.constant 0 : index
    %c0_5 = arith.constant 0 : index
    %2 = vector.load %arg1[%c0_2, %c0_3, %c0_4, %c0_5] : memref<1x16x16x3xf32, #tpu.memory_space<vmem>>, vector<1x16x16x3xf32>
    %3 = vector.shape_cast %2 : vector<1x16x16x3xf32> to vector<16x16x3xf32>
    %c1 = arith.constant 1 : index
    %c1_6 = arith.constant 1 : index
    %c0_7 = arith.constant 0 : index
    %4 = vector.load %arg4[%c1, %c1_6, %c0_7] : memref<18x18x3xf32, #tpu.memory_space<vmem>>, vector<16x16x3xf32>
    tpu.vector_store %arg4[%c1, %c1_6, %c0_7], %3 {strides = array<i32>} : memref<18x18x3xf32, #tpu.memory_space<vmem>>, vector<16x16x3xf32>,
    %cst_8 = arith.constant 0.000000e+00 : f32
    %5 = vector.broadcast %cst_8 : f32 to vector<256x16xf32>
    %c0_9 = arith.constant 0 : index
    %c0_10 = arith.constant 0 : index
    %c0_11 = arith.constant 0 : index
    %6 = vector.load %arg4[%c0_9, %c0_10, %c0_11] : memref<18x18x3xf32, #tpu.memory_space<vmem>>, vector<16x16x3xf32>
    %7 = vector.shape_cast %6 : vector<16x16x3xf32> to vector<256x3xf32>
    %8 = arith.truncf %7 : vector<256x3xf32> to vector<256x3xbf16>
    %c0_12 = arith.constant 0 : index
    %c0_13 = arith.constant 0 : index
    %9 = vector.load %arg2[%c0_12, %c0_13] : memref<27x16xbf16, #tpu.memory_space<vmem>>, vector<3x16xbf16>
    %cst_14 = arith.constant dense<0.000000e+00> : vector<256x16xf32>
    %10 = tpu.matmul %8, %9, %cst_14 {dimension_numbers = #tpu.dot_dimension_numbers<[1], [0], [0], [1], [0, 0, 1, 1], [], []>} : vector<256x3xbf16>, vector<3x16xbf16>, vector<256x16xf32> -> vector<256x16xf32>
    %11 = arith.addf %5, %10 : vector<256x16xf32>
    %c0_15 = arith.constant 0 : index
    %c1_16 = arith.constant 1 : index
    %c0_17 = arith.constant 0 : index
    %12 = vector.load %arg4[%c0_15, %c1_16, %c0_17] : memref<18x18x3xf32, #tpu.memory_space<vmem>>, vector<16x16x3xf32>
    %13 = vector.shape_cast %12 : vector<16x16x3xf32> to vector<256x3xf32>
    %14 = arith.truncf %13 : vector<256x3xf32> to vector<256x3xbf16>
    %c3 = arith.constant 3 : index
    %c0_18 = arith.constant 0 : index
    %15 = vector.load %arg2[%c3, %c0_18] : memref<27x16xbf16, #tpu.memory_space<vmem>>, vector<3x16xbf16>
    %cst_19 = arith.constant dense<0.000000e+00> : vector<256x16xf32>
    %16 = tpu.matmul %14, %15, %cst_19 {dimension_numbers = #tpu.dot_dimension_numbers<[1], [0], [0], [1], [0, 0, 1, 1], [], []>} : vector<256x3xbf16>, vector<3x16xbf16>, vector<256x16xf32> -> vector<256x16xf32>
    %17 = arith.addf %11, %16 : vector<256x16xf32>
    %c0_20 = arith.constant 0 : index
    %c2 = arith.constant 2 : index
    %c0_21 = arith.constant 0 : index
    %18 = vector.load %arg4[%c0_20, %c2, %c0_21] : memref<18x18x3xf32, #tpu.memory_space<vmem>>, vector<16x16x3xf32>
    %19 = vector.shape_cast %18 : vector<16x16x3xf32> to vector<256x3xf32>
    %20 = arith.truncf %19 : vector<256x3xf32> to vector<256x3xbf16>
    %c6 = arith.constant 6 : index
    %c0_22 = arith.constant 0 : index
    %21 = vector.load %arg2[%c6, %c0_22] : memref<27x16xbf16, #tpu.memory_space<vmem>>, vector<3x16xbf16>
    %cst_23 = arith.constant dense<0.000000e+00> : vector<256x16xf32>
    %22 = tpu.matmul %20, %21, %cst_23 {dimension_numbers = #tpu.dot_dimension_numbers<[1], [0], [0], [1], [0, 0, 1, 1], [], []>} : vector<256x3xbf16>, vector<3x16xbf16>, vector<256x16xf32> -> vector<256x16xf32>
    %23 = arith.addf %17, %22 : vector<256x16xf32>
    %c1_24 = arith.constant 1 : index
    %c0_25 = arith.constant 0 : index
    %c0_26 = arith.constant 0 : index
    %24 = vector.load %arg4[%c1_24, %c0_25, %c0_26] : memref<18x18x3xf32, #tpu.memory_space<vmem>>, vector<16x16x3xf32>
    %25 = vector.shape_cast %24 : vector<16x16x3xf32> to vector<256x3xf32>
    %26 = arith.truncf %25 : vector<256x3xf32> to vector<256x3xbf16>
    %c9 = arith.constant 9 : index
    %c0_27 = arith.constant 0 : index
    %27 = vector.load %arg2[%c9, %c0_27] : memref<27x16xbf16, #tpu.memory_space<vmem>>, vector<3x16xbf16>
    %cst_28 = arith.constant dense<0.000000e+00> : vector<256x16xf32>
    %28 = tpu.matmul %26, %27, %cst_28 {dimension_numbers = #tpu.dot_dimension_numbers<[1], [0], [0], [1], [0, 0, 1, 1], [], []>} : vector<256x3xbf16>, vector<3x16xbf16>, vector<256x16xf32> -> vector<256x16xf32>
    %29 = arith.addf %23, %28 : vector<256x16xf32>
    %c1_29 = arith.constant 1 : index
    %c1_30 = arith.constant 1 : index
    %c0_31 = arith.constant 0 : index
    %30 = vector.load %arg4[%c1_29, %c1_30, %c0_31] : memref<18x18x3xf32, #tpu.memory_space<vmem>>, vector<16x16x3xf32>
    %31 = vector.shape_cast %30 : vector<16x16x3xf32> to vector<256x3xf32>
    %32 = arith.truncf %31 : vector<256x3xf32> to vector<256x3xbf16>
    %c12 = arith.constant 12 : index
    %c0_32 = arith.constant 0 : index
    %33 = vector.load %arg2[%c12, %c0_32] : memref<27x16xbf16, #tpu.memory_space<vmem>>, vector<3x16xbf16>
    %cst_33 = arith.constant dense<0.000000e+00> : vector<256x16xf32>
    %34 = tpu.matmul %32, %33, %cst_33 {dimension_numbers = #tpu.dot_dimension_numbers<[1], [0], [0], [1], [0, 0, 1, 1], [], []>} : vector<256x3xbf16>, vector<3x16xbf16>, vector<256x16xf32> -> vector<256x16xf32>
    %35 = arith.addf %29, %34 : vector<256x16xf32>
    %c1_34 = arith.constant 1 : index
    %c2_35 = arith.constant 2 : index
    %c0_36 = arith.constant 0 : index
    %36 = vector.load %arg4[%c1_34, %c2_35, %c0_36] : memref<18x18x3xf32, #tpu.memory_space<vmem>>, vector<16x16x3xf32>
    %37 = vector.shape_cast %36 : vector<16x16x3xf32> to vector<256x3xf32>
    %38 = arith.truncf %37 : vector<256x3xf32> to vector<256x3xbf16>
    %c15 = arith.constant 15 : index
    %c0_37 = arith.constant 0 : index
    %39 = vector.load %arg2[%c15, %c0_37] : memref<27x16xbf16, #tpu.memory_space<vmem>>, vector<3x16xbf16>
    %cst_38 = arith.constant dense<0.000000e+00> : vector<256x16xf32>
    %40 = tpu.matmul %38, %39, %cst_38 {dimension_numbers = #tpu.dot_dimension_numbers<[1], [0], [0], [1], [0, 0, 1, 1], [], []>} : vector<256x3xbf16>, vector<3x16xbf16>, vector<256x16xf32> -> vector<256x16xf32>
    %41 = arith.addf %35, %40 : vector<256x16xf32>
    %c2_39 = arith.constant 2 : index
    %c0_40 = arith.constant 0 : index
    %c0_41 = arith.constant 0 : index
    %42 = vector.load %arg4[%c2_39, %c0_40, %c0_41] : memref<18x18x3xf32, #tpu.memory_space<vmem>>, vector<16x16x3xf32>
    %43 = vector.shape_cast %42 : vector<16x16x3xf32> to vector<256x3xf32>
    %44 = arith.truncf %43 : vector<256x3xf32> to vector<256x3xbf16>
    %c18 = arith.constant 18 : index
    %c0_42 = arith.constant 0 : index
    %45 = vector.load %arg2[%c18, %c0_42] : memref<27x16xbf16, #tpu.memory_space<vmem>>, vector<3x16xbf16>
    %cst_43 = arith.constant dense<0.000000e+00> : vector<256x16xf32>
    %46 = tpu.matmul %44, %45, %cst_43 {dimension_numbers = #tpu.dot_dimension_numbers<[1], [0], [0], [1], [0, 0, 1, 1], [], []>} : vector<256x3xbf16>, vector<3x16xbf16>, vector<256x16xf32> -> vector<256x16xf32>
    %47 = arith.addf %41, %46 : vector<256x16xf32>
    %c2_44 = arith.constant 2 : index
    %c1_45 = arith.constant 1 : index
    %c0_46 = arith.constant 0 : index
    %48 = vector.load %arg4[%c2_44, %c1_45, %c0_46] : memref<18x18x3xf32, #tpu.memory_space<vmem>>, vector<16x16x3xf32>
    %49 = vector.shape_cast %48 : vector<16x16x3xf32> to vector<256x3xf32>
    %50 = arith.truncf %49 : vector<256x3xf32> to vector<256x3xbf16>
    %c21 = arith.constant 21 : index
    %c0_47 = arith.constant 0 : index
    %51 = vector.load %arg2[%c21, %c0_47] : memref<27x16xbf16, #tpu.memory_space<vmem>>, vector<3x16xbf16>
    %cst_48 = arith.constant dense<0.000000e+00> : vector<256x16xf32>
    %52 = tpu.matmul %50, %51, %cst_48 {dimension_numbers = #tpu.dot_dimension_numbers<[1], [0], [0], [1], [0, 0, 1, 1], [], []>} : vector<256x3xbf16>, vector<3x16xbf16>, vector<256x16xf32> -> vector<256x16xf32>
    %53 = arith.addf %47, %52 : vector<256x16xf32>
    %c2_49 = arith.constant 2 : index
    %c2_50 = arith.constant 2 : index
    %c0_51 = arith.constant 0 : index
    %54 = vector.load %arg4[%c2_49, %c2_50, %c0_51] : memref<18x18x3xf32, #tpu.memory_space<vmem>>, vector<16x16x3xf32>
    %55 = vector.shape_cast %54 : vector<16x16x3xf32> to vector<256x3xf32>
    %56 = arith.truncf %55 : vector<256x3xf32> to vector<256x3xbf16>
    %c24 = arith.constant 24 : index
    %c0_52 = arith.constant 0 : index
    %57 = vector.load %arg2[%c24, %c0_52] : memref<27x16xbf16, #tpu.memory_space<vmem>>, vector<3x16xbf16>
    %cst_53 = arith.constant dense<0.000000e+00> : vector<256x16xf32>
    %58 = tpu.matmul %56, %57, %cst_53 {dimension_numbers = #tpu.dot_dimension_numbers<[1], [0], [0], [1], [0, 0, 1, 1], [], []>} : vector<256x3xbf16>, vector<3x16xbf16>, vector<256x16xf32> -> vector<256x16xf32>
    %59 = arith.addf %53, %58 : vector<256x16xf32>
    %c0_54 = arith.constant 0 : index
    %c0_55 = arith.constant 0 : index
    %60 = vector.load %arg3[%c0_54, %c0_55] : memref<256x16xf32, #tpu.memory_space<vmem>>, vector<256x16xf32>
    tpu.vector_store %arg3[%c0_54, %c0_55], %59 {strides = array<i32>} : memref<256x16xf32, #tpu.memory_space<vmem>>, vector<256x16xf32>,
    return
  }
  func.func @transform_0(%arg0: i32) -> (i32, i32, i32, i32) {
    %c0_i32 = arith.constant 0 : i32
    %c0_i32_0 = arith.constant 0 : i32
    %c0_i32_1 = arith.constant 0 : i32
    %c0_i32_2 = arith.constant 0 : i32
    return %arg0, %c0_i32, %c0_i32_0, %c0_i32_1 : i32, i32, i32, i32
  }
  func.func @transform_1(%arg0: i32) -> (i32, i32) {
    %c0_i32 = arith.constant 0 : i32
    %c0_i32_0 = arith.constant 0 : i32
    %c0_i32_1 = arith.constant 0 : i32
    return %c0_i32, %c0_i32_0 : i32, i32
  }
  func.func @transform_2(%arg0: i32) -> (i32, i32) {
    %c0_i32 = arith.constant 0 : i32
    %c0_i32_0 = arith.constant 0 : i32
    return %arg0, %c0_i32 : i32, i32
  }
}

module attributes {stable_mosaic.version = 11 : i64} {
  func.func @kernel(%arg0: i32, %arg1: memref<1x16x16x16xf32, #tpu.memory_space<vmem>>, %arg2: memref<144x32xbf16, #tpu.memory_space<vmem>>, %arg3: memref<16x32xbf16, #tpu.memory_space<vmem>>, %arg4: memref<1x16xf32, #tpu.memory_space<vmem>>, %arg5: memref<1x16xf32, #tpu.memory_space<vmem>>, %arg6: memref<1x32xf32, #tpu.memory_space<vmem>>, %arg7: memref<1x32xf32, #tpu.memory_space<vmem>>, %arg8: memref<256x32xf32, #tpu.memory_space<vmem>>, %arg9: memref<256x32xf32, #tpu.memory_space<vmem>>, %arg10: memref<18x18x16xf32, #tpu.memory_space<vmem>>) attributes {dimension_semantics = [#tpu.dimension_semantics<parallel>], iteration_bounds = array<i64: 2>, scalar_prefetch = 0 : i64, scratch_operands = 1 : i64, tpu.core_type = #tpu.core_type<tc>, window_params = [{transform_indices = @transform_0, window_bounds = array<i64: 1, 16, 16, 16>}, {pipeline_mode = #tpu.pipeline_mode<synchronous>, transform_indices = @transform_1, window_bounds = array<i64: 144, 32>}, {pipeline_mode = #tpu.pipeline_mode<synchronous>, transform_indices = @transform_2, window_bounds = array<i64: 16, 32>}, {pipeline_mode = #tpu.pipeline_mode<synchronous>, transform_indices = @transform_3, window_bounds = array<i64: 1, 16>}, {pipeline_mode = #tpu.pipeline_mode<synchronous>, transform_indices = @transform_4, window_bounds = array<i64: 1, 16>}, {pipeline_mode = #tpu.pipeline_mode<synchronous>, transform_indices = @transform_5, window_bounds = array<i64: 1, 32>}, {pipeline_mode = #tpu.pipeline_mode<synchronous>, transform_indices = @transform_6, window_bounds = array<i64: 1, 32>}, {transform_indices = @transform_7, window_bounds = array<i64: 256, 32>}, {transform_indices = @transform_8, window_bounds = array<i64: 256, 32>}]} {
    %cst = arith.constant 0.000000e+00 : f32
    %0 = vector.broadcast %cst : f32 to vector<18x18x16xf32>
    %c0 = arith.constant 0 : index
    %c0_0 = arith.constant 0 : index
    %c0_1 = arith.constant 0 : index
    %1 = vector.load %arg10[%c0, %c0_0, %c0_1] : memref<18x18x16xf32, #tpu.memory_space<vmem>>, vector<18x18x16xf32>
    tpu.vector_store %arg10[%c0, %c0_0, %c0_1], %0 {strides = array<i32>} : memref<18x18x16xf32, #tpu.memory_space<vmem>>, vector<18x18x16xf32>,
    %c0_2 = arith.constant 0 : index
    %c0_3 = arith.constant 0 : index
    %c0_4 = arith.constant 0 : index
    %c0_5 = arith.constant 0 : index
    %2 = vector.load %arg1[%c0_2, %c0_3, %c0_4, %c0_5] : memref<1x16x16x16xf32, #tpu.memory_space<vmem>>, vector<1x16x16x16xf32>
    %3 = vector.shape_cast %2 : vector<1x16x16x16xf32> to vector<16x16x16xf32>
    %c0_6 = arith.constant 0 : index
    %c0_7 = arith.constant 0 : index
    %4 = vector.load %arg4[%c0_6, %c0_7] : memref<1x16xf32, #tpu.memory_space<vmem>>, vector<1x16xf32>
    %5 = vector.shape_cast %4 : vector<1x16xf32> to vector<1x1x16xf32>
    %6 = vector.broadcast %5 : vector<1x1x16xf32> to vector<16x16x16xf32>
    %7 = arith.mulf %3, %6 : vector<16x16x16xf32>
    %c0_8 = arith.constant 0 : index
    %c0_9 = arith.constant 0 : index
    %8 = vector.load %arg5[%c0_8, %c0_9] : memref<1x16xf32, #tpu.memory_space<vmem>>, vector<1x16xf32>
    %9 = vector.shape_cast %8 : vector<1x16xf32> to vector<1x1x16xf32>
    %10 = vector.broadcast %9 : vector<1x1x16xf32> to vector<16x16x16xf32>
    %11 = arith.addf %7, %10 : vector<16x16x16xf32>
    %cst_10 = arith.constant 0.000000e+00 : f32
    %12 = vector.broadcast %cst_10 : f32 to vector<16x16x16xf32>
    %13 = arith.cmpf oge, %11, %12 : vector<16x16x16xf32>
    %cst_11 = arith.constant 1.000000e-01 : f32
    %14 = vector.broadcast %cst_11 : f32 to vector<16x16x16xf32>
    %15 = arith.mulf %14, %11 : vector<16x16x16xf32>
    %16 = arith.select %13, %11, %15 : vector<16x16x16xi1>, vector<16x16x16xf32>
    %c1 = arith.constant 1 : index
    %c1_12 = arith.constant 1 : index
    %c0_13 = arith.constant 0 : index
    %17 = vector.load %arg10[%c1, %c1_12, %c0_13] : memref<18x18x16xf32, #tpu.memory_space<vmem>>, vector<16x16x16xf32>
    tpu.vector_store %arg10[%c1, %c1_12, %c0_13], %16 {strides = array<i32>} : memref<18x18x16xf32, #tpu.memory_space<vmem>>, vector<16x16x16xf32>,
    %cst_14 = arith.constant 0.000000e+00 : f32
    %18 = vector.broadcast %cst_14 : f32 to vector<256x32xf32>
    %c0_15 = arith.constant 0 : index
    %c0_16 = arith.constant 0 : index
    %c0_17 = arith.constant 0 : index
    %19 = vector.load %arg10[%c0_15, %c0_16, %c0_17] : memref<18x18x16xf32, #tpu.memory_space<vmem>>, vector<16x16x16xf32>
    %20 = vector.shape_cast %19 : vector<16x16x16xf32> to vector<256x16xf32>
    %21 = arith.truncf %20 : vector<256x16xf32> to vector<256x16xbf16>
    %c0_18 = arith.constant 0 : index
    %c0_19 = arith.constant 0 : index
    %22 = vector.load %arg2[%c0_18, %c0_19] : memref<144x32xbf16, #tpu.memory_space<vmem>>, vector<16x32xbf16>
    %cst_20 = arith.constant dense<0.000000e+00> : vector<256x32xf32>
    %23 = tpu.matmul %21, %22, %cst_20 {dimension_numbers = #tpu.dot_dimension_numbers<[1], [0], [0], [1], [0, 0, 1, 1], [], []>} : vector<256x16xbf16>, vector<16x32xbf16>, vector<256x32xf32> -> vector<256x32xf32>
    %24 = arith.addf %18, %23 : vector<256x32xf32>
    %c0_21 = arith.constant 0 : index
    %c1_22 = arith.constant 1 : index
    %c0_23 = arith.constant 0 : index
    %25 = vector.load %arg10[%c0_21, %c1_22, %c0_23] : memref<18x18x16xf32, #tpu.memory_space<vmem>>, vector<16x16x16xf32>
    %26 = vector.shape_cast %25 : vector<16x16x16xf32> to vector<256x16xf32>
    %27 = arith.truncf %26 : vector<256x16xf32> to vector<256x16xbf16>
    %c16 = arith.constant 16 : index
    %c0_24 = arith.constant 0 : index
    %28 = vector.load %arg2[%c16, %c0_24] : memref<144x32xbf16, #tpu.memory_space<vmem>>, vector<16x32xbf16>
    %cst_25 = arith.constant dense<0.000000e+00> : vector<256x32xf32>
    %29 = tpu.matmul %27, %28, %cst_25 {dimension_numbers = #tpu.dot_dimension_numbers<[1], [0], [0], [1], [0, 0, 1, 1], [], []>} : vector<256x16xbf16>, vector<16x32xbf16>, vector<256x32xf32> -> vector<256x32xf32>
    %30 = arith.addf %24, %29 : vector<256x32xf32>
    %c0_26 = arith.constant 0 : index
    %c2 = arith.constant 2 : index
    %c0_27 = arith.constant 0 : index
    %31 = vector.load %arg10[%c0_26, %c2, %c0_27] : memref<18x18x16xf32, #tpu.memory_space<vmem>>, vector<16x16x16xf32>
    %32 = vector.shape_cast %31 : vector<16x16x16xf32> to vector<256x16xf32>
    %33 = arith.truncf %32 : vector<256x16xf32> to vector<256x16xbf16>
    %c32 = arith.constant 32 : index
    %c0_28 = arith.constant 0 : index
    %34 = vector.load %arg2[%c32, %c0_28] : memref<144x32xbf16, #tpu.memory_space<vmem>>, vector<16x32xbf16>
    %cst_29 = arith.constant dense<0.000000e+00> : vector<256x32xf32>
    %35 = tpu.matmul %33, %34, %cst_29 {dimension_numbers = #tpu.dot_dimension_numbers<[1], [0], [0], [1], [0, 0, 1, 1], [], []>} : vector<256x16xbf16>, vector<16x32xbf16>, vector<256x32xf32> -> vector<256x32xf32>
    %36 = arith.addf %30, %35 : vector<256x32xf32>
    %c1_30 = arith.constant 1 : index
    %c0_31 = arith.constant 0 : index
    %c0_32 = arith.constant 0 : index
    %37 = vector.load %arg10[%c1_30, %c0_31, %c0_32] : memref<18x18x16xf32, #tpu.memory_space<vmem>>, vector<16x16x16xf32>
    %38 = vector.shape_cast %37 : vector<16x16x16xf32> to vector<256x16xf32>
    %39 = arith.truncf %38 : vector<256x16xf32> to vector<256x16xbf16>
    %c48 = arith.constant 48 : index
    %c0_33 = arith.constant 0 : index
    %40 = vector.load %arg2[%c48, %c0_33] : memref<144x32xbf16, #tpu.memory_space<vmem>>, vector<16x32xbf16>
    %cst_34 = arith.constant dense<0.000000e+00> : vector<256x32xf32>
    %41 = tpu.matmul %39, %40, %cst_34 {dimension_numbers = #tpu.dot_dimension_numbers<[1], [0], [0], [1], [0, 0, 1, 1], [], []>} : vector<256x16xbf16>, vector<16x32xbf16>, vector<256x32xf32> -> vector<256x32xf32>
    %42 = arith.addf %36, %41 : vector<256x32xf32>
    %c1_35 = arith.constant 1 : index
    %c1_36 = arith.constant 1 : index
    %c0_37 = arith.constant 0 : index
    %43 = vector.load %arg10[%c1_35, %c1_36, %c0_37] : memref<18x18x16xf32, #tpu.memory_space<vmem>>, vector<16x16x16xf32>
    %44 = vector.shape_cast %43 : vector<16x16x16xf32> to vector<256x16xf32>
    %45 = arith.truncf %44 : vector<256x16xf32> to vector<256x16xbf16>
    %c64 = arith.constant 64 : index
    %c0_38 = arith.constant 0 : index
    %46 = vector.load %arg2[%c64, %c0_38] : memref<144x32xbf16, #tpu.memory_space<vmem>>, vector<16x32xbf16>
    %cst_39 = arith.constant dense<0.000000e+00> : vector<256x32xf32>
    %47 = tpu.matmul %45, %46, %cst_39 {dimension_numbers = #tpu.dot_dimension_numbers<[1], [0], [0], [1], [0, 0, 1, 1], [], []>} : vector<256x16xbf16>, vector<16x32xbf16>, vector<256x32xf32> -> vector<256x32xf32>
    %48 = arith.addf %42, %47 : vector<256x32xf32>
    %c1_40 = arith.constant 1 : index
    %c2_41 = arith.constant 2 : index
    %c0_42 = arith.constant 0 : index
    %49 = vector.load %arg10[%c1_40, %c2_41, %c0_42] : memref<18x18x16xf32, #tpu.memory_space<vmem>>, vector<16x16x16xf32>
    %50 = vector.shape_cast %49 : vector<16x16x16xf32> to vector<256x16xf32>
    %51 = arith.truncf %50 : vector<256x16xf32> to vector<256x16xbf16>
    %c80 = arith.constant 80 : index
    %c0_43 = arith.constant 0 : index
    %52 = vector.load %arg2[%c80, %c0_43] : memref<144x32xbf16, #tpu.memory_space<vmem>>, vector<16x32xbf16>
    %cst_44 = arith.constant dense<0.000000e+00> : vector<256x32xf32>
    %53 = tpu.matmul %51, %52, %cst_44 {dimension_numbers = #tpu.dot_dimension_numbers<[1], [0], [0], [1], [0, 0, 1, 1], [], []>} : vector<256x16xbf16>, vector<16x32xbf16>, vector<256x32xf32> -> vector<256x32xf32>
    %54 = arith.addf %48, %53 : vector<256x32xf32>
    %c2_45 = arith.constant 2 : index
    %c0_46 = arith.constant 0 : index
    %c0_47 = arith.constant 0 : index
    %55 = vector.load %arg10[%c2_45, %c0_46, %c0_47] : memref<18x18x16xf32, #tpu.memory_space<vmem>>, vector<16x16x16xf32>
    %56 = vector.shape_cast %55 : vector<16x16x16xf32> to vector<256x16xf32>
    %57 = arith.truncf %56 : vector<256x16xf32> to vector<256x16xbf16>
    %c96 = arith.constant 96 : index
    %c0_48 = arith.constant 0 : index
    %58 = vector.load %arg2[%c96, %c0_48] : memref<144x32xbf16, #tpu.memory_space<vmem>>, vector<16x32xbf16>
    %cst_49 = arith.constant dense<0.000000e+00> : vector<256x32xf32>
    %59 = tpu.matmul %57, %58, %cst_49 {dimension_numbers = #tpu.dot_dimension_numbers<[1], [0], [0], [1], [0, 0, 1, 1], [], []>} : vector<256x16xbf16>, vector<16x32xbf16>, vector<256x32xf32> -> vector<256x32xf32>
    %60 = arith.addf %54, %59 : vector<256x32xf32>
    %c2_50 = arith.constant 2 : index
    %c1_51 = arith.constant 1 : index
    %c0_52 = arith.constant 0 : index
    %61 = vector.load %arg10[%c2_50, %c1_51, %c0_52] : memref<18x18x16xf32, #tpu.memory_space<vmem>>, vector<16x16x16xf32>
    %62 = vector.shape_cast %61 : vector<16x16x16xf32> to vector<256x16xf32>
    %63 = arith.truncf %62 : vector<256x16xf32> to vector<256x16xbf16>
    %c112 = arith.constant 112 : index
    %c0_53 = arith.constant 0 : index
    %64 = vector.load %arg2[%c112, %c0_53] : memref<144x32xbf16, #tpu.memory_space<vmem>>, vector<16x32xbf16>
    %cst_54 = arith.constant dense<0.000000e+00> : vector<256x32xf32>
    %65 = tpu.matmul %63, %64, %cst_54 {dimension_numbers = #tpu.dot_dimension_numbers<[1], [0], [0], [1], [0, 0, 1, 1], [], []>} : vector<256x16xbf16>, vector<16x32xbf16>, vector<256x32xf32> -> vector<256x32xf32>
    %66 = arith.addf %60, %65 : vector<256x32xf32>
    %c2_55 = arith.constant 2 : index
    %c2_56 = arith.constant 2 : index
    %c0_57 = arith.constant 0 : index
    %67 = vector.load %arg10[%c2_55, %c2_56, %c0_57] : memref<18x18x16xf32, #tpu.memory_space<vmem>>, vector<16x16x16xf32>
    %68 = vector.shape_cast %67 : vector<16x16x16xf32> to vector<256x16xf32>
    %69 = arith.truncf %68 : vector<256x16xf32> to vector<256x16xbf16>
    %c128 = arith.constant 128 : index
    %c0_58 = arith.constant 0 : index
    %70 = vector.load %arg2[%c128, %c0_58] : memref<144x32xbf16, #tpu.memory_space<vmem>>, vector<16x32xbf16>
    %cst_59 = arith.constant dense<0.000000e+00> : vector<256x32xf32>
    %71 = tpu.matmul %69, %70, %cst_59 {dimension_numbers = #tpu.dot_dimension_numbers<[1], [0], [0], [1], [0, 0, 1, 1], [], []>} : vector<256x16xbf16>, vector<16x32xbf16>, vector<256x32xf32> -> vector<256x32xf32>
    %72 = arith.addf %66, %71 : vector<256x32xf32>
    %c0_60 = arith.constant 0 : index
    %c0_61 = arith.constant 0 : index
    %73 = vector.load %arg6[%c0_60, %c0_61] : memref<1x32xf32, #tpu.memory_space<vmem>>, vector<1x32xf32>
    %74 = vector.broadcast %73 : vector<1x32xf32> to vector<256x32xf32>
    %75 = arith.mulf %72, %74 : vector<256x32xf32>
    %c0_62 = arith.constant 0 : index
    %c0_63 = arith.constant 0 : index
    %76 = vector.load %arg7[%c0_62, %c0_63] : memref<1x32xf32, #tpu.memory_space<vmem>>, vector<1x32xf32>
    %77 = vector.broadcast %76 : vector<1x32xf32> to vector<256x32xf32>
    %78 = arith.addf %75, %77 : vector<256x32xf32>
    %cst_64 = arith.constant 0.000000e+00 : f32
    %79 = vector.broadcast %cst_64 : f32 to vector<256x32xf32>
    %80 = arith.cmpf oge, %78, %79 : vector<256x32xf32>
    %cst_65 = arith.constant 1.000000e-01 : f32
    %81 = vector.broadcast %cst_65 : f32 to vector<256x32xf32>
    %82 = arith.mulf %81, %78 : vector<256x32xf32>
    %83 = arith.select %80, %78, %82 : vector<256x32xi1>, vector<256x32xf32>
    %c0_66 = arith.constant 0 : index
    %c0_67 = arith.constant 0 : index
    %84 = vector.load %arg8[%c0_66, %c0_67] : memref<256x32xf32, #tpu.memory_space<vmem>>, vector<256x32xf32>
    tpu.vector_store %arg8[%c0_66, %c0_67], %83 {strides = array<i32>} : memref<256x32xf32, #tpu.memory_space<vmem>>, vector<256x32xf32>,
    %c0_68 = arith.constant 0 : index
    %c0_69 = arith.constant 0 : index
    %85 = vector.load %arg3[%c0_68, %c0_69] : memref<16x32xbf16, #tpu.memory_space<vmem>>, vector<16x32xbf16>
    %cst_70 = arith.constant dense<0.000000e+00> : vector<256x32xf32>
    %86 = tpu.matmul %45, %85, %cst_70 {dimension_numbers = #tpu.dot_dimension_numbers<[1], [0], [0], [1], [0, 0, 1, 1], [], []>} : vector<256x16xbf16>, vector<16x32xbf16>, vector<256x32xf32> -> vector<256x32xf32>
    %c0_71 = arith.constant 0 : index
    %c0_72 = arith.constant 0 : index
    %87 = vector.load %arg9[%c0_71, %c0_72] : memref<256x32xf32, #tpu.memory_space<vmem>>, vector<256x32xf32>
    tpu.vector_store %arg9[%c0_71, %c0_72], %86 {strides = array<i32>} : memref<256x32xf32, #tpu.memory_space<vmem>>, vector<256x32xf32>,
    return
  }
  func.func @transform_0(%arg0: i32) -> (i32, i32, i32, i32) {
    %c0_i32 = arith.constant 0 : i32
    %c0_i32_0 = arith.constant 0 : i32
    %c0_i32_1 = arith.constant 0 : i32
    %c0_i32_2 = arith.constant 0 : i32
    return %arg0, %c0_i32, %c0_i32_0, %c0_i32_1 : i32, i32, i32, i32
  }
  func.func @transform_1(%arg0: i32) -> (i32, i32) {
    %c0_i32 = arith.constant 0 : i32
    %c0_i32_0 = arith.constant 0 : i32
    %c0_i32_1 = arith.constant 0 : i32
    return %c0_i32, %c0_i32_0 : i32, i32
  }
  func.func @transform_2(%arg0: i32) -> (i32, i32) {
    %c0_i32 = arith.constant 0 : i32
    %c0_i32_0 = arith.constant 0 : i32
    %c0_i32_1 = arith.constant 0 : i32
    return %c0_i32, %c0_i32_0 : i32, i32
  }
  func.func @transform_3(%arg0: i32) -> (i32, i32) {
    %c0_i32 = arith.constant 0 : i32
    %c0_i32_0 = arith.constant 0 : i32
    %c0_i32_1 = arith.constant 0 : i32
    return %c0_i32, %c0_i32_0 : i32, i32
  }
  func.func @transform_4(%arg0: i32) -> (i32, i32) {
    %c0_i32 = arith.constant 0 : i32
    %c0_i32_0 = arith.constant 0 : i32
    %c0_i32_1 = arith.constant 0 : i32
    return %c0_i32, %c0_i32_0 : i32, i32
  }
  func.func @transform_5(%arg0: i32) -> (i32, i32) {
    %c0_i32 = arith.constant 0 : i32
    %c0_i32_0 = arith.constant 0 : i32
    %c0_i32_1 = arith.constant 0 : i32
    return %c0_i32, %c0_i32_0 : i32, i32
  }
  func.func @transform_6(%arg0: i32) -> (i32, i32) {
    %c0_i32 = arith.constant 0 : i32
    %c0_i32_0 = arith.constant 0 : i32
    %c0_i32_1 = arith.constant 0 : i32
    return %c0_i32, %c0_i32_0 : i32, i32
  }
  func.func @transform_7(%arg0: i32) -> (i32, i32) {
    %c0_i32 = arith.constant 0 : i32
    %c0_i32_0 = arith.constant 0 : i32
    return %arg0, %c0_i32 : i32, i32
  }
  func.func @transform_8(%arg0: i32) -> (i32, i32) {
    %c0_i32 = arith.constant 0 : i32
    %c0_i32_0 = arith.constant 0 : i32
    return %arg0, %c0_i32 : i32, i32
  }
}

module attributes {stable_mosaic.version = 11 : i64} {
  func.func @kernel(%arg0: i32, %arg1: memref<1x16x16x32xf32, #tpu.memory_space<vmem>>, %arg2: memref<288x32xbf16, #tpu.memory_space<vmem>>, %arg3: memref<256x32xf32, #tpu.memory_space<vmem>>, %arg4: memref<256x32xf32, #tpu.memory_space<vmem>>, %arg5: memref<18x18x32xf32, #tpu.memory_space<vmem>>) attributes {dimension_semantics = [#tpu.dimension_semantics<parallel>], iteration_bounds = array<i64: 2>, scalar_prefetch = 0 : i64, scratch_operands = 1 : i64, tpu.core_type = #tpu.core_type<tc>, window_params = [{transform_indices = @transform_0, window_bounds = array<i64: 1, 16, 16, 32>}, {pipeline_mode = #tpu.pipeline_mode<synchronous>, transform_indices = @transform_1, window_bounds = array<i64: 288, 32>}, {transform_indices = @transform_2, window_bounds = array<i64: 256, 32>}, {transform_indices = @transform_3, window_bounds = array<i64: 256, 32>}]} {
    %cst = arith.constant 0.000000e+00 : f32
    %0 = vector.broadcast %cst : f32 to vector<18x18x32xf32>
    %c0 = arith.constant 0 : index
    %c0_0 = arith.constant 0 : index
    %c0_1 = arith.constant 0 : index
    %1 = vector.load %arg5[%c0, %c0_0, %c0_1] : memref<18x18x32xf32, #tpu.memory_space<vmem>>, vector<18x18x32xf32>
    tpu.vector_store %arg5[%c0, %c0_0, %c0_1], %0 {strides = array<i32>} : memref<18x18x32xf32, #tpu.memory_space<vmem>>, vector<18x18x32xf32>,
    %c0_2 = arith.constant 0 : index
    %c0_3 = arith.constant 0 : index
    %c0_4 = arith.constant 0 : index
    %c0_5 = arith.constant 0 : index
    %2 = vector.load %arg1[%c0_2, %c0_3, %c0_4, %c0_5] : memref<1x16x16x32xf32, #tpu.memory_space<vmem>>, vector<1x16x16x32xf32>
    %3 = vector.shape_cast %2 : vector<1x16x16x32xf32> to vector<16x16x32xf32>
    %c1 = arith.constant 1 : index
    %c1_6 = arith.constant 1 : index
    %c0_7 = arith.constant 0 : index
    %4 = vector.load %arg5[%c1, %c1_6, %c0_7] : memref<18x18x32xf32, #tpu.memory_space<vmem>>, vector<16x16x32xf32>
    tpu.vector_store %arg5[%c1, %c1_6, %c0_7], %3 {strides = array<i32>} : memref<18x18x32xf32, #tpu.memory_space<vmem>>, vector<16x16x32xf32>,
    %cst_8 = arith.constant 0.000000e+00 : f32
    %5 = vector.broadcast %cst_8 : f32 to vector<256x32xf32>
    %c0_9 = arith.constant 0 : index
    %c0_10 = arith.constant 0 : index
    %c0_11 = arith.constant 0 : index
    %6 = vector.load %arg5[%c0_9, %c0_10, %c0_11] : memref<18x18x32xf32, #tpu.memory_space<vmem>>, vector<16x16x32xf32>
    %7 = vector.shape_cast %6 : vector<16x16x32xf32> to vector<256x32xf32>
    %8 = arith.truncf %7 : vector<256x32xf32> to vector<256x32xbf16>
    %c0_12 = arith.constant 0 : index
    %c0_13 = arith.constant 0 : index
    %9 = vector.load %arg2[%c0_12, %c0_13] : memref<288x32xbf16, #tpu.memory_space<vmem>>, vector<32x32xbf16>
    %cst_14 = arith.constant dense<0.000000e+00> : vector<256x32xf32>
    %10 = tpu.matmul %8, %9, %cst_14 {dimension_numbers = #tpu.dot_dimension_numbers<[1], [0], [0], [1], [0, 0, 1, 1], [], []>} : vector<256x32xbf16>, vector<32x32xbf16>, vector<256x32xf32> -> vector<256x32xf32>
    %11 = arith.addf %5, %10 : vector<256x32xf32>
    %c0_15 = arith.constant 0 : index
    %c1_16 = arith.constant 1 : index
    %c0_17 = arith.constant 0 : index
    %12 = vector.load %arg5[%c0_15, %c1_16, %c0_17] : memref<18x18x32xf32, #tpu.memory_space<vmem>>, vector<16x16x32xf32>
    %13 = vector.shape_cast %12 : vector<16x16x32xf32> to vector<256x32xf32>
    %14 = arith.truncf %13 : vector<256x32xf32> to vector<256x32xbf16>
    %c32 = arith.constant 32 : index
    %c0_18 = arith.constant 0 : index
    %15 = vector.load %arg2[%c32, %c0_18] : memref<288x32xbf16, #tpu.memory_space<vmem>>, vector<32x32xbf16>
    %cst_19 = arith.constant dense<0.000000e+00> : vector<256x32xf32>
    %16 = tpu.matmul %14, %15, %cst_19 {dimension_numbers = #tpu.dot_dimension_numbers<[1], [0], [0], [1], [0, 0, 1, 1], [], []>} : vector<256x32xbf16>, vector<32x32xbf16>, vector<256x32xf32> -> vector<256x32xf32>
    %17 = arith.addf %11, %16 : vector<256x32xf32>
    %c0_20 = arith.constant 0 : index
    %c2 = arith.constant 2 : index
    %c0_21 = arith.constant 0 : index
    %18 = vector.load %arg5[%c0_20, %c2, %c0_21] : memref<18x18x32xf32, #tpu.memory_space<vmem>>, vector<16x16x32xf32>
    %19 = vector.shape_cast %18 : vector<16x16x32xf32> to vector<256x32xf32>
    %20 = arith.truncf %19 : vector<256x32xf32> to vector<256x32xbf16>
    %c64 = arith.constant 64 : index
    %c0_22 = arith.constant 0 : index
    %21 = vector.load %arg2[%c64, %c0_22] : memref<288x32xbf16, #tpu.memory_space<vmem>>, vector<32x32xbf16>
    %cst_23 = arith.constant dense<0.000000e+00> : vector<256x32xf32>
    %22 = tpu.matmul %20, %21, %cst_23 {dimension_numbers = #tpu.dot_dimension_numbers<[1], [0], [0], [1], [0, 0, 1, 1], [], []>} : vector<256x32xbf16>, vector<32x32xbf16>, vector<256x32xf32> -> vector<256x32xf32>
    %23 = arith.addf %17, %22 : vector<256x32xf32>
    %c1_24 = arith.constant 1 : index
    %c0_25 = arith.constant 0 : index
    %c0_26 = arith.constant 0 : index
    %24 = vector.load %arg5[%c1_24, %c0_25, %c0_26] : memref<18x18x32xf32, #tpu.memory_space<vmem>>, vector<16x16x32xf32>
    %25 = vector.shape_cast %24 : vector<16x16x32xf32> to vector<256x32xf32>
    %26 = arith.truncf %25 : vector<256x32xf32> to vector<256x32xbf16>
    %c96 = arith.constant 96 : index
    %c0_27 = arith.constant 0 : index
    %27 = vector.load %arg2[%c96, %c0_27] : memref<288x32xbf16, #tpu.memory_space<vmem>>, vector<32x32xbf16>
    %cst_28 = arith.constant dense<0.000000e+00> : vector<256x32xf32>
    %28 = tpu.matmul %26, %27, %cst_28 {dimension_numbers = #tpu.dot_dimension_numbers<[1], [0], [0], [1], [0, 0, 1, 1], [], []>} : vector<256x32xbf16>, vector<32x32xbf16>, vector<256x32xf32> -> vector<256x32xf32>
    %29 = arith.addf %23, %28 : vector<256x32xf32>
    %c1_29 = arith.constant 1 : index
    %c1_30 = arith.constant 1 : index
    %c0_31 = arith.constant 0 : index
    %30 = vector.load %arg5[%c1_29, %c1_30, %c0_31] : memref<18x18x32xf32, #tpu.memory_space<vmem>>, vector<16x16x32xf32>
    %31 = vector.shape_cast %30 : vector<16x16x32xf32> to vector<256x32xf32>
    %32 = arith.truncf %31 : vector<256x32xf32> to vector<256x32xbf16>
    %c128 = arith.constant 128 : index
    %c0_32 = arith.constant 0 : index
    %33 = vector.load %arg2[%c128, %c0_32] : memref<288x32xbf16, #tpu.memory_space<vmem>>, vector<32x32xbf16>
    %cst_33 = arith.constant dense<0.000000e+00> : vector<256x32xf32>
    %34 = tpu.matmul %32, %33, %cst_33 {dimension_numbers = #tpu.dot_dimension_numbers<[1], [0], [0], [1], [0, 0, 1, 1], [], []>} : vector<256x32xbf16>, vector<32x32xbf16>, vector<256x32xf32> -> vector<256x32xf32>
    %35 = arith.addf %29, %34 : vector<256x32xf32>
    %c1_34 = arith.constant 1 : index
    %c2_35 = arith.constant 2 : index
    %c0_36 = arith.constant 0 : index
    %36 = vector.load %arg5[%c1_34, %c2_35, %c0_36] : memref<18x18x32xf32, #tpu.memory_space<vmem>>, vector<16x16x32xf32>
    %37 = vector.shape_cast %36 : vector<16x16x32xf32> to vector<256x32xf32>
    %38 = arith.truncf %37 : vector<256x32xf32> to vector<256x32xbf16>
    %c160 = arith.constant 160 : index
    %c0_37 = arith.constant 0 : index
    %39 = vector.load %arg2[%c160, %c0_37] : memref<288x32xbf16, #tpu.memory_space<vmem>>, vector<32x32xbf16>
    %cst_38 = arith.constant dense<0.000000e+00> : vector<256x32xf32>
    %40 = tpu.matmul %38, %39, %cst_38 {dimension_numbers = #tpu.dot_dimension_numbers<[1], [0], [0], [1], [0, 0, 1, 1], [], []>} : vector<256x32xbf16>, vector<32x32xbf16>, vector<256x32xf32> -> vector<256x32xf32>
    %41 = arith.addf %35, %40 : vector<256x32xf32>
    %c2_39 = arith.constant 2 : index
    %c0_40 = arith.constant 0 : index
    %c0_41 = arith.constant 0 : index
    %42 = vector.load %arg5[%c2_39, %c0_40, %c0_41] : memref<18x18x32xf32, #tpu.memory_space<vmem>>, vector<16x16x32xf32>
    %43 = vector.shape_cast %42 : vector<16x16x32xf32> to vector<256x32xf32>
    %44 = arith.truncf %43 : vector<256x32xf32> to vector<256x32xbf16>
    %c192 = arith.constant 192 : index
    %c0_42 = arith.constant 0 : index
    %45 = vector.load %arg2[%c192, %c0_42] : memref<288x32xbf16, #tpu.memory_space<vmem>>, vector<32x32xbf16>
    %cst_43 = arith.constant dense<0.000000e+00> : vector<256x32xf32>
    %46 = tpu.matmul %44, %45, %cst_43 {dimension_numbers = #tpu.dot_dimension_numbers<[1], [0], [0], [1], [0, 0, 1, 1], [], []>} : vector<256x32xbf16>, vector<32x32xbf16>, vector<256x32xf32> -> vector<256x32xf32>
    %47 = arith.addf %41, %46 : vector<256x32xf32>
    %c2_44 = arith.constant 2 : index
    %c1_45 = arith.constant 1 : index
    %c0_46 = arith.constant 0 : index
    %48 = vector.load %arg5[%c2_44, %c1_45, %c0_46] : memref<18x18x32xf32, #tpu.memory_space<vmem>>, vector<16x16x32xf32>
    %49 = vector.shape_cast %48 : vector<16x16x32xf32> to vector<256x32xf32>
    %50 = arith.truncf %49 : vector<256x32xf32> to vector<256x32xbf16>
    %c224 = arith.constant 224 : index
    %c0_47 = arith.constant 0 : index
    %51 = vector.load %arg2[%c224, %c0_47] : memref<288x32xbf16, #tpu.memory_space<vmem>>, vector<32x32xbf16>
    %cst_48 = arith.constant dense<0.000000e+00> : vector<256x32xf32>
    %52 = tpu.matmul %50, %51, %cst_48 {dimension_numbers = #tpu.dot_dimension_numbers<[1], [0], [0], [1], [0, 0, 1, 1], [], []>} : vector<256x32xbf16>, vector<32x32xbf16>, vector<256x32xf32> -> vector<256x32xf32>
    %53 = arith.addf %47, %52 : vector<256x32xf32>
    %c2_49 = arith.constant 2 : index
    %c2_50 = arith.constant 2 : index
    %c0_51 = arith.constant 0 : index
    %54 = vector.load %arg5[%c2_49, %c2_50, %c0_51] : memref<18x18x32xf32, #tpu.memory_space<vmem>>, vector<16x16x32xf32>
    %55 = vector.shape_cast %54 : vector<16x16x32xf32> to vector<256x32xf32>
    %56 = arith.truncf %55 : vector<256x32xf32> to vector<256x32xbf16>
    %c256 = arith.constant 256 : index
    %c0_52 = arith.constant 0 : index
    %57 = vector.load %arg2[%c256, %c0_52] : memref<288x32xbf16, #tpu.memory_space<vmem>>, vector<32x32xbf16>
    %cst_53 = arith.constant dense<0.000000e+00> : vector<256x32xf32>
    %58 = tpu.matmul %56, %57, %cst_53 {dimension_numbers = #tpu.dot_dimension_numbers<[1], [0], [0], [1], [0, 0, 1, 1], [], []>} : vector<256x32xbf16>, vector<32x32xbf16>, vector<256x32xf32> -> vector<256x32xf32>
    %59 = arith.addf %53, %58 : vector<256x32xf32>
    %c0_54 = arith.constant 0 : index
    %c0_55 = arith.constant 0 : index
    %60 = vector.load %arg3[%c0_54, %c0_55] : memref<256x32xf32, #tpu.memory_space<vmem>>, vector<256x32xf32>
    %61 = arith.addf %59, %60 : vector<256x32xf32>
    %c0_56 = arith.constant 0 : index
    %c0_57 = arith.constant 0 : index
    %62 = vector.load %arg4[%c0_56, %c0_57] : memref<256x32xf32, #tpu.memory_space<vmem>>, vector<256x32xf32>
    tpu.vector_store %arg4[%c0_56, %c0_57], %61 {strides = array<i32>} : memref<256x32xf32, #tpu.memory_space<vmem>>, vector<256x32xf32>,
    return
  }
  func.func @transform_0(%arg0: i32) -> (i32, i32, i32, i32) {
    %c0_i32 = arith.constant 0 : i32
    %c0_i32_0 = arith.constant 0 : i32
    %c0_i32_1 = arith.constant 0 : i32
    %c0_i32_2 = arith.constant 0 : i32
    return %arg0, %c0_i32, %c0_i32_0, %c0_i32_1 : i32, i32, i32, i32
  }
  func.func @transform_1(%arg0: i32) -> (i32, i32) {
    %c0_i32 = arith.constant 0 : i32
    %c0_i32_0 = arith.constant 0 : i32
    %c0_i32_1 = arith.constant 0 : i32
    return %c0_i32, %c0_i32_0 : i32, i32
  }
  func.func @transform_2(%arg0: i32) -> (i32, i32) {
    %c0_i32 = arith.constant 0 : i32
    %c0_i32_0 = arith.constant 0 : i32
    return %arg0, %c0_i32 : i32, i32
  }
  func.func @transform_3(%arg0: i32) -> (i32, i32) {
    %c0_i32 = arith.constant 0 : i32
    %c0_i32_0 = arith.constant 0 : i32
    return %arg0, %c0_i32 : i32, i32
  }
}

module attributes {stable_mosaic.version = 11 : i64} {
  func.func @kernel(%arg0: i32, %arg1: memref<4x9x9x32xbf16, #tpu.memory_space<vmem>>, %arg2: memref<288x64xbf16, #tpu.memory_space<vmem>>, %arg3: memref<32x64xbf16, #tpu.memory_space<vmem>>, %arg4: memref<1x64xf32, #tpu.memory_space<vmem>>, %arg5: memref<1x64xf32, #tpu.memory_space<vmem>>, %arg6: memref<64x64xf32, #tpu.memory_space<vmem>>, %arg7: memref<64x64xf32, #tpu.memory_space<vmem>>) attributes {dimension_semantics = [#tpu.dimension_semantics<parallel>], iteration_bounds = array<i64: 2>, scalar_prefetch = 0 : i64, scratch_operands = 0 : i64, tpu.core_type = #tpu.core_type<tc>, window_params = [{transform_indices = @transform_0, window_bounds = array<i64: 4, 9, 9, 32>}, {pipeline_mode = #tpu.pipeline_mode<synchronous>, transform_indices = @transform_1, window_bounds = array<i64: 288, 64>}, {pipeline_mode = #tpu.pipeline_mode<synchronous>, transform_indices = @transform_2, window_bounds = array<i64: 32, 64>}, {pipeline_mode = #tpu.pipeline_mode<synchronous>, transform_indices = @transform_3, window_bounds = array<i64: 1, 64>}, {pipeline_mode = #tpu.pipeline_mode<synchronous>, transform_indices = @transform_4, window_bounds = array<i64: 1, 64>}, {transform_indices = @transform_5, window_bounds = array<i64: 64, 64>}, {transform_indices = @transform_6, window_bounds = array<i64: 64, 64>}]} {
    %cst = arith.constant 0.000000e+00 : f32
    %0 = vector.broadcast %cst : f32 to vector<64x64xf32>
    %c0 = arith.constant 0 : index
    %c0_0 = arith.constant 0 : index
    %c0_1 = arith.constant 0 : index
    %c0_2 = arith.constant 0 : index
    %1 = vector.load %arg1[%c0, %c0_0, %c0_1, %c0_2] : memref<4x9x9x32xbf16, #tpu.memory_space<vmem>>, vector<1x8x8x32xbf16>
    %2 = vector.shape_cast %1 : vector<1x8x8x32xbf16> to vector<8x8x32xbf16>
    %3 = vector.shape_cast %2 : vector<8x8x32xbf16> to vector<64x32xbf16>
    %c0_3 = arith.constant 0 : index
    %c0_4 = arith.constant 0 : index
    %4 = vector.load %arg2[%c0_3, %c0_4] : memref<288x64xbf16, #tpu.memory_space<vmem>>, vector<32x64xbf16>
    %cst_5 = arith.constant dense<0.000000e+00> : vector<64x64xf32>
    %5 = tpu.matmul %3, %4, %cst_5 {dimension_numbers = #tpu.dot_dimension_numbers<[1], [0], [0], [1], [0, 0, 1, 1], [], []>} : vector<64x32xbf16>, vector<32x64xbf16>, vector<64x64xf32> -> vector<64x64xf32>
    %6 = arith.addf %0, %5 : vector<64x64xf32>
    %c1 = arith.constant 1 : index
    %c0_6 = arith.constant 0 : index
    %c0_7 = arith.constant 0 : index
    %c0_8 = arith.constant 0 : index
    %7 = vector.load %arg1[%c1, %c0_6, %c0_7, %c0_8] : memref<4x9x9x32xbf16, #tpu.memory_space<vmem>>, vector<1x8x8x32xbf16>
    %8 = vector.shape_cast %7 : vector<1x8x8x32xbf16> to vector<8x8x32xbf16>
    %9 = vector.shape_cast %8 : vector<8x8x32xbf16> to vector<64x32xbf16>
    %c32 = arith.constant 32 : index
    %c0_9 = arith.constant 0 : index
    %10 = vector.load %arg2[%c32, %c0_9] : memref<288x64xbf16, #tpu.memory_space<vmem>>, vector<32x64xbf16>
    %cst_10 = arith.constant dense<0.000000e+00> : vector<64x64xf32>
    %11 = tpu.matmul %9, %10, %cst_10 {dimension_numbers = #tpu.dot_dimension_numbers<[1], [0], [0], [1], [0, 0, 1, 1], [], []>} : vector<64x32xbf16>, vector<32x64xbf16>, vector<64x64xf32> -> vector<64x64xf32>
    %12 = arith.addf %6, %11 : vector<64x64xf32>
    %c0_11 = arith.constant 0 : index
    %c0_12 = arith.constant 0 : index
    %c1_13 = arith.constant 1 : index
    %c0_14 = arith.constant 0 : index
    %13 = vector.load %arg1[%c0_11, %c0_12, %c1_13, %c0_14] : memref<4x9x9x32xbf16, #tpu.memory_space<vmem>>, vector<1x8x8x32xbf16>
    %14 = vector.shape_cast %13 : vector<1x8x8x32xbf16> to vector<8x8x32xbf16>
    %15 = vector.shape_cast %14 : vector<8x8x32xbf16> to vector<64x32xbf16>
    %c64 = arith.constant 64 : index
    %c0_15 = arith.constant 0 : index
    %16 = vector.load %arg2[%c64, %c0_15] : memref<288x64xbf16, #tpu.memory_space<vmem>>, vector<32x64xbf16>
    %cst_16 = arith.constant dense<0.000000e+00> : vector<64x64xf32>
    %17 = tpu.matmul %15, %16, %cst_16 {dimension_numbers = #tpu.dot_dimension_numbers<[1], [0], [0], [1], [0, 0, 1, 1], [], []>} : vector<64x32xbf16>, vector<32x64xbf16>, vector<64x64xf32> -> vector<64x64xf32>
    %18 = arith.addf %12, %17 : vector<64x64xf32>
    %c2 = arith.constant 2 : index
    %c0_17 = arith.constant 0 : index
    %c0_18 = arith.constant 0 : index
    %c0_19 = arith.constant 0 : index
    %19 = vector.load %arg1[%c2, %c0_17, %c0_18, %c0_19] : memref<4x9x9x32xbf16, #tpu.memory_space<vmem>>, vector<1x8x8x32xbf16>
    %20 = vector.shape_cast %19 : vector<1x8x8x32xbf16> to vector<8x8x32xbf16>
    %21 = vector.shape_cast %20 : vector<8x8x32xbf16> to vector<64x32xbf16>
    %c96 = arith.constant 96 : index
    %c0_20 = arith.constant 0 : index
    %22 = vector.load %arg2[%c96, %c0_20] : memref<288x64xbf16, #tpu.memory_space<vmem>>, vector<32x64xbf16>
    %cst_21 = arith.constant dense<0.000000e+00> : vector<64x64xf32>
    %23 = tpu.matmul %21, %22, %cst_21 {dimension_numbers = #tpu.dot_dimension_numbers<[1], [0], [0], [1], [0, 0, 1, 1], [], []>} : vector<64x32xbf16>, vector<32x64xbf16>, vector<64x64xf32> -> vector<64x64xf32>
    %24 = arith.addf %18, %23 : vector<64x64xf32>
    %c3 = arith.constant 3 : index
    %c0_22 = arith.constant 0 : index
    %c0_23 = arith.constant 0 : index
    %c0_24 = arith.constant 0 : index
    %25 = vector.load %arg1[%c3, %c0_22, %c0_23, %c0_24] : memref<4x9x9x32xbf16, #tpu.memory_space<vmem>>, vector<1x8x8x32xbf16>
    %26 = vector.shape_cast %25 : vector<1x8x8x32xbf16> to vector<8x8x32xbf16>
    %27 = vector.shape_cast %26 : vector<8x8x32xbf16> to vector<64x32xbf16>
    %c128 = arith.constant 128 : index
    %c0_25 = arith.constant 0 : index
    %28 = vector.load %arg2[%c128, %c0_25] : memref<288x64xbf16, #tpu.memory_space<vmem>>, vector<32x64xbf16>
    %cst_26 = arith.constant dense<0.000000e+00> : vector<64x64xf32>
    %29 = tpu.matmul %27, %28, %cst_26 {dimension_numbers = #tpu.dot_dimension_numbers<[1], [0], [0], [1], [0, 0, 1, 1], [], []>} : vector<64x32xbf16>, vector<32x64xbf16>, vector<64x64xf32> -> vector<64x64xf32>
    %30 = arith.addf %24, %29 : vector<64x64xf32>
    %c2_27 = arith.constant 2 : index
    %c0_28 = arith.constant 0 : index
    %c1_29 = arith.constant 1 : index
    %c0_30 = arith.constant 0 : index
    %31 = vector.load %arg1[%c2_27, %c0_28, %c1_29, %c0_30] : memref<4x9x9x32xbf16, #tpu.memory_space<vmem>>, vector<1x8x8x32xbf16>
    %32 = vector.shape_cast %31 : vector<1x8x8x32xbf16> to vector<8x8x32xbf16>
    %33 = vector.shape_cast %32 : vector<8x8x32xbf16> to vector<64x32xbf16>
    %c160 = arith.constant 160 : index
    %c0_31 = arith.constant 0 : index
    %34 = vector.load %arg2[%c160, %c0_31] : memref<288x64xbf16, #tpu.memory_space<vmem>>, vector<32x64xbf16>
    %cst_32 = arith.constant dense<0.000000e+00> : vector<64x64xf32>
    %35 = tpu.matmul %33, %34, %cst_32 {dimension_numbers = #tpu.dot_dimension_numbers<[1], [0], [0], [1], [0, 0, 1, 1], [], []>} : vector<64x32xbf16>, vector<32x64xbf16>, vector<64x64xf32> -> vector<64x64xf32>
    %36 = arith.addf %30, %35 : vector<64x64xf32>
    %c0_33 = arith.constant 0 : index
    %c1_34 = arith.constant 1 : index
    %c0_35 = arith.constant 0 : index
    %c0_36 = arith.constant 0 : index
    %37 = vector.load %arg1[%c0_33, %c1_34, %c0_35, %c0_36] : memref<4x9x9x32xbf16, #tpu.memory_space<vmem>>, vector<1x8x8x32xbf16>
    %38 = vector.shape_cast %37 : vector<1x8x8x32xbf16> to vector<8x8x32xbf16>
    %39 = vector.shape_cast %38 : vector<8x8x32xbf16> to vector<64x32xbf16>
    %c192 = arith.constant 192 : index
    %c0_37 = arith.constant 0 : index
    %40 = vector.load %arg2[%c192, %c0_37] : memref<288x64xbf16, #tpu.memory_space<vmem>>, vector<32x64xbf16>
    %cst_38 = arith.constant dense<0.000000e+00> : vector<64x64xf32>
    %41 = tpu.matmul %39, %40, %cst_38 {dimension_numbers = #tpu.dot_dimension_numbers<[1], [0], [0], [1], [0, 0, 1, 1], [], []>} : vector<64x32xbf16>, vector<32x64xbf16>, vector<64x64xf32> -> vector<64x64xf32>
    %42 = arith.addf %36, %41 : vector<64x64xf32>
    %c1_39 = arith.constant 1 : index
    %c1_40 = arith.constant 1 : index
    %c0_41 = arith.constant 0 : index
    %c0_42 = arith.constant 0 : index
    %43 = vector.load %arg1[%c1_39, %c1_40, %c0_41, %c0_42] : memref<4x9x9x32xbf16, #tpu.memory_space<vmem>>, vector<1x8x8x32xbf16>
    %44 = vector.shape_cast %43 : vector<1x8x8x32xbf16> to vector<8x8x32xbf16>
    %45 = vector.shape_cast %44 : vector<8x8x32xbf16> to vector<64x32xbf16>
    %c224 = arith.constant 224 : index
    %c0_43 = arith.constant 0 : index
    %46 = vector.load %arg2[%c224, %c0_43] : memref<288x64xbf16, #tpu.memory_space<vmem>>, vector<32x64xbf16>
    %cst_44 = arith.constant dense<0.000000e+00> : vector<64x64xf32>
    %47 = tpu.matmul %45, %46, %cst_44 {dimension_numbers = #tpu.dot_dimension_numbers<[1], [0], [0], [1], [0, 0, 1, 1], [], []>} : vector<64x32xbf16>, vector<32x64xbf16>, vector<64x64xf32> -> vector<64x64xf32>
    %48 = arith.addf %42, %47 : vector<64x64xf32>
    %c0_45 = arith.constant 0 : index
    %c1_46 = arith.constant 1 : index
    %c1_47 = arith.constant 1 : index
    %c0_48 = arith.constant 0 : index
    %49 = vector.load %arg1[%c0_45, %c1_46, %c1_47, %c0_48] : memref<4x9x9x32xbf16, #tpu.memory_space<vmem>>, vector<1x8x8x32xbf16>
    %50 = vector.shape_cast %49 : vector<1x8x8x32xbf16> to vector<8x8x32xbf16>
    %51 = vector.shape_cast %50 : vector<8x8x32xbf16> to vector<64x32xbf16>
    %c256 = arith.constant 256 : index
    %c0_49 = arith.constant 0 : index
    %52 = vector.load %arg2[%c256, %c0_49] : memref<288x64xbf16, #tpu.memory_space<vmem>>, vector<32x64xbf16>
    %cst_50 = arith.constant dense<0.000000e+00> : vector<64x64xf32>
    %53 = tpu.matmul %51, %52, %cst_50 {dimension_numbers = #tpu.dot_dimension_numbers<[1], [0], [0], [1], [0, 0, 1, 1], [], []>} : vector<64x32xbf16>, vector<32x64xbf16>, vector<64x64xf32> -> vector<64x64xf32>
    %54 = arith.addf %48, %53 : vector<64x64xf32>
    %c0_51 = arith.constant 0 : index
    %c0_52 = arith.constant 0 : index
    %55 = vector.load %arg4[%c0_51, %c0_52] : memref<1x64xf32, #tpu.memory_space<vmem>>, vector<1x64xf32>
    %56 = vector.broadcast %55 : vector<1x64xf32> to vector<64x64xf32>
    %57 = arith.mulf %54, %56 : vector<64x64xf32>
    %c0_53 = arith.constant 0 : index
    %c0_54 = arith.constant 0 : index
    %58 = vector.load %arg5[%c0_53, %c0_54] : memref<1x64xf32, #tpu.memory_space<vmem>>, vector<1x64xf32>
    %59 = vector.broadcast %58 : vector<1x64xf32> to vector<64x64xf32>
    %60 = arith.addf %57, %59 : vector<64x64xf32>
    %cst_55 = arith.constant 0.000000e+00 : f32
    %61 = vector.broadcast %cst_55 : f32 to vector<64x64xf32>
    %62 = arith.cmpf oge, %60, %61 : vector<64x64xf32>
    %cst_56 = arith.constant 1.000000e-01 : f32
    %63 = vector.broadcast %cst_56 : f32 to vector<64x64xf32>
    %64 = arith.mulf %63, %60 : vector<64x64xf32>
    %65 = arith.select %62, %60, %64 : vector<64x64xi1>, vector<64x64xf32>
    %c0_57 = arith.constant 0 : index
    %c0_58 = arith.constant 0 : index
    %66 = vector.load %arg6[%c0_57, %c0_58] : memref<64x64xf32, #tpu.memory_space<vmem>>, vector<64x64xf32>
    tpu.vector_store %arg6[%c0_57, %c0_58], %65 {strides = array<i32>} : memref<64x64xf32, #tpu.memory_space<vmem>>, vector<64x64xf32>,
    %c0_59 = arith.constant 0 : index
    %c0_60 = arith.constant 0 : index
    %67 = vector.load %arg3[%c0_59, %c0_60] : memref<32x64xbf16, #tpu.memory_space<vmem>>, vector<32x64xbf16>
    %cst_61 = arith.constant dense<0.000000e+00> : vector<64x64xf32>
    %68 = tpu.matmul %27, %67, %cst_61 {dimension_numbers = #tpu.dot_dimension_numbers<[1], [0], [0], [1], [0, 0, 1, 1], [], []>} : vector<64x32xbf16>, vector<32x64xbf16>, vector<64x64xf32> -> vector<64x64xf32>
    %c0_62 = arith.constant 0 : index
    %c0_63 = arith.constant 0 : index
    %69 = vector.load %arg7[%c0_62, %c0_63] : memref<64x64xf32, #tpu.memory_space<vmem>>, vector<64x64xf32>
    tpu.vector_store %arg7[%c0_62, %c0_63], %68 {strides = array<i32>} : memref<64x64xf32, #tpu.memory_space<vmem>>, vector<64x64xf32>,
    return
  }
  func.func @transform_0(%arg0: i32) -> (i32, i32, i32, i32) {
    %c0_i32 = arith.constant 0 : i32
    %c0_i32_0 = arith.constant 0 : i32
    %c0_i32_1 = arith.constant 0 : i32
    %c0_i32_2 = arith.constant 0 : i32
    return %arg0, %c0_i32, %c0_i32_0, %c0_i32_1 : i32, i32, i32, i32
  }
  func.func @transform_1(%arg0: i32) -> (i32, i32) {
    %c0_i32 = arith.constant 0 : i32
    %c0_i32_0 = arith.constant 0 : i32
    %c0_i32_1 = arith.constant 0 : i32
    return %c0_i32, %c0_i32_0 : i32, i32
  }
  func.func @transform_2(%arg0: i32) -> (i32, i32) {
    %c0_i32 = arith.constant 0 : i32
    %c0_i32_0 = arith.constant 0 : i32
    %c0_i32_1 = arith.constant 0 : i32
    return %c0_i32, %c0_i32_0 : i32, i32
  }
  func.func @transform_3(%arg0: i32) -> (i32, i32) {
    %c0_i32 = arith.constant 0 : i32
    %c0_i32_0 = arith.constant 0 : i32
    %c0_i32_1 = arith.constant 0 : i32
    return %c0_i32, %c0_i32_0 : i32, i32
  }
  func.func @transform_4(%arg0: i32) -> (i32, i32) {
    %c0_i32 = arith.constant 0 : i32
    %c0_i32_0 = arith.constant 0 : i32
    %c0_i32_1 = arith.constant 0 : i32
    return %c0_i32, %c0_i32_0 : i32, i32
  }
  func.func @transform_5(%arg0: i32) -> (i32, i32) {
    %c0_i32 = arith.constant 0 : i32
    %c0_i32_0 = arith.constant 0 : i32
    return %arg0, %c0_i32 : i32, i32
  }
  func.func @transform_6(%arg0: i32) -> (i32, i32) {
    %c0_i32 = arith.constant 0 : i32
    %c0_i32_0 = arith.constant 0 : i32
    return %arg0, %c0_i32 : i32, i32
  }
}

module attributes {stable_mosaic.version = 11 : i64} {
  func.func @kernel(%arg0: i32, %arg1: memref<4x5x5x64xbf16, #tpu.memory_space<vmem>>, %arg2: memref<4x5x5x64xbf16, #tpu.memory_space<vmem>>, %arg3: memref<576x128xbf16, #tpu.memory_space<vmem>>, %arg4: memref<64x128xbf16, #tpu.memory_space<vmem>>, %arg5: memref<1x128xf32, #tpu.memory_space<vmem>>, %arg6: memref<1x128xf32, #tpu.memory_space<vmem>>, %arg7: memref<16x128xf32, #tpu.memory_space<vmem>>, %arg8: memref<16x128xf32, #tpu.memory_space<vmem>>) attributes {dimension_semantics = [#tpu.dimension_semantics<parallel>], iteration_bounds = array<i64: 2>, scalar_prefetch = 0 : i64, scratch_operands = 0 : i64, tpu.core_type = #tpu.core_type<tc>, window_params = [{transform_indices = @transform_0, window_bounds = array<i64: 4, 5, 5, 64>}, {transform_indices = @transform_1, window_bounds = array<i64: 4, 5, 5, 64>}, {pipeline_mode = #tpu.pipeline_mode<synchronous>, transform_indices = @transform_2, window_bounds = array<i64: 576, 128>}, {pipeline_mode = #tpu.pipeline_mode<synchronous>, transform_indices = @transform_3, window_bounds = array<i64: 64, 128>}, {pipeline_mode = #tpu.pipeline_mode<synchronous>, transform_indices = @transform_4, window_bounds = array<i64: 1, 128>}, {pipeline_mode = #tpu.pipeline_mode<synchronous>, transform_indices = @transform_5, window_bounds = array<i64: 1, 128>}, {transform_indices = @transform_6, window_bounds = array<i64: 16, 128>}, {transform_indices = @transform_7, window_bounds = array<i64: 16, 128>}]} {
    %c0 = arith.constant 0 : index
    %c0_0 = arith.constant 0 : index
    %c0_1 = arith.constant 0 : index
    %c0_2 = arith.constant 0 : index
    %0 = vector.load %arg1[%c0, %c0_0, %c0_1, %c0_2] : memref<4x5x5x64xbf16, #tpu.memory_space<vmem>>, vector<4x5x5x64xbf16>
    %1 = arith.extf %0 : vector<4x5x5x64xbf16> to vector<4x5x5x64xf32>
    %cst = arith.constant 0.899999976 : f32
    %2 = vector.broadcast %cst : f32 to vector<4x5x5x64xf32>
    %3 = arith.mulf %2, %1 : vector<4x5x5x64xf32>
    %c0_3 = arith.constant 0 : index
    %c0_4 = arith.constant 0 : index
    %c0_5 = arith.constant 0 : index
    %c0_6 = arith.constant 0 : index
    %4 = vector.load %arg2[%c0_3, %c0_4, %c0_5, %c0_6] : memref<4x5x5x64xbf16, #tpu.memory_space<vmem>>, vector<4x5x5x64xbf16>
    %5 = arith.extf %4 : vector<4x5x5x64xbf16> to vector<4x5x5x64xf32>
    %cst_7 = arith.constant 1.000000e-01 : f32
    %6 = vector.broadcast %cst_7 : f32 to vector<4x5x5x64xf32>
    %7 = arith.mulf %6, %5 : vector<4x5x5x64xf32>
    %8 = arith.addf %3, %7 : vector<4x5x5x64xf32>
    %9 = arith.truncf %8 : vector<4x5x5x64xf32> to vector<4x5x5x64xbf16>
    %cst_8 = arith.constant 0.000000e+00 : f32
    %10 = vector.broadcast %cst_8 : f32 to vector<16x128xf32>
    %11 = vector.extract_strided_slice %9 {offsets = [0, 0, 0, 0], sizes = [1, 4, 4, 64], strides = [1, 1, 1, 1]} : vector<4x5x5x64xbf16> to vector<1x4x4x64xbf16>
    %12 = vector.shape_cast %11 : vector<1x4x4x64xbf16> to vector<4x4x64xbf16>
    %13 = vector.shape_cast %12 : vector<4x4x64xbf16> to vector<16x64xbf16>
    %c0_9 = arith.constant 0 : index
    %c0_10 = arith.constant 0 : index
    %14 = vector.load %arg3[%c0_9, %c0_10] : memref<576x128xbf16, #tpu.memory_space<vmem>>, vector<64x128xbf16>
    %cst_11 = arith.constant dense<0.000000e+00> : vector<16x128xf32>
    %15 = tpu.matmul %13, %14, %cst_11 {dimension_numbers = #tpu.dot_dimension_numbers<[1], [0], [0], [1], [0, 0, 1, 1], [], []>} : vector<16x64xbf16>, vector<64x128xbf16>, vector<16x128xf32> -> vector<16x128xf32>
    %16 = arith.addf %10, %15 : vector<16x128xf32>
    %17 = vector.extract_strided_slice %9 {offsets = [1, 0, 0, 0], sizes = [1, 4, 4, 64], strides = [1, 1, 1, 1]} : vector<4x5x5x64xbf16> to vector<1x4x4x64xbf16>
    %18 = vector.shape_cast %17 : vector<1x4x4x64xbf16> to vector<4x4x64xbf16>
    %19 = vector.shape_cast %18 : vector<4x4x64xbf16> to vector<16x64xbf16>
    %c64 = arith.constant 64 : index
    %c0_12 = arith.constant 0 : index
    %20 = vector.load %arg3[%c64, %c0_12] : memref<576x128xbf16, #tpu.memory_space<vmem>>, vector<64x128xbf16>
    %cst_13 = arith.constant dense<0.000000e+00> : vector<16x128xf32>
    %21 = tpu.matmul %19, %20, %cst_13 {dimension_numbers = #tpu.dot_dimension_numbers<[1], [0], [0], [1], [0, 0, 1, 1], [], []>} : vector<16x64xbf16>, vector<64x128xbf16>, vector<16x128xf32> -> vector<16x128xf32>
    %22 = arith.addf %16, %21 : vector<16x128xf32>
    %23 = vector.extract_strided_slice %9 {offsets = [0, 0, 1, 0], sizes = [1, 4, 4, 64], strides = [1, 1, 1, 1]} : vector<4x5x5x64xbf16> to vector<1x4x4x64xbf16>
    %24 = vector.shape_cast %23 : vector<1x4x4x64xbf16> to vector<4x4x64xbf16>
    %25 = vector.shape_cast %24 : vector<4x4x64xbf16> to vector<16x64xbf16>
    %c128 = arith.constant 128 : index
    %c0_14 = arith.constant 0 : index
    %26 = vector.load %arg3[%c128, %c0_14] : memref<576x128xbf16, #tpu.memory_space<vmem>>, vector<64x128xbf16>
    %cst_15 = arith.constant dense<0.000000e+00> : vector<16x128xf32>
    %27 = tpu.matmul %25, %26, %cst_15 {dimension_numbers = #tpu.dot_dimension_numbers<[1], [0], [0], [1], [0, 0, 1, 1], [], []>} : vector<16x64xbf16>, vector<64x128xbf16>, vector<16x128xf32> -> vector<16x128xf32>
    %28 = arith.addf %22, %27 : vector<16x128xf32>
    %29 = vector.extract_strided_slice %9 {offsets = [2, 0, 0, 0], sizes = [1, 4, 4, 64], strides = [1, 1, 1, 1]} : vector<4x5x5x64xbf16> to vector<1x4x4x64xbf16>
    %30 = vector.shape_cast %29 : vector<1x4x4x64xbf16> to vector<4x4x64xbf16>
    %31 = vector.shape_cast %30 : vector<4x4x64xbf16> to vector<16x64xbf16>
    %c192 = arith.constant 192 : index
    %c0_16 = arith.constant 0 : index
    %32 = vector.load %arg3[%c192, %c0_16] : memref<576x128xbf16, #tpu.memory_space<vmem>>, vector<64x128xbf16>
    %cst_17 = arith.constant dense<0.000000e+00> : vector<16x128xf32>
    %33 = tpu.matmul %31, %32, %cst_17 {dimension_numbers = #tpu.dot_dimension_numbers<[1], [0], [0], [1], [0, 0, 1, 1], [], []>} : vector<16x64xbf16>, vector<64x128xbf16>, vector<16x128xf32> -> vector<16x128xf32>
    %34 = arith.addf %28, %33 : vector<16x128xf32>
    %35 = vector.extract_strided_slice %9 {offsets = [3, 0, 0, 0], sizes = [1, 4, 4, 64], strides = [1, 1, 1, 1]} : vector<4x5x5x64xbf16> to vector<1x4x4x64xbf16>
    %36 = vector.shape_cast %35 : vector<1x4x4x64xbf16> to vector<4x4x64xbf16>
    %37 = vector.shape_cast %36 : vector<4x4x64xbf16> to vector<16x64xbf16>
    %c256 = arith.constant 256 : index
    %c0_18 = arith.constant 0 : index
    %38 = vector.load %arg3[%c256, %c0_18] : memref<576x128xbf16, #tpu.memory_space<vmem>>, vector<64x128xbf16>
    %cst_19 = arith.constant dense<0.000000e+00> : vector<16x128xf32>
    %39 = tpu.matmul %37, %38, %cst_19 {dimension_numbers = #tpu.dot_dimension_numbers<[1], [0], [0], [1], [0, 0, 1, 1], [], []>} : vector<16x64xbf16>, vector<64x128xbf16>, vector<16x128xf32> -> vector<16x128xf32>
    %40 = arith.addf %34, %39 : vector<16x128xf32>
    %41 = vector.extract_strided_slice %9 {offsets = [2, 0, 1, 0], sizes = [1, 4, 4, 64], strides = [1, 1, 1, 1]} : vector<4x5x5x64xbf16> to vector<1x4x4x64xbf16>
    %42 = vector.shape_cast %41 : vector<1x4x4x64xbf16> to vector<4x4x64xbf16>
    %43 = vector.shape_cast %42 : vector<4x4x64xbf16> to vector<16x64xbf16>
    %c320 = arith.constant 320 : index
    %c0_20 = arith.constant 0 : index
    %44 = vector.load %arg3[%c320, %c0_20] : memref<576x128xbf16, #tpu.memory_space<vmem>>, vector<64x128xbf16>
    %cst_21 = arith.constant dense<0.000000e+00> : vector<16x128xf32>
    %45 = tpu.matmul %43, %44, %cst_21 {dimension_numbers = #tpu.dot_dimension_numbers<[1], [0], [0], [1], [0, 0, 1, 1], [], []>} : vector<16x64xbf16>, vector<64x128xbf16>, vector<16x128xf32> -> vector<16x128xf32>
    %46 = arith.addf %40, %45 : vector<16x128xf32>
    %47 = vector.extract_strided_slice %9 {offsets = [0, 1, 0, 0], sizes = [1, 4, 4, 64], strides = [1, 1, 1, 1]} : vector<4x5x5x64xbf16> to vector<1x4x4x64xbf16>
    %48 = vector.shape_cast %47 : vector<1x4x4x64xbf16> to vector<4x4x64xbf16>
    %49 = vector.shape_cast %48 : vector<4x4x64xbf16> to vector<16x64xbf16>
    %c384 = arith.constant 384 : index
    %c0_22 = arith.constant 0 : index
    %50 = vector.load %arg3[%c384, %c0_22] : memref<576x128xbf16, #tpu.memory_space<vmem>>, vector<64x128xbf16>
    %cst_23 = arith.constant dense<0.000000e+00> : vector<16x128xf32>
    %51 = tpu.matmul %49, %50, %cst_23 {dimension_numbers = #tpu.dot_dimension_numbers<[1], [0], [0], [1], [0, 0, 1, 1], [], []>} : vector<16x64xbf16>, vector<64x128xbf16>, vector<16x128xf32> -> vector<16x128xf32>
    %52 = arith.addf %46, %51 : vector<16x128xf32>
    %53 = vector.extract_strided_slice %9 {offsets = [1, 1, 0, 0], sizes = [1, 4, 4, 64], strides = [1, 1, 1, 1]} : vector<4x5x5x64xbf16> to vector<1x4x4x64xbf16>
    %54 = vector.shape_cast %53 : vector<1x4x4x64xbf16> to vector<4x4x64xbf16>
    %55 = vector.shape_cast %54 : vector<4x4x64xbf16> to vector<16x64xbf16>
    %c448 = arith.constant 448 : index
    %c0_24 = arith.constant 0 : index
    %56 = vector.load %arg3[%c448, %c0_24] : memref<576x128xbf16, #tpu.memory_space<vmem>>, vector<64x128xbf16>
    %cst_25 = arith.constant dense<0.000000e+00> : vector<16x128xf32>
    %57 = tpu.matmul %55, %56, %cst_25 {dimension_numbers = #tpu.dot_dimension_numbers<[1], [0], [0], [1], [0, 0, 1, 1], [], []>} : vector<16x64xbf16>, vector<64x128xbf16>, vector<16x128xf32> -> vector<16x128xf32>
    %58 = arith.addf %52, %57 : vector<16x128xf32>
    %59 = vector.extract_strided_slice %9 {offsets = [0, 1, 1, 0], sizes = [1, 4, 4, 64], strides = [1, 1, 1, 1]} : vector<4x5x5x64xbf16> to vector<1x4x4x64xbf16>
    %60 = vector.shape_cast %59 : vector<1x4x4x64xbf16> to vector<4x4x64xbf16>
    %61 = vector.shape_cast %60 : vector<4x4x64xbf16> to vector<16x64xbf16>
    %c512 = arith.constant 512 : index
    %c0_26 = arith.constant 0 : index
    %62 = vector.load %arg3[%c512, %c0_26] : memref<576x128xbf16, #tpu.memory_space<vmem>>, vector<64x128xbf16>
    %cst_27 = arith.constant dense<0.000000e+00> : vector<16x128xf32>
    %63 = tpu.matmul %61, %62, %cst_27 {dimension_numbers = #tpu.dot_dimension_numbers<[1], [0], [0], [1], [0, 0, 1, 1], [], []>} : vector<16x64xbf16>, vector<64x128xbf16>, vector<16x128xf32> -> vector<16x128xf32>
    %64 = arith.addf %58, %63 : vector<16x128xf32>
    %c0_28 = arith.constant 0 : index
    %c0_29 = arith.constant 0 : index
    %65 = vector.load %arg5[%c0_28, %c0_29] : memref<1x128xf32, #tpu.memory_space<vmem>>, vector<1x128xf32>
    %66 = vector.broadcast %65 : vector<1x128xf32> to vector<16x128xf32>
    %67 = arith.mulf %64, %66 : vector<16x128xf32>
    %c0_30 = arith.constant 0 : index
    %c0_31 = arith.constant 0 : index
    %68 = vector.load %arg6[%c0_30, %c0_31] : memref<1x128xf32, #tpu.memory_space<vmem>>, vector<1x128xf32>
    %69 = vector.broadcast %68 : vector<1x128xf32> to vector<16x128xf32>
    %70 = arith.addf %67, %69 : vector<16x128xf32>
    %cst_32 = arith.constant 0.000000e+00 : f32
    %71 = vector.broadcast %cst_32 : f32 to vector<16x128xf32>
    %72 = arith.cmpf oge, %70, %71 : vector<16x128xf32>
    %cst_33 = arith.constant 1.000000e-01 : f32
    %73 = vector.broadcast %cst_33 : f32 to vector<16x128xf32>
    %74 = arith.mulf %73, %70 : vector<16x128xf32>
    %75 = arith.select %72, %70, %74 : vector<16x128xi1>, vector<16x128xf32>
    %c0_34 = arith.constant 0 : index
    %c0_35 = arith.constant 0 : index
    %76 = vector.load %arg7[%c0_34, %c0_35] : memref<16x128xf32, #tpu.memory_space<vmem>>, vector<16x128xf32>
    tpu.vector_store %arg7[%c0_34, %c0_35], %75 {strides = array<i32>} : memref<16x128xf32, #tpu.memory_space<vmem>>, vector<16x128xf32>,
    %c0_36 = arith.constant 0 : index
    %c0_37 = arith.constant 0 : index
    %77 = vector.load %arg4[%c0_36, %c0_37] : memref<64x128xbf16, #tpu.memory_space<vmem>>, vector<64x128xbf16>
    %cst_38 = arith.constant dense<0.000000e+00> : vector<16x128xf32>
    %78 = tpu.matmul %37, %77, %cst_38 {dimension_numbers = #tpu.dot_dimension_numbers<[1], [0], [0], [1], [0, 0, 1, 1], [], []>} : vector<16x64xbf16>, vector<64x128xbf16>, vector<16x128xf32> -> vector<16x128xf32>
    %c0_39 = arith.constant 0 : index
    %c0_40 = arith.constant 0 : index
    %79 = vector.load %arg8[%c0_39, %c0_40] : memref<16x128xf32, #tpu.memory_space<vmem>>, vector<16x128xf32>
    tpu.vector_store %arg8[%c0_39, %c0_40], %78 {strides = array<i32>} : memref<16x128xf32, #tpu.memory_space<vmem>>, vector<16x128xf32>,
    return
  }
  func.func @transform_0(%arg0: i32) -> (i32, i32, i32, i32) {
    %c0_i32 = arith.constant 0 : i32
    %c0_i32_0 = arith.constant 0 : i32
    %c0_i32_1 = arith.constant 0 : i32
    %c0_i32_2 = arith.constant 0 : i32
    return %arg0, %c0_i32, %c0_i32_0, %c0_i32_1 : i32, i32, i32, i32
  }
  func.func @transform_1(%arg0: i32) -> (i32, i32, i32, i32) {
    %c1_i32 = arith.constant 1 : i32
    %0 = arith.addi %arg0, %c1_i32 : i32
    %c2_i32 = arith.constant 2 : i32
    %c0_i32 = arith.constant 0 : i32
    %1 = arith.cmpi eq, %c2_i32, %c0_i32 : i32
    %c1_i32_0 = arith.constant 1 : i32
    %2 = arith.select %1, %c1_i32_0, %c2_i32 : i32
    %3 = arith.remsi %0, %2 : i32
    %c0_i32_1 = arith.constant 0 : i32
    %4 = arith.cmpi ne, %3, %c0_i32_1 : i32
    %c0_i32_2 = arith.constant 0 : i32
    %5 = arith.cmpi slt, %3, %c0_i32_2 : i32
    %c0_i32_3 = arith.constant 0 : i32
    %6 = arith.cmpi slt, %2, %c0_i32_3 : i32
    %7 = arith.xori %5, %6 : i1
    %8 = arith.andi %7, %4 : i1
    %9 = arith.addi %3, %2 : i32
    %10 = arith.select %8, %9, %3 : i32
    %c0_i32_4 = arith.constant 0 : i32
    %c0_i32_5 = arith.constant 0 : i32
    %c0_i32_6 = arith.constant 0 : i32
    %c0_i32_7 = arith.constant 0 : i32
    return %10, %c0_i32_4, %c0_i32_5, %c0_i32_6 : i32, i32, i32, i32
  }
  func.func @transform_2(%arg0: i32) -> (i32, i32) {
    %c0_i32 = arith.constant 0 : i32
    %c0_i32_0 = arith.constant 0 : i32
    %c0_i32_1 = arith.constant 0 : i32
    return %c0_i32, %c0_i32_0 : i32, i32
  }
  func.func @transform_3(%arg0: i32) -> (i32, i32) {
    %c0_i32 = arith.constant 0 : i32
    %c0_i32_0 = arith.constant 0 : i32
    %c0_i32_1 = arith.constant 0 : i32
    return %c0_i32, %c0_i32_0 : i32, i32
  }
  func.func @transform_4(%arg0: i32) -> (i32, i32) {
    %c0_i32 = arith.constant 0 : i32
    %c0_i32_0 = arith.constant 0 : i32
    %c0_i32_1 = arith.constant 0 : i32
    return %c0_i32, %c0_i32_0 : i32, i32
  }
  func.func @transform_5(%arg0: i32) -> (i32, i32) {
    %c0_i32 = arith.constant 0 : i32
    %c0_i32_0 = arith.constant 0 : i32
    %c0_i32_1 = arith.constant 0 : i32
    return %c0_i32, %c0_i32_0 : i32, i32
  }
  func.func @transform_6(%arg0: i32) -> (i32, i32) {
    %c0_i32 = arith.constant 0 : i32
    %c0_i32_0 = arith.constant 0 : i32
    return %arg0, %c0_i32 : i32, i32
  }
  func.func @transform_7(%arg0: i32) -> (i32, i32) {
    %c0_i32 = arith.constant 0 : i32
    %c0_i32_0 = arith.constant 0 : i32
    return %arg0, %c0_i32 : i32, i32
  }
}

module attributes {stable_mosaic.version = 11 : i64} {
  func.func @kernel(%arg0: i32, %arg1: memref<1x8x8x64xf32, #tpu.memory_space<vmem>>, %arg2: memref<576x64xbf16, #tpu.memory_space<vmem>>, %arg3: memref<64x64xf32, #tpu.memory_space<vmem>>, %arg4: memref<64x64xf32, #tpu.memory_space<vmem>>, %arg5: memref<10x10x64xf32, #tpu.memory_space<vmem>>) attributes {dimension_semantics = [#tpu.dimension_semantics<parallel>], iteration_bounds = array<i64: 2>, scalar_prefetch = 0 : i64, scratch_operands = 1 : i64, tpu.core_type = #tpu.core_type<tc>, window_params = [{transform_indices = @transform_0, window_bounds = array<i64: 1, 8, 8, 64>}, {pipeline_mode = #tpu.pipeline_mode<synchronous>, transform_indices = @transform_1, window_bounds = array<i64: 576, 64>}, {transform_indices = @transform_2, window_bounds = array<i64: 64, 64>}, {transform_indices = @transform_3, window_bounds = array<i64: 64, 64>}]} {
    %cst = arith.constant 0.000000e+00 : f32
    %0 = vector.broadcast %cst : f32 to vector<10x10x64xf32>
    %c0 = arith.constant 0 : index
    %c0_0 = arith.constant 0 : index
    %c0_1 = arith.constant 0 : index
    %1 = vector.load %arg5[%c0, %c0_0, %c0_1] : memref<10x10x64xf32, #tpu.memory_space<vmem>>, vector<10x10x64xf32>
    tpu.vector_store %arg5[%c0, %c0_0, %c0_1], %0 {strides = array<i32>} : memref<10x10x64xf32, #tpu.memory_space<vmem>>, vector<10x10x64xf32>,
    %c0_2 = arith.constant 0 : index
    %c0_3 = arith.constant 0 : index
    %c0_4 = arith.constant 0 : index
    %c0_5 = arith.constant 0 : index
    %2 = vector.load %arg1[%c0_2, %c0_3, %c0_4, %c0_5] : memref<1x8x8x64xf32, #tpu.memory_space<vmem>>, vector<1x8x8x64xf32>
    %3 = vector.shape_cast %2 : vector<1x8x8x64xf32> to vector<8x8x64xf32>
    %c1 = arith.constant 1 : index
    %c1_6 = arith.constant 1 : index
    %c0_7 = arith.constant 0 : index
    %4 = vector.load %arg5[%c1, %c1_6, %c0_7] : memref<10x10x64xf32, #tpu.memory_space<vmem>>, vector<8x8x64xf32>
    tpu.vector_store %arg5[%c1, %c1_6, %c0_7], %3 {strides = array<i32>} : memref<10x10x64xf32, #tpu.memory_space<vmem>>, vector<8x8x64xf32>,
    %cst_8 = arith.constant 0.000000e+00 : f32
    %5 = vector.broadcast %cst_8 : f32 to vector<64x64xf32>
    %c0_9 = arith.constant 0 : index
    %c0_10 = arith.constant 0 : index
    %c0_11 = arith.constant 0 : index
    %6 = vector.load %arg5[%c0_9, %c0_10, %c0_11] : memref<10x10x64xf32, #tpu.memory_space<vmem>>, vector<8x8x64xf32>
    %7 = vector.shape_cast %6 : vector<8x8x64xf32> to vector<64x64xf32>
    %8 = arith.truncf %7 : vector<64x64xf32> to vector<64x64xbf16>
    %c0_12 = arith.constant 0 : index
    %c0_13 = arith.constant 0 : index
    %9 = vector.load %arg2[%c0_12, %c0_13] : memref<576x64xbf16, #tpu.memory_space<vmem>>, vector<64x64xbf16>
    %cst_14 = arith.constant dense<0.000000e+00> : vector<64x64xf32>
    %10 = tpu.matmul %8, %9, %cst_14 {dimension_numbers = #tpu.dot_dimension_numbers<[1], [0], [0], [1], [0, 0, 1, 1], [], []>} : vector<64x64xbf16>, vector<64x64xbf16>, vector<64x64xf32> -> vector<64x64xf32>
    %11 = arith.addf %5, %10 : vector<64x64xf32>
    %c0_15 = arith.constant 0 : index
    %c1_16 = arith.constant 1 : index
    %c0_17 = arith.constant 0 : index
    %12 = vector.load %arg5[%c0_15, %c1_16, %c0_17] : memref<10x10x64xf32, #tpu.memory_space<vmem>>, vector<8x8x64xf32>
    %13 = vector.shape_cast %12 : vector<8x8x64xf32> to vector<64x64xf32>
    %14 = arith.truncf %13 : vector<64x64xf32> to vector<64x64xbf16>
    %c64 = arith.constant 64 : index
    %c0_18 = arith.constant 0 : index
    %15 = vector.load %arg2[%c64, %c0_18] : memref<576x64xbf16, #tpu.memory_space<vmem>>, vector<64x64xbf16>
    %cst_19 = arith.constant dense<0.000000e+00> : vector<64x64xf32>
    %16 = tpu.matmul %14, %15, %cst_19 {dimension_numbers = #tpu.dot_dimension_numbers<[1], [0], [0], [1], [0, 0, 1, 1], [], []>} : vector<64x64xbf16>, vector<64x64xbf16>, vector<64x64xf32> -> vector<64x64xf32>
    %17 = arith.addf %11, %16 : vector<64x64xf32>
    %c0_20 = arith.constant 0 : index
    %c2 = arith.constant 2 : index
    %c0_21 = arith.constant 0 : index
    %18 = vector.load %arg5[%c0_20, %c2, %c0_21] : memref<10x10x64xf32, #tpu.memory_space<vmem>>, vector<8x8x64xf32>
    %19 = vector.shape_cast %18 : vector<8x8x64xf32> to vector<64x64xf32>
    %20 = arith.truncf %19 : vector<64x64xf32> to vector<64x64xbf16>
    %c128 = arith.constant 128 : index
    %c0_22 = arith.constant 0 : index
    %21 = vector.load %arg2[%c128, %c0_22] : memref<576x64xbf16, #tpu.memory_space<vmem>>, vector<64x64xbf16>
    %cst_23 = arith.constant dense<0.000000e+00> : vector<64x64xf32>
    %22 = tpu.matmul %20, %21, %cst_23 {dimension_numbers = #tpu.dot_dimension_numbers<[1], [0], [0], [1], [0, 0, 1, 1], [], []>} : vector<64x64xbf16>, vector<64x64xbf16>, vector<64x64xf32> -> vector<64x64xf32>
    %23 = arith.addf %17, %22 : vector<64x64xf32>
    %c1_24 = arith.constant 1 : index
    %c0_25 = arith.constant 0 : index
    %c0_26 = arith.constant 0 : index
    %24 = vector.load %arg5[%c1_24, %c0_25, %c0_26] : memref<10x10x64xf32, #tpu.memory_space<vmem>>, vector<8x8x64xf32>
    %25 = vector.shape_cast %24 : vector<8x8x64xf32> to vector<64x64xf32>
    %26 = arith.truncf %25 : vector<64x64xf32> to vector<64x64xbf16>
    %c192 = arith.constant 192 : index
    %c0_27 = arith.constant 0 : index
    %27 = vector.load %arg2[%c192, %c0_27] : memref<576x64xbf16, #tpu.memory_space<vmem>>, vector<64x64xbf16>
    %cst_28 = arith.constant dense<0.000000e+00> : vector<64x64xf32>
    %28 = tpu.matmul %26, %27, %cst_28 {dimension_numbers = #tpu.dot_dimension_numbers<[1], [0], [0], [1], [0, 0, 1, 1], [], []>} : vector<64x64xbf16>, vector<64x64xbf16>, vector<64x64xf32> -> vector<64x64xf32>
    %29 = arith.addf %23, %28 : vector<64x64xf32>
    %c1_29 = arith.constant 1 : index
    %c1_30 = arith.constant 1 : index
    %c0_31 = arith.constant 0 : index
    %30 = vector.load %arg5[%c1_29, %c1_30, %c0_31] : memref<10x10x64xf32, #tpu.memory_space<vmem>>, vector<8x8x64xf32>
    %31 = vector.shape_cast %30 : vector<8x8x64xf32> to vector<64x64xf32>
    %32 = arith.truncf %31 : vector<64x64xf32> to vector<64x64xbf16>
    %c256 = arith.constant 256 : index
    %c0_32 = arith.constant 0 : index
    %33 = vector.load %arg2[%c256, %c0_32] : memref<576x64xbf16, #tpu.memory_space<vmem>>, vector<64x64xbf16>
    %cst_33 = arith.constant dense<0.000000e+00> : vector<64x64xf32>
    %34 = tpu.matmul %32, %33, %cst_33 {dimension_numbers = #tpu.dot_dimension_numbers<[1], [0], [0], [1], [0, 0, 1, 1], [], []>} : vector<64x64xbf16>, vector<64x64xbf16>, vector<64x64xf32> -> vector<64x64xf32>
    %35 = arith.addf %29, %34 : vector<64x64xf32>
    %c1_34 = arith.constant 1 : index
    %c2_35 = arith.constant 2 : index
    %c0_36 = arith.constant 0 : index
    %36 = vector.load %arg5[%c1_34, %c2_35, %c0_36] : memref<10x10x64xf32, #tpu.memory_space<vmem>>, vector<8x8x64xf32>
    %37 = vector.shape_cast %36 : vector<8x8x64xf32> to vector<64x64xf32>
    %38 = arith.truncf %37 : vector<64x64xf32> to vector<64x64xbf16>
    %c320 = arith.constant 320 : index
    %c0_37 = arith.constant 0 : index
    %39 = vector.load %arg2[%c320, %c0_37] : memref<576x64xbf16, #tpu.memory_space<vmem>>, vector<64x64xbf16>
    %cst_38 = arith.constant dense<0.000000e+00> : vector<64x64xf32>
    %40 = tpu.matmul %38, %39, %cst_38 {dimension_numbers = #tpu.dot_dimension_numbers<[1], [0], [0], [1], [0, 0, 1, 1], [], []>} : vector<64x64xbf16>, vector<64x64xbf16>, vector<64x64xf32> -> vector<64x64xf32>
    %41 = arith.addf %35, %40 : vector<64x64xf32>
    %c2_39 = arith.constant 2 : index
    %c0_40 = arith.constant 0 : index
    %c0_41 = arith.constant 0 : index
    %42 = vector.load %arg5[%c2_39, %c0_40, %c0_41] : memref<10x10x64xf32, #tpu.memory_space<vmem>>, vector<8x8x64xf32>
    %43 = vector.shape_cast %42 : vector<8x8x64xf32> to vector<64x64xf32>
    %44 = arith.truncf %43 : vector<64x64xf32> to vector<64x64xbf16>
    %c384 = arith.constant 384 : index
    %c0_42 = arith.constant 0 : index
    %45 = vector.load %arg2[%c384, %c0_42] : memref<576x64xbf16, #tpu.memory_space<vmem>>, vector<64x64xbf16>
    %cst_43 = arith.constant dense<0.000000e+00> : vector<64x64xf32>
    %46 = tpu.matmul %44, %45, %cst_43 {dimension_numbers = #tpu.dot_dimension_numbers<[1], [0], [0], [1], [0, 0, 1, 1], [], []>} : vector<64x64xbf16>, vector<64x64xbf16>, vector<64x64xf32> -> vector<64x64xf32>
    %47 = arith.addf %41, %46 : vector<64x64xf32>
    %c2_44 = arith.constant 2 : index
    %c1_45 = arith.constant 1 : index
    %c0_46 = arith.constant 0 : index
    %48 = vector.load %arg5[%c2_44, %c1_45, %c0_46] : memref<10x10x64xf32, #tpu.memory_space<vmem>>, vector<8x8x64xf32>
    %49 = vector.shape_cast %48 : vector<8x8x64xf32> to vector<64x64xf32>
    %50 = arith.truncf %49 : vector<64x64xf32> to vector<64x64xbf16>
    %c448 = arith.constant 448 : index
    %c0_47 = arith.constant 0 : index
    %51 = vector.load %arg2[%c448, %c0_47] : memref<576x64xbf16, #tpu.memory_space<vmem>>, vector<64x64xbf16>
    %cst_48 = arith.constant dense<0.000000e+00> : vector<64x64xf32>
    %52 = tpu.matmul %50, %51, %cst_48 {dimension_numbers = #tpu.dot_dimension_numbers<[1], [0], [0], [1], [0, 0, 1, 1], [], []>} : vector<64x64xbf16>, vector<64x64xbf16>, vector<64x64xf32> -> vector<64x64xf32>
    %53 = arith.addf %47, %52 : vector<64x64xf32>
    %c2_49 = arith.constant 2 : index
    %c2_50 = arith.constant 2 : index
    %c0_51 = arith.constant 0 : index
    %54 = vector.load %arg5[%c2_49, %c2_50, %c0_51] : memref<10x10x64xf32, #tpu.memory_space<vmem>>, vector<8x8x64xf32>
    %55 = vector.shape_cast %54 : vector<8x8x64xf32> to vector<64x64xf32>
    %56 = arith.truncf %55 : vector<64x64xf32> to vector<64x64xbf16>
    %c512 = arith.constant 512 : index
    %c0_52 = arith.constant 0 : index
    %57 = vector.load %arg2[%c512, %c0_52] : memref<576x64xbf16, #tpu.memory_space<vmem>>, vector<64x64xbf16>
    %cst_53 = arith.constant dense<0.000000e+00> : vector<64x64xf32>
    %58 = tpu.matmul %56, %57, %cst_53 {dimension_numbers = #tpu.dot_dimension_numbers<[1], [0], [0], [1], [0, 0, 1, 1], [], []>} : vector<64x64xbf16>, vector<64x64xbf16>, vector<64x64xf32> -> vector<64x64xf32>
    %59 = arith.addf %53, %58 : vector<64x64xf32>
    %c0_54 = arith.constant 0 : index
    %c0_55 = arith.constant 0 : index
    %60 = vector.load %arg3[%c0_54, %c0_55] : memref<64x64xf32, #tpu.memory_space<vmem>>, vector<64x64xf32>
    %61 = arith.addf %59, %60 : vector<64x64xf32>
    %c0_56 = arith.constant 0 : index
    %c0_57 = arith.constant 0 : index
    %62 = vector.load %arg4[%c0_56, %c0_57] : memref<64x64xf32, #tpu.memory_space<vmem>>, vector<64x64xf32>
    tpu.vector_store %arg4[%c0_56, %c0_57], %61 {strides = array<i32>} : memref<64x64xf32, #tpu.memory_space<vmem>>, vector<64x64xf32>,
    return
  }
  func.func @transform_0(%arg0: i32) -> (i32, i32, i32, i32) {
    %c0_i32 = arith.constant 0 : i32
    %c0_i32_0 = arith.constant 0 : i32
    %c0_i32_1 = arith.constant 0 : i32
    %c0_i32_2 = arith.constant 0 : i32
    return %arg0, %c0_i32, %c0_i32_0, %c0_i32_1 : i32, i32, i32, i32
  }
  func.func @transform_1(%arg0: i32) -> (i32, i32) {
    %c0_i32 = arith.constant 0 : i32
    %c0_i32_0 = arith.constant 0 : i32
    %c0_i32_1 = arith.constant 0 : i32
    return %c0_i32, %c0_i32_0 : i32, i32
  }
  func.func @transform_2(%arg0: i32) -> (i32, i32) {
    %c0_i32 = arith.constant 0 : i32
    %c0_i32_0 = arith.constant 0 : i32
    return %arg0, %c0_i32 : i32, i32
  }
  func.func @transform_3(%arg0: i32) -> (i32, i32) {
    %c0_i32 = arith.constant 0 : i32
    %c0_i32_0 = arith.constant 0 : i32
    return %arg0, %c0_i32 : i32, i32
  }
}

module attributes {stable_mosaic.version = 11 : i64} {
  func.func @kernel(%arg0: i32, %arg1: memref<1x4x4x128xf32, #tpu.memory_space<vmem>>, %arg2: memref<1152x128xbf16, #tpu.memory_space<vmem>>, %arg3: memref<16x128xf32, #tpu.memory_space<vmem>>, %arg4: memref<16x128xf32, #tpu.memory_space<vmem>>, %arg5: memref<6x6x128xf32, #tpu.memory_space<vmem>>) attributes {dimension_semantics = [#tpu.dimension_semantics<parallel>], iteration_bounds = array<i64: 2>, scalar_prefetch = 0 : i64, scratch_operands = 1 : i64, tpu.core_type = #tpu.core_type<tc>, window_params = [{transform_indices = @transform_0, window_bounds = array<i64: 1, 4, 4, 128>}, {pipeline_mode = #tpu.pipeline_mode<synchronous>, transform_indices = @transform_1, window_bounds = array<i64: 1152, 128>}, {transform_indices = @transform_2, window_bounds = array<i64: 16, 128>}, {transform_indices = @transform_3, window_bounds = array<i64: 16, 128>}]} {
    %cst = arith.constant 0.000000e+00 : f32
    %0 = vector.broadcast %cst : f32 to vector<6x6x128xf32>
    %c0 = arith.constant 0 : index
    %c0_0 = arith.constant 0 : index
    %c0_1 = arith.constant 0 : index
    %1 = vector.load %arg5[%c0, %c0_0, %c0_1] : memref<6x6x128xf32, #tpu.memory_space<vmem>>, vector<6x6x128xf32>
    tpu.vector_store %arg5[%c0, %c0_0, %c0_1], %0 {strides = array<i32>} : memref<6x6x128xf32, #tpu.memory_space<vmem>>, vector<6x6x128xf32>,
    %c0_2 = arith.constant 0 : index
    %c0_3 = arith.constant 0 : index
    %c0_4 = arith.constant 0 : index
    %c0_5 = arith.constant 0 : index
    %2 = vector.load %arg1[%c0_2, %c0_3, %c0_4, %c0_5] : memref<1x4x4x128xf32, #tpu.memory_space<vmem>>, vector<1x4x4x128xf32>
    %3 = vector.shape_cast %2 : vector<1x4x4x128xf32> to vector<4x4x128xf32>
    %c1 = arith.constant 1 : index
    %c1_6 = arith.constant 1 : index
    %c0_7 = arith.constant 0 : index
    %4 = vector.load %arg5[%c1, %c1_6, %c0_7] : memref<6x6x128xf32, #tpu.memory_space<vmem>>, vector<4x4x128xf32>
    tpu.vector_store %arg5[%c1, %c1_6, %c0_7], %3 {strides = array<i32>} : memref<6x6x128xf32, #tpu.memory_space<vmem>>, vector<4x4x128xf32>,
    %cst_8 = arith.constant 0.000000e+00 : f32
    %5 = vector.broadcast %cst_8 : f32 to vector<16x128xf32>
    %c0_9 = arith.constant 0 : index
    %c0_10 = arith.constant 0 : index
    %c0_11 = arith.constant 0 : index
    %6 = vector.load %arg5[%c0_9, %c0_10, %c0_11] : memref<6x6x128xf32, #tpu.memory_space<vmem>>, vector<4x4x128xf32>
    %7 = vector.shape_cast %6 : vector<4x4x128xf32> to vector<16x128xf32>
    %8 = arith.truncf %7 : vector<16x128xf32> to vector<16x128xbf16>
    %c0_12 = arith.constant 0 : index
    %c0_13 = arith.constant 0 : index
    %9 = vector.load %arg2[%c0_12, %c0_13] : memref<1152x128xbf16, #tpu.memory_space<vmem>>, vector<128x128xbf16>
    %cst_14 = arith.constant dense<0.000000e+00> : vector<16x128xf32>
    %10 = tpu.matmul %8, %9, %cst_14 {dimension_numbers = #tpu.dot_dimension_numbers<[1], [0], [0], [1], [0, 0, 1, 1], [], []>} : vector<16x128xbf16>, vector<128x128xbf16>, vector<16x128xf32> -> vector<16x128xf32>
    %11 = arith.addf %5, %10 : vector<16x128xf32>
    %c0_15 = arith.constant 0 : index
    %c1_16 = arith.constant 1 : index
    %c0_17 = arith.constant 0 : index
    %12 = vector.load %arg5[%c0_15, %c1_16, %c0_17] : memref<6x6x128xf32, #tpu.memory_space<vmem>>, vector<4x4x128xf32>
    %13 = vector.shape_cast %12 : vector<4x4x128xf32> to vector<16x128xf32>
    %14 = arith.truncf %13 : vector<16x128xf32> to vector<16x128xbf16>
    %c128 = arith.constant 128 : index
    %c0_18 = arith.constant 0 : index
    %15 = vector.load %arg2[%c128, %c0_18] : memref<1152x128xbf16, #tpu.memory_space<vmem>>, vector<128x128xbf16>
    %cst_19 = arith.constant dense<0.000000e+00> : vector<16x128xf32>
    %16 = tpu.matmul %14, %15, %cst_19 {dimension_numbers = #tpu.dot_dimension_numbers<[1], [0], [0], [1], [0, 0, 1, 1], [], []>} : vector<16x128xbf16>, vector<128x128xbf16>, vector<16x128xf32> -> vector<16x128xf32>
    %17 = arith.addf %11, %16 : vector<16x128xf32>
    %c0_20 = arith.constant 0 : index
    %c2 = arith.constant 2 : index
    %c0_21 = arith.constant 0 : index
    %18 = vector.load %arg5[%c0_20, %c2, %c0_21] : memref<6x6x128xf32, #tpu.memory_space<vmem>>, vector<4x4x128xf32>
    %19 = vector.shape_cast %18 : vector<4x4x128xf32> to vector<16x128xf32>
    %20 = arith.truncf %19 : vector<16x128xf32> to vector<16x128xbf16>
    %c256 = arith.constant 256 : index
    %c0_22 = arith.constant 0 : index
    %21 = vector.load %arg2[%c256, %c0_22] : memref<1152x128xbf16, #tpu.memory_space<vmem>>, vector<128x128xbf16>
    %cst_23 = arith.constant dense<0.000000e+00> : vector<16x128xf32>
    %22 = tpu.matmul %20, %21, %cst_23 {dimension_numbers = #tpu.dot_dimension_numbers<[1], [0], [0], [1], [0, 0, 1, 1], [], []>} : vector<16x128xbf16>, vector<128x128xbf16>, vector<16x128xf32> -> vector<16x128xf32>
    %23 = arith.addf %17, %22 : vector<16x128xf32>
    %c1_24 = arith.constant 1 : index
    %c0_25 = arith.constant 0 : index
    %c0_26 = arith.constant 0 : index
    %24 = vector.load %arg5[%c1_24, %c0_25, %c0_26] : memref<6x6x128xf32, #tpu.memory_space<vmem>>, vector<4x4x128xf32>
    %25 = vector.shape_cast %24 : vector<4x4x128xf32> to vector<16x128xf32>
    %26 = arith.truncf %25 : vector<16x128xf32> to vector<16x128xbf16>
    %c384 = arith.constant 384 : index
    %c0_27 = arith.constant 0 : index
    %27 = vector.load %arg2[%c384, %c0_27] : memref<1152x128xbf16, #tpu.memory_space<vmem>>, vector<128x128xbf16>
    %cst_28 = arith.constant dense<0.000000e+00> : vector<16x128xf32>
    %28 = tpu.matmul %26, %27, %cst_28 {dimension_numbers = #tpu.dot_dimension_numbers<[1], [0], [0], [1], [0, 0, 1, 1], [], []>} : vector<16x128xbf16>, vector<128x128xbf16>, vector<16x128xf32> -> vector<16x128xf32>
    %29 = arith.addf %23, %28 : vector<16x128xf32>
    %c1_29 = arith.constant 1 : index
    %c1_30 = arith.constant 1 : index
    %c0_31 = arith.constant 0 : index
    %30 = vector.load %arg5[%c1_29, %c1_30, %c0_31] : memref<6x6x128xf32, #tpu.memory_space<vmem>>, vector<4x4x128xf32>
    %31 = vector.shape_cast %30 : vector<4x4x128xf32> to vector<16x128xf32>
    %32 = arith.truncf %31 : vector<16x128xf32> to vector<16x128xbf16>
    %c512 = arith.constant 512 : index
    %c0_32 = arith.constant 0 : index
    %33 = vector.load %arg2[%c512, %c0_32] : memref<1152x128xbf16, #tpu.memory_space<vmem>>, vector<128x128xbf16>
    %cst_33 = arith.constant dense<0.000000e+00> : vector<16x128xf32>
    %34 = tpu.matmul %32, %33, %cst_33 {dimension_numbers = #tpu.dot_dimension_numbers<[1], [0], [0], [1], [0, 0, 1, 1], [], []>} : vector<16x128xbf16>, vector<128x128xbf16>, vector<16x128xf32> -> vector<16x128xf32>
    %35 = arith.addf %29, %34 : vector<16x128xf32>
    %c1_34 = arith.constant 1 : index
    %c2_35 = arith.constant 2 : index
    %c0_36 = arith.constant 0 : index
    %36 = vector.load %arg5[%c1_34, %c2_35, %c0_36] : memref<6x6x128xf32, #tpu.memory_space<vmem>>, vector<4x4x128xf32>
    %37 = vector.shape_cast %36 : vector<4x4x128xf32> to vector<16x128xf32>
    %38 = arith.truncf %37 : vector<16x128xf32> to vector<16x128xbf16>
    %c640 = arith.constant 640 : index
    %c0_37 = arith.constant 0 : index
    %39 = vector.load %arg2[%c640, %c0_37] : memref<1152x128xbf16, #tpu.memory_space<vmem>>, vector<128x128xbf16>
    %cst_38 = arith.constant dense<0.000000e+00> : vector<16x128xf32>
    %40 = tpu.matmul %38, %39, %cst_38 {dimension_numbers = #tpu.dot_dimension_numbers<[1], [0], [0], [1], [0, 0, 1, 1], [], []>} : vector<16x128xbf16>, vector<128x128xbf16>, vector<16x128xf32> -> vector<16x128xf32>
    %41 = arith.addf %35, %40 : vector<16x128xf32>
    %c2_39 = arith.constant 2 : index
    %c0_40 = arith.constant 0 : index
    %c0_41 = arith.constant 0 : index
    %42 = vector.load %arg5[%c2_39, %c0_40, %c0_41] : memref<6x6x128xf32, #tpu.memory_space<vmem>>, vector<4x4x128xf32>
    %43 = vector.shape_cast %42 : vector<4x4x128xf32> to vector<16x128xf32>
    %44 = arith.truncf %43 : vector<16x128xf32> to vector<16x128xbf16>
    %c768 = arith.constant 768 : index
    %c0_42 = arith.constant 0 : index
    %45 = vector.load %arg2[%c768, %c0_42] : memref<1152x128xbf16, #tpu.memory_space<vmem>>, vector<128x128xbf16>
    %cst_43 = arith.constant dense<0.000000e+00> : vector<16x128xf32>
    %46 = tpu.matmul %44, %45, %cst_43 {dimension_numbers = #tpu.dot_dimension_numbers<[1], [0], [0], [1], [0, 0, 1, 1], [], []>} : vector<16x128xbf16>, vector<128x128xbf16>, vector<16x128xf32> -> vector<16x128xf32>
    %47 = arith.addf %41, %46 : vector<16x128xf32>
    %c2_44 = arith.constant 2 : index
    %c1_45 = arith.constant 1 : index
    %c0_46 = arith.constant 0 : index
    %48 = vector.load %arg5[%c2_44, %c1_45, %c0_46] : memref<6x6x128xf32, #tpu.memory_space<vmem>>, vector<4x4x128xf32>
    %49 = vector.shape_cast %48 : vector<4x4x128xf32> to vector<16x128xf32>
    %50 = arith.truncf %49 : vector<16x128xf32> to vector<16x128xbf16>
    %c896 = arith.constant 896 : index
    %c0_47 = arith.constant 0 : index
    %51 = vector.load %arg2[%c896, %c0_47] : memref<1152x128xbf16, #tpu.memory_space<vmem>>, vector<128x128xbf16>
    %cst_48 = arith.constant dense<0.000000e+00> : vector<16x128xf32>
    %52 = tpu.matmul %50, %51, %cst_48 {dimension_numbers = #tpu.dot_dimension_numbers<[1], [0], [0], [1], [0, 0, 1, 1], [], []>} : vector<16x128xbf16>, vector<128x128xbf16>, vector<16x128xf32> -> vector<16x128xf32>
    %53 = arith.addf %47, %52 : vector<16x128xf32>
    %c2_49 = arith.constant 2 : index
    %c2_50 = arith.constant 2 : index
    %c0_51 = arith.constant 0 : index
    %54 = vector.load %arg5[%c2_49, %c2_50, %c0_51] : memref<6x6x128xf32, #tpu.memory_space<vmem>>, vector<4x4x128xf32>
    %55 = vector.shape_cast %54 : vector<4x4x128xf32> to vector<16x128xf32>
    %56 = arith.truncf %55 : vector<16x128xf32> to vector<16x128xbf16>
    %c1024 = arith.constant 1024 : index
    %c0_52 = arith.constant 0 : index
    %57 = vector.load %arg2[%c1024, %c0_52] : memref<1152x128xbf16, #tpu.memory_space<vmem>>, vector<128x128xbf16>
    %cst_53 = arith.constant dense<0.000000e+00> : vector<16x128xf32>
    %58 = tpu.matmul %56, %57, %cst_53 {dimension_numbers = #tpu.dot_dimension_numbers<[1], [0], [0], [1], [0, 0, 1, 1], [], []>} : vector<16x128xbf16>, vector<128x128xbf16>, vector<16x128xf32> -> vector<16x128xf32>
    %59 = arith.addf %53, %58 : vector<16x128xf32>
    %c0_54 = arith.constant 0 : index
    %c0_55 = arith.constant 0 : index
    %60 = vector.load %arg3[%c0_54, %c0_55] : memref<16x128xf32, #tpu.memory_space<vmem>>, vector<16x128xf32>
    %61 = arith.addf %59, %60 : vector<16x128xf32>
    %c0_56 = arith.constant 0 : index
    %c0_57 = arith.constant 0 : index
    %62 = vector.load %arg4[%c0_56, %c0_57] : memref<16x128xf32, #tpu.memory_space<vmem>>, vector<16x128xf32>
    tpu.vector_store %arg4[%c0_56, %c0_57], %61 {strides = array<i32>} : memref<16x128xf32, #tpu.memory_space<vmem>>, vector<16x128xf32>,
    return
  }
  func.func @transform_0(%arg0: i32) -> (i32, i32, i32, i32) {
    %c0_i32 = arith.constant 0 : i32
    %c0_i32_0 = arith.constant 0 : i32
    %c0_i32_1 = arith.constant 0 : i32
    %c0_i32_2 = arith.constant 0 : i32
    return %arg0, %c0_i32, %c0_i32_0, %c0_i32_1 : i32, i32, i32, i32
  }
  func.func @transform_1(%arg0: i32) -> (i32, i32) {
    %c0_i32 = arith.constant 0 : i32
    %c0_i32_0 = arith.constant 0 : i32
    %c0_i32_1 = arith.constant 0 : i32
    return %c0_i32, %c0_i32_0 : i32, i32
  }
  func.func @transform_2(%arg0: i32) -> (i32, i32) {
    %c0_i32 = arith.constant 0 : i32
    %c0_i32_0 = arith.constant 0 : i32
    return %arg0, %c0_i32 : i32, i32
  }
  func.func @transform_3(%arg0: i32) -> (i32, i32) {
    %c0_i32 = arith.constant 0 : i32
    %c0_i32_0 = arith.constant 0 : i32
    return %arg0, %c0_i32 : i32, i32
  }
}

module attributes {stable_mosaic.version = 11 : i64} {
  func.func @_head_kernel(%arg0: i32, %arg1: memref<2x16x128xf32, #tpu.memory_space<vmem>>, %arg2: memref<1x128xf32, #tpu.memory_space<vmem>>, %arg3: memref<1x128xf32, #tpu.memory_space<vmem>>, %arg4: memref<128x10xf32, #tpu.memory_space<vmem>>, %arg5: memref<1x10xf32, #tpu.memory_space<vmem>>, %arg6: memref<2x10xf32, #tpu.memory_space<vmem>>) attributes {dimension_semantics = [#tpu.dimension_semantics<arbitrary>], iteration_bounds = array<i64: 1>, scalar_prefetch = 0 : i64, scratch_operands = 0 : i64, tpu.core_type = #tpu.core_type<tc>, window_params = [{pipeline_mode = #tpu.pipeline_mode<synchronous>, transform_indices = @transform_0, window_bounds = array<i64: 2, 16, 128>}, {pipeline_mode = #tpu.pipeline_mode<synchronous>, transform_indices = @transform_1, window_bounds = array<i64: 1, 128>}, {pipeline_mode = #tpu.pipeline_mode<synchronous>, transform_indices = @transform_2, window_bounds = array<i64: 1, 128>}, {pipeline_mode = #tpu.pipeline_mode<synchronous>, transform_indices = @transform_3, window_bounds = array<i64: 128, 10>}, {pipeline_mode = #tpu.pipeline_mode<synchronous>, transform_indices = @transform_4, window_bounds = array<i64: 1, 10>}, {pipeline_mode = #tpu.pipeline_mode<synchronous>, transform_indices = @transform_5, window_bounds = array<i64: 2, 10>}]} {
    %c0 = arith.constant 0 : index
    %c0_0 = arith.constant 0 : index
    %c0_1 = arith.constant 0 : index
    %0 = vector.load %arg1[%c0, %c0_0, %c0_1] : memref<2x16x128xf32, #tpu.memory_space<vmem>>, vector<2x16x128xf32>
    %c0_2 = arith.constant 0 : index
    %c0_3 = arith.constant 0 : index
    %1 = vector.load %arg2[%c0_2, %c0_3] : memref<1x128xf32, #tpu.memory_space<vmem>>, vector<1x128xf32>
    %2 = vector.shape_cast %1 : vector<1x128xf32> to vector<1x1x128xf32>
    %3 = vector.broadcast %2 : vector<1x1x128xf32> to vector<2x16x128xf32>
    %4 = arith.mulf %0, %3 : vector<2x16x128xf32>
    %c0_4 = arith.constant 0 : index
    %c0_5 = arith.constant 0 : index
    %5 = vector.load %arg3[%c0_4, %c0_5] : memref<1x128xf32, #tpu.memory_space<vmem>>, vector<1x128xf32>
    %6 = vector.shape_cast %5 : vector<1x128xf32> to vector<1x1x128xf32>
    %7 = vector.broadcast %6 : vector<1x1x128xf32> to vector<2x16x128xf32>
    %8 = arith.addf %4, %7 : vector<2x16x128xf32>
    %cst = arith.constant 0.000000e+00 : f32
    %9 = vector.broadcast %cst : f32 to vector<2x16x128xf32>
    %10 = arith.cmpf oge, %8, %9 : vector<2x16x128xf32>
    %cst_6 = arith.constant 1.000000e-01 : f32
    %11 = vector.broadcast %cst_6 : f32 to vector<2x16x128xf32>
    %12 = arith.mulf %11, %8 : vector<2x16x128xf32>
    %13 = arith.select %10, %8, %12 : vector<2x16x128xi1>, vector<2x16x128xf32>
    %cst_7 = arith.constant dense<0.000000e+00> : vector<2x128xf32>
    %14 = vector.multi_reduction <add>, %13, %cst_7 [1] : vector<2x16x128xf32> to vector<2x128xf32>
    %cst_8 = arith.constant 1.600000e+01 : f32
    %15 = vector.broadcast %cst_8 : f32 to vector<2x128xf32>
    %16 = arith.divf %14, %15 : vector<2x128xf32>
    %c0_9 = arith.constant 0 : index
    %c0_10 = arith.constant 0 : index
    %17 = vector.load %arg4[%c0_9, %c0_10] : memref<128x10xf32, #tpu.memory_space<vmem>>, vector<128x10xf32>
    %cst_11 = arith.constant dense<0.000000e+00> : vector<2x10xf32>
    %18 = tpu.matmul %16, %17, %cst_11 {dimension_numbers = #tpu.dot_dimension_numbers<[1], [0], [0], [1], [0, 0, 1, 1], [], []>} : vector<2x128xf32>, vector<128x10xf32>, vector<2x10xf32> -> vector<2x10xf32>
    %c0_12 = arith.constant 0 : index
    %c0_13 = arith.constant 0 : index
    %19 = vector.load %arg5[%c0_12, %c0_13] : memref<1x10xf32, #tpu.memory_space<vmem>>, vector<1x10xf32>
    %20 = vector.broadcast %19 : vector<1x10xf32> to vector<2x10xf32>
    %21 = arith.addf %18, %20 : vector<2x10xf32>
    %c0_14 = arith.constant 0 : index
    %c0_15 = arith.constant 0 : index
    %22 = vector.load %arg6[%c0_14, %c0_15] : memref<2x10xf32, #tpu.memory_space<vmem>>, vector<2x10xf32>
    tpu.vector_store %arg6[%c0_14, %c0_15], %21 {strides = array<i32>} : memref<2x10xf32, #tpu.memory_space<vmem>>, vector<2x10xf32>,
    return
  }
  func.func @transform_0(%arg0: i32) -> (i32, i32, i32) {
    %c0_i32 = arith.constant 0 : i32
    %c0_i32_0 = arith.constant 0 : i32
    %c0_i32_1 = arith.constant 0 : i32
    %c0_i32_2 = arith.constant 0 : i32
    return %c0_i32, %c0_i32_0, %c0_i32_1 : i32, i32, i32
  }
  func.func @transform_1(%arg0: i32) -> (i32, i32) {
    %c0_i32 = arith.constant 0 : i32
    %c0_i32_0 = arith.constant 0 : i32
    %c0_i32_1 = arith.constant 0 : i32
    return %c0_i32, %c0_i32_0 : i32, i32
  }
  func.func @transform_2(%arg0: i32) -> (i32, i32) {
    %c0_i32 = arith.constant 0 : i32
    %c0_i32_0 = arith.constant 0 : i32
    %c0_i32_1 = arith.constant 0 : i32
    return %c0_i32, %c0_i32_0 : i32, i32
  }
  func.func @transform_3(%arg0: i32) -> (i32, i32) {
    %c0_i32 = arith.constant 0 : i32
    %c0_i32_0 = arith.constant 0 : i32
    %c0_i32_1 = arith.constant 0 : i32
    return %c0_i32, %c0_i32_0 : i32, i32
  }
  func.func @transform_4(%arg0: i32) -> (i32, i32) {
    %c0_i32 = arith.constant 0 : i32
    %c0_i32_0 = arith.constant 0 : i32
    %c0_i32_1 = arith.constant 0 : i32
    return %c0_i32, %c0_i32_0 : i32, i32
  }
  func.func @transform_5(%arg0: i32) -> (i32, i32) {
    %c0_i32 = arith.constant 0 : i32
    %c0_i32_0 = arith.constant 0 : i32
    %c0_i32_1 = arith.constant 0 : i32
    return %c0_i32, %c0_i32_0 : i32, i32
  }
}

</mosaic_0001>

<bundles_post_ra>
// kernel: _lambda_.8
= control target key start
LH: loop header
LB: loop body
LE: loop exit
PB: predicated region body
PF: predicated region fallthrough
CT: control target
= control target key end

     0   :  { %s3917_s9 = smov 0   ;;  %s4572_s0 = inlined_call_operand.vmem [shape: f32[2,16,16,3], index: 0, kind: input, shape index: {}]   ;;  %s4573_s1 = inlined_call_operand.vmem [shape: bf16[27,16], index: 1, kind: input, shape index: {}]   ;;  %s4574_s2 = inlined_call_operand.vmem [shape: f32[512,16], index: 2, kind: output, shape index: {}]  }
   0x1 LB: > { %s3923_s10 = sadd.s32 4294967295, %s3898_s9   ;;  %p2999_p0 = scmp.ge.s32.totalorder %s3898_s9, 1  ;;  %s3898_s9 = sphi %s3917_s9, %s12_s9  }
   0x2   : > { %p112_p1 = scmp.lt.s32.totalorder %s3898_s9, 3 }
   0x4   : > { %p113_p2 = pnand %p2999_p0, %p112_p1 }
   0x5   : > { %v3885_v0 = vld [vmem:[%s4573_s1] ss:$0 sps:$4 sm:$0x66] (!%p113_p2)   ;;  %vm424_vm0 = vcmask (!%p113_p2), 1040384   ;;  %vm425_vm1 = vcmask (!%p113_p2), 1041408   ;;  %vm146_vm2 = vcmask (!%p113_p2), 23552  }
   0x6   : > { %116 = sbr.rel (%p113_p2) target bundleno = 543 (0x21f), region = 28  ;;  %v369_v1 = vshrl.u32 (!%p113_p2), %v3885_v0, 16  ;;  %v372_v2 = vshll.u32 (!%p113_p2), %v3885_v0, 16  ;;  %v3900_v3 = vmov (!%p113_p2), 65535   ;;  %v3901_v6 = vmov (!%p113_p2), 0.0   ;;  %p134_p3 = scmp.lt.s32.totalorder (!%p113_p2), %s3923_s10, 1 }
   0x7   : > { %v426_v4 = vsel (!%p113_p2), %vm424_vm0, 4294967295, %v3900_v3  ;;  %v3933_v5 = vld [vmem:[%s4573_s1 + $0x4] ss:$0 sps:$4 sm:$0xcc] (!%p113_p2)   ;;  %147 = vst.msk [vmem:[#allocation2] sm:$0xff] (!%p113_p2), %vm146_vm2, %v3901_v6  ;;  %148 = vst.msk [vmem:[#allocation2 + $0x8] sm:$0xff] (!%p113_p2), %vm146_vm2, %v3901_v6 }
   0x8   : > { %151 = vst.msk [vmem:[#allocation2 + $0x18] sm:$0xff] (!%p113_p2), %vm146_vm2, %v3901_v6  ;;  %152 = vst.msk [vmem:[#allocation2 + $0x20] sm:$0xff] (!%p113_p2), %vm146_vm2, %v3901_v6  ;;  %v3972_v7 = vsel (!%p113_p2), %vm425_vm1, %v426_v4, 0  ;;  %vm149_vm3 = vcmask (!%p113_p2), 17408   ;;  %v315_v8 = vld [vmem:[%s4573_s1] sm:$0x3] (!%p113_p2) }
   0x9   : > { %154 = vst.msk [vmem:[#allocation2 + $0x30] sm:$0xff] (!%p113_p2), %vm146_vm2, %v3901_v6  ;;  %155 = vst.msk [vmem:[#allocation2 + $0x38] sm:$0xff] (!%p113_p2), %vm146_vm2, %v3901_v6  ;;  %v371_v9 = vrot.slane (!%p113_p2), %v369_v1, 1  ;;  %v374_v10 = vrot.slane (!%p113_p2), %v372_v2, 2  ;;  %v1459_v11 = vrot.slane (!%p113_p2), %v3933_v5, 2  ;;  %v4014_v18 = vand.u32 (!%p113_p2), %v3972_v7, %v315_v8  ;;  %s3002_s6 = sshll.u32 (!%p113_p2), %s3923_s10, 5 }
   0xa   : > { %157 = vst.msk [vmem:[#allocation2 + $0x48] sm:$0xff] (!%p113_p2), %vm146_vm2, %v3901_v6  ;;  %158 = vst.msk [vmem:[#allocation2 + $0x50] sm:$0xff] (!%p113_p2), %vm146_vm2, %v3901_v6  ;;  %v3887_v12 = vld [vmem:[%s4573_s1 + $0x4] sm:$0x18] (!%p113_p2)   ;;  %v3889_v28 = vld [vmem:[%s4573_s1] sm:$0x18] (!%p113_p2)  }
   0xb   : > { %160 = vst.msk [vmem:[#allocation2 + $0x60] sm:$0xff] (!%p113_p2), %vm146_vm2, %v3901_v6  ;;  %161 = vst.msk [vmem:[#allocation2 + $0x68] sm:$0xff] (!%p113_p2), %vm146_vm2, %v3901_v6  ;;  %v375_v13 = vor.u32 (!%p113_p2), %v374_v10, %v371_v9  ;;  %v4004_v14 = vand.u32 (!%p113_p2), %v1459_v11, %v3972_v7  ;;  %v1760_v15 = vshrl.u32 (!%p113_p2), %v3887_v12, 16  ;;  %v1763_v16 = vshll.u32 (!%p113_p2), %v3887_v12, 16  ;;  %p140_p4 = scmp.lt.s32.totalorder (!%p113_p2), %s3002_s6, 63 }
   0xc   : > { %163 = vst.msk [vmem:[#allocation2 + $0x78] sm:$0xff] (!%p113_p2), %vm146_vm2, %v3901_v6  ;;  %164 = vst.msk [vmem:[#allocation2 + $0x80] sm:$0xff] (!%p113_p2), %vm146_vm2, %v3901_v6  ;;  %v4022_v24 = vld [vmem:[%s4573_s1 + $0x8] ss:$0 sps:$4 sm:$0x66] (!%p113_p2)   ;;  %v859_v51 = vrot.slane (!%p113_p2), %v3889_v28, 3 }
   0xd   : > { %166 = vst.msk [vmem:[#allocation2 + $0x90] sm:$0xff] %vm146_vm2, %v3901_v6  ;;  %167 = vst.msk [vmem:[#allocation2 + $0x98] sm:$0xff] %vm146_vm2, %v3901_v6  ;;  %s135_s17 = scalar_select %p134_p3, %s3923_s10, 1  ;;  %v429_v17 = vand.u32 %v3972_v7, %v375_v13  ;;  %3447 = vmatprep.subr.bf16.mxu0 %v4004_v14  ;;  %v1762_v22 = vrot.slane %v1760_v15, 3  ;;  %v1765_v23 = vrot.slane %v1763_v16, 4  ;;  %v2064_v46 = vrot.slane %v4022_v24, 1 }
   0xe   : > { %169 = vst.msk [vmem:[#allocation2 + $0xa8] sm:$0xff] %vm146_vm2, %v3901_v6  ;;  %170 = vst.msk [vmem:[#allocation2 + $0xb0] sm:$0xff] %vm146_vm2, %v3901_v6  ;;  %3448 = vmatpush3.bf16.msra.mxu0 %v4004_v14  ;;  %v316_v19 = vld [vmem:[#allocation2 + $0x1] sm:$0xff]  ;;  %v4083_v62 = vand.u32 %v859_v51, %v3972_v7  ;;  %s4576_s6 = smov (!%p140_p4, %s3002_s6), 63  ;;  %vm2906_vm4 = vcmask 130048  }
   0xf   : > { %172 = vst.msk [vmem:[#allocation2 + $0xc0] sm:$0xff] %vm146_vm2, %v3901_v6  ;;  %173 = vst.msk [vmem:[#allocation2 + $0xc8] sm:$0xff] %vm146_vm2, %v3901_v6  ;;  %s3157_s20 = sshll.u32 %s135_s17, 8  ;;  %3311 = vmatprep.subr.bf16.mxu1 %v429_v17  ;;  %v1766_v30 = vor.u32 %v1765_v23, %v1762_v22  ;;  %v4076_v60 = vand.u32 %v2064_v46, %v3972_v7  ;;  %s3003_s7 = sshll.u32 %s4576_s6, 3 }
  0x10   : > { %175 = vst.msk [vmem:[#allocation2 + $0xd8] sm:$0xff] %vm146_vm2, %v3901_v6  ;;  %176 = vst.msk [vmem:[#allocation2 + $0xe0] sm:$0xff] %vm146_vm2, %v3901_v6  ;;  %s4011_s23 = scalar_lea.vmem %s4572_s0, %s3157_s20  ;;  %3312 = vmatpush3.bf16.msra.mxu1 %v429_v17  ;;  %s4503_s12 = scalar_lea.vmem %s4574_s2, %s3003_s7 }
  0x11   : > { %178 = vst.msk [vmem:[#allocation2 + $0xf0] sm:$0xff] %vm146_vm2, %v3901_v6  ;;  %179 = vst.msk [vmem:[#allocation2 + $0xf8] sm:$0xff] %vm146_vm2, %v3901_v6  ;;  %v202_v20 = vld [vmem:[%s4011_s23] sm:$0xff]  ;;  %v203_v21 = vld [vmem:[%s4011_s23 + $0x8] sm:$0xff]  ;;  %3345 = vmatprep.subr.bf16.mxu1 %v4014_v18  ;;  %v1816_v37 = vand.u32 %v1766_v30, %v3972_v7 }
  0x12   : > { %181 = vst.msk [vmem:[#allocation2 + $0x108] sm:$0xff] %vm146_vm2, %v3901_v6  ;;  %182 = vst.msk [vmem:[#allocation2 + $0x110] sm:$0xff] %vm146_vm2, %v3901_v6  ;;  %v204_v25 = vld [vmem:[%s4011_s23 + $0x10] sm:$0xff]  ;;  %v205_v26 = vld [vmem:[%s4011_s23 + $0x18] sm:$0xff] }
  0x13   : > { %184 = vst.msk [vmem:[#allocation2 + $0x120] sm:$0xff] %vm146_vm2, %v3901_v6  ;;  %185 = vst.msk [vmem:[#allocation2 + $0x128] sm:$0xff] %vm146_vm2, %v3901_v6  ;;  %v206_v27 = vld [vmem:[%s4011_s23 + $0x20] sm:$0xff]  ;;  %v207_v31 = vld [vmem:[%s4011_s23 + $0x28] sm:$0xff]  ;;  %3481 = vmatprep.subr.bf16.mxu0 %v1816_v37 }
  0x14   : > { %187 = vst.msk [vmem:[#allocation2 + $0x138] sm:$0xff] %vm146_vm2, %v3901_v6  ;;  %188 = vst.msk [vmem:[#allocation2 + $0x140] sm:$0xff] %vm146_vm2, %v3901_v6  ;;  %v208_v32 = vld [vmem:[%s4011_s23 + $0x30] sm:$0xff]  ;;  %v209_v34 = vld [vmem:[%s4011_s23 + $0x38] sm:$0xff] }
  0x15   : > { %190 = vst.msk [vmem:[#allocation2 + $0x150] sm:$0xff] %vm146_vm2, %v3901_v6  ;;  %191 = vst.msk [vmem:[#allocation2 + $0x158] sm:$0xff] %vm146_vm2, %v3901_v6  ;;  %v210_v35 = vld [vmem:[%s4011_s23 + $0x40] sm:$0xff]  ;;  %v211_v36 = vld [vmem:[%s4011_s23 + $0x48] sm:$0xff] }
  0x16   : > { %193 = vst.msk [vmem:[#allocation2 + $0x168] sm:$0xff] %vm146_vm2, %v3901_v6  ;;  %194 = vst.msk [vmem:[#allocation2 + $0x170] sm:$0xff] %vm146_vm2, %v3901_v6  ;;  %v212_v38 = vld [vmem:[%s4011_s23 + $0x50] sm:$0xff]  ;;  %v213_v39 = vld [vmem:[%s4011_s23 + $0x58] sm:$0xff] }
  0x17   : > { %196 = vst.msk [vmem:[#allocation2 + $0x180] sm:$0xff] %vm146_vm2, %v3901_v6  ;;  %197 = vst.msk [vmem:[#allocation2 + $0x188] sm:$0xff] %vm146_vm2, %v3901_v6  ;;  %v214_v40 = vld [vmem:[%s4011_s23 + $0x60] sm:$0xff]  ;;  %v215_v41 = vld [vmem:[%s4011_s23 + $0x68] sm:$0xff] }
  0x18   : > { %199 = vst.msk [vmem:[#allocation2 + $0x198] sm:$0xff] %vm146_vm2, %v3901_v6  ;;  %200 = vst.msk [vmem:[#allocation2 + $0x1a0] sm:$0xff] %vm146_vm2, %v3901_v6  ;;  %v216_v42 = vld [vmem:[%s4011_s23 + $0x70] sm:$0xff]  ;;  %v217_v43 = vld [vmem:[%s4011_s23 + $0x78] sm:$0xff] }
  0x19   : > { %150 = vst.msk [vmem:[#allocation2 + $0x10] sm:$0x3] %vm149_vm3, %v3901_v6  ;;  %153 = vst.msk [vmem:[#allocation2 + $0x28] sm:$0x3] %vm149_vm3, %v3901_v6  ;;  %v218_v44 = vld [vmem:[%s4011_s23 + $0x80] sm:$0xff]  ;;  %v219_v45 = vld [vmem:[%s4011_s23 + $0x88] sm:$0xff] }
  0x1a   : > { %156 = vst.msk [vmem:[#allocation2 + $0x40] sm:$0x3] %vm149_vm3, %v3901_v6  ;;  %159 = vst.msk [vmem:[#allocation2 + $0x58] sm:$0x3] %vm149_vm3, %v3901_v6  ;;  %v220_v47 = vld [vmem:[%s4011_s23 + $0x90] sm:$0xff]  ;;  %v221_v48 = vld [vmem:[%s4011_s23 + $0x98] sm:$0xff] }
  0x1b   : > { %162 = vst.msk [vmem:[#allocation2 + $0x70] sm:$0x3] %vm149_vm3, %v3901_v6  ;;  %165 = vst.msk [vmem:[#allocation2 + $0x88] sm:$0x3] %vm149_vm3, %v3901_v6  ;;  %v222_v49 = vld [vmem:[%s4011_s23 + $0xa0] sm:$0xff]  ;;  %v223_v50 = vld [vmem:[%s4011_s23 + $0xa8] sm:$0xff] }
  0x1c   : > { %168 = vst.msk [vmem:[#allocation2 + $0xa0] sm:$0x3] %vm149_vm3, %v3901_v6  ;;  %171 = vst.msk [vmem:[#allocation2 + $0xb8] sm:$0x3] %vm149_vm3, %v3901_v6  ;;  %v224_v5 = vld [vmem:[%s4011_s23 + $0xb0] sm:$0xff]  ;;  %v226_v8 = vld [vmem:[%s4011_s23 + $0xc0] sm:$0xff] }
  0x1d   : > { %174 = vst.msk [vmem:[#allocation2 + $0xd0] sm:$0x3] %vm149_vm3, %v3901_v6  ;;  %177 = vst.msk [vmem:[#allocation2 + $0xe8] sm:$0x3] %vm149_vm3, %v3901_v6  ;;  %v227_v9 = vld [vmem:[%s4011_s23 + $0xc8] sm:$0xff]  ;;  %v228_v12 = vld [vmem:[%s4011_s23 + $0xd0] sm:$0xff] }
  0x1e   : > { %180 = vst.msk [vmem:[#allocation2 + $0x100] sm:$0x3] %vm149_vm3, %v3901_v6  ;;  %183 = vst.msk [vmem:[#allocation2 + $0x118] sm:$0x3] %vm149_vm3, %v3901_v6  ;;  %v229_v13 = vld [vmem:[%s4011_s23 + $0xd8] sm:$0xff]  ;;  %v230_v15 = vld [vmem:[%s4011_s23 + $0xe0] sm:$0xff] }
  0x1f   : > { %186 = vst.msk [vmem:[#allocation2 + $0x130] sm:$0x3] %vm149_vm3, %v3901_v6  ;;  %189 = vst.msk [vmem:[#allocation2 + $0x148] sm:$0x3] %vm149_vm3, %v3901_v6  ;;  %v231_v16 = vld [vmem:[%s4011_s23 + $0xe8] sm:$0xff] }
  0x20   : > { %192 = vst.msk [vmem:[#allocation2 + $0x160] sm:$0x3] %vm149_vm3, %v3901_v6  ;;  %195 = vst.msk [vmem:[#allocation2 + $0x178] sm:$0x3] %vm149_vm3, %v3901_v6  ;;  %v317_v29 = vld [vmem:[#allocation2 + $0x9] sm:$0xff] }
  0x21   : > { %198 = vst.msk [vmem:[#allocation2 + $0x190] sm:$0x3] %vm149_vm3, %v3901_v6  ;;  %201 = vst.msk [vmem:[#allocation2 + $0x1a8] sm:$0x3] %vm149_vm3, %v3901_v6  ;;  %v348_v33 = vpack.c.bf16 %v317_v29, %v316_v19  ;;  %v225_v6 = vld [vmem:[%s4011_s23 + $0xb8] sm:$0xff] }
  0x22   : > { %235 = vst.msk [vmem:[#allocation2 + $0x19] sm:$0xff] %vm146_vm2, %v202_v20  ;;  %236 = vst.msk [vmem:[#allocation2 + $0x21] sm:$0xff] %vm146_vm2, %v203_v21 }
  0x23   : > { %237 = vst.msk [vmem:[#allocation2 + $0x31] sm:$0xff] %vm146_vm2, %v204_v25  ;;  %238 = vst.msk [vmem:[#allocation2 + $0x39] sm:$0xff] %vm146_vm2, %v205_v26  ;;  %3313 = vmatprep.mubr.msk.bf16.mxu1 %vm146_vm2, %v348_v33 }
  0x24   : > { %239 = vst.msk [vmem:[#allocation2 + $0x49] sm:$0xff] %vm146_vm2, %v206_v27  ;;  %240 = vst.msk [vmem:[#allocation2 + $0x51] sm:$0xff] %vm146_vm2, %v207_v31  ;;  %v232_v31 = vld [vmem:[%s4011_s23 + $0xf0] sm:$0xff] }
  0x25   : > { %241 = vst.msk [vmem:[#allocation2 + $0x61] sm:$0xff] %vm146_vm2, %v208_v32  ;;  %242 = vst.msk [vmem:[#allocation2 + $0x69] sm:$0xff] %vm146_vm2, %v209_v34  ;;  %v233_v32 = vld [vmem:[%s4011_s23 + $0xf8] sm:$0xff] }
  0x26   : > { %243 = vst.msk [vmem:[#allocation2 + $0x79] sm:$0xff] %vm146_vm2, %v210_v35  ;;  %244 = vst.msk [vmem:[#allocation2 + $0x81] sm:$0xff] %vm146_vm2, %v211_v36 }
  0x27   : > { %245 = vst.msk [vmem:[#allocation2 + $0x91] sm:$0xff] %vm146_vm2, %v212_v38  ;;  %246 = vst.msk [vmem:[#allocation2 + $0x99] sm:$0xff] %vm146_vm2, %v213_v39 }
  0x28   : > { %247 = vst.msk [vmem:[#allocation2 + $0xa9] sm:$0xff] %vm146_vm2, %v214_v40  ;;  %248 = vst.msk [vmem:[#allocation2 + $0xb1] sm:$0xff] %vm146_vm2, %v215_v41 }
  0x29   : > { %249 = vst.msk [vmem:[#allocation2 + $0xc1] sm:$0xff] %vm146_vm2, %v216_v42  ;;  %250 = vst.msk [vmem:[#allocation2 + $0xc9] sm:$0xff] %vm146_vm2, %v217_v43  ;;  %v318_v52 = vld [vmem:[#allocation2 + $0x19] sm:$0xff]  ;;  %v319_v53 = vld [vmem:[#allocation2 + $0x21] sm:$0xff] }
  0x2a   : > { %251 = vst.msk [vmem:[#allocation2 + $0xd9] sm:$0xff] %vm146_vm2, %v218_v44  ;;  %252 = vst.msk [vmem:[#allocation2 + $0xe1] sm:$0xff] %vm146_vm2, %v219_v45  ;;  %v349_v54 = vpack.c.bf16 %v319_v53, %v318_v52  ;;  %v1409_v55 = vld [vmem:[#allocation2 + $0x31] sm:$0xff]  ;;  %v1410_v56 = vld [vmem:[#allocation2 + $0x39] sm:$0xff] }
  0x2b   : > { %253 = vst.msk [vmem:[#allocation2 + $0xf1] sm:$0xff] %vm146_vm2, %v220_v47  ;;  %254 = vst.msk [vmem:[#allocation2 + $0xf9] sm:$0xff] %vm146_vm2, %v221_v48  ;;  %v322_v57 = vld [vmem:[#allocation2 + $0x49] sm:$0xff]  ;;  %v4073_v58 = vpack.c.bf16 %v1410_v56, %v1409_v55  ;;  %v323_v59 = vld [vmem:[#allocation2 + $0x51] sm:$0xff] }
  0x2c   : > { %255 = vst.msk [vmem:[#allocation2 + $0x109] sm:$0xff] %vm146_vm2, %v222_v49  ;;  %256 = vst.msk [vmem:[#allocation2 + $0x111] sm:$0xff] %vm146_vm2, %v223_v50  ;;  %3314 = vmatmul.mubr.msk.bf16.vlgmr.msra.gmra.mrb[0].mxu1 %vm146_vm2, %v349_v54  ;;  %3449 = vmatprep.mubr.msk.bf16.mxu0 %vm146_vm2, %v349_v54  ;;  %v4080_v61 = vpack.c.bf16 %v323_v59, %v322_v57  ;;  %v1413_v63 = vld [vmem:[#allocation2 + $0x61] sm:$0xff]  ;;  %v1414_v0 = vld [vmem:[#allocation2 + $0x69] sm:$0xff] }
  0x2d   : > { %3346 = vmatpush3.bf16.msra.mxu1 %v4014_v18  ;;  %3450 = vmatmul.mubr.msk.bf16.vlgmr.msra.gmra.mrb[0].mxu0 %vm146_vm2, %v4073_v58  ;;  %v326_v1 = vld [vmem:[#allocation2 + $0x79] sm:$0xff]  ;;  %v327_v2 = vld [vmem:[#allocation2 + $0x81] sm:$0xff]  ;;  %v4094_v3 = vpack.c.bf16 %v1414_v0, %v1413_v63  ;;  %257 = vst.msk [vmem:[#allocation2 + $0x121] sm:$0xff] %vm146_vm2, %v224_v5  ;;  %258 = vst.msk [vmem:[#allocation2 + $0x129] sm:$0xff] %vm146_vm2, %v225_v6 }
  0x2e   : > { %3482 = vmatpush3.bf16.msra.mxu0 %v1816_v37  ;;  %3317 = vmatprep.mubr.msk.bf16.mxu1 %vm146_vm2, %v4073_v58  ;;  %v4096_v4 = vpack.c.bf16 %v327_v2, %v326_v1  ;;  %259 = vst.msk [vmem:[#allocation2 + $0x139] sm:$0xff] %vm146_vm2, %v226_v8  ;;  %v1417_v10 = vld [vmem:[#allocation2 + $0x91] sm:$0xff]  ;;  %v1418_v11 = vld [vmem:[#allocation2 + $0x99] sm:$0xff]  ;;  %260 = vst.msk [vmem:[#allocation2 + $0x141] sm:$0xff] %vm146_vm2, %v227_v9 }
  0x2f   : > { %3453 = vmatprep.mubr.msk.bf16.mxu0 %vm146_vm2, %v4080_v61  ;;  %3515 = vmatprep.subr.bf16.mxu0 %v4076_v60  ;;  %261 = vst.msk [vmem:[#allocation2 + $0x151] sm:$0xff] %vm146_vm2, %v228_v12  ;;  %v330_v17 = vld [vmem:[#allocation2 + $0xa9] sm:$0xff]  ;;  %v331_v18 = vld [vmem:[#allocation2 + $0xb1] sm:$0xff]  ;;  %262 = vst.msk [vmem:[#allocation2 + $0x159] sm:$0xff] %vm146_vm2, %v229_v13  ;;  %v4122_v19 = vpack.c.bf16 %v1418_v11, %v1417_v10 }
  0x30   : > { %3379 = vmatprep.subr.bf16.mxu1 %v4083_v62  ;;  %263 = vst.msk [vmem:[#allocation2 + $0x169] sm:$0xff] %vm146_vm2, %v230_v15  ;;  %264 = vst.msk [vmem:[#allocation2 + $0x171] sm:$0xff] %vm146_vm2, %v231_v16  ;;  %v4124_v20 = vpack.c.bf16 %v331_v18, %v330_v17  ;;  %v1421_v21 = vld [vmem:[#allocation2 + $0xc1] sm:$0xff]  ;;  %v1422_v22 = vld [vmem:[#allocation2 + $0xc9] sm:$0xff] }
  0x31   : > { %v1704_v23 = vld [vmem:[#allocation2 + $0x1a] sm:$0xff]  ;;  %v1705_v24 = vld [vmem:[#allocation2 + $0x22] sm:$0xff]  ;;  %v4134_v25 = vpack.c.bf16 %v1422_v22, %v1421_v21  ;;  %v1706_v29 = vld [vmem:[#allocation2 + $0x32] sm:$0xff]  ;;  %265 = vst.msk [vmem:[#allocation2 + $0x181] sm:$0xff] %vm146_vm2, %v232_v31 }
  0x32   : > { %v4136_v26 = vpack.c.bf16 %v1705_v24, %v1704_v23  ;;  %v334_v27 = vld [vmem:[#allocation2 + $0xd9] sm:$0xff]  ;;  %v335_v28 = vld [vmem:[#allocation2 + $0xe1] sm:$0xff]  ;;  %v336_v33 = vld [vmem:[#allocation2 + $0xf1] sm:$0xff]  ;;  %266 = vst.msk [vmem:[#allocation2 + $0x189] sm:$0xff] %vm146_vm2, %v233_v32 }
  0x33   : > { %v1707_v30 = vld [vmem:[#allocation2 + $0x3a] sm:$0xff]  ;;  %v1708_v35 = vld [vmem:[#allocation2 + $0x4a] sm:$0xff]  ;;  %v1709_v36 = vld [vmem:[#allocation2 + $0x52] sm:$0xff]  ;;  %v4153_v38 = vpack.c.bf16 %v335_v28, %v334_v27 }
  0x34   : > { %3318 = vmatmul.mubr.msk.bf16.gmra.mrb[4].mxu1 %vm146_vm2, %v4080_v61  ;;  %v337_v34 = vld [vmem:[#allocation2 + $0xf9] sm:$0xff]  ;;  %v3890_v37 = vld [vmem:[%s4573_s1 + $0x8] ss:$0 sps:$4 sm:$0xcc]   ;;  %v4155_v39 = vpack.c.bf16 %v1707_v30, %v1706_v29  ;;  %v4159_v43 = vpack.c.bf16 %v1709_v36, %v1708_v35  ;;  %v338_v46 = vld [vmem:[#allocation2 + $0x109] sm:$0xff] }
  0x35   : > { %3454 = vmatmul.mubr.msk.bf16.gmra.mrb[4].mxu0 %vm146_vm2, %v4094_v3  ;;  %3321 = vmatprep.mubr.msk.bf16.mxu1 %vm146_vm2, %v4094_v3  ;;  %v4157_v40 = vpack.c.bf16 %v337_v34, %v336_v33  ;;  %v2362_v41 = vshrl.u32 %v3890_v37, 16  ;;  %v2365_v42 = vshll.u32 %v3890_v37, 16  ;;  %v339_v47 = vld [vmem:[#allocation2 + $0x111] sm:$0xff]  ;;  %v1710_v48 = vld [vmem:[#allocation2 + $0x62] sm:$0xff]  ;;  %v1712_v53 = vld [vmem:[#allocation2 + $0x7a] sm:$0xff] }
  0x36   : > { %3457 = vmatprep.mubr.msk.bf16.mxu0 %vm146_vm2, %v4096_v4  ;;  %v1711_v50 = vld [vmem:[#allocation2 + $0x6a] sm:$0xff]  ;;  %v340_v51 = vld [vmem:[#allocation2 + $0x121] sm:$0xff]  ;;  %v4173_v56 = vpack.c.bf16 %v339_v47, %v338_v46  ;;  %v342_v63 = vld [vmem:[#allocation2 + $0x139] sm:$0xff] }
  0x37   : > { %v2364_v44 = vrot.slane %v2362_v41, 2  ;;  %v2367_v45 = vrot.slane %v2365_v42, 3  ;;  %v341_v52 = vld [vmem:[#allocation2 + $0x129] sm:$0xff]  ;;  %v4175_v57 = vpack.c.bf16 %v1711_v50, %v1710_v48  ;;  %v343_v0 = vld [vmem:[#allocation2 + $0x141] sm:$0xff]  ;;  %v1714_v1 = vld [vmem:[#allocation2 + $0x92] sm:$0xff] }
  0x38   : > { %v1713_v54 = vld [vmem:[#allocation2 + $0x82] sm:$0xff]  ;;  %v4177_v59 = vpack.c.bf16 %v341_v52, %v340_v51  ;;  %v1715_v2 = vld [vmem:[#allocation2 + $0x9a] sm:$0xff]  ;;  %v344_v5 = vld [vmem:[#allocation2 + $0x151] sm:$0xff]  ;;  %v4190_v10 = vpack.c.bf16 %v343_v0, %v342_v63 }
  0x39   : > { %v2368_v49 = vor.u32 %v2367_v45, %v2364_v44  ;;  %v345_v6 = vld [vmem:[#allocation2 + $0x159] sm:$0xff]  ;;  %v1716_v8 = vld [vmem:[#allocation2 + $0xaa] sm:$0xff]  ;;  %v4192_v11 = vpack.c.bf16 %v1715_v2, %v1714_v1  ;;  %v3891_v15 = vld [vmem:[%s4573_s1 + $0x4] ss:$0 sps:$4 sm:$0x33]  }
  0x3a   : > { %v1717_v9 = vld [vmem:[#allocation2 + $0xb2] sm:$0xff]  ;;  %v4194_v12 = vpack.c.bf16 %v345_v6, %v344_v5  ;;  %v346_v16 = vld [vmem:[#allocation2 + $0x169] sm:$0xff]  ;;  %v267_v22 = vld [vmem:[#allocation2] sm:$0xff]  ;;  %v1159_v28 = vshll.u32 %v3891_v15, 16  ;;  %v1157_v33 = vshrl.u32 %v3891_v15, 16 }
  0x3b   : > { %v4171_v55 = vand.u32 %v2368_v49, %v3972_v7  ;;  %v4196_v13 = vpack.c.bf16 %v1717_v9, %v1716_v8  ;;  %v347_v17 = vld [vmem:[#allocation2 + $0x171] sm:$0xff]  ;;  %v1718_v18 = vld [vmem:[#allocation2 + $0xc2] sm:$0xff]  ;;  %v1720_v24 = vld [vmem:[#allocation2 + $0xda] sm:$0xff] }
  0x3c   : > { %3322 = vmatmul.mubr.msk.bf16.gmra.mrb[8].mxu1 %vm146_vm2, %v4096_v4  ;;  %v1719_v21 = vld [vmem:[#allocation2 + $0xca] sm:$0xff]  ;;  %v1721_v27 = vld [vmem:[#allocation2 + $0xe2] sm:$0xff]  ;;  %v4209_v29 = vpack.c.bf16 %v347_v17, %v346_v16  ;;  %v1161_v34 = vrot.slane %v1159_v28, 1  ;;  %v269_v35 = vld [vmem:[#allocation2 + $0x18] sm:$0xff] }
  0x3d   : > { %3458 = vmatmul.mubr.msk.bf16.gmra.mrb[8].mxu0 %vm146_vm2, %v4122_v19  ;;  %3325 = vmatprep.mubr.msk.bf16.mxu1 %vm146_vm2, %v4122_v19  ;;  %v268_v23 = vld [vmem:[#allocation2 + $0x8] sm:$0xff]  ;;  %v4211_v30 = vpack.c.bf16 %v1719_v21, %v1718_v18  ;;  %v4213_v32 = vpack.c.bf16 %v1721_v27, %v1720_v24  ;;  %v270_v36 = vld [vmem:[#allocation2 + $0x20] sm:$0xff]  ;;  %v1722_v37 = vld [vmem:[#allocation2 + $0xf2] sm:$0xff] }
  0x3e   : > { %3461 = vmatprep.mubr.msk.bf16.mxu0 %vm146_vm2, %v4124_v20  ;;  %v299_v31 = vpack.c.bf16 %v268_v23, %v267_v22  ;;  %v1723_v41 = vld [vmem:[#allocation2 + $0xfa] sm:$0xff]  ;;  %v271_v42 = vld [vmem:[#allocation2 + $0x30] sm:$0xff]  ;;  %v1162_v47 = vor.u32 %v1161_v34, %v1157_v33  ;;  %v4222_v48 = vpack.c.bf16 %v270_v36, %v269_v35  ;;  %v1726_v63 = vld [vmem:[#allocation2 + $0x122] sm:$0xff] }
  0x3f   : > { %v272_v44 = vld [vmem:[#allocation2 + $0x38] sm:$0xff]  ;;  %v1724_v45 = vld [vmem:[#allocation2 + $0x10a] sm:$0xff]  ;;  %v4224_v49 = vpack.c.bf16 %v1723_v41, %v1722_v37  ;;  %v275_v1 = vld [vmem:[#allocation2 + $0x60] sm:$0xff] }
  0x40   : > { %v1725_v46 = vld [vmem:[#allocation2 + $0x112] sm:$0xff]  ;;  %v4226_v50 = vpack.c.bf16 %v272_v44, %v271_v42  ;;  %v4231_v52 = vand.u32 %v1162_v47, %v3972_v7  ;;  %v1727_v0 = vld [vmem:[#allocation2 + $0x12a] sm:$0xff]  ;;  %v1728_v5 = vld [vmem:[#allocation2 + $0x13a] sm:$0xff] }
  0x41   : > { %v4228_v51 = vpack.c.bf16 %v1725_v46, %v1724_v45  ;;  %v276_v2 = vld [vmem:[#allocation2 + $0x68] sm:$0xff]  ;;  %v4245_v8 = vpack.c.bf16 %v1727_v0, %v1726_v63  ;;  %v277_v16 = vld [vmem:[#allocation2 + $0x78] sm:$0xff]  ;;  %v278_v17 = vld [vmem:[#allocation2 + $0x80] sm:$0xff] }
  0x42   : > { %v1729_v6 = vld [vmem:[#allocation2 + $0x142] sm:$0xff]  ;;  %v4247_v9 = vpack.c.bf16 %v276_v2, %v275_v1  ;;  %v1730_v18 = vld [vmem:[#allocation2 + $0x152] sm:$0xff]  ;;  %v1731_v21 = vld [vmem:[#allocation2 + $0x15a] sm:$0xff]  ;;  %v4259_v28 = vpack.c.bf16 %v278_v17, %v277_v16 }
  0x43   : > { %v4249_v15 = vpack.c.bf16 %v1729_v6, %v1728_v5  ;;  %v279_v22 = vld [vmem:[#allocation2 + $0x90] sm:$0xff]  ;;  %v280_v23 = vld [vmem:[#allocation2 + $0x98] sm:$0xff]  ;;  %v281_v35 = vld [vmem:[#allocation2 + $0xa8] sm:$0xff] }
  0x44   : > { %3326 = vmatmul.mubr.msk.bf16.gmra.mrb[12].mxu1 %vm146_vm2, %v4124_v20  ;;  %v1732_v24 = vld [vmem:[#allocation2 + $0x16a] sm:$0xff]  ;;  %v1733_v27 = vld [vmem:[#allocation2 + $0x172] sm:$0xff]  ;;  %v4263_v33 = vpack.c.bf16 %v280_v23, %v279_v22  ;;  %v283_v37 = vld [vmem:[#allocation2 + $0xc0] sm:$0xff] }
  0x45   : > { %3462 = vmatmul.mubr.msk.bf16.gmra.mrb[12].mxu0 %vm146_vm2, %v4134_v25  ;;  %3329 = vmatprep.mubr.msk.bf16.mxu1 %vm146_vm2, %v4134_v25  ;;  %v4265_v34 = vpack.c.bf16 %v1733_v27, %v1732_v24  ;;  %v282_v36 = vld [vmem:[#allocation2 + $0xb0] sm:$0xff]  ;;  %v1734_v41 = vld [vmem:[#allocation2 + $0x182] sm:$0xff]  ;;  %v288_v0 = vld [vmem:[#allocation2 + $0xf8] sm:$0xff] }
  0x46   : > { %3483 = vmatprep.mubr.msk.bf16.mxu0 %vm146_vm2, %v4136_v26  ;;  %v1735_v42 = vld [vmem:[#allocation2 + $0x18a] sm:$0xff]  ;;  %v4275_v45 = vpack.c.bf16 %v282_v36, %v281_v35  ;;  %v294_v23 = vld [vmem:[#allocation2 + $0x140] sm:$0xff]  ;;  %v296_v27 = vld [vmem:[#allocation2 + $0x158] sm:$0xff] }
  0x47   : > { %v284_v44 = vld [vmem:[#allocation2 + $0xc8] sm:$0xff]  ;;  %v4277_v46 = vpack.c.bf16 %v1735_v42, %v1734_v41  ;;  %v287_v63 = vld [vmem:[#allocation2 + $0xf0] sm:$0xff] }
  0x48   : > { %v4279_v47 = vpack.c.bf16 %v284_v44, %v283_v37  ;;  %v2661_v2 = vld [vmem:[%s4573_s1 + $0xc] sm:$0x3]  ;;  %v4294_v5 = vpack.c.bf16 %v288_v0, %v287_v63  ;;  %v290_v17 = vld [vmem:[#allocation2 + $0x110] sm:$0xff]  ;;  %v804_v42 = vld [vmem:[#allocation2 + $0x2] sm:$0xff] }
  0x49   : > { %v4297_v6 = vand.u32 %v2661_v2, %v3972_v7  ;;  %v289_v16 = vld [vmem:[#allocation2 + $0x108] sm:$0xff]  ;;  %v295_v24 = vld [vmem:[#allocation2 + $0x150] sm:$0xff]  ;;  %v2042_v0 = vld [vmem:[#allocation2 + $0x198] sm:$0xff] }
  0x4a   : > { %v4309_v7 = vpack.c.bf16 %v290_v17, %v289_v16  ;;  %v4323_v36 = vpack.c.bf16 %v296_v27, %v295_v24  ;;  %v297_v37 = vld [vmem:[#allocation2 + $0x168] sm:$0xff]  ;;  %v298_v41 = vld [vmem:[#allocation2 + $0x170] sm:$0xff]  ;;  %v2043_v2 = vld [vmem:[#allocation2 + $0x1a0] sm:$0xff] }
  0x4b   : > { %v805_v44 = vld [vmem:[#allocation2 + $0xa] sm:$0xff]  ;;  %v2059_v16 = vpack.c.bf16 %v2043_v2, %v2042_v0 }
  0x4c   : > { %3330 = vmatmul.mubr.msk.bf16.gmra.mrb[16].mxu1 %vm146_vm2, %v4153_v38 }
  0x4d   : > { %3484 = vmatmul.mubr.msk.bf16.vlgmr.msra.gmra.mrb[0].mxu0 %vm146_vm2, %v4155_v39  ;;  %3333 = vmatprep.mubr.msk.bf16.mxu1 %vm146_vm2, %v4157_v40 }
  0x4e   : > { %3516 = vmatpush3.bf16.msra.mxu0 %v4076_v60  ;;  %3487 = vmatprep.mubr.msk.bf16.mxu0 %vm146_vm2, %v4159_v43  ;;  %v4180_v60 = vpack.c.bf16 %v1713_v54, %v1712_v53  ;;  %v273_v53 = vld [vmem:[#allocation2 + $0x48] sm:$0xff]  ;;  %v274_v54 = vld [vmem:[#allocation2 + $0x50] sm:$0xff] }
  0x4f   : > { %3549 = vmatprep.subr.bf16.mxu0 %v4171_v55 }
  0x54   : > { %3334 = vmatmul.mubr.msk.bf16.gmra.mrb[20].mxu1 %vm146_vm2, %v4173_v56 }
  0x55   : > { %3488 = vmatmul.mubr.msk.bf16.gmra.mrb[4].mxu0 %vm146_vm2, %v4175_v57  ;;  %3337 = vmatprep.mubr.msk.bf16.mxu1 %vm146_vm2, %v4177_v59 }
  0x56   : > { %3491 = vmatprep.mubr.msk.bf16.mxu0 %vm146_vm2, %v4180_v60 }
  0x5c   : > { %3338 = vmatmul.mubr.msk.bf16.gmra.mrb[24].mxu1 %vm146_vm2, %v4190_v10 }
  0x5d   : > { %3492 = vmatmul.mubr.msk.bf16.gmra.mrb[8].mxu0 %vm146_vm2, %v4192_v11  ;;  %3341 = vmatprep.mubr.msk.bf16.mxu1 %vm146_vm2, %v4194_v12 }
  0x5e   : > { %3495 = vmatprep.mubr.msk.bf16.mxu0 %vm146_vm2, %v4196_v13 }
  0x64   : > { %3342 = vmatmul.mubr.msk.bf16.gmra.mrb[28].mxu1 %vm146_vm2, %v4209_v29 }
  0x65   : > { %3496 = vmatmul.mubr.msk.bf16.gmra.mrb[12].mxu0 %vm146_vm2, %v4211_v30  ;;  %3347 = vmatprep.mubr.msk.bf16.mxu1 %vm146_vm2, %v299_v31  ;;  %v4261_v31 = vpack.c.bf16 %v1731_v21, %v1730_v18  ;;  %v291_v18 = vld [vmem:[#allocation2 + $0x120] sm:$0xff]  ;;  %v292_v21 = vld [vmem:[#allocation2 + $0x128] sm:$0xff] }
  0x66   : > { %3499 = vmatprep.mubr.msk.bf16.mxu0 %vm146_vm2, %v4213_v32  ;;  %v4311_v22 = vpack.c.bf16 %v292_v21, %v291_v18 }
  0x6c   : > { %3348 = vmatmul.mubr.msk.bf16.vlgmr.msra.gmra.mrb[0].mxu1 %vm146_vm2, %v4222_v48 }
  0x6d   : > { %3380 = vmatpush3.bf16.msra.mxu1 %v4083_v62  ;;  %3500 = vmatmul.mubr.msk.bf16.gmra.mrb[16].mxu0 %vm146_vm2, %v4224_v49  ;;  %v4243_v62 = vpack.c.bf16 %v274_v54, %v273_v53  ;;  %v285_v53 = vld [vmem:[#allocation2 + $0xd8] sm:$0xff]  ;;  %v286_v54 = vld [vmem:[#allocation2 + $0xe0] sm:$0xff] }
  0x6e   : > { %3351 = vmatprep.mubr.msk.bf16.mxu1 %vm146_vm2, %v4226_v50  ;;  %3503 = vmatprep.mubr.msk.bf16.mxu0 %vm146_vm2, %v4228_v51  ;;  %v4289_v1 = vpack.c.bf16 %v286_v54, %v285_v53  ;;  %v4333_v53 = vpack.c.bf16 %v298_v41, %v297_v37  ;;  %v836_v54 = vpack.c.bf16 %v805_v44, %v804_v42 }
  0x6f   : > { %3413 = vmatprep.subr.bf16.mxu1 %v4231_v52 }
  0x74   : > { %3352 = vmatmul.mubr.msk.bf16.gmra.mrb[4].mxu1 %vm146_vm2, %v4243_v62 }
  0x75   : > { %3504 = vmatmul.mubr.msk.bf16.gmra.mrb[20].mxu0 %vm146_vm2, %v4245_v8  ;;  %3355 = vmatprep.mubr.msk.bf16.mxu1 %vm146_vm2, %v4247_v9 }
  0x76   : > { %3507 = vmatprep.mubr.msk.bf16.mxu0 %vm146_vm2, %v4249_v15 }
  0x7c   : > { %3356 = vmatmul.mubr.msk.bf16.gmra.mrb[8].mxu1 %vm146_vm2, %v4259_v28 }
  0x7d   : > { %3508 = vmatmul.mubr.msk.bf16.gmra.mrb[24].mxu0 %vm146_vm2, %v4261_v31  ;;  %3359 = vmatprep.mubr.msk.bf16.mxu1 %vm146_vm2, %v4263_v33 }
  0x7e   : > { %3511 = vmatprep.mubr.msk.bf16.mxu0 %vm146_vm2, %v4265_v34 }
  0x84   : > { %3360 = vmatmul.mubr.msk.bf16.gmra.mrb[12].mxu1 %vm146_vm2, %v4275_v45 }
  0x85   : > { %3512 = vmatmul.mubr.msk.bf16.gmra.mrb[28].mxu0 %vm146_vm2, %v4277_v46  ;;  %3363 = vmatprep.mubr.msk.bf16.mxu1 %vm146_vm2, %v4279_v47 }
  0x86   : > { %3517 = vmatprep.mubr.msk.bf16.mxu0 %vm146_vm2, %v4226_v50 }
  0x8c   : > { %3364 = vmatmul.mubr.msk.bf16.gmra.mrb[16].mxu1 %vm146_vm2, %v4289_v1 }
  0x8d   : > { %3518 = vmatmul.mubr.msk.bf16.vlgmr.msra.gmra.mrb[0].mxu0 %vm146_vm2, %v4243_v62  ;;  %3367 = vmatprep.mubr.msk.bf16.mxu1 %vm146_vm2, %v4294_v5 }
  0x8e   : > { %3550 = vmatpush3.bf16.msra.mxu0 %v4171_v55  ;;  %3521 = vmatprep.mubr.msk.bf16.mxu0 %vm146_vm2, %v4247_v9  ;;  %v293_v55 = vld [vmem:[#allocation2 + $0x138] sm:$0xff] }
  0x8f   : > { %3583 = vmatprep.subr.bf16.mxu0 %v4297_v6  ;;  %v4321_v35 = vpack.c.bf16 %v294_v23, %v293_v55 }
  0x94   : > { %3368 = vmatmul.mubr.msk.bf16.gmra.mrb[20].mxu1 %vm146_vm2, %v4309_v7 }
  0x95   : > { %3522 = vmatmul.mubr.msk.bf16.gmra.mrb[4].mxu0 %vm146_vm2, %v4259_v28  ;;  %3371 = vmatprep.mubr.msk.bf16.mxu1 %vm146_vm2, %v4311_v22 }
  0x96   : > { %3525 = vmatprep.mubr.msk.bf16.mxu0 %vm146_vm2, %v4263_v33 }
  0x9c   : > { %3372 = vmatmul.mubr.msk.bf16.gmra.mrb[24].mxu1 %vm146_vm2, %v4321_v35 }
  0x9d   : > { %3526 = vmatmul.mubr.msk.bf16.gmra.mrb[8].mxu0 %vm146_vm2, %v4275_v45  ;;  %3375 = vmatprep.mubr.msk.bf16.mxu1 %vm146_vm2, %v4323_v36 }
  0x9e   : > { %3529 = vmatprep.mubr.msk.bf16.mxu0 %vm146_vm2, %v4279_v47 }
  0xa4   : > { %3376 = vmatmul.mubr.msk.bf16.gmra.mrb[28].mxu1 %vm146_vm2, %v4333_v53 }
  0xa5   : > { %3530 = vmatmul.mubr.msk.bf16.gmra.mrb[12].mxu0 %vm146_vm2, %v4289_v1  ;;  %3381 = vmatprep.mubr.msk.bf16.mxu1 %vm146_vm2, %v836_v54 }
  0xa6   : > { %3533 = vmatprep.mubr.msk.bf16.mxu0 %vm146_vm2, %v4294_v5 }
  0xac   : > { %3382 = vmatmul.mubr.msk.bf16.vlgmr.msra.gmra.mrb[0].mxu1 %vm146_vm2, %v4136_v26  ;;  %v2040_v26 = vld [vmem:[#allocation2 + $0x180] sm:$0xff] }
  0xad   : > { %3414 = vmatpush3.bf16.msra.mxu1 %v4231_v52  ;;  %3534 = vmatmul.mubr.msk.bf16.gmra.mrb[16].mxu0 %vm146_vm2, %v4309_v7  ;;  %v2041_v52 = vld [vmem:[#allocation2 + $0x188] sm:$0xff] }
  0xae   : > { %3385 = vmatprep.mubr.msk.bf16.mxu1 %vm146_vm2, %v4155_v39  ;;  %3537 = vmatprep.mubr.msk.bf16.mxu0 %vm146_vm2, %v4311_v22  ;;  %v4360_v63 = vpack.c.bf16 %v2041_v52, %v2040_v26 }
  0xaf   : > { %3617 = vmatprep.subr.bf16.mxu1 %v4004_v14 }
  0xb4   : > { %3386 = vmatmul.mubr.msk.bf16.gmra.mrb[4].mxu1 %vm146_vm2, %v4159_v43 }
  0xb5   : > { %3538 = vmatmul.mubr.msk.bf16.gmra.mrb[20].mxu0 %vm146_vm2, %v4321_v35  ;;  %3389 = vmatprep.mubr.msk.bf16.mxu1 %vm146_vm2, %v4175_v57 }
  0xb6   : > { %3541 = vmatprep.mubr.msk.bf16.mxu0 %vm146_vm2, %v4323_v36 }
  0xbc   : > { %3390 = vmatmul.mubr.msk.bf16.gmra.mrb[8].mxu1 %vm146_vm2, %v4180_v60 }
  0xbd   : > { %3542 = vmatmul.mubr.msk.bf16.gmra.mrb[24].mxu0 %vm146_vm2, %v4333_v53  ;;  %3393 = vmatprep.mubr.msk.bf16.mxu1 %vm146_vm2, %v4192_v11 }
  0xbe   : > { %3545 = vmatprep.mubr.msk.bf16.mxu0 %vm146_vm2, %v4360_v63 }
  0xc4   : > { %3394 = vmatmul.mubr.msk.bf16.gmra.mrb[12].mxu1 %vm146_vm2, %v4196_v13 }
  0xc5   : > { %3546 = vmatmul.mubr.msk.bf16.gmra.mrb[28].mxu0 %vm146_vm2, %v2059_v16  ;;  %3397 = vmatprep.mubr.msk.bf16.mxu1 %vm146_vm2, %v4211_v30 }
  0xc6   : > { %3551 = vmatprep.mubr.msk.bf16.mxu0 %vm146_vm2, %v4073_v58  ;;  %v2338_v58 = vld [vmem:[#allocation2 + $0x189] sm:$0xff] }
  0xcc   : > { %3398 = vmatmul.mubr.msk.bf16.gmra.mrb[16].mxu1 %vm146_vm2, %v4213_v32 }
  0xcd   : > { %3552 = vmatmul.mubr.msk.bf16.vlgmr.msra.gmra.mrb[0].mxu0 %vm146_vm2, %v4080_v61  ;;  %3401 = vmatprep.mubr.msk.bf16.mxu1 %vm146_vm2, %v4224_v49 }
  0xce   : > { %3584 = vmatpush3.bf16.msra.mxu0 %v4297_v6  ;;  %3555 = vmatprep.mubr.msk.bf16.mxu0 %vm146_vm2, %v4094_v3  ;;  %v2339_v3 = vld [vmem:[#allocation2 + $0x199] sm:$0xff] }
  0xd4   : > { %3402 = vmatmul.mubr.msk.bf16.gmra.mrb[20].mxu1 %vm146_vm2, %v4228_v51 }
  0xd5   : > { %3556 = vmatmul.mubr.msk.bf16.gmra.mrb[4].mxu0 %vm146_vm2, %v4096_v4  ;;  %3405 = vmatprep.mubr.msk.bf16.mxu1 %vm146_vm2, %v4245_v8  ;;  %v2340_v4 = vld [vmem:[#allocation2 + $0x1a1] sm:$0xff] }
  0xd6   : > { %3559 = vmatprep.mubr.msk.bf16.mxu0 %vm146_vm2, %v4122_v19  ;;  %v2356_v19 = vpack.c.bf16 %v2340_v4, %v2339_v3 }
  0xdc   : > { %3406 = vmatmul.mubr.msk.bf16.gmra.mrb[24].mxu1 %vm146_vm2, %v4249_v15 }
  0xdd   : > { %3560 = vmatmul.mubr.msk.bf16.gmra.mrb[8].mxu0 %vm146_vm2, %v4124_v20  ;;  %3409 = vmatprep.mubr.msk.bf16.mxu1 %vm146_vm2, %v4261_v31  ;;  %v2643_v20 = vld [vmem:[#allocation2 + $0x19a] sm:$0xff] }
  0xde   : > { %3563 = vmatprep.mubr.msk.bf16.mxu0 %vm146_vm2, %v4134_v25  ;;  %v2644_v25 = vld [vmem:[#allocation2 + $0x1a2] sm:$0xff] }
  0xe4   : > { %3410 = vmatmul.mubr.msk.bf16.gmra.mrb[28].mxu1 %vm146_vm2, %v4265_v34 }
  0xe5   : > { %3564 = vmatmul.mubr.msk.bf16.gmra.mrb[12].mxu0 %vm146_vm2, %v4153_v38  ;;  %3415 = vmatprep.mubr.msk.bf16.mxu1 %vm146_vm2, %v4222_v48 }
  0xe6   : > { %3567 = vmatprep.mubr.msk.bf16.mxu0 %vm146_vm2, %v4157_v40 }
  0xec   : > { %3416 = vmatmul.mubr.msk.bf16.vlgmr.msra.gmra.mrb[0].mxu1 %vm146_vm2, %v4226_v50 }
  0xed   : > { %3618 = vmatpush3.bf16.msra.mxu1 %v4004_v14  ;;  %3568 = vmatmul.mubr.msk.bf16.gmra.mrb[16].mxu0 %vm146_vm2, %v4173_v56  ;;  %v2337_v14 = vld [vmem:[#allocation2 + $0x181] sm:$0xff] }
  0xee   : > { %3419 = vmatprep.mubr.msk.bf16.mxu1 %vm146_vm2, %v4243_v62  ;;  %3571 = vmatprep.mubr.msk.bf16.mxu0 %vm146_vm2, %v4177_v59  ;;  %v2355_v61 = vpack.c.bf16 %v2338_v58, %v2337_v14 }
  0xf4   : > { %3420 = vmatmul.mubr.msk.bf16.gmra.mrb[4].mxu1 %vm146_vm2, %v4247_v9 }
  0xf5   : > { %3572 = vmatmul.mubr.msk.bf16.gmra.mrb[20].mxu0 %vm146_vm2, %v4190_v10  ;;  %3423 = vmatprep.mubr.msk.bf16.mxu1 %vm146_vm2, %v4259_v28 }
  0xf6   : > { %3575 = vmatprep.mubr.msk.bf16.mxu0 %vm146_vm2, %v4194_v12 }
  0xfc   : > { %3424 = vmatmul.mubr.msk.bf16.gmra.mrb[8].mxu1 %vm146_vm2, %v4263_v33 }
  0xfd   : > { %3576 = vmatmul.mubr.msk.bf16.gmra.mrb[24].mxu0 %vm146_vm2, %v4209_v29  ;;  %3427 = vmatprep.mubr.msk.bf16.mxu1 %vm146_vm2, %v4275_v45 }
  0xfe   : > { %3579 = vmatprep.mubr.msk.bf16.mxu0 %vm146_vm2, %v2355_v61 }
 0x104   : > { %3428 = vmatmul.mubr.msk.bf16.gmra.mrb[12].mxu1 %vm146_vm2, %v4279_v47 }
 0x105   : > { %3580 = vmatmul.mubr.msk.bf16.gmra.mrb[28].mxu0 %vm146_vm2, %v2356_v19  ;;  %3431 = vmatprep.mubr.msk.bf16.mxu1 %vm146_vm2, %v4289_v1 }
 0x106   : > { %3585 = vmatprep.mubr.msk.bf16.mxu0 %vm146_vm2, %v4155_v39 }
 0x10c   : > { %3432 = vmatmul.mubr.msk.bf16.gmra.mrb[16].mxu1 %vm146_vm2, %v4294_v5 }
 0x10d   : > { %3586 = vmatmul.mubr.msk.bf16.vlgmr.msra.gmra.mrb[0].mxu0 %vm146_vm2, %v4159_v43  ;;  %3435 = vmatprep.mubr.msk.bf16.mxu1 %vm146_vm2, %v4309_v7 }
 0x10e   : > { %3589 = vmatprep.mubr.msk.bf16.mxu0 %vm146_vm2, %v4175_v57 }
 0x114   : > { %3436 = vmatmul.mubr.msk.bf16.gmra.mrb[20].mxu1 %vm146_vm2, %v4311_v22 }
 0x115   : > { %3590 = vmatmul.mubr.msk.bf16.gmra.mrb[4].mxu0 %vm146_vm2, %v4180_v60  ;;  %3439 = vmatprep.mubr.msk.bf16.mxu1 %vm146_vm2, %v4321_v35 }
 0x116   : > { %3593 = vmatprep.mubr.msk.bf16.mxu0 %vm146_vm2, %v4192_v11 }
 0x11c   : > { %3440 = vmatmul.mubr.msk.bf16.gmra.mrb[24].mxu1 %vm146_vm2, %v4323_v36 }
 0x11d   : > { %3594 = vmatmul.mubr.msk.bf16.gmra.mrb[8].mxu0 %vm146_vm2, %v4196_v13  ;;  %3443 = vmatprep.mubr.msk.bf16.mxu1 %vm146_vm2, %v4333_v53 }
 0x11e   : > { %3597 = vmatprep.mubr.msk.bf16.mxu0 %vm146_vm2, %v4211_v30 }
 0x124   : > { %3444 = vmatmul.mubr.msk.bf16.gmra.mrb[28].mxu1 %vm146_vm2, %v4360_v63 }
 0x125   : > { %3598 = vmatmul.mubr.msk.bf16.gmra.mrb[12].mxu0 %vm146_vm2, %v4213_v32  ;;  %3465 = vmatprep.mubr.msk.bf16.mxu1 %vm146_vm2, %v4153_v38  ;;  %v2660_v38 = vpack.c.bf16 %v2644_v25, %v2643_v20 }
 0x126   : > { %3601 = vmatprep.mubr.msk.bf16.mxu0 %vm146_vm2, %v4224_v49 }
 0x12c   : > { %3466 = vmatmul.mubr.msk.bf16.vlgmr.msra.gmra.mrb[16].mxu1 %vm146_vm2, %v4157_v40 }
 0x12d   : > { %3602 = vmatmul.mubr.msk.bf16.gmra.mrb[16].mxu0 %vm146_vm2, %v4228_v51  ;;  %3469 = vmatprep.mubr.msk.bf16.mxu1 %vm146_vm2, %v4173_v56 }
 0x12e   : > { %3605 = vmatprep.mubr.msk.bf16.mxu0 %vm146_vm2, %v4245_v8 }
 0x134   : > { %3470 = vmatmul.mubr.msk.bf16.gmra.mrb[20].mxu1 %vm146_vm2, %v4177_v59 }
 0x135   : > { %3606 = vmatmul.mubr.msk.bf16.gmra.mrb[20].mxu0 %vm146_vm2, %v4249_v15  ;;  %3473 = vmatprep.mubr.msk.bf16.mxu1 %vm146_vm2, %v4190_v10 }
 0x136   : > { %3609 = vmatprep.mubr.msk.bf16.mxu0 %vm146_vm2, %v4261_v31 }
 0x13c   : > { %3474 = vmatmul.mubr.msk.bf16.gmra.mrb[24].mxu1 %vm146_vm2, %v4194_v12 }
 0x13d   : > { %3610 = vmatmul.mubr.msk.bf16.gmra.mrb[24].mxu0 %vm146_vm2, %v4265_v34  ;;  %3477 = vmatprep.mubr.msk.bf16.mxu1 %vm146_vm2, %v4209_v29 }
 0x13e   : > { %3613 = vmatprep.mubr.msk.bf16.mxu0 %vm146_vm2, %v4277_v46 }
 0x144   : > { %3478 = vmatmul.mubr.msk.bf16.gmra.mrb[28].mxu1 %vm146_vm2, %v2355_v61 }
 0x145   : > { %3614 = vmatmul.mubr.msk.bf16.gmra.mrb[28].mxu0 %vm146_vm2, %v2660_v38 }
 0x1bf   : > { %v3417_v39 = vpop.f32.mrb[0].mxu1 }
 0x1c0   : > { %v1248_v40 = vpop.f32.mrb[1].mxu1 }
 0x1c1   : > { %v3418_v43 = vpop.f32.mrb[2].mxu1 }
 0x1c2   : > { %v1251_v56 = vpop.f32.mrb[3].mxu1 }
 0x1c7   : > { %v3421_v57 = vpop.f32.mrb[4].mxu1 }
 0x1c8   : > { %v1264_v59 = vpop.f32.mrb[5].mxu1 }
 0x1c9   : > { %v3422_v60 = vpop.f32.mrb[6].mxu1 }
 0x1ca   : > { %v1267_v10 = vpop.f32.mrb[7].mxu1 }
 0x1cf   : > { %v3425_v11 = vpop.f32.mrb[8].mxu1 }
 0x1d0   : > { %v1280_v12 = vpop.f32.mrb[9].mxu1 }
 0x1d1   : > { %v3426_v13 = vpop.f32.mrb[10].mxu1 }
 0x1d2   : > { %v1283_v29 = vpop.f32.mrb[11].mxu1 }
 0x1d7   : > { %v3429_v30 = vpop.f32.mrb[12].mxu1 }
 0x1d8   : > { %v1296_v32 = vpop.f32.mrb[13].mxu1 }
 0x1d9   : > { %v3430_v48 = vpop.f32.mrb[14].mxu1 }
 0x1da   : > { %v1299_v49 = vpop.f32.mrb[15].mxu1 }
 0x1e0   : > { %v3587_v50 = vpop.f32.mrb[0].mxu0 }
 0x1e1   : > { %v3619_v51 = vadd.f32 %v3587_v50, %v3417_v39  ;;  %v2747_v62 = vpop.f32.mrb[1].mxu0 }
 0x1e2   : > { %v3620_v8 = vadd.f32 %v2747_v62, %v1248_v40  ;;  %v3588_v9 = vpop.f32.mrb[2].mxu0 }
 0x1e3   : > { %2909 = vst.msk [vmem:[%s4503_s12 + $0x10] sm:$0xff] %vm2906_vm4, %v3619_v51  ;;  %v3621_v15 = vadd.f32 %v3588_v9, %v3418_v43  ;;  %v2750_v28 = vpop.f32.mrb[3].mxu0 }
 0x1e4   : > { %2907 = vst.msk [vmem:[%s4503_s12] sm:$0xff] %vm2906_vm4, %v3620_v8  ;;  %v3622_v31 = vadd.f32 %v2750_v28, %v1251_v56 }
 0x1e5   : > { %2910 = vst.msk [vmem:[%s4503_s12 + $0x18] sm:$0xff] %vm2906_vm4, %v3621_v15 }
 0x1e6   : > { %2908 = vst.msk [vmem:[%s4503_s12 + $0x8] sm:$0xff] %vm2906_vm4, %v3622_v31 }
 0x1e8   : > { %v3591_v33 = vpop.f32.mrb[4].mxu0 }
 0x1e9   : > { %v3623_v34 = vadd.f32 %v3591_v33, %v3421_v57  ;;  %v2763_v45 = vpop.f32.mrb[5].mxu0 }
 0x1ea   : > { %v3624_v46 = vadd.f32 %v2763_v45, %v1264_v59  ;;  %v3592_v47 = vpop.f32.mrb[6].mxu0 }
 0x1eb   : > { %2913 = vst.msk [vmem:[%s4503_s12 + $0x30] sm:$0xff] %vm2906_vm4, %v3623_v34  ;;  %v3625_v1 = vadd.f32 %v3592_v47, %v3422_v60  ;;  %v2766_v5 = vpop.f32.mrb[7].mxu0 }
 0x1ec   : > { %2911 = vst.msk [vmem:[%s4503_s12 + $0x20] sm:$0xff] %vm2906_vm4, %v3624_v46  ;;  %v3626_v6 = vadd.f32 %v2766_v5, %v1267_v10 }
 0x1ed   : > { %2914 = vst.msk [vmem:[%s4503_s12 + $0x38] sm:$0xff] %vm2906_vm4, %v3625_v1 }
 0x1ee   : > { %2912 = vst.msk [vmem:[%s4503_s12 + $0x28] sm:$0xff] %vm2906_vm4, %v3626_v6 }
 0x1f0   : > { %v3595_v17 = vpop.f32.mrb[8].mxu0 }
 0x1f1   : > { %v3627_v18 = vadd.f32 %v3595_v17, %v3425_v11  ;;  %v2779_v21 = vpop.f32.mrb[9].mxu0 }
 0x1f2   : > { %v3628_v7 = vadd.f32 %v2779_v21, %v1280_v12  ;;  %v3596_v22 = vpop.f32.mrb[10].mxu0 }
 0x1f3   : > { %2917 = vst.msk [vmem:[%s4503_s12 + $0x50] sm:$0xff] %vm2906_vm4, %v3627_v18  ;;  %v3629_v55 = vadd.f32 %v3596_v22, %v3426_v13  ;;  %v2782_v23 = vpop.f32.mrb[11].mxu0 }
 0x1f4   : > { %2915 = vst.msk [vmem:[%s4503_s12 + $0x40] sm:$0xff] %vm2906_vm4, %v3628_v7  ;;  %v3630_v24 = vadd.f32 %v2782_v23, %v1283_v29 }
 0x1f5   : > { %2918 = vst.msk [vmem:[%s4503_s12 + $0x58] sm:$0xff] %vm2906_vm4, %v3629_v55 }
 0x1f6   : > { %2916 = vst.msk [vmem:[%s4503_s12 + $0x48] sm:$0xff] %vm2906_vm4, %v3630_v24 }
 0x1f8   : > { %v3599_v27 = vpop.f32.mrb[12].mxu0 }
 0x1f9   : > { %v3631_v35 = vadd.f32 %v3599_v27, %v3429_v30  ;;  %v2795_v36 = vpop.f32.mrb[13].mxu0 }
 0x1fa   : > { %v3632_v37 = vadd.f32 %v2795_v36, %v1296_v32  ;;  %v3600_v41 = vpop.f32.mrb[14].mxu0 }
 0x1fb   : > { %2921 = vst.msk [vmem:[%s4503_s12 + $0x70] sm:$0xff] %vm2906_vm4, %v3631_v35  ;;  %v3633_v42 = vadd.f32 %v3600_v41, %v3430_v48  ;;  %v2798_v44 = vpop.f32.mrb[15].mxu0 }
 0x1fc   : > { %2919 = vst.msk [vmem:[%s4503_s12 + $0x60] sm:$0xff] %vm2906_vm4, %v3632_v37  ;;  %v3634_v53 = vadd.f32 %v2798_v44, %v1299_v49 }
 0x1fd   : > { %2922 = vst.msk [vmem:[%s4503_s12 + $0x78] sm:$0xff] %vm2906_vm4, %v3633_v42 }
 0x1fe   : > { %2920 = vst.msk [vmem:[%s4503_s12 + $0x68] sm:$0xff] %vm2906_vm4, %v3634_v53 }
 0x1ff   : > { %v3467_v54 = vpop.f32.mrb[16].mxu1 }
 0x200   : > { %v1609_v26 = vpop.f32.mrb[17].mxu1  ;;  %v3603_v52 = vpop.f32.mrb[16].mxu0 }
 0x201   : > { %v3635_v63 = vadd.f32 %v3603_v52, %v3467_v54  ;;  %v3468_v0 = vpop.f32.mrb[18].mxu1  ;;  %v2811_v2 = vpop.f32.mrb[17].mxu0 }
 0x202   : > { %v3636_v16 = vadd.f32 %v2811_v2, %v1609_v26  ;;  %v1612_v14 = vpop.f32.mrb[19].mxu1  ;;  %v3604_v58 = vpop.f32.mrb[18].mxu0 }
 0x203   : > { %2925 = vst.msk [vmem:[%s4503_s12 + $0x90] sm:$0xff] %vm2906_vm4, %v3635_v63  ;;  %v3637_v61 = vadd.f32 %v3604_v58, %v3468_v0  ;;  %v2814_v3 = vpop.f32.mrb[19].mxu0 }
 0x204   : > { %2923 = vst.msk [vmem:[%s4503_s12 + $0x80] sm:$0xff] %vm2906_vm4, %v3636_v16  ;;  %v3638_v4 = vadd.f32 %v2814_v3, %v1612_v14 }
 0x205   : > { %2926 = vst.msk [vmem:[%s4503_s12 + $0x98] sm:$0xff] %vm2906_vm4, %v3637_v61 }
 0x206   : > { %2924 = vst.msk [vmem:[%s4503_s12 + $0x88] sm:$0xff] %vm2906_vm4, %v3638_v4 }
 0x207   : > { %v3471_v19 = vpop.f32.mrb[20].mxu1 }
 0x208   : > { %v1625_v20 = vpop.f32.mrb[21].mxu1  ;;  %v3607_v25 = vpop.f32.mrb[20].mxu0 }
 0x209   : > { %v3639_v38 = vadd.f32 %v3607_v25, %v3471_v19  ;;  %v3472_v39 = vpop.f32.mrb[22].mxu1  ;;  %v2827_v40 = vpop.f32.mrb[21].mxu0 }
 0x20a   : > { %v3640_v43 = vadd.f32 %v2827_v40, %v1625_v20  ;;  %v1628_v56 = vpop.f32.mrb[23].mxu1  ;;  %v3608_v57 = vpop.f32.mrb[22].mxu0 }
 0x20b   : > { %2929 = vst.msk [vmem:[%s4503_s12 + $0xb0] sm:$0xff] %vm2906_vm4, %v3639_v38  ;;  %v3641_v59 = vadd.f32 %v3608_v57, %v3472_v39  ;;  %v2830_v60 = vpop.f32.mrb[23].mxu0 }
 0x20c   : > { %2927 = vst.msk [vmem:[%s4503_s12 + $0xa0] sm:$0xff] %vm2906_vm4, %v3640_v43  ;;  %v3642_v10 = vadd.f32 %v2830_v60, %v1628_v56 }
 0x20d   : > { %2930 = vst.msk [vmem:[%s4503_s12 + $0xb8] sm:$0xff] %vm2906_vm4, %v3641_v59 }
 0x20e   : > { %2928 = vst.msk [vmem:[%s4503_s12 + $0xa8] sm:$0xff] %vm2906_vm4, %v3642_v10 }
 0x20f   : > { %v3475_v11 = vpop.f32.mrb[24].mxu1 }
 0x210   : > { %v1641_v12 = vpop.f32.mrb[25].mxu1  ;;  %v3611_v13 = vpop.f32.mrb[24].mxu0 }
 0x211   : > { %v3643_v29 = vadd.f32 %v3611_v13, %v3475_v11  ;;  %v3476_v30 = vpop.f32.mrb[26].mxu1  ;;  %v2843_v32 = vpop.f32.mrb[25].mxu0 }
 0x212   : > { %v3644_v48 = vadd.f32 %v2843_v32, %v1641_v12  ;;  %v1644_v49 = vpop.f32.mrb[27].mxu1  ;;  %v3612_v50 = vpop.f32.mrb[26].mxu0 }
 0x213   : > { %2933 = vst.msk [vmem:[%s4503_s12 + $0xd0] sm:$0xff] %vm2906_vm4, %v3643_v29  ;;  %v3645_v51 = vadd.f32 %v3612_v50, %v3476_v30  ;;  %v2846_v62 = vpop.f32.mrb[27].mxu0 }
 0x214   : > { %2931 = vst.msk [vmem:[%s4503_s12 + $0xc0] sm:$0xff] %vm2906_vm4, %v3644_v48  ;;  %v3646_v8 = vadd.f32 %v2846_v62, %v1644_v49 }
 0x215   : > { %2934 = vst.msk [vmem:[%s4503_s12 + $0xd8] sm:$0xff] %vm2906_vm4, %v3645_v51 }
 0x216   : > { %2932 = vst.msk [vmem:[%s4503_s12 + $0xc8] sm:$0xff] %vm2906_vm4, %v3646_v8 }
 0x217   : > { %v3479_v9 = vpop.f32.mrb[28].mxu1 }
 0x218   : > { %v1657_v15 = vpop.f32.mrb[29].mxu1  ;;  %v3615_v28 = vpop.f32.mrb[28].mxu0 }
 0x219   : > { %v3647_v31 = vadd.f32 %v3615_v28, %v3479_v9  ;;  %v3480_v33 = vpop.f32.mrb[30].mxu1  ;;  %v2859_v34 = vpop.f32.mrb[29].mxu0 }
 0x21a   : > { %v3648_v45 = vadd.f32 %v2859_v34, %v1657_v15  ;;  %v1660_v46 = vpop.f32.mrb[31].mxu1  ;;  %v3616_v47 = vpop.f32.mrb[30].mxu0 }
 0x21b   : > { %2937 = vst.msk [vmem:[%s4503_s12 + $0xf0] sm:$0xff] %vm2906_vm4, %v3647_v31  ;;  %v3649_v1 = vadd.f32 %v3616_v47, %v3480_v33  ;;  %v2862_v5 = vpop.f32.mrb[31].mxu0 }
 0x21c   : > { %2935 = vst.msk [vmem:[%s4503_s12 + $0xe0] sm:$0xff] %vm2906_vm4, %v3648_v45  ;;  %v3650_v6 = vadd.f32 %v2862_v5, %v1660_v46 }
 0x21d   : > { %2938 = vst.msk [vmem:[%s4503_s12 + $0xf8] sm:$0xff] %vm2906_vm4, %v3649_v1 }
 0x21e   : > { %2936 = vst.msk [vmem:[%s4503_s12 + $0xe8] sm:$0xff] %vm2906_vm4, %v3650_v6 }
 0x21f PF: > { %s12_s9 = sadd.s32 1, %s3898_s9  }
 0x220   : > { %p9_p5 = scmp.ge.s32.totalorder %s12_s9, 4  }
 0x222   :  { %11 = sbr.rel (!%p9_p5) target bundleno = 1 (0x1), region = 60 }

// kernel: _lambda_.9
= control target key start
LH: loop header
LB: loop body
LE: loop exit
PB: predicated region body
PF: predicated region fallthrough
CT: control target
= control target key end

     0   :  { %s4752_s27 = smov 0   ;;  %s5728_s0 = inlined_call_operand.vmem [shape: f32[2,16,16,16], index: 0, kind: input, shape index: {}]   ;;  %s5729_s1 = inlined_call_operand.vmem [shape: bf16[144,32], index: 1, kind: input, shape index: {}]   ;;  %s5730_s2 = inlined_call_operand.vmem [shape: bf16[16,32], index: 2, kind: input, shape index: {}]   ;;  %s5731_s3 = inlined_call_operand.vmem [shape: f32[1,16], index: 3, kind: input, shape index: {}]   ;;  %s5732_s4 = inlined_call_operand.vmem [shape: f32[1,16], index: 4, kind: input, shape index: {}]   ;;  %s5733_s5 = inlined_call_operand.vmem [shape: f32[1,32], index: 5, kind: input, shape index: {}]   ;;  %s5734_s6 = inlined_call_operand.vmem [shape: f32[1,32], index: 6, kind: input, shape index: {}]   ;;  %s5735_s7 = inlined_call_operand.vmem [shape: f32[512,32], index: 7, kind: output, shape index: {0}]   ;;  %s5736_s8 = inlined_call_operand.vmem [shape: f32[512,32], index: 8, kind: output, shape index: {1}]  }
   0x1 LB: > { %s4758_s28 = sadd.s32 4294967295, %s4704_s27   ;;  %p3729_p0 = scmp.ge.s32.totalorder %s4704_s27, 1  ;;  %s4704_s27 = sphi %s4752_s27, %s19_s27  }
   0x2   : > { %p265_p1 = scmp.lt.s32.totalorder %s4704_s27, 3 }
   0x4   : > { %p266_p2 = pnand %p3729_p0, %p265_p1 }
   0x5   : > { %v4688_v0 = vld [vmem:[%s5729_s1 + $0x8] sm:$0xff] (!%p266_p2)   ;;  %vm322_vm0 = vcmask (!%p266_p2), 130048   ;;  %v4689_v1 = vld [vmem:[%s5729_s1 + $0x20] sm:$0xff] (!%p266_p2)   ;;  %v4706_v2 = vmov (!%p266_p2), 0.0   ;;  %vm325_vm1 = vcmask (!%p266_p2), 123904   ;;  %p304_p3 = scmp.lt.s32.totalorder (!%p266_p2), %s4758_s28, 1 }
   0x6   : > { %269 = sbr.rel (%p266_p2) target bundleno = 581 (0x245), region = 48  ;;  %4083 = vmatprep.subr.bf16.mxu1 (!%p266_p2), %v4688_v0  ;;  %323 = vst.msk [vmem:[#allocation2] sm:$0xff] (!%p266_p2), %vm322_vm0, %v4706_v2  ;;  %324 = vst.msk [vmem:[#allocation2 + $0x8] sm:$0xff] (!%p266_p2), %vm322_vm0, %v4706_v2  ;;  %4219 = vmatprep.subr.bf16.mxu0 (!%p266_p2), %v4689_v1  ;;  %v4826_v3 = vld [vmem:[%s5729_s1 + $0x28] sm:$0xff] (!%p266_p2)   ;;  %v4834_v4 = vld [vmem:[%s5729_s1] sm:$0xff] (!%p266_p2)   ;;  %s3732_s16 = sshll.u32 (!%p266_p2), %s4758_s28, 5 }
   0x7   : > { %327 = vst.msk [vmem:[#allocation2 + $0x18] sm:$0xff] (!%p266_p2), %vm322_vm0, %v4706_v2  ;;  %328 = vst.msk [vmem:[#allocation2 + $0x20] sm:$0xff] (!%p266_p2), %vm322_vm0, %v4706_v2  ;;  %4084 = vmatpush3.bf16.msra.mxu1 (!%p266_p2), %v4688_v0  ;;  %4220 = vmatpush3.bf16.msra.mxu0 (!%p266_p2), %v4689_v1  ;;  %v4839_v5 = vld [vmem:[%s5731_s3] ss:$0 sm:$0xff] (!%p266_p2)  ;;  %p310_p4 = scmp.lt.s32.totalorder (!%p266_p2), %s3732_s16, 63 }
   0x8   : > { %330 = vst.msk [vmem:[#allocation2 + $0x30] sm:$0xff] (!%p266_p2), %vm322_vm0, %v4706_v2  ;;  %331 = vst.msk [vmem:[#allocation2 + $0x38] sm:$0xff] (!%p266_p2), %vm322_vm0, %v4706_v2  ;;  %4253 = vmatprep.subr.bf16.mxu0 (!%p266_p2), %v4826_v3  ;;  %v4845_v6 = vld [vmem:[%s5732_s4] ss:$0 sm:$0xff] (!%p266_p2)  ;;  %4117 = vmatprep.subr.bf16.mxu1 (!%p266_p2), %v4834_v4 }
   0x9   : > { %333 = vst.msk [vmem:[#allocation2 + $0x48] sm:$0xff] (!%p266_p2), %vm322_vm0, %v4706_v2  ;;  %334 = vst.msk [vmem:[#allocation2 + $0x50] sm:$0xff] (!%p266_p2), %vm322_vm0, %v4706_v2 }
   0xa   : > { %336 = vst.msk [vmem:[#allocation2 + $0x60] sm:$0xff] (!%p266_p2), %vm322_vm0, %v4706_v2  ;;  %337 = vst.msk [vmem:[#allocation2 + $0x68] sm:$0xff] (!%p266_p2), %vm322_vm0, %v4706_v2 }
   0xb   : > { %339 = vst.msk [vmem:[#allocation2 + $0x78] sm:$0xff] (!%p266_p2), %vm322_vm0, %v4706_v2  ;;  %340 = vst.msk [vmem:[#allocation2 + $0x80] sm:$0xff] (!%p266_p2), %vm322_vm0, %v4706_v2 }
   0xc   : > { %342 = vst.msk [vmem:[#allocation2 + $0x90] sm:$0xff] (!%p266_p2), %vm322_vm0, %v4706_v2  ;;  %343 = vst.msk [vmem:[#allocation2 + $0x98] sm:$0xff] (!%p266_p2), %vm322_vm0, %v4706_v2 }
   0xd   : > { %345 = vst.msk [vmem:[#allocation2 + $0xa8] sm:$0xff] %vm322_vm0, %v4706_v2  ;;  %346 = vst.msk [vmem:[#allocation2 + $0xb0] sm:$0xff] %vm322_vm0, %v4706_v2  ;;  %s305_s13 = scalar_select %p304_p3, %s4758_s28, 1  ;;  %v667_v10 = vld [vmem:[#allocation2 + $0x1] sm:$0xff] }
   0xe   : > { %348 = vst.msk [vmem:[#allocation2 + $0xc0] sm:$0xff] %vm322_vm0, %v4706_v2  ;;  %349 = vst.msk [vmem:[#allocation2 + $0xc8] sm:$0xff] %vm322_vm0, %v4706_v2  ;;  %s5738_s16 = smov (!%p310_p4, %s3732_s16), 63 }
   0xf   : > { %351 = vst.msk [vmem:[#allocation2 + $0xd8] sm:$0xff] %vm322_vm0, %v4706_v2  ;;  %352 = vst.msk [vmem:[#allocation2 + $0xe0] sm:$0xff] %vm322_vm0, %v4706_v2  ;;  %s3912_s18 = sshll.u32 %s305_s13, 8  ;;  %s3733_s17 = sshll.u32 %s5738_s16, 3 }
  0x10   : > { %354 = vst.msk [vmem:[#allocation2 + $0xf0] sm:$0xff] %vm322_vm0, %v4706_v2  ;;  %355 = vst.msk [vmem:[#allocation2 + $0xf8] sm:$0xff] %vm322_vm0, %v4706_v2  ;;  %s4851_s23 = scalar_lea.vmem %s5728_s0, %s3912_s18  ;;  %s5488_s19 = scalar_lea.vmem %s5736_s8, %s3733_s17 }
  0x11   : > { %357 = vst.msk [vmem:[#allocation2 + $0x108] sm:$0xff] %vm322_vm0, %v4706_v2  ;;  %358 = vst.msk [vmem:[#allocation2 + $0x110] sm:$0xff] %vm322_vm0, %v4706_v2  ;;  %v378_v7 = vld [vmem:[%s4851_s23] sm:$0xff]  ;;  %v379_v8 = vld [vmem:[%s4851_s23 + $0x8] sm:$0xff]  ;;  %s5517_s26 = scalar_lea.vmem %s5735_s7, %s3733_s17 }
  0x12   : > { %360 = vst.msk [vmem:[#allocation2 + $0x120] sm:$0xff] %vm322_vm0, %v4706_v2  ;;  %361 = vst.msk [vmem:[#allocation2 + $0x128] sm:$0xff] %vm322_vm0, %v4706_v2  ;;  %v380_v9 = vld [vmem:[%s4851_s23 + $0x10] sm:$0xff]  ;;  %v417_v11 = vmul.f32 %v4839_v5, %v378_v7  ;;  %v418_v12 = vmul.f32 %v4839_v5, %v379_v8  ;;  %v381_v13 = vld [vmem:[%s4851_s23 + $0x18] sm:$0xff] }
  0x13   : > { %363 = vst.msk [vmem:[#allocation2 + $0x138] sm:$0xff] %vm322_vm0, %v4706_v2  ;;  %364 = vst.msk [vmem:[#allocation2 + $0x140] sm:$0xff] %vm322_vm0, %v4706_v2  ;;  %v419_v14 = vmul.f32 %v4839_v5, %v380_v9  ;;  %v382_v15 = vld [vmem:[%s4851_s23 + $0x20] sm:$0xff]  ;;  %v420_v17 = vmul.f32 %v4839_v5, %v381_v13  ;;  %v383_v18 = vld [vmem:[%s4851_s23 + $0x28] sm:$0xff] }
  0x14   : > { %366 = vst.msk [vmem:[#allocation2 + $0x150] sm:$0xff] %vm322_vm0, %v4706_v2  ;;  %367 = vst.msk [vmem:[#allocation2 + $0x158] sm:$0xff] %vm322_vm0, %v4706_v2  ;;  %v421_v19 = vmul.f32 %v4839_v5, %v382_v15  ;;  %v384_v20 = vld [vmem:[%s4851_s23 + $0x30] sm:$0xff]  ;;  %v456_v22 = vadd.f32 %v4845_v6, %v417_v11  ;;  %v457_v23 = vadd.f32 %v4845_v6, %v418_v12  ;;  %v385_v28 = vld [vmem:[%s4851_s23 + $0x38] sm:$0xff] }
  0x15   : > { %369 = vst.msk [vmem:[#allocation2 + $0x168] sm:$0xff] %vm322_vm0, %v4706_v2  ;;  %370 = vst.msk [vmem:[#allocation2 + $0x170] sm:$0xff] %vm322_vm0, %v4706_v2  ;;  %v458_v24 = vadd.f32 %v4845_v6, %v419_v14  ;;  %v459_v25 = vadd.f32 %v4845_v6, %v420_v17  ;;  %v422_v26 = vmul.f32 %v4839_v5, %v383_v18  ;;  %v386_v30 = vld [vmem:[%s4851_s23 + $0x40] sm:$0xff]  ;;  %v387_v38 = vld [vmem:[%s4851_s23 + $0x48] sm:$0xff] }
  0x16   : > { %372 = vst.msk [vmem:[#allocation2 + $0x180] sm:$0xff] %vm322_vm0, %v4706_v2  ;;  %373 = vst.msk [vmem:[#allocation2 + $0x188] sm:$0xff] %vm322_vm0, %v4706_v2  ;;  %v460_v27 = vadd.f32 %v4845_v6, %v421_v19  ;;  %v423_v29 = vmul.f32 %v4839_v5, %v384_v20  ;;  %vm488_vm2 = vcmp.ge.f32.partialorder %v456_v22, 0.0  ;;  %vm489_vm3 = vcmp.ge.f32.partialorder %v457_v23, 0.0  ;;  %v388_v39 = vld [vmem:[%s4851_s23 + $0x50] sm:$0xff]  ;;  %v389_v47 = vld [vmem:[%s4851_s23 + $0x58] sm:$0xff] }
  0x17   : > { %375 = vst.msk [vmem:[#allocation2 + $0x198] sm:$0xff] %vm322_vm0, %v4706_v2  ;;  %376 = vst.msk [vmem:[#allocation2 + $0x1a0] sm:$0xff] %vm322_vm0, %v4706_v2  ;;  %v520_v31 = vmul.f32 0.1, %v456_v22  ;;  %v521_v32 = vmul.f32 0.1, %v457_v23  ;;  %v461_v37 = vadd.f32 %v4845_v6, %v422_v26  ;;  %v424_v43 = vmul.f32 %v4839_v5, %v385_v28 }
  0x18   : > { %326 = vst.msk [vmem:[#allocation2 + $0x10] sm:$0x3] %vm325_vm1, %v4706_v2  ;;  %329 = vst.msk [vmem:[#allocation2 + $0x28] sm:$0x3] %vm325_vm1, %v4706_v2  ;;  %vm490_vm4 = vcmp.ge.f32.partialorder %v458_v24, 0.0  ;;  %vm491_vm5 = vcmp.ge.f32.partialorder %v459_v25, 0.0  ;;  %v462_v45 = vadd.f32 %v4845_v6, %v423_v29  ;;  %v425_v46 = vmul.f32 %v4839_v5, %v386_v30 }
  0x19   : > { %332 = vst.msk [vmem:[#allocation2 + $0x40] sm:$0x3] %vm325_vm1, %v4706_v2  ;;  %335 = vst.msk [vmem:[#allocation2 + $0x58] sm:$0x3] %vm325_vm1, %v4706_v2  ;;  %v522_v33 = vmul.f32 0.1, %v458_v24  ;;  %v552_v35 = vsel %vm488_vm2, %v456_v22, %v520_v31  ;;  %v553_v36 = vsel %vm489_vm3, %v457_v23, %v521_v32  ;;  %v463_v49 = vadd.f32 %v4845_v6, %v424_v43 }
  0x1a   : > { %338 = vst.msk [vmem:[#allocation2 + $0x70] sm:$0x3] %vm325_vm1, %v4706_v2  ;;  %341 = vst.msk [vmem:[#allocation2 + $0x88] sm:$0x3] %vm325_vm1, %v4706_v2  ;;  %v523_v34 = vmul.f32 0.1, %v459_v25  ;;  %v426_v50 = vmul.f32 %v4839_v5, %v387_v38  ;;  %v427_v51 = vmul.f32 %v4839_v5, %v388_v39  ;;  %v464_v54 = vadd.f32 %v4845_v6, %v425_v46 }
  0x1b   : > { %344 = vst.msk [vmem:[#allocation2 + $0xa0] sm:$0x3] %vm325_vm1, %v4706_v2  ;;  %347 = vst.msk [vmem:[#allocation2 + $0xb8] sm:$0x3] %vm325_vm1, %v4706_v2  ;;  %vm492_vm6 = vcmp.ge.f32.partialorder %v460_v27, 0.0  ;;  %v554_v40 = vsel %vm490_vm4, %v458_v24, %v522_v33  ;;  %vm493_vm7 = vcmp.ge.f32.partialorder %v461_v37, 0.0  ;;  %v428_v57 = vmul.f32 %v4839_v5, %v389_v47 }
  0x1c   : > { %350 = vst.msk [vmem:[#allocation2 + $0xd0] sm:$0x3] %vm325_vm1, %v4706_v2  ;;  %353 = vst.msk [vmem:[#allocation2 + $0xe8] sm:$0x3] %vm325_vm1, %v4706_v2  ;;  %v555_v41 = vsel %vm491_vm5, %v459_v25, %v523_v34  ;;  %v524_v42 = vmul.f32 0.1, %v460_v27  ;;  %v465_v56 = vadd.f32 %v4845_v6, %v426_v50  ;;  %v466_v61 = vadd.f32 %v4845_v6, %v427_v51 }
  0x1d   : > { %356 = vst.msk [vmem:[#allocation2 + $0x100] sm:$0x3] %vm325_vm1, %v4706_v2  ;;  %359 = vst.msk [vmem:[#allocation2 + $0x118] sm:$0x3] %vm325_vm1, %v4706_v2  ;;  %v525_v44 = vmul.f32 0.1, %v461_v37  ;;  %v467_v0 = vadd.f32 %v4845_v6, %v428_v57 }
  0x1e   : > { %362 = vst.msk [vmem:[#allocation2 + $0x130] sm:$0x3] %vm325_vm1, %v4706_v2  ;;  %365 = vst.msk [vmem:[#allocation2 + $0x148] sm:$0x3] %vm325_vm1, %v4706_v2  ;;  %v556_v48 = vsel %vm492_vm6, %v460_v27, %v524_v42  ;;  %vm494_vm8 = vcmp.ge.f32.partialorder %v462_v45, 0.0  ;;  %vm495_vm9 = vcmp.ge.f32.partialorder %v463_v49, 0.0 }
  0x1f   : > { %368 = vst.msk [vmem:[#allocation2 + $0x160] sm:$0x3] %vm325_vm1, %v4706_v2  ;;  %371 = vst.msk [vmem:[#allocation2 + $0x178] sm:$0x3] %vm325_vm1, %v4706_v2  ;;  %v668_v16 = vld [vmem:[#allocation2 + $0x9] sm:$0xff]  ;;  %v557_v52 = vsel %vm493_vm7, %v461_v37, %v525_v44  ;;  %v390_v58 = vld [vmem:[%s4851_s23 + $0x60] sm:$0xff] }
  0x20   : > { %374 = vst.msk [vmem:[#allocation2 + $0x190] sm:$0x3] %vm325_vm1, %v4706_v2  ;;  %377 = vst.msk [vmem:[#allocation2 + $0x1a8] sm:$0x3] %vm325_vm1, %v4706_v2  ;;  %v699_v21 = vpack.c.bf16 %v668_v16, %v667_v10  ;;  %v526_v53 = vmul.f32 0.1, %v462_v45  ;;  %v429_v11 = vmul.f32 %v4839_v5, %v390_v58 }
  0x21   : > { %585 = vst.msk [vmem:[#allocation2 + $0x19] sm:$0xff] %vm322_vm0, %v552_v35  ;;  %586 = vst.msk [vmem:[#allocation2 + $0x21] sm:$0xff] %vm322_vm0, %v553_v36  ;;  %v527_v55 = vmul.f32 0.1, %v463_v49  ;;  %vm496_vm10 = vcmp.ge.f32.partialorder %v464_v54, 0.0  ;;  %vm497_vm11 = vcmp.ge.f32.partialorder %v465_v56, 0.0 }
  0x22   : > { %4085 = vmatprep.mubr.msk.bf16.mxu1 %vm322_vm0, %v699_v21  ;;  %587 = vst.msk [vmem:[#allocation2 + $0x31] sm:$0xff] %vm322_vm0, %v554_v40  ;;  %588 = vst.msk [vmem:[#allocation2 + $0x39] sm:$0xff] %vm322_vm0, %v555_v41  ;;  %v558_v59 = vsel %vm494_vm8, %v462_v45, %v526_v53  ;;  %v528_v60 = vmul.f32 0.1, %v464_v54  ;;  %v529_v63 = vmul.f32 0.1, %v465_v56  ;;  %v468_v22 = vadd.f32 %v4845_v6, %v429_v11 }
  0x23   : > { %589 = vst.msk [vmem:[#allocation2 + $0x49] sm:$0xff] %vm322_vm0, %v556_v48  ;;  %590 = vst.msk [vmem:[#allocation2 + $0x51] sm:$0xff] %vm322_vm0, %v557_v52  ;;  %v559_v62 = vsel %vm495_vm9, %v463_v49, %v527_v55  ;;  %v391_v1 = vld [vmem:[%s4851_s23 + $0x68] sm:$0xff]  ;;  %v392_v2 = vld [vmem:[%s4851_s23 + $0x70] sm:$0xff]  ;;  %vm498_vm12 = vcmp.ge.f32.partialorder %v466_v61, 0.0  ;;  %vm499_vm13 = vcmp.ge.f32.partialorder %v467_v0, 0.0 }
  0x24   : > { %591 = vst.msk [vmem:[#allocation2 + $0x61] sm:$0xff] %vm322_vm0, %v558_v59  ;;  %592 = vst.msk [vmem:[#allocation2 + $0x69] sm:$0xff] %vm322_vm0, %v559_v62  ;;  %v560_v9 = vsel %vm496_vm10, %v464_v54, %v528_v60  ;;  %v530_v10 = vmul.f32 0.1, %v466_v61  ;;  %v393_v12 = vld [vmem:[%s4851_s23 + $0x78] sm:$0xff]  ;;  %v561_v16 = vsel %vm497_vm11, %v465_v56, %v529_v63  ;;  %v394_v18 = vld [vmem:[%s4851_s23 + $0x80] sm:$0xff]  ;;  %v430_v21 = vmul.f32 %v4839_v5, %v391_v1 }
  0x25   : > { %593 = vst.msk [vmem:[#allocation2 + $0x79] sm:$0xff] %vm322_vm0, %v560_v9  ;;  %v531_v17 = vmul.f32 0.1, %v467_v0  ;;  %594 = vst.msk [vmem:[#allocation2 + $0x81] sm:$0xff] %vm322_vm0, %v561_v16  ;;  %v4917_v23 = vld [vmem:[%s5729_s1 + $0x30] sm:$0xff]   ;;  %v431_v27 = vmul.f32 %v4839_v5, %v392_v2  ;;  %v432_v28 = vmul.f32 %v4839_v5, %v393_v12  ;;  %v395_v29 = vld [vmem:[%s4851_s23 + $0x88] sm:$0xff]  ;;  %v433_v33 = vmul.f32 %v4839_v5, %v394_v18 }
  0x26   : > { %v562_v20 = vsel %vm498_vm12, %v466_v61, %v530_v10  ;;  %v4922_v24 = vld [vmem:[%s5729_s1 + $0x10] sm:$0xff]   ;;  %v469_v31 = vadd.f32 %v4845_v6, %v430_v21  ;;  %vm500_vm14 = vcmp.ge.f32.partialorder %v468_v22, 0.0  ;;  %v532_v32 = vmul.f32 0.1, %v468_v22  ;;  %v397_v48 = vld [vmem:[%s4851_s23 + $0x98] sm:$0xff]  ;;  %v398_v49 = vld [vmem:[%s4851_s23 + $0xa0] sm:$0xff] }
  0x27   : > { %v563_v26 = vsel %vm499_vm13, %v467_v0, %v531_v17  ;;  %595 = vst.msk [vmem:[#allocation2 + $0x91] sm:$0xff] %vm322_vm0, %v562_v20  ;;  %v470_v35 = vadd.f32 %v4845_v6, %v431_v27  ;;  %v471_v36 = vadd.f32 %v4845_v6, %v432_v28  ;;  %v434_v40 = vmul.f32 %v4839_v5, %v395_v29  ;;  %v396_v41 = vld [vmem:[%s4851_s23 + $0x90] sm:$0xff]  ;;  %v399_v54 = vld [vmem:[%s4851_s23 + $0xa8] sm:$0xff]  ;;  %v401_v1 = vld [vmem:[%s4851_s23 + $0xb8] sm:$0xff] }
  0x28   : > { %v669_v7 = vld [vmem:[#allocation2 + $0x19] sm:$0xff]  ;;  %v670_v8 = vld [vmem:[#allocation2 + $0x21] sm:$0xff]  ;;  %596 = vst.msk [vmem:[#allocation2 + $0x99] sm:$0xff] %vm322_vm0, %v563_v26  ;;  %vm501_vm15 = vcmp.ge.f32.partialorder %v469_v31, 0.0  ;;  %v533_v38 = vmul.f32 0.1, %v469_v31  ;;  %v564_v39 = vsel %vm500_vm14, %v468_v22, %v532_v32  ;;  %v472_v42 = vadd.f32 %v4845_v6, %v433_v33 }
  0x29   : > { %v4904_v13 = vpack.c.bf16 %v670_v8, %v669_v7  ;;  %v1743_v14 = vld [vmem:[#allocation2 + $0x31] sm:$0xff]  ;;  %v1744_v15 = vld [vmem:[#allocation2 + $0x39] sm:$0xff]  ;;  %597 = vst.msk [vmem:[#allocation2 + $0xa9] sm:$0xff] %vm322_vm0, %v564_v39  ;;  %vm502_vm1 = vcmp.ge.f32.partialorder %v470_v35, 0.0  ;;  %vm503_vm2 = vcmp.ge.f32.partialorder %v471_v36, 0.0  ;;  %v473_v47 = vadd.f32 %v4845_v6, %v434_v40  ;;  %v403_v18 = vld [vmem:[%s4851_s23 + $0xc8] sm:$0xff] }
  0x2a   : > { %v4909_v19 = vpack.c.bf16 %v1744_v15, %v1743_v14  ;;  %v673_v25 = vld [vmem:[#allocation2 + $0x49] sm:$0xff]  ;;  %v674_v30 = vld [vmem:[#allocation2 + $0x51] sm:$0xff]  ;;  %v565_v45 = vsel %vm501_vm15, %v469_v31, %v533_v38  ;;  %v535_v46 = vmul.f32 0.1, %v471_v36  ;;  %vm504_vm3 = vcmp.ge.f32.partialorder %v472_v42, 0.0  ;;  %v402_v2 = vld [vmem:[%s4851_s23 + $0xc0] sm:$0xff] }
  0x2b   : > { %4086 = vmatmul.mubr.msk.bf16.vlgmr.msra.gmra.mrb[0].mxu1 %vm322_vm0, %v4904_v13  ;;  %4221 = vmatprep.mubr.msk.bf16.mxu0 %vm322_vm0, %v4904_v13  ;;  %v4940_v34 = vpack.c.bf16 %v674_v30, %v673_v25  ;;  %v1747_v37 = vld [vmem:[#allocation2 + $0x61] sm:$0xff]  ;;  %598 = vst.msk [vmem:[#allocation2 + $0xb1] sm:$0xff] %vm322_vm0, %v565_v45  ;;  %v536_v52 = vmul.f32 0.1, %v472_v42  ;;  %v435_v53 = vmul.f32 %v4839_v5, %v396_v41  ;;  %vm505_vm4 = vcmp.ge.f32.partialorder %v473_v47, 0.0  ;;  %v400_v59 = vld [vmem:[%s4851_s23 + $0xb0] sm:$0xff] }
  0x2c   : > { %4222 = vmatmul.mubr.msk.bf16.vlgmr.msra.gmra.mrb[0].mxu0 %vm322_vm0, %v4909_v19  ;;  %4089 = vmatprep.mubr.msk.bf16.mxu1 %vm322_vm0, %v4909_v19  ;;  %v677_v44 = vld [vmem:[#allocation2 + $0x79] sm:$0xff]  ;;  %v678_v50 = vld [vmem:[#allocation2 + $0x81] sm:$0xff]  ;;  %v567_v57 = vsel %vm503_vm2, %v471_v36, %v535_v46  ;;  %v537_v58 = vmul.f32 0.1, %v473_v47  ;;  %v436_v62 = vmul.f32 %v4839_v5, %v397_v48  ;;  %v437_v0 = vmul.f32 %v4839_v5, %v398_v49 }
  0x2d   : > { %4254 = vmatpush3.bf16.msra.mxu0 %v4826_v3  ;;  %4118 = vmatpush3.bf16.msra.mxu1 %v4834_v4  ;;  %v1748_v3 = vld [vmem:[#allocation2 + $0x69] sm:$0xff]  ;;  %v534_v4 = vmul.f32 0.1, %v470_v35  ;;  %v4962_v55 = vpack.c.bf16 %v678_v50, %v677_v44  ;;  %600 = vst.msk [vmem:[#allocation2 + $0xc9] sm:$0xff] %vm322_vm0, %v567_v57  ;;  %v568_v61 = vsel %vm504_vm3, %v472_v42, %v536_v52  ;;  %v405_v42 = vld [vmem:[%s4851_s23 + $0xd8] sm:$0xff]  ;;  %v406_v44 = vld [vmem:[%s4851_s23 + $0xe0] sm:$0xff] }
  0x2e   : > { %4287 = vmatprep.subr.bf16.mxu0 %v4917_v23  ;;  %4151 = vmatprep.subr.bf16.mxu1 %v4922_v24  ;;  %v4953_v43 = vpack.c.bf16 %v1748_v3, %v1747_v37  ;;  %v1751_v56 = vld [vmem:[#allocation2 + $0x91] sm:$0xff]  ;;  %v474_v63 = vadd.f32 %v4845_v6, %v435_v53  ;;  %v569_v8 = vsel %vm505_vm4, %v473_v47, %v537_v58  ;;  %v407_v49 = vld [vmem:[%s4851_s23 + $0xe8] sm:$0xff] }
  0x2f   : > { %4225 = vmatprep.mubr.msk.bf16.mxu0 %vm322_vm0, %v4940_v34  ;;  %v566_v51 = vsel %vm502_vm1, %v470_v35, %v534_v4  ;;  %v1752_v60 = vld [vmem:[#allocation2 + $0x99] sm:$0xff]  ;;  %601 = vst.msk [vmem:[#allocation2 + $0xd9] sm:$0xff] %vm322_vm0, %v568_v61  ;;  %v438_v9 = vmul.f32 %v4839_v5, %v399_v54  ;;  %602 = vst.msk [vmem:[#allocation2 + $0xe1] sm:$0xff] %vm322_vm0, %v569_v8  ;;  %v475_v10 = vadd.f32 %v4845_v6, %v436_v62  ;;  %v404_v35 = vld [vmem:[%s4851_s23 + $0xd0] sm:$0xff] }
  0x30   : > { %599 = vst.msk [vmem:[#allocation2 + $0xc1] sm:$0xff] %vm322_vm0, %v566_v51  ;;  %v4979_v7 = vpack.c.bf16 %v1752_v60, %v1751_v56  ;;  %vm506_vm5 = vcmp.ge.f32.partialorder %v474_v63, 0.0  ;;  %v538_v11 = vmul.f32 0.1, %v474_v63  ;;  %v476_v12 = vadd.f32 %v4845_v6, %v437_v0  ;;  %v681_v14 = vld [vmem:[#allocation2 + $0xa9] sm:$0xff]  ;;  %v409_v58 = vld [vmem:[%s4851_s23 + $0xf8] sm:$0xff] }
  0x31   : > { %v477_v15 = vadd.f32 %v4845_v6, %v438_v9  ;;  %v439_v16 = vmul.f32 %v4839_v5, %v400_v59  ;;  %v440_v17 = vmul.f32 %v4839_v5, %v401_v1  ;;  %v441_v20 = vmul.f32 %v4839_v5, %v402_v2  ;;  %v408_v50 = vld [vmem:[%s4851_s23 + $0xf0] sm:$0xff] }
  0x32   : > { %vm507_vm6 = vcmp.ge.f32.partialorder %v475_v10, 0.0  ;;  %v539_v21 = vmul.f32 0.1, %v475_v10  ;;  %v570_v22 = vsel %vm506_vm5, %v474_v63, %v538_v11  ;;  %vm508_vm7 = vcmp.ge.f32.partialorder %v476_v12, 0.0  ;;  %v682_v25 = vld [vmem:[#allocation2 + $0xb1] sm:$0xff] }
  0x33   : > { %4090 = vmatmul.mubr.msk.bf16.gmra.mrb[4].mxu1 %vm322_vm0, %v4940_v34  ;;  %603 = vst.msk [vmem:[#allocation2 + $0xf1] sm:$0xff] %vm322_vm0, %v570_v22  ;;  %vm509_vm8 = vcmp.ge.f32.partialorder %v477_v15, 0.0  ;;  %v540_v26 = vmul.f32 0.1, %v476_v12  ;;  %v541_v27 = vmul.f32 0.1, %v477_v15  ;;  %v478_v28 = vadd.f32 %v4845_v6, %v439_v16 }
  0x34   : > { %4226 = vmatmul.mubr.msk.bf16.gmra.mrb[4].mxu0 %vm322_vm0, %v4953_v43  ;;  %4093 = vmatprep.mubr.msk.bf16.mxu1 %vm322_vm0, %v4953_v43  ;;  %v4995_v29 = vpack.c.bf16 %v682_v25, %v681_v14  ;;  %v571_v31 = vsel %vm507_vm6, %v475_v10, %v539_v21  ;;  %v479_v32 = vadd.f32 %v4845_v6, %v440_v17  ;;  %v1756_v36 = vld [vmem:[#allocation2 + $0xc9] sm:$0xff] }
  0x35   : > { %4229 = vmatprep.mubr.msk.bf16.mxu0 %vm322_vm0, %v4962_v55  ;;  %v442_v33 = vmul.f32 %v4839_v5, %v403_v18  ;;  %604 = vst.msk [vmem:[#allocation2 + $0xf9] sm:$0xff] %vm322_vm0, %v571_v31  ;;  %v572_v37 = vsel %vm508_vm7, %v476_v12, %v540_v26  ;;  %v573_v38 = vsel %vm509_vm8, %v477_v15, %v541_v27  ;;  %vm510_vm9 = vcmp.ge.f32.partialorder %v478_v28, 0.0 }
  0x36   : > { %v542_v39 = vmul.f32 0.1, %v478_v28  ;;  %v685_v41 = vld [vmem:[#allocation2 + $0xd9] sm:$0xff]  ;;  %605 = vst.msk [vmem:[#allocation2 + $0x109] sm:$0xff] %vm322_vm0, %v572_v37  ;;  %606 = vst.msk [vmem:[#allocation2 + $0x111] sm:$0xff] %vm322_vm0, %v573_v38  ;;  %vm511_vm10 = vcmp.ge.f32.partialorder %v479_v32, 0.0  ;;  %v480_v4 = vadd.f32 %v4845_v6, %v441_v20  ;;  %v443_v48 = vmul.f32 %v4839_v5, %v404_v35 }
  0x37   : > { %v1755_v30 = vld [vmem:[#allocation2 + $0xc1] sm:$0xff]  ;;  %v543_v3 = vmul.f32 0.1, %v479_v32  ;;  %v481_v47 = vadd.f32 %v4845_v6, %v442_v33  ;;  %v444_v56 = vmul.f32 %v4839_v5, %v405_v42  ;;  %v445_v60 = vmul.f32 %v4839_v5, %v406_v44 }
  0x38   : > { %v5003_v40 = vpack.c.bf16 %v1756_v36, %v1755_v30  ;;  %v686_v45 = vld [vmem:[#allocation2 + $0xe1] sm:$0xff]  ;;  %v574_v46 = vsel %vm510_vm9, %v478_v28, %v542_v39  ;;  %vm512_vm11 = vcmp.ge.f32.partialorder %v480_v4, 0.0  ;;  %v544_v53 = vmul.f32 0.1, %v480_v4 }
  0x39   : > { %v5020_v51 = vpack.c.bf16 %v686_v45, %v685_v41  ;;  %v575_v52 = vsel %vm511_vm10, %v479_v32, %v543_v3  ;;  %607 = vst.msk [vmem:[#allocation2 + $0x121] sm:$0xff] %vm322_vm0, %v574_v46  ;;  %vm513_vm12 = vcmp.ge.f32.partialorder %v481_v47, 0.0  ;;  %v545_v54 = vmul.f32 0.1, %v481_v47  ;;  %v617_v45 = vld [vmem:[#allocation2] sm:$0xff] }
  0x3a   : > { %608 = vst.msk [vmem:[#allocation2 + $0x129] sm:$0xff] %vm322_vm0, %v575_v52  ;;  %v482_v57 = vadd.f32 %v4845_v6, %v443_v48  ;;  %v576_v59 = vsel %vm512_vm11, %v480_v4, %v544_v53  ;;  %v446_v61 = vmul.f32 %v4839_v5, %v407_v49  ;;  %v447_v62 = vmul.f32 %v4839_v5, %v408_v50  ;;  %v1759_v17 = vld [vmem:[#allocation2 + $0xf1] sm:$0xff]  ;;  %v618_v48 = vld [vmem:[#allocation2 + $0x8] sm:$0xff]  ;;  %v2038_v49 = vld [vmem:[#allocation2 + $0x1a] sm:$0xff] }
  0x3b   : > { %4094 = vmatmul.mubr.msk.bf16.gmra.mrb[8].mxu1 %vm322_vm0, %v4962_v55  ;;  %v577_v63 = vsel %vm513_vm12, %v481_v47, %v545_v54  ;;  %609 = vst.msk [vmem:[#allocation2 + $0x139] sm:$0xff] %vm322_vm0, %v576_v59  ;;  %v483_v0 = vadd.f32 %v4845_v6, %v444_v56  ;;  %v484_v2 = vadd.f32 %v4845_v6, %v445_v60  ;;  %v2039_v50 = vld [vmem:[#allocation2 + $0x22] sm:$0xff]  ;;  %v619_v56 = vld [vmem:[#allocation2 + $0x18] sm:$0xff]  ;;  %v621_v60 = vld [vmem:[#allocation2 + $0x30] sm:$0xff] }
  0x3c   : > { %4230 = vmatmul.mubr.msk.bf16.gmra.mrb[8].mxu0 %vm322_vm0, %v4979_v7  ;;  %4097 = vmatprep.mubr.msk.bf16.mxu1 %vm322_vm0, %v4979_v7  ;;  %vm514_vm13 = vcmp.ge.f32.partialorder %v482_v57, 0.0  ;;  %v546_v1 = vmul.f32 0.1, %v482_v57  ;;  %610 = vst.msk [vmem:[#allocation2 + $0x141] sm:$0xff] %vm322_vm0, %v577_v63  ;;  %v485_v8 = vadd.f32 %v4845_v6, %v446_v61  ;;  %v448_v9 = vmul.f32 %v4839_v5, %v409_v58  ;;  %v1760_v18 = vld [vmem:[#allocation2 + $0xf9] sm:$0xff] }
  0x3d   : > { %4233 = vmatprep.mubr.msk.bf16.mxu0 %vm322_vm0, %v4995_v29  ;;  %v486_v10 = vadd.f32 %v4845_v6, %v447_v62  ;;  %vm515_vm14 = vcmp.ge.f32.partialorder %v483_v0, 0.0  ;;  %v547_v11 = vmul.f32 0.1, %v483_v0  ;;  %vm516_vm15 = vcmp.ge.f32.partialorder %v484_v2, 0.0  ;;  %v689_v22 = vld [vmem:[#allocation2 + $0x109] sm:$0xff]  ;;  %v690_v25 = vld [vmem:[#allocation2 + $0x111] sm:$0xff] }
  0x3e   : > { %v578_v12 = vsel %vm514_vm13, %v482_v57, %v546_v1  ;;  %vm517_vm1 = vcmp.ge.f32.partialorder %v485_v8, 0.0  ;;  %v548_v14 = vmul.f32 0.1, %v484_v2  ;;  %v549_v15 = vmul.f32 0.1, %v485_v8  ;;  %v620_v57 = vld [vmem:[#allocation2 + $0x20] sm:$0xff] }
  0x3f   : > { %611 = vst.msk [vmem:[#allocation2 + $0x151] sm:$0xff] %vm322_vm0, %v578_v12  ;;  %v579_v5 = vsel %vm515_vm14, %v483_v0, %v547_v11  ;;  %v487_v16 = vadd.f32 %v4845_v6, %v448_v9  ;;  %vm518_vm2 = vcmp.ge.f32.partialorder %v486_v10, 0.0  ;;  %v550_v21 = vmul.f32 0.1, %v486_v10  ;;  %v2040_v58 = vld [vmem:[#allocation2 + $0x32] sm:$0xff]  ;;  %v2041_v59 = vld [vmem:[#allocation2 + $0x3a] sm:$0xff] }
  0x40   : > { %612 = vst.msk [vmem:[#allocation2 + $0x159] sm:$0xff] %vm322_vm0, %v579_v5  ;;  %v580_v20 = vsel %vm516_vm15, %v484_v2, %v548_v14  ;;  %v581_v26 = vsel %vm517_vm1, %v485_v8, %v549_v15  ;;  %v5051_v28 = vpack.c.bf16 %v1760_v18, %v1759_v17  ;;  %v5054_v31 = vpack.c.bf16 %v690_v25, %v689_v22  ;;  %v1763_v32 = vld [vmem:[#allocation2 + $0x121] sm:$0xff]  ;;  %v622_v61 = vld [vmem:[#allocation2 + $0x38] sm:$0xff]  ;;  %v2042_v62 = vld [vmem:[#allocation2 + $0x4a] sm:$0xff] }
  0x41   : > { %613 = vst.msk [vmem:[#allocation2 + $0x169] sm:$0xff] %vm322_vm0, %v580_v20  ;;  %vm519_vm3 = vcmp.ge.f32.partialorder %v487_v16, 0.0  ;;  %v551_v27 = vmul.f32 0.1, %v487_v16  ;;  %614 = vst.msk [vmem:[#allocation2 + $0x171] sm:$0xff] %vm322_vm0, %v581_v26  ;;  %v582_v6 = vsel %vm518_vm2, %v486_v10, %v550_v21  ;;  %v1764_v33 = vld [vmem:[#allocation2 + $0x129] sm:$0xff]  ;;  %v649_v53 = vpack.c.bf16 %v618_v48, %v617_v45 }
  0x42   : > { %615 = vst.msk [vmem:[#allocation2 + $0x181] sm:$0xff] %vm322_vm0, %v582_v6  ;;  %v693_v35 = vld [vmem:[#allocation2 + $0x139] sm:$0xff]  ;;  %v5065_v37 = vpack.c.bf16 %v1764_v33, %v1763_v32  ;;  %v5091_v54 = vpack.c.bf16 %v2039_v50, %v2038_v49  ;;  %v5100_v0 = vpack.c.bf16 %v620_v57, %v619_v56  ;;  %v5102_v1 = vpack.c.bf16 %v2041_v59, %v2040_v58  ;;  %v623_v11 = vld [vmem:[#allocation2 + $0x48] sm:$0xff]  ;;  %v624_v12 = vld [vmem:[#allocation2 + $0x50] sm:$0xff] }
  0x43   : > { %4098 = vmatmul.mubr.msk.bf16.gmra.mrb[12].mxu1 %vm322_vm0, %v4995_v29  ;;  %v583_v30 = vsel %vm519_vm3, %v487_v16, %v551_v27  ;;  %v694_v36 = vld [vmem:[#allocation2 + $0x141] sm:$0xff]  ;;  %v2043_v63 = vld [vmem:[#allocation2 + $0x52] sm:$0xff]  ;;  %v5104_v2 = vpack.c.bf16 %v622_v61, %v621_v60  ;;  %v2045_v15 = vld [vmem:[#allocation2 + $0x6a] sm:$0xff]  ;;  %v5129_v20 = vpack.c.bf16 %v624_v12, %v623_v11 }
  0x44   : > { %4234 = vmatmul.mubr.msk.bf16.gmra.mrb[12].mxu0 %vm322_vm0, %v5003_v40  ;;  %4101 = vmatprep.mubr.msk.bf16.mxu1 %vm322_vm0, %v5003_v40  ;;  %616 = vst.msk [vmem:[#allocation2 + $0x189] sm:$0xff] %vm322_vm0, %v583_v30  ;;  %v5067_v38 = vpack.c.bf16 %v694_v36, %v693_v35  ;;  %v5106_v8 = vpack.c.bf16 %v2043_v63, %v2042_v62  ;;  %v5111_v9 = vld [vmem:[%s5729_s1 + $0x38] sm:$0xff]   ;;  %v625_v14 = vld [vmem:[#allocation2 + $0x60] sm:$0xff]  ;;  %v626_v16 = vld [vmem:[#allocation2 + $0x68] sm:$0xff] }
  0x45   : > { %4237 = vmatprep.mubr.msk.bf16.mxu0 %vm322_vm0, %v5020_v51  ;;  %v5118_v10 = vld [vmem:[%s5729_s1 + $0x18] sm:$0xff]   ;;  %v2044_v5 = vld [vmem:[#allocation2 + $0x62] sm:$0xff]  ;;  %v5134_v22 = vpack.c.bf16 %v626_v16, %v625_v14  ;;  %v629_v6 = vld [vmem:[#allocation2 + $0x90] sm:$0xff] }
  0x46   : > { %v1767_v39 = vld [vmem:[#allocation2 + $0x151] sm:$0xff]  ;;  %v2046_v17 = vld [vmem:[#allocation2 + $0x7a] sm:$0xff]  ;;  %v2047_v18 = vld [vmem:[#allocation2 + $0x82] sm:$0xff]  ;;  %v5132_v21 = vpack.c.bf16 %v2045_v15, %v2044_v5 }
  0x47   : > { %v1768_v41 = vld [vmem:[#allocation2 + $0x159] sm:$0xff]  ;;  %v2050_v32 = vld [vmem:[#allocation2 + $0xaa] sm:$0xff]  ;;  %v2052_v45 = vld [vmem:[#allocation2 + $0xc2] sm:$0xff] }
  0x48   : > { %v697_v3 = vld [vmem:[#allocation2 + $0x169] sm:$0xff]  ;;  %v698_v4 = vld [vmem:[#allocation2 + $0x171] sm:$0xff]  ;;  %v5077_v42 = vpack.c.bf16 %v1768_v41, %v1767_v39  ;;  %v628_v25 = vld [vmem:[#allocation2 + $0x80] sm:$0xff] }
  0x49   : > { %v5079_v44 = vpack.c.bf16 %v698_v4, %v697_v3  ;;  %v1771_v46 = vld [vmem:[#allocation2 + $0x181] sm:$0xff]  ;;  %v2048_v26 = vld [vmem:[#allocation2 + $0x92] sm:$0xff]  ;;  %v2058_v12 = vld [vmem:[#allocation2 + $0x10a] sm:$0xff] }
  0x4a   : > { %v2049_v27 = vld [vmem:[#allocation2 + $0x9a] sm:$0xff]  ;;  %v2051_v33 = vld [vmem:[#allocation2 + $0xb2] sm:$0xff]  ;;  %v631_v3 = vld [vmem:[#allocation2 + $0xa8] sm:$0xff] }
  0x4b   : > { %4102 = vmatmul.mubr.msk.bf16.gmra.mrb[16].mxu1 %vm322_vm0, %v5020_v51  ;;  %v1772_v47 = vld [vmem:[#allocation2 + $0x189] sm:$0xff]  ;;  %v630_v30 = vld [vmem:[#allocation2 + $0x98] sm:$0xff]  ;;  %v5148_v36 = vpack.c.bf16 %v2049_v27, %v2048_v26  ;;  %v5152_v41 = vpack.c.bf16 %v2051_v33, %v2050_v32  ;;  %v636_v60 = vld [vmem:[#allocation2 + $0xe0] sm:$0xff] }
  0x4c   : > { %4238 = vmatmul.mubr.msk.bf16.gmra.mrb[16].mxu0 %vm322_vm0, %v5051_v28  ;;  %4105 = vmatprep.mubr.msk.bf16.mxu1 %vm322_vm0, %v5051_v28  ;;  %v5089_v52 = vpack.c.bf16 %v1772_v47, %v1771_v46  ;;  %v5150_v39 = vpack.c.bf16 %v630_v30, %v629_v6  ;;  %v632_v4 = vld [vmem:[#allocation2 + $0xb0] sm:$0xff]  ;;  %v633_v47 = vld [vmem:[#allocation2 + $0xc0] sm:$0xff]  ;;  %v634_v48 = vld [vmem:[#allocation2 + $0xc8] sm:$0xff] }
  0x4d   : > { %4241 = vmatprep.mubr.msk.bf16.mxu0 %vm322_vm0, %v5054_v31  ;;  %v2053_v46 = vld [vmem:[#allocation2 + $0xca] sm:$0xff]  ;;  %v2054_v49 = vld [vmem:[#allocation2 + $0xda] sm:$0xff]  ;;  %v2055_v50 = vld [vmem:[#allocation2 + $0xe2] sm:$0xff]  ;;  %v5166_v57 = vpack.c.bf16 %v634_v48, %v633_v47 }
  0x4e   : > { %v5164_v56 = vpack.c.bf16 %v2053_v46, %v2052_v45  ;;  %v5168_v58 = vpack.c.bf16 %v2055_v50, %v2054_v49  ;;  %v635_v59 = vld [vmem:[#allocation2 + $0xd8] sm:$0xff]  ;;  %v637_v61 = vld [vmem:[#allocation2 + $0xf0] sm:$0xff]  ;;  %v641_v27 = vld [vmem:[#allocation2 + $0x120] sm:$0xff] }
  0x4f   : > { %v2056_v62 = vld [vmem:[#allocation2 + $0xf2] sm:$0xff]  ;;  %v2057_v63 = vld [vmem:[#allocation2 + $0xfa] sm:$0xff]  ;;  %v5178_v5 = vpack.c.bf16 %v636_v60, %v635_v59  ;;  %v2061_v26 = vld [vmem:[#allocation2 + $0x12a] sm:$0xff] }
  0x50   : > { %v638_v11 = vld [vmem:[#allocation2 + $0xf8] sm:$0xff]  ;;  %v5180_v15 = vpack.c.bf16 %v2057_v63, %v2056_v62  ;;  %v642_v6 = vld [vmem:[#allocation2 + $0x128] sm:$0xff]  ;;  %v644_v47 = vld [vmem:[#allocation2 + $0x140] sm:$0xff] }
  0x51   : > { %v2059_v14 = vld [vmem:[#allocation2 + $0x112] sm:$0xff]  ;;  %v5182_v16 = vpack.c.bf16 %v638_v11, %v637_v61  ;;  %v2062_v30 = vld [vmem:[#allocation2 + $0x13a] sm:$0xff]  ;;  %v2063_v32 = vld [vmem:[#allocation2 + $0x142] sm:$0xff] }
  0x52   : > { %v5200_v45 = vpack.c.bf16 %v2063_v32, %v2062_v30  ;;  %v643_v46 = vld [vmem:[#allocation2 + $0x138] sm:$0xff]  ;;  %v645_v48 = vld [vmem:[#allocation2 + $0x150] sm:$0xff] }
  0x53   : > { %4106 = vmatmul.mubr.msk.bf16.gmra.mrb[20].mxu1 %vm322_vm0, %v5054_v31  ;;  %v2064_v49 = vld [vmem:[#allocation2 + $0x152] sm:$0xff]  ;;  %v2065_v50 = vld [vmem:[#allocation2 + $0x15a] sm:$0xff]  ;;  %v2066_v60 = vld [vmem:[#allocation2 + $0x16a] sm:$0xff]  ;;  %v5210_v62 = vpack.c.bf16 %v644_v47, %v643_v46 }
  0x54   : > { %4242 = vmatmul.mubr.msk.bf16.gmra.mrb[20].mxu0 %vm322_vm0, %v5065_v37  ;;  %4109 = vmatprep.mubr.msk.bf16.mxu1 %vm322_vm0, %v5065_v37  ;;  %v646_v59 = vld [vmem:[#allocation2 + $0x158] sm:$0xff]  ;;  %v5212_v63 = vpack.c.bf16 %v2065_v50, %v2064_v49  ;;  %v4696_v46 = vld [vmem:[%s5729_s1 + $0x40] sm:$0xff]  }
  0x55   : > { %4245 = vmatprep.mubr.msk.bf16.mxu0 %vm322_vm0, %v5067_v38  ;;  %v2067_v61 = vld [vmem:[#allocation2 + $0x172] sm:$0xff]  ;;  %v5214_v11 = vpack.c.bf16 %v646_v59, %v645_v48  ;;  %v4697_v47 = vld [vmem:[%s5730_s2] sm:$0xff]  }
  0x56   : > { %v2366_v48 = vld [vmem:[#allocation2 + $0x198] sm:$0xff]  ;;  %v2367_v49 = vld [vmem:[#allocation2 + $0x1a0] sm:$0xff] }
  0x57   : > { %v2633_v50 = vld [vmem:[#allocation2 + $0x31] sm:$0xff]  ;;  %v2634_v59 = vld [vmem:[#allocation2 + $0x39] sm:$0xff] }
  0x5b   : > { %4110 = vmatmul.mubr.msk.bf16.gmra.mrb[24].mxu1 %vm322_vm0, %v5067_v38 }
  0x5c   : > { %4246 = vmatmul.mubr.msk.bf16.gmra.mrb[24].mxu0 %vm322_vm0, %v5077_v42  ;;  %4113 = vmatprep.mubr.msk.bf16.mxu1 %vm322_vm0, %v5077_v42 }
  0x5d   : > { %4249 = vmatprep.mubr.msk.bf16.mxu0 %vm322_vm0, %v5079_v44 }
  0x63   : > { %4114 = vmatmul.mubr.msk.bf16.gmra.mrb[28].mxu1 %vm322_vm0, %v5079_v44 }
  0x64   : > { %4250 = vmatmul.mubr.msk.bf16.gmra.mrb[28].mxu0 %vm322_vm0, %v5089_v52  ;;  %4119 = vmatprep.mubr.msk.bf16.mxu1 %vm322_vm0, %v649_v53  ;;  %v5162_v53 = vpack.c.bf16 %v632_v4, %v631_v3  ;;  %v5198_v4 = vpack.c.bf16 %v642_v6, %v641_v27  ;;  %v1148_v27 = vld [vmem:[#allocation2 + $0xa] sm:$0xff] }
  0x65   : > { %4255 = vmatprep.mubr.msk.bf16.mxu0 %vm322_vm0, %v5091_v54 }
  0x6b   : > { %4120 = vmatmul.mubr.msk.bf16.vlgmr.msra.gmra.mrb[0].mxu1 %vm322_vm0, %v5100_v0 }
  0x6c   : > { %4256 = vmatmul.mubr.msk.bf16.vlgmr.msra.gmra.mrb[0].mxu0 %vm322_vm0, %v5102_v1  ;;  %4123 = vmatprep.mubr.msk.bf16.mxu1 %vm322_vm0, %v5104_v2 }
  0x6d   : > { %4288 = vmatpush3.bf16.msra.mxu0 %v4917_v23  ;;  %4259 = vmatprep.mubr.msk.bf16.mxu0 %vm322_vm0, %v5106_v8  ;;  %v5136_v23 = vpack.c.bf16 %v2047_v18, %v2046_v17  ;;  %v5184_v17 = vpack.c.bf16 %v2059_v14, %v2058_v12  ;;  %v639_v18 = vld [vmem:[#allocation2 + $0x108] sm:$0xff]  ;;  %v5216_v12 = vpack.c.bf16 %v2067_v61, %v2066_v60 }
  0x6e   : > { %4152 = vmatpush3.bf16.msra.mxu1 %v4922_v24  ;;  %4321 = vmatprep.subr.bf16.mxu0 %v5111_v9  ;;  %v627_v24 = vld [vmem:[#allocation2 + $0x78] sm:$0xff]  ;;  %v647_v14 = vld [vmem:[#allocation2 + $0x168] sm:$0xff]  ;;  %v2383_v60 = vpack.c.bf16 %v2367_v49, %v2366_v48  ;;  %v2665_v61 = vpack.c.bf16 %v2634_v59, %v2633_v50 }
  0x6f   : > { %4185 = vmatprep.subr.bf16.mxu1 %v5118_v10  ;;  %v5146_v35 = vpack.c.bf16 %v628_v25, %v627_v24  ;;  %v640_v24 = vld [vmem:[#allocation2 + $0x110] sm:$0xff]  ;;  %v2060_v25 = vld [vmem:[#allocation2 + $0x122] sm:$0xff] }
  0x70   : > { %v5194_v33 = vpack.c.bf16 %v640_v24, %v639_v18  ;;  %v5196_v3 = vpack.c.bf16 %v2061_v26, %v2060_v25  ;;  %v648_v18 = vld [vmem:[#allocation2 + $0x170] sm:$0xff]  ;;  %v1147_v24 = vld [vmem:[#allocation2 + $0x2] sm:$0xff] }
  0x71   : > { %v2068_v25 = vld [vmem:[#allocation2 + $0x182] sm:$0xff]  ;;  %v2069_v26 = vld [vmem:[#allocation2 + $0x18a] sm:$0xff]  ;;  %v5226_v6 = vpack.c.bf16 %v648_v18, %v647_v14  ;;  %v1179_v32 = vpack.c.bf16 %v1148_v27, %v1147_v24 }
  0x72   : > { %v5228_v30 = vpack.c.bf16 %v2069_v26, %v2068_v25  ;;  %v2635_v14 = vld [vmem:[#allocation2 + $0x49] sm:$0xff]  ;;  %v2636_v18 = vld [vmem:[#allocation2 + $0x51] sm:$0xff]  ;;  %v2637_v24 = vld [vmem:[#allocation2 + $0x61] sm:$0xff] }
  0x73   : > { %4124 = vmatmul.mubr.msk.bf16.gmra.mrb[4].mxu1 %vm322_vm0, %v5129_v20  ;;  %v2638_v25 = vld [vmem:[#allocation2 + $0x69] sm:$0xff]  ;;  %v2666_v26 = vpack.c.bf16 %v2636_v18, %v2635_v14 }
  0x74   : > { %4260 = vmatmul.mubr.msk.bf16.gmra.mrb[4].mxu0 %vm322_vm0, %v5132_v21  ;;  %4127 = vmatprep.mubr.msk.bf16.mxu1 %vm322_vm0, %v5134_v22  ;;  %v2667_v27 = vpack.c.bf16 %v2638_v25, %v2637_v24  ;;  %v2646_v50 = vld [vmem:[#allocation2 + $0xc9] sm:$0xff] }
  0x75   : > { %4263 = vmatprep.mubr.msk.bf16.mxu0 %vm322_vm0, %v5136_v23 }
  0x7b   : > { %4128 = vmatmul.mubr.msk.bf16.gmra.mrb[8].mxu1 %vm322_vm0, %v5146_v35 }
  0x7c   : > { %4264 = vmatmul.mubr.msk.bf16.gmra.mrb[8].mxu0 %vm322_vm0, %v5148_v36  ;;  %4131 = vmatprep.mubr.msk.bf16.mxu1 %vm322_vm0, %v5150_v39 }
  0x7d   : > { %4267 = vmatprep.mubr.msk.bf16.mxu0 %vm322_vm0, %v5152_v41 }
  0x83   : > { %4132 = vmatmul.mubr.msk.bf16.gmra.mrb[12].mxu1 %vm322_vm0, %v5162_v53 }
  0x84   : > { %4268 = vmatmul.mubr.msk.bf16.gmra.mrb[12].mxu0 %vm322_vm0, %v5164_v56  ;;  %4135 = vmatprep.mubr.msk.bf16.mxu1 %vm322_vm0, %v5166_v57 }
  0x85   : > { %4271 = vmatprep.mubr.msk.bf16.mxu0 %vm322_vm0, %v5168_v58 }
  0x8b   : > { %4136 = vmatmul.mubr.msk.bf16.gmra.mrb[16].mxu1 %vm322_vm0, %v5178_v5 }
  0x8c   : > { %4272 = vmatmul.mubr.msk.bf16.gmra.mrb[16].mxu0 %vm322_vm0, %v5180_v15  ;;  %4139 = vmatprep.mubr.msk.bf16.mxu1 %vm322_vm0, %v5182_v16 }
  0x8d   : > { %4275 = vmatprep.mubr.msk.bf16.mxu0 %vm322_vm0, %v5184_v17 }
  0x93   : > { %4140 = vmatmul.mubr.msk.bf16.gmra.mrb[20].mxu1 %vm322_vm0, %v5194_v33 }
  0x94   : > { %4276 = vmatmul.mubr.msk.bf16.gmra.mrb[20].mxu0 %vm322_vm0, %v5196_v3  ;;  %4143 = vmatprep.mubr.msk.bf16.mxu1 %vm322_vm0, %v5198_v4 }
  0x95   : > { %4279 = vmatprep.mubr.msk.bf16.mxu0 %vm322_vm0, %v5200_v45 }
  0x9b   : > { %4144 = vmatmul.mubr.msk.bf16.gmra.mrb[24].mxu1 %vm322_vm0, %v5210_v62 }
  0x9c   : > { %4280 = vmatmul.mubr.msk.bf16.gmra.mrb[24].mxu0 %vm322_vm0, %v5212_v63  ;;  %4147 = vmatprep.mubr.msk.bf16.mxu1 %vm322_vm0, %v5214_v11 }
  0x9d   : > { %4283 = vmatprep.mubr.msk.bf16.mxu0 %vm322_vm0, %v5216_v12 }
  0xa3   : > { %4148 = vmatmul.mubr.msk.bf16.gmra.mrb[28].mxu1 %vm322_vm0, %v5226_v6 }
  0xa4   : > { %4284 = vmatmul.mubr.msk.bf16.gmra.mrb[28].mxu0 %vm322_vm0, %v5228_v30  ;;  %4153 = vmatprep.mubr.msk.bf16.mxu1 %vm322_vm0, %v1179_v32  ;;  %v2640_v32 = vld [vmem:[#allocation2 + $0x81] sm:$0xff] }
  0xa5   : > { %4289 = vmatprep.mubr.msk.bf16.mxu0 %vm322_vm0, %v5104_v2 }
  0xab   : > { %4154 = vmatmul.mubr.msk.bf16.vlgmr.msra.gmra.mrb[0].mxu1 %vm322_vm0, %v5091_v54  ;;  %v2364_v54 = vld [vmem:[#allocation2 + $0x180] sm:$0xff] }
  0xac   : > { %4290 = vmatmul.mubr.msk.bf16.vlgmr.msra.gmra.mrb[0].mxu0 %vm322_vm0, %v5129_v20  ;;  %4157 = vmatprep.mubr.msk.bf16.mxu1 %vm322_vm0, %v5102_v1 }
  0xad   : > { %4322 = vmatpush3.bf16.msra.mxu0 %v5111_v9  ;;  %4293 = vmatprep.mubr.msk.bf16.mxu0 %vm322_vm0, %v5134_v22  ;;  %v2365_v9 = vld [vmem:[#allocation2 + $0x188] sm:$0xff] }
  0xae   : > { %4186 = vmatpush3.bf16.msra.mxu1 %v5118_v10  ;;  %4355 = vmatprep.subr.bf16.mxu0 %v4696_v46  ;;  %v5293_v10 = vpack.c.bf16 %v2365_v9, %v2364_v54  ;;  %v2641_v54 = vld [vmem:[#allocation2 + $0x91] sm:$0xff]  ;;  %v2642_v9 = vld [vmem:[#allocation2 + $0x99] sm:$0xff] }
  0xaf   : > { %4389 = vmatprep.subr.bf16.mxu1 %v4697_v47  ;;  %v2669_v49 = vpack.c.bf16 %v2642_v9, %v2641_v54 }
  0xb3   : > { %4158 = vmatmul.mubr.msk.bf16.gmra.mrb[4].mxu1 %vm322_vm0, %v5106_v8 }
  0xb4   : > { %4294 = vmatmul.mubr.msk.bf16.gmra.mrb[4].mxu0 %vm322_vm0, %v5146_v35  ;;  %4161 = vmatprep.mubr.msk.bf16.mxu1 %vm322_vm0, %v5132_v21 }
  0xb5   : > { %4297 = vmatprep.mubr.msk.bf16.mxu0 %vm322_vm0, %v5150_v39 }
  0xbb   : > { %4162 = vmatmul.mubr.msk.bf16.gmra.mrb[8].mxu1 %vm322_vm0, %v5136_v23 }
  0xbc   : > { %4298 = vmatmul.mubr.msk.bf16.gmra.mrb[8].mxu0 %vm322_vm0, %v5162_v53  ;;  %4165 = vmatprep.mubr.msk.bf16.mxu1 %vm322_vm0, %v5148_v36 }
  0xbd   : > { %4301 = vmatprep.mubr.msk.bf16.mxu0 %vm322_vm0, %v5166_v57 }
  0xc3   : > { %4166 = vmatmul.mubr.msk.bf16.gmra.mrb[12].mxu1 %vm322_vm0, %v5152_v41 }
  0xc4   : > { %4302 = vmatmul.mubr.msk.bf16.gmra.mrb[12].mxu0 %vm322_vm0, %v5178_v5  ;;  %4169 = vmatprep.mubr.msk.bf16.mxu1 %vm322_vm0, %v5164_v56 }
  0xc5   : > { %4305 = vmatprep.mubr.msk.bf16.mxu0 %vm322_vm0, %v5182_v16 }
  0xcb   : > { %4170 = vmatmul.mubr.msk.bf16.gmra.mrb[16].mxu1 %vm322_vm0, %v5168_v58 }
  0xcc   : > { %4306 = vmatmul.mubr.msk.bf16.gmra.mrb[16].mxu0 %vm322_vm0, %v5194_v33  ;;  %4173 = vmatprep.mubr.msk.bf16.mxu1 %vm322_vm0, %v5180_v15 }
  0xcd   : > { %4309 = vmatprep.mubr.msk.bf16.mxu0 %vm322_vm0, %v5198_v4 }
  0xd3   : > { %4174 = vmatmul.mubr.msk.bf16.gmra.mrb[20].mxu1 %vm322_vm0, %v5184_v17 }
  0xd4   : > { %4310 = vmatmul.mubr.msk.bf16.gmra.mrb[20].mxu0 %vm322_vm0, %v5210_v62  ;;  %4177 = vmatprep.mubr.msk.bf16.mxu1 %vm322_vm0, %v5196_v3 }
  0xd5   : > { %4313 = vmatprep.mubr.msk.bf16.mxu0 %vm322_vm0, %v5214_v11 }
  0xdb   : > { %4178 = vmatmul.mubr.msk.bf16.gmra.mrb[24].mxu1 %vm322_vm0, %v5200_v45 }
  0xdc   : > { %4314 = vmatmul.mubr.msk.bf16.gmra.mrb[24].mxu0 %vm322_vm0, %v5226_v6  ;;  %4181 = vmatprep.mubr.msk.bf16.mxu1 %vm322_vm0, %v5212_v63 }
  0xdd   : > { %4317 = vmatprep.mubr.msk.bf16.mxu0 %vm322_vm0, %v5293_v10 }
  0xe3   : > { %4182 = vmatmul.mubr.msk.bf16.gmra.mrb[28].mxu1 %vm322_vm0, %v5216_v12 }
  0xe4   : > { %4318 = vmatmul.mubr.msk.bf16.gmra.mrb[28].mxu0 %vm322_vm0, %v2383_v60  ;;  %4187 = vmatprep.mubr.msk.bf16.mxu1 %vm322_vm0, %v5100_v0  ;;  %v2639_v0 = vld [vmem:[#allocation2 + $0x79] sm:$0xff] }
  0xe5   : > { %4323 = vmatprep.mubr.msk.bf16.mxu0 %vm322_vm0, %v2665_v61  ;;  %v2668_v48 = vpack.c.bf16 %v2640_v32, %v2639_v0  ;;  %v5502_v61 = vld [vmem:[%s5734_s6] ss:$0 sm:$0xff] }
  0xeb   : > { %4188 = vmatmul.mubr.msk.bf16.vlgmr.msra.gmra.mrb[0].mxu1 %vm322_vm0, %v5104_v2  ;;  %v2643_v2 = vld [vmem:[#allocation2 + $0xa9] sm:$0xff] }
  0xec   : > { %4324 = vmatmul.mubr.msk.bf16.vlgmr.msra.gmra.mrb[0].mxu0 %vm322_vm0, %v2666_v26  ;;  %4191 = vmatprep.mubr.msk.bf16.mxu1 %vm322_vm0, %v5129_v20  ;;  %v2644_v20 = vld [vmem:[#allocation2 + $0xb1] sm:$0xff] }
  0xed   : > { %4356 = vmatpush3.bf16.msra.mxu0 %v4696_v46  ;;  %4327 = vmatprep.mubr.msk.bf16.mxu0 %vm322_vm0, %v2667_v27  ;;  %v2645_v46 = vld [vmem:[#allocation2 + $0xc1] sm:$0xff]  ;;  %v2670_v59 = vpack.c.bf16 %v2644_v20, %v2643_v2 }
  0xee   : > { %4390 = vmatpush3.bf16.msra.mxu1 %v4697_v47  ;;  %v2671_v47 = vpack.c.bf16 %v2646_v50, %v2645_v46 }
  0xf3   : > { %4192 = vmatmul.mubr.msk.bf16.gmra.mrb[4].mxu1 %vm322_vm0, %v5134_v22  ;;  %v2663_v22 = vld [vmem:[#allocation2 + $0x199] sm:$0xff] }
  0xf4   : > { %4328 = vmatmul.mubr.msk.bf16.gmra.mrb[4].mxu0 %vm322_vm0, %v2668_v48  ;;  %4195 = vmatprep.mubr.msk.bf16.mxu1 %vm322_vm0, %v5146_v35  ;;  %v2664_v35 = vld [vmem:[#allocation2 + $0x1a1] sm:$0xff] }
  0xf5   : > { %4331 = vmatprep.mubr.msk.bf16.mxu0 %vm322_vm0, %v2669_v49 }
  0xfb   : > { %4196 = vmatmul.mubr.msk.bf16.gmra.mrb[8].mxu1 %vm322_vm0, %v5150_v39  ;;  %v2680_v39 = vpack.c.bf16 %v2664_v35, %v2663_v22 }
  0xfc   : > { %4332 = vmatmul.mubr.msk.bf16.gmra.mrb[8].mxu0 %vm322_vm0, %v2670_v59  ;;  %4199 = vmatprep.mubr.msk.bf16.mxu1 %vm322_vm0, %v5162_v53 }
  0xfd   : > { %4335 = vmatprep.mubr.msk.bf16.mxu0 %vm322_vm0, %v2671_v47 }
 0x103   : > { %4200 = vmatmul.mubr.msk.bf16.gmra.mrb[12].mxu1 %vm322_vm0, %v5166_v57 }
 0x104   : > { %4336 = vmatmul.mubr.msk.bf16.gmra.mrb[12].mxu0 %vm322_vm0, %v5020_v51  ;;  %4203 = vmatprep.mubr.msk.bf16.mxu1 %vm322_vm0, %v5178_v5 }
 0x105   : > { %4339 = vmatprep.mubr.msk.bf16.mxu0 %vm322_vm0, %v5051_v28 }
 0x10b   : > { %4204 = vmatmul.mubr.msk.bf16.gmra.mrb[16].mxu1 %vm322_vm0, %v5182_v16 }
 0x10c   : > { %4340 = vmatmul.mubr.msk.bf16.gmra.mrb[16].mxu0 %vm322_vm0, %v5054_v31  ;;  %4207 = vmatprep.mubr.msk.bf16.mxu1 %vm322_vm0, %v5194_v33 }
 0x10d   : > { %4343 = vmatprep.mubr.msk.bf16.mxu0 %vm322_vm0, %v5065_v37 }
 0x113   : > { %4208 = vmatmul.mubr.msk.bf16.gmra.mrb[20].mxu1 %vm322_vm0, %v5198_v4 }
 0x114   : > { %4344 = vmatmul.mubr.msk.bf16.gmra.mrb[20].mxu0 %vm322_vm0, %v5067_v38  ;;  %4211 = vmatprep.mubr.msk.bf16.mxu1 %vm322_vm0, %v5210_v62 }
 0x115   : > { %4347 = vmatprep.mubr.msk.bf16.mxu0 %vm322_vm0, %v5077_v42 }
 0x11b   : > { %4212 = vmatmul.mubr.msk.bf16.gmra.mrb[24].mxu1 %vm322_vm0, %v5214_v11 }
 0x11c   : > { %4348 = vmatmul.mubr.msk.bf16.gmra.mrb[24].mxu0 %vm322_vm0, %v5079_v44  ;;  %4215 = vmatprep.mubr.msk.bf16.mxu1 %vm322_vm0, %v5226_v6 }
 0x11d   : > { %4351 = vmatprep.mubr.msk.bf16.mxu0 %vm322_vm0, %v5089_v52 }
 0x123   : > { %4216 = vmatmul.mubr.msk.bf16.gmra.mrb[28].mxu1 %vm322_vm0, %v5293_v10 }
 0x124   : > { %4352 = vmatmul.mubr.msk.bf16.gmra.mrb[28].mxu0 %vm322_vm0, %v2680_v39  ;;  %4391 = vmatprep.mubr.msk.bf16.mxu1 %vm322_vm0, %v4904_v13  ;;  %v2960_v13 = vld [vmem:[#allocation2 + $0x19a] sm:$0xff] }
 0x125   : > { %4357 = vmatprep.mubr.msk.bf16.mxu0 %vm322_vm0, %v5102_v1 }
 0x12b   : > { %4392 = vmatmul.mubr.msk.bf16.vlgmr.msra.gmra.mrb[32].mxu1 %vm322_vm0, %v4909_v19  ;;  %v2961_v19 = vld [vmem:[#allocation2 + $0x1a2] sm:$0xff] }
 0x12c   : > { %4358 = vmatmul.mubr.msk.bf16.vlgmr.msra.gmra.mrb[0].mxu0 %vm322_vm0, %v5106_v8  ;;  %4395 = vmatprep.mubr.msk.bf16.mxu1 %vm322_vm0, %v4940_v34  ;;  %v2977_v34 = vpack.c.bf16 %v2961_v19, %v2960_v13 }
 0x12d   : > { %4361 = vmatprep.mubr.msk.bf16.mxu0 %vm322_vm0, %v5132_v21 }
 0x133   : > { %4396 = vmatmul.mubr.msk.bf16.gmra.mrb[36].mxu1 %vm322_vm0, %v4953_v43 }
 0x134   : > { %4362 = vmatmul.mubr.msk.bf16.gmra.mrb[4].mxu0 %vm322_vm0, %v5136_v23  ;;  %4399 = vmatprep.mubr.msk.bf16.mxu1 %vm322_vm0, %v4962_v55 }
 0x135   : > { %4365 = vmatprep.mubr.msk.bf16.mxu0 %vm322_vm0, %v5148_v36 }
 0x13b   : > { %4400 = vmatmul.mubr.msk.bf16.gmra.mrb[40].mxu1 %vm322_vm0, %v4979_v7 }
 0x13c   : > { %4366 = vmatmul.mubr.msk.bf16.gmra.mrb[8].mxu0 %vm322_vm0, %v5152_v41  ;;  %4403 = vmatprep.mubr.msk.bf16.mxu1 %vm322_vm0, %v4995_v29 }
 0x13d   : > { %4369 = vmatprep.mubr.msk.bf16.mxu0 %vm322_vm0, %v5164_v56 }
 0x143   : > { %4404 = vmatmul.mubr.msk.bf16.gmra.mrb[44].mxu1 %vm322_vm0, %v5003_v40 }
 0x144   : > { %4370 = vmatmul.mubr.msk.bf16.gmra.mrb[12].mxu0 %vm322_vm0, %v5168_v58  ;;  %4407 = vmatprep.mubr.msk.bf16.mxu1 %vm322_vm0, %v5020_v51 }
 0x145   : > { %4373 = vmatprep.mubr.msk.bf16.mxu0 %vm322_vm0, %v5180_v15 }
 0x14b   : > { %4408 = vmatmul.mubr.msk.bf16.gmra.mrb[48].mxu1 %vm322_vm0, %v5051_v28 }
 0x14c   : > { %4374 = vmatmul.mubr.msk.bf16.gmra.mrb[16].mxu0 %vm322_vm0, %v5184_v17  ;;  %4411 = vmatprep.mubr.msk.bf16.mxu1 %vm322_vm0, %v5054_v31 }
 0x14d   : > { %4377 = vmatprep.mubr.msk.bf16.mxu0 %vm322_vm0, %v5196_v3 }
 0x153   : > { %4412 = vmatmul.mubr.msk.bf16.gmra.mrb[52].mxu1 %vm322_vm0, %v5065_v37 }
 0x154   : > { %4378 = vmatmul.mubr.msk.bf16.gmra.mrb[20].mxu0 %vm322_vm0, %v5200_v45  ;;  %4415 = vmatprep.mubr.msk.bf16.mxu1 %vm322_vm0, %v5067_v38 }
 0x155   : > { %4381 = vmatprep.mubr.msk.bf16.mxu0 %vm322_vm0, %v5212_v63 }
 0x15b   : > { %4416 = vmatmul.mubr.msk.bf16.gmra.mrb[56].mxu1 %vm322_vm0, %v5077_v42 }
 0x15c   : > { %4382 = vmatmul.mubr.msk.bf16.gmra.mrb[24].mxu0 %vm322_vm0, %v5216_v12  ;;  %4419 = vmatprep.mubr.msk.bf16.mxu1 %vm322_vm0, %v5079_v44  ;;  %v5493_v12 = vld [vmem:[%s5733_s5] ss:$0 sm:$0xff] }
 0x15d   : > { %4385 = vmatprep.mubr.msk.bf16.mxu0 %vm322_vm0, %v5228_v30 }
 0x163   : > { %4420 = vmatmul.mubr.msk.bf16.gmra.mrb[60].mxu1 %vm322_vm0, %v5089_v52 }
 0x164   : > { %4386 = vmatmul.mubr.msk.bf16.gmra.mrb[28].mxu0 %vm322_vm0, %v2977_v34  ;;  %vm3401_vm0 = vcmask 261120  }
 0x1be   : > { %v4189_v43 = vpop.f32.mrb[0].mxu1 }
 0x1bf   : > { %v1582_v55 = vpop.f32.mrb[1].mxu1 }
 0x1c0   : > { %v4190_v7 = vpop.f32.mrb[2].mxu1 }
 0x1c1   : > { %v1585_v29 = vpop.f32.mrb[3].mxu1 }
 0x1c6   : > { %v5425_v40 = vpop.f32.mrb[4].mxu1 }
 0x1c7   : > { %v5427_v51 = vpop.f32.mrb[5].mxu1 }
 0x1c8   : > { %v5429_v28 = vpop.f32.mrb[6].mxu1 }
 0x1c9   : > { %v5431_v31 = vpop.f32.mrb[7].mxu1 }
 0x1ce   : > { %v5433_v37 = vpop.f32.mrb[8].mxu1 }
 0x1cf   : > { %v5435_v38 = vpop.f32.mrb[9].mxu1 }
 0x1d0   : > { %v5437_v42 = vpop.f32.mrb[10].mxu1 }
 0x1d1   : > { %v5439_v44 = vpop.f32.mrb[11].mxu1 }
 0x1d6   : > { %v5441_v52 = vpop.f32.mrb[12].mxu1 }
 0x1d7   : > { %v5443_v1 = vpop.f32.mrb[13].mxu1 }
 0x1d8   : > { %v5445_v8 = vpop.f32.mrb[14].mxu1 }
 0x1d9   : > { %v5447_v21 = vpop.f32.mrb[15].mxu1 }
 0x1de   : > { %v5449_v23 = vpop.f32.mrb[16].mxu1 }
 0x1df   : > { %v5451_v36 = vpop.f32.mrb[17].mxu1 }
 0x1e0   : > { %v5453_v41 = vpop.f32.mrb[18].mxu1 }
 0x1e1   : > { %v5455_v53 = vpop.f32.mrb[19].mxu1 }
 0x1e6   : > { %v5457_v56 = vpop.f32.mrb[20].mxu1 }
 0x1e7   : > { %v5459_v57 = vpop.f32.mrb[21].mxu1 }
 0x1e8   : > { %v5461_v58 = vpop.f32.mrb[22].mxu1 }
 0x1e9   : > { %v5463_v5 = vpop.f32.mrb[23].mxu1 }
 0x1ee   : > { %v5465_v15 = vpop.f32.mrb[24].mxu1 }
 0x1ef   : > { %v5468_v16 = vpop.f32.mrb[25].mxu1 }
 0x1f0   : > { %v5470_v17 = vpop.f32.mrb[26].mxu1 }
 0x1f1   : > { %v5472_v33 = vpop.f32.mrb[27].mxu1 }
 0x1f6   : > { %v5476_v3 = vpop.f32.mrb[28].mxu1 }
 0x1f7   : > { %v5478_v4 = vpop.f32.mrb[29].mxu1 }
 0x1f8   : > { %v5480_v45 = vpop.f32.mrb[30].mxu1 }
 0x1f9   : > { %v5482_v62 = vpop.f32.mrb[31].mxu1 }
 0x1fe   : > { %v4393_v63 = vpop.f32.mrb[32].mxu1 }
 0x1ff   : > { %v4359_v11 = vpop.f32.mrb[0].mxu0  ;;  %3605 = vst.msk [vmem:[%s5488_s19 + $0x10] sm:$0xff] %vm3401_vm0, %v4393_v63  ;;  %v3476_v6 = vpop.f32.mrb[33].mxu1 }
 0x200   : > { %v4423_v30 = vadd.f32 %v4359_v11, %v4189_v43  ;;  %v3068_v10 = vpop.f32.mrb[1].mxu0  ;;  %3603 = vst.msk [vmem:[%s5488_s19] sm:$0xff] %vm3401_vm0, %v3476_v6  ;;  %v4394_v60 = vpop.f32.mrb[34].mxu1 }
 0x201   : > { %v4424_v14 = vadd.f32 %v3068_v10, %v1582_v55  ;;  %v4360_v18 = vpop.f32.mrb[2].mxu0  ;;  %3606 = vst.msk [vmem:[%s5488_s19 + $0x18] sm:$0xff] %vm3401_vm0, %v4394_v60  ;;  %v3479_v24 = vpop.f32.mrb[35].mxu1 }
 0x202   : > { %v3236_v25 = vmul.f32 %v4423_v30, %v5493_v12  ;;  %v4425_v26 = vadd.f32 %v4360_v18, %v4190_v7  ;;  %v3071_v27 = vpop.f32.mrb[3].mxu0  ;;  %3604 = vst.msk [vmem:[%s5488_s19 + $0x8] sm:$0xff] %vm3401_vm0, %v3479_v24 }
 0x203   : > { %v3234_v0 = vmul.f32 %v4424_v14, %v5493_v12  ;;  %v4426_v32 = vadd.f32 %v3071_v27, %v1585_v29 }
 0x204   : > { %v3275_v54 = vadd.f32 %v5502_v61, %v3236_v25  ;;  %v3237_v9 = vmul.f32 %v4425_v26, %v5493_v12 }
 0x205   : > { %v3273_v48 = vadd.f32 %v5502_v61, %v3234_v0  ;;  %v3235_v49 = vmul.f32 %v4426_v32, %v5493_v12 }
 0x206   : > { %vm3307_vm4 = vcmp.ge.f32.partialorder %v3275_v54, 0.0  ;;  %v3339_v2 = vmul.f32 0.1, %v3275_v54  ;;  %v3276_v20 = vadd.f32 %v5502_v61, %v3237_v9  ;;  %v4397_v46 = vpop.f32.mrb[36].mxu1 }
 0x207   : > { %vm3305_vm5 = vcmp.ge.f32.partialorder %v3273_v48, 0.0  ;;  %v3337_v50 = vmul.f32 0.1, %v3273_v48  ;;  %v3274_v59 = vadd.f32 %v5502_v61, %v3235_v49  ;;  %v4363_v47 = vpop.f32.mrb[4].mxu0  ;;  %3609 = vst.msk [vmem:[%s5488_s19 + $0x30] sm:$0xff] %vm3401_vm0, %v4397_v46  ;;  %v3492_v22 = vpop.f32.mrb[37].mxu1 }
 0x208   : > { %v3371_v35 = vsel %vm3307_vm4, %v3275_v54, %v3339_v2  ;;  %vm3308_vm6 = vcmp.ge.f32.partialorder %v3276_v20, 0.0  ;;  %v3340_v39 = vmul.f32 0.1, %v3276_v20  ;;  %v4427_v13 = vadd.f32 %v4363_v47, %v5425_v40  ;;  %v3084_v19 = vpop.f32.mrb[5].mxu0  ;;  %3607 = vst.msk [vmem:[%s5488_s19 + $0x20] sm:$0xff] %vm3401_vm0, %v3492_v22  ;;  %v4398_v34 = vpop.f32.mrb[38].mxu1 }
 0x209   : > { %3404 = vst.msk [vmem:[%s5517_s26 + $0x10] sm:$0xff] %vm3401_vm0, %v3371_v35  ;;  %v3369_v43 = vsel %vm3305_vm5, %v3273_v48, %v3337_v50  ;;  %vm3306_vm7 = vcmp.ge.f32.partialorder %v3274_v59, 0.0  ;;  %v3338_v55 = vmul.f32 0.1, %v3274_v59  ;;  %v4428_v7 = vadd.f32 %v3084_v19, %v5427_v51  ;;  %v4364_v29 = vpop.f32.mrb[6].mxu0  ;;  %3610 = vst.msk [vmem:[%s5488_s19 + $0x38] sm:$0xff] %vm3401_vm0, %v4398_v34 }
 0x20a   : > { %v3495_v63 = vpop.f32.mrb[39].mxu1  ;;  %3402 = vst.msk [vmem:[%s5517_s26] sm:$0xff] %vm3401_vm0, %v3369_v43  ;;  %v3372_v40 = vsel %vm3308_vm6, %v3276_v20, %v3340_v39  ;;  %v3240_v11 = vmul.f32 %v4427_v13, %v5493_v12  ;;  %v4429_v6 = vadd.f32 %v4364_v29, %v5429_v28  ;;  %v3087_v30 = vpop.f32.mrb[7].mxu0 }
 0x20b   : > { %3608 = vst.msk [vmem:[%s5488_s19 + $0x28] sm:$0xff] %vm3401_vm0, %v3495_v63  ;;  %3405 = vst.msk [vmem:[%s5517_s26 + $0x18] sm:$0xff] %vm3401_vm0, %v3372_v40  ;;  %v3370_v10 = vsel %vm3306_vm7, %v3274_v59, %v3338_v55  ;;  %v3238_v51 = vmul.f32 %v4428_v7, %v5493_v12  ;;  %v4430_v60 = vadd.f32 %v3087_v30, %v5431_v31 }
 0x20c   : > { %3403 = vst.msk [vmem:[%s5517_s26 + $0x8] sm:$0xff] %vm3401_vm0, %v3370_v10  ;;  %v3279_v14 = vadd.f32 %v5502_v61, %v3240_v11  ;;  %v3241_v18 = vmul.f32 %v4429_v6, %v5493_v12 }
 0x20d   : > { %v3277_v24 = vadd.f32 %v5502_v61, %v3238_v51  ;;  %v3239_v28 = vmul.f32 %v4430_v60, %v5493_v12 }
 0x20e   : > { %vm3311_vm8 = vcmp.ge.f32.partialorder %v3279_v14, 0.0  ;;  %v3343_v25 = vmul.f32 0.1, %v3279_v14  ;;  %v3280_v26 = vadd.f32 %v5502_v61, %v3241_v18  ;;  %v4401_v27 = vpop.f32.mrb[40].mxu1 }
 0x20f   : > { %vm3309_vm9 = vcmp.ge.f32.partialorder %v3277_v24, 0.0  ;;  %v3341_v0 = vmul.f32 0.1, %v3277_v24  ;;  %v3278_v31 = vadd.f32 %v5502_v61, %v3239_v28  ;;  %v4367_v32 = vpop.f32.mrb[8].mxu0  ;;  %3613 = vst.msk [vmem:[%s5488_s19 + $0x50] sm:$0xff] %vm3401_vm0, %v4401_v27  ;;  %v3508_v54 = vpop.f32.mrb[41].mxu1 }
 0x210   : > { %v3375_v9 = vsel %vm3311_vm8, %v3279_v14, %v3343_v25  ;;  %vm3312_vm10 = vcmp.ge.f32.partialorder %v3280_v26, 0.0  ;;  %v3344_v48 = vmul.f32 0.1, %v3280_v26  ;;  %v4431_v49 = vadd.f32 %v4367_v32, %v5433_v37  ;;  %v3100_v2 = vpop.f32.mrb[9].mxu0  ;;  %3611 = vst.msk [vmem:[%s5488_s19 + $0x40] sm:$0xff] %vm3401_vm0, %v3508_v54  ;;  %v4402_v20 = vpop.f32.mrb[42].mxu1 }
 0x211   : > { %3408 = vst.msk [vmem:[%s5517_s26 + $0x30] sm:$0xff] %vm3401_vm0, %v3375_v9  ;;  %v3373_v46 = vsel %vm3309_vm9, %v3277_v24, %v3341_v0  ;;  %vm3310_vm11 = vcmp.ge.f32.partialorder %v3278_v31, 0.0  ;;  %v3342_v50 = vmul.f32 0.1, %v3278_v31  ;;  %v4432_v59 = vadd.f32 %v3100_v2, %v5435_v38  ;;  %v4368_v47 = vpop.f32.mrb[10].mxu0  ;;  %3614 = vst.msk [vmem:[%s5488_s19 + $0x58] sm:$0xff] %vm3401_vm0, %v4402_v20 }
 0x212   : > { %v3511_v22 = vpop.f32.mrb[43].mxu1  ;;  %3406 = vst.msk [vmem:[%s5517_s26 + $0x20] sm:$0xff] %vm3401_vm0, %v3373_v46  ;;  %v3376_v37 = vsel %vm3312_vm10, %v3280_v26, %v3344_v48  ;;  %v3244_v35 = vmul.f32 %v4431_v49, %v5493_v12  ;;  %v4433_v39 = vadd.f32 %v4368_v47, %v5437_v42  ;;  %v3103_v13 = vpop.f32.mrb[11].mxu0 }
 0x213   : > { %3612 = vst.msk [vmem:[%s5488_s19 + $0x48] sm:$0xff] %vm3401_vm0, %v3511_v22  ;;  %3409 = vst.msk [vmem:[%s5517_s26 + $0x38] sm:$0xff] %vm3401_vm0, %v3376_v37  ;;  %v3374_v19 = vsel %vm3310_vm11, %v3278_v31, %v3342_v50  ;;  %v3242_v38 = vmul.f32 %v4432_v59, %v5493_v12  ;;  %v4434_v34 = vadd.f32 %v3103_v13, %v5439_v44 }
 0x214   : > { %3407 = vst.msk [vmem:[%s5517_s26 + $0x28] sm:$0xff] %vm3401_vm0, %v3374_v19  ;;  %v3283_v43 = vadd.f32 %v5502_v61, %v3244_v35  ;;  %v3245_v55 = vmul.f32 %v4433_v39, %v5493_v12 }
 0x215   : > { %v3281_v7 = vadd.f32 %v5502_v61, %v3242_v38  ;;  %v3243_v42 = vmul.f32 %v4434_v34, %v5493_v12 }
 0x216   : > { %vm3315_vm12 = vcmp.ge.f32.partialorder %v3283_v43, 0.0  ;;  %v3347_v29 = vmul.f32 0.1, %v3283_v43  ;;  %v3284_v63 = vadd.f32 %v5502_v61, %v3245_v55  ;;  %v4405_v40 = vpop.f32.mrb[44].mxu1 }
 0x217   : > { %vm3313_vm13 = vcmp.ge.f32.partialorder %v3281_v7, 0.0  ;;  %v3345_v11 = vmul.f32 0.1, %v3281_v7  ;;  %v3282_v44 = vadd.f32 %v5502_v61, %v3243_v42  ;;  %v4371_v6 = vpop.f32.mrb[12].mxu0  ;;  %3617 = vst.msk [vmem:[%s5488_s19 + $0x70] sm:$0xff] %vm3401_vm0, %v4405_v40  ;;  %v3524_v30 = vpop.f32.mrb[45].mxu1 }
 0x218   : > { %v3379_v10 = vsel %vm3315_vm12, %v3283_v43, %v3347_v29  ;;  %vm3316_vm14 = vcmp.ge.f32.partialorder %v3284_v63, 0.0  ;;  %v3348_v51 = vmul.f32 0.1, %v3284_v63  ;;  %v4435_v60 = vadd.f32 %v4371_v6, %v5441_v52  ;;  %v3116_v14 = vpop.f32.mrb[13].mxu0  ;;  %3615 = vst.msk [vmem:[%s5488_s19 + $0x60] sm:$0xff] %vm3401_vm0, %v3524_v30  ;;  %v4406_v18 = vpop.f32.mrb[46].mxu1 }
 0x219   : > { %3412 = vst.msk [vmem:[%s5517_s26 + $0x50] sm:$0xff] %vm3401_vm0, %v3379_v10  ;;  %v3377_v24 = vsel %vm3313_vm13, %v3281_v7, %v3345_v11  ;;  %vm3314_vm15 = vcmp.ge.f32.partialorder %v3282_v44, 0.0  ;;  %v3346_v28 = vmul.f32 0.1, %v3282_v44  ;;  %v4436_v25 = vadd.f32 %v3116_v14, %v5443_v1  ;;  %v4372_v26 = vpop.f32.mrb[14].mxu0  ;;  %3618 = vst.msk [vmem:[%s5488_s19 + $0x78] sm:$0xff] %vm3401_vm0, %v4406_v18 }
 0x21a   : > { %v3527_v27 = vpop.f32.mrb[47].mxu1  ;;  %3410 = vst.msk [vmem:[%s5517_s26 + $0x40] sm:$0xff] %vm3401_vm0, %v3377_v24  ;;  %v3380_v52 = vsel %vm3316_vm14, %v3284_v63, %v3348_v51  ;;  %v3248_v0 = vmul.f32 %v4435_v60, %v5493_v12  ;;  %v4437_v31 = vadd.f32 %v4372_v26, %v5445_v8  ;;  %v3119_v32 = vpop.f32.mrb[15].mxu0 }
 0x21b   : > { %3616 = vst.msk [vmem:[%s5488_s19 + $0x68] sm:$0xff] %vm3401_vm0, %v3527_v27  ;;  %3413 = vst.msk [vmem:[%s5517_s26 + $0x58] sm:$0xff] %vm3401_vm0, %v3380_v52  ;;  %v3378_v54 = vsel %vm3314_vm15, %v3282_v44, %v3346_v28  ;;  %v3246_v1 = vmul.f32 %v4436_v25, %v5493_v12  ;;  %v4438_v9 = vadd.f32 %v3119_v32, %v5447_v21 }
 0x21c   : > { %3411 = vst.msk [vmem:[%s5517_s26 + $0x48] sm:$0xff] %vm3401_vm0, %v3378_v54  ;;  %v3287_v48 = vadd.f32 %v5502_v61, %v3248_v0  ;;  %v3249_v49 = vmul.f32 %v4437_v31, %v5493_v12 }
 0x21d   : > { %v3285_v2 = vadd.f32 %v5502_v61, %v3246_v1  ;;  %v3247_v8 = vmul.f32 %v4438_v9, %v5493_v12 }
 0x21e   : > { %vm3319_vm1 = vcmp.ge.f32.partialorder %v3287_v48, 0.0  ;;  %v3351_v20 = vmul.f32 0.1, %v3287_v48  ;;  %v3288_v46 = vadd.f32 %v5502_v61, %v3249_v49  ;;  %v4409_v50 = vpop.f32.mrb[48].mxu1 }
 0x21f   : > { %vm3317_vm2 = vcmp.ge.f32.partialorder %v3285_v2, 0.0  ;;  %v3349_v59 = vmul.f32 0.1, %v3285_v2  ;;  %v3286_v21 = vadd.f32 %v5502_v61, %v3247_v8  ;;  %v4375_v47 = vpop.f32.mrb[16].mxu0  ;;  %3621 = vst.msk [vmem:[%s5488_s19 + $0x90] sm:$0xff] %vm3401_vm0, %v4409_v50  ;;  %v3540_v22 = vpop.f32.mrb[49].mxu1 }
 0x220   : > { %v3383_v37 = vsel %vm3319_vm1, %v3287_v48, %v3351_v20  ;;  %vm3320_vm3 = vcmp.ge.f32.partialorder %v3288_v46, 0.0  ;;  %v3352_v35 = vmul.f32 0.1, %v3288_v46  ;;  %v4439_v39 = vadd.f32 %v4375_v47, %v5449_v23  ;;  %v3132_v13 = vpop.f32.mrb[17].mxu0  ;;  %3619 = vst.msk [vmem:[%s5488_s19 + $0x80] sm:$0xff] %vm3401_vm0, %v3540_v22  ;;  %v4410_v19 = vpop.f32.mrb[50].mxu1 }
 0x221   : > { %3416 = vst.msk [vmem:[%s5517_s26 + $0x70] sm:$0xff] %vm3401_vm0, %v3383_v37  ;;  %v3381_v38 = vsel %vm3317_vm2, %v3285_v2, %v3349_v59  ;;  %vm3318_vm4 = vcmp.ge.f32.partialorder %v3286_v21, 0.0  ;;  %v3350_v34 = vmul.f32 0.1, %v3286_v21  ;;  %v4440_v43 = vadd.f32 %v3132_v13, %v5451_v36  ;;  %v4376_v55 = vpop.f32.mrb[18].mxu0  ;;  %3622 = vst.msk [vmem:[%s5488_s19 + $0x98] sm:$0xff] %vm3401_vm0, %v4410_v19 }
 0x222   : > { %v3543_v7 = vpop.f32.mrb[51].mxu1  ;;  %3414 = vst.msk [vmem:[%s5517_s26 + $0x60] sm:$0xff] %vm3401_vm0, %v3381_v38  ;;  %v3384_v23 = vsel %vm3320_vm3, %v3288_v46, %v3352_v35  ;;  %v3252_v42 = vmul.f32 %v4439_v39, %v5493_v12  ;;  %v4441_v29 = vadd.f32 %v4376_v55, %v5453_v41  ;;  %v3135_v63 = vpop.f32.mrb[19].mxu0 }
 0x223   : > { %3620 = vst.msk [vmem:[%s5488_s19 + $0x88] sm:$0xff] %vm3401_vm0, %v3543_v7  ;;  %3417 = vst.msk [vmem:[%s5517_s26 + $0x78] sm:$0xff] %vm3401_vm0, %v3384_v23  ;;  %v3382_v40 = vsel %vm3318_vm4, %v3286_v21, %v3350_v34  ;;  %v3250_v36 = vmul.f32 %v4440_v43, %v5493_v12  ;;  %v4442_v11 = vadd.f32 %v3135_v63, %v5455_v53 }
 0x224   : > { %3415 = vst.msk [vmem:[%s5517_s26 + $0x68] sm:$0xff] %vm3401_vm0, %v3382_v40  ;;  %v3291_v44 = vadd.f32 %v5502_v61, %v3252_v42  ;;  %v3253_v6 = vmul.f32 %v4441_v29, %v5493_v12 }
 0x225   : > { %v3289_v30 = vadd.f32 %v5502_v61, %v3250_v36  ;;  %v3251_v41 = vmul.f32 %v4442_v11, %v5493_v12 }
 0x226   : > { %vm3323_vm5 = vcmp.ge.f32.partialorder %v3291_v44, 0.0  ;;  %v3355_v10 = vmul.f32 0.1, %v3291_v44  ;;  %v3292_v51 = vadd.f32 %v5502_v61, %v3253_v6  ;;  %v4413_v60 = vpop.f32.mrb[52].mxu1 }
 0x227   : > { %vm3321_vm6 = vcmp.ge.f32.partialorder %v3289_v30, 0.0  ;;  %v3353_v14 = vmul.f32 0.1, %v3289_v30  ;;  %v3290_v53 = vadd.f32 %v5502_v61, %v3251_v41  ;;  %v4379_v18 = vpop.f32.mrb[20].mxu0  ;;  %3625 = vst.msk [vmem:[%s5488_s19 + $0xb0] sm:$0xff] %vm3401_vm0, %v4413_v60  ;;  %v3556_v24 = vpop.f32.mrb[53].mxu1 }
 0x228   : > { %v3387_v28 = vsel %vm3323_vm5, %v3291_v44, %v3355_v10  ;;  %vm3324_vm7 = vcmp.ge.f32.partialorder %v3292_v51, 0.0  ;;  %v3356_v25 = vmul.f32 0.1, %v3292_v51  ;;  %v4443_v26 = vadd.f32 %v4379_v18, %v5457_v56  ;;  %v3148_v27 = vpop.f32.mrb[21].mxu0  ;;  %3623 = vst.msk [vmem:[%s5488_s19 + $0xa0] sm:$0xff] %vm3401_vm0, %v3556_v24  ;;  %v4414_v52 = vpop.f32.mrb[54].mxu1 }
 0x229   : > { %3420 = vst.msk [vmem:[%s5517_s26 + $0x90] sm:$0xff] %vm3401_vm0, %v3387_v28  ;;  %v3385_v0 = vsel %vm3321_vm6, %v3289_v30, %v3353_v14  ;;  %vm3322_vm8 = vcmp.ge.f32.partialorder %v3290_v53, 0.0  ;;  %v3354_v31 = vmul.f32 0.1, %v3290_v53  ;;  %v4444_v32 = vadd.f32 %v3148_v27, %v5459_v57  ;;  %v4380_v54 = vpop.f32.mrb[22].mxu0  ;;  %3626 = vst.msk [vmem:[%s5488_s19 + $0xb8] sm:$0xff] %vm3401_vm0, %v4414_v52 }
 0x22a   : > { %v3559_v1 = vpop.f32.mrb[55].mxu1  ;;  %3418 = vst.msk [vmem:[%s5517_s26 + $0x80] sm:$0xff] %vm3401_vm0, %v3385_v0  ;;  %v3388_v56 = vsel %vm3324_vm7, %v3292_v51, %v3356_v25  ;;  %v3256_v9 = vmul.f32 %v4443_v26, %v5493_v12  ;;  %v4445_v48 = vadd.f32 %v4380_v54, %v5461_v58  ;;  %v3151_v49 = vpop.f32.mrb[23].mxu0 }
 0x22b   : > { %3624 = vst.msk [vmem:[%s5488_s19 + $0xa8] sm:$0xff] %vm3401_vm0, %v3559_v1  ;;  %3421 = vst.msk [vmem:[%s5517_s26 + $0x98] sm:$0xff] %vm3401_vm0, %v3388_v56  ;;  %v3386_v2 = vsel %vm3322_vm8, %v3290_v53, %v3354_v31  ;;  %v3254_v57 = vmul.f32 %v4444_v32, %v5493_v12  ;;  %v4446_v8 = vadd.f32 %v3151_v49, %v5463_v5 }
 0x22c   : > { %3419 = vst.msk [vmem:[%s5517_s26 + $0x88] sm:$0xff] %vm3401_vm0, %v3386_v2  ;;  %v3295_v20 = vadd.f32 %v5502_v61, %v3256_v9  ;;  %v3257_v46 = vmul.f32 %v4445_v48, %v5493_v12 }
 0x22d   : > { %v3293_v50 = vadd.f32 %v5502_v61, %v3254_v57  ;;  %v3255_v58 = vmul.f32 %v4446_v8, %v5493_v12 }
 0x22e   : > { %vm3327_vm9 = vcmp.ge.f32.partialorder %v3295_v20, 0.0  ;;  %v3359_v59 = vmul.f32 0.1, %v3295_v20  ;;  %v3296_v21 = vadd.f32 %v5502_v61, %v3257_v46  ;;  %v4417_v47 = vpop.f32.mrb[56].mxu1 }
 0x22f   : > { %vm3325_vm10 = vcmp.ge.f32.partialorder %v3293_v50, 0.0  ;;  %v3357_v22 = vmul.f32 0.1, %v3293_v50  ;;  %v3294_v5 = vadd.f32 %v5502_v61, %v3255_v58  ;;  %v4383_v37 = vpop.f32.mrb[24].mxu0  ;;  %3629 = vst.msk [vmem:[%s5488_s19 + $0xd0] sm:$0xff] %vm3401_vm0, %v4417_v47  ;;  %v3572_v35 = vpop.f32.mrb[57].mxu1 }
 0x230   : > { %v3391_v39 = vsel %vm3327_vm9, %v3295_v20, %v3359_v59  ;;  %vm3328_vm11 = vcmp.ge.f32.partialorder %v3296_v21, 0.0  ;;  %v3360_v13 = vmul.f32 0.1, %v3296_v21  ;;  %v4447_v19 = vadd.f32 %v4383_v37, %v5465_v15  ;;  %v3164_v38 = vpop.f32.mrb[25].mxu0  ;;  %3627 = vst.msk [vmem:[%s5488_s19 + $0xc0] sm:$0xff] %vm3401_vm0, %v3572_v35  ;;  %v4418_v34 = vpop.f32.mrb[58].mxu1 }
 0x231   : > { %3424 = vst.msk [vmem:[%s5517_s26 + $0xb0] sm:$0xff] %vm3401_vm0, %v3391_v39  ;;  %v3389_v43 = vsel %vm3325_vm10, %v3293_v50, %v3357_v22  ;;  %vm3326_vm12 = vcmp.ge.f32.partialorder %v3294_v5, 0.0  ;;  %v3358_v55 = vmul.f32 0.1, %v3294_v5  ;;  %v4448_v7 = vadd.f32 %v3164_v38, %v5468_v16  ;;  %v4384_v23 = vpop.f32.mrb[26].mxu0  ;;  %3630 = vst.msk [vmem:[%s5488_s19 + $0xd8] sm:$0xff] %vm3401_vm0, %v4418_v34 }
 0x232   : > { %v3575_v42 = vpop.f32.mrb[59].mxu1  ;;  %3422 = vst.msk [vmem:[%s5517_s26 + $0xa0] sm:$0xff] %vm3401_vm0, %v3389_v43  ;;  %v3392_v15 = vsel %vm3328_vm11, %v3296_v21, %v3360_v13  ;;  %v3260_v29 = vmul.f32 %v4447_v19, %v5493_v12  ;;  %v4449_v63 = vadd.f32 %v4384_v23, %v5470_v17  ;;  %v3167_v40 = vpop.f32.mrb[27].mxu0 }
 0x233   : > { %3628 = vst.msk [vmem:[%s5488_s19 + $0xc8] sm:$0xff] %vm3401_vm0, %v3575_v42  ;;  %3425 = vst.msk [vmem:[%s5517_s26 + $0xb8] sm:$0xff] %vm3401_vm0, %v3392_v15  ;;  %v3390_v36 = vsel %vm3326_vm12, %v3294_v5, %v3358_v55  ;;  %v3258_v16 = vmul.f32 %v4448_v7, %v5493_v12  ;;  %v4450_v11 = vadd.f32 %v3167_v40, %v5472_v33 }
 0x234   : > { %3423 = vst.msk [vmem:[%s5517_s26 + $0xa8] sm:$0xff] %vm3401_vm0, %v3390_v36  ;;  %v3299_v44 = vadd.f32 %v5502_v61, %v3260_v29  ;;  %v3261_v6 = vmul.f32 %v4449_v63, %v5493_v12 }
 0x235   : > { %v3297_v30 = vadd.f32 %v5502_v61, %v3258_v16  ;;  %v3259_v17 = vmul.f32 %v4450_v11, %v5493_v12 }
 0x236   : > { %vm3331_vm13 = vcmp.ge.f32.partialorder %v3299_v44, 0.0  ;;  %v3363_v41 = vmul.f32 0.1, %v3299_v44  ;;  %v3300_v10 = vadd.f32 %v5502_v61, %v3261_v6  ;;  %v4421_v51 = vpop.f32.mrb[60].mxu1 }
 0x237   : > { %vm3329_vm14 = vcmp.ge.f32.partialorder %v3297_v30, 0.0  ;;  %v3361_v60 = vmul.f32 0.1, %v3297_v30  ;;  %v3298_v33 = vadd.f32 %v5502_v61, %v3259_v17  ;;  %v4387_v14 = vpop.f32.mrb[28].mxu0  ;;  %3633 = vst.msk [vmem:[%s5488_s19 + $0xf0] sm:$0xff] %vm3401_vm0, %v4421_v51  ;;  %v3588_v53 = vpop.f32.mrb[61].mxu1 }
 0x238   : > { %v3395_v18 = vsel %vm3331_vm13, %v3299_v44, %v3363_v41  ;;  %vm3332_vm15 = vcmp.ge.f32.partialorder %v3300_v10, 0.0  ;;  %v3364_v24 = vmul.f32 0.1, %v3300_v10  ;;  %v4451_v28 = vadd.f32 %v4387_v14, %v5476_v3  ;;  %v3180_v25 = vpop.f32.mrb[29].mxu0  ;;  %3631 = vst.msk [vmem:[%s5488_s19 + $0xe0] sm:$0xff] %vm3401_vm0, %v3588_v53  ;;  %v4422_v26 = vpop.f32.mrb[62].mxu1 }
 0x239   : > { %3428 = vst.msk [vmem:[%s5517_s26 + $0xd0] sm:$0xff] %vm3401_vm0, %v3395_v18  ;;  %v3393_v27 = vsel %vm3329_vm14, %v3297_v30, %v3361_v60  ;;  %vm3330_vm1 = vcmp.ge.f32.partialorder %v3298_v33, 0.0  ;;  %v3362_v52 = vmul.f32 0.1, %v3298_v33  ;;  %v4452_v0 = vadd.f32 %v3180_v25, %v5478_v4  ;;  %v4388_v31 = vpop.f32.mrb[30].mxu0  ;;  %3634 = vst.msk [vmem:[%s5488_s19 + $0xf8] sm:$0xff] %vm3401_vm0, %v4422_v26 }
 0x23a   : > { %v3591_v32 = vpop.f32.mrb[63].mxu1  ;;  %3426 = vst.msk [vmem:[%s5517_s26 + $0xc0] sm:$0xff] %vm3401_vm0, %v3393_v27  ;;  %v3396_v3 = vsel %vm3332_vm15, %v3300_v10, %v3364_v24  ;;  %v3264_v54 = vmul.f32 %v4451_v28, %v5493_v12  ;;  %v4453_v1 = vadd.f32 %v4388_v31, %v5480_v45  ;;  %v3183_v56 = vpop.f32.mrb[31].mxu0 }
 0x23b   : > { %3632 = vst.msk [vmem:[%s5488_s19 + $0xe8] sm:$0xff] %vm3401_vm0, %v3591_v32  ;;  %3429 = vst.msk [vmem:[%s5517_s26 + $0xd8] sm:$0xff] %vm3401_vm0, %v3396_v3  ;;  %v3394_v9 = vsel %vm3330_vm1, %v3298_v33, %v3362_v52  ;;  %v3262_v48 = vmul.f32 %v4452_v0, %v5493_v12  ;;  %v4454_v4 = vadd.f32 %v3183_v56, %v5482_v62 }
 0x23c   : > { %3427 = vst.msk [vmem:[%s5517_s26 + $0xc8] sm:$0xff] %vm3401_vm0, %v3394_v9  ;;  %v3303_v49 = vadd.f32 %v5502_v61, %v3264_v54  ;;  %v3265_v2 = vmul.f32 %v4453_v1, %v5493_v12 }
 0x23d   : > { %v3301_v45 = vadd.f32 %v5502_v61, %v3262_v48  ;;  %v3263_v57 = vmul.f32 %v4454_v4, %v5493_v12 }
 0x23e   : > { %vm3335_vm2 = vcmp.ge.f32.partialorder %v3303_v49, 0.0  ;;  %v3367_v8 = vmul.f32 0.1, %v3303_v49  ;;  %v3304_v20 = vadd.f32 %v5502_v61, %v3265_v2 }
 0x23f   : > { %vm3333_vm3 = vcmp.ge.f32.partialorder %v3301_v45, 0.0  ;;  %v3365_v46 = vmul.f32 0.1, %v3301_v45  ;;  %v3302_v62 = vadd.f32 %v5502_v61, %v3263_v57 }
 0x240   : > { %v3399_v50 = vsel %vm3335_vm2, %v3303_v49, %v3367_v8  ;;  %vm3336_vm4 = vcmp.ge.f32.partialorder %v3304_v20, 0.0  ;;  %v3368_v58 = vmul.f32 0.1, %v3304_v20 }
 0x241   : > { %3432 = vst.msk [vmem:[%s5517_s26 + $0xf0] sm:$0xff] %vm3401_vm0, %v3399_v50  ;;  %v3397_v59 = vsel %vm3333_vm3, %v3301_v45, %v3365_v46  ;;  %vm3334_vm5 = vcmp.ge.f32.partialorder %v3302_v62, 0.0  ;;  %v3366_v21 = vmul.f32 0.1, %v3302_v62 }
 0x242   : > { %3430 = vst.msk [vmem:[%s5517_s26 + $0xe0] sm:$0xff] %vm3401_vm0, %v3397_v59  ;;  %v3400_v12 = vsel %vm3336_vm4, %v3304_v20, %v3368_v58 }
 0x243   : > { %3433 = vst.msk [vmem:[%s5517_s26 + $0xf8] sm:$0xff] %vm3401_vm0, %v3400_v12  ;;  %v3398_v47 = vsel %vm3334_vm5, %v3302_v62, %v3366_v21 }
 0x244   : > { %3431 = vst.msk [vmem:[%s5517_s26 + $0xe8] sm:$0xff] %vm3401_vm0, %v3398_v47 }
 0x245 PF: > { %s19_s27 = sadd.s32 1, %s4704_s27  }
 0x246   : > { %p16_p5 = scmp.ge.s32.totalorder %s19_s27, 4  }
 0x248   :  { %18 = sbr.rel (!%p16_p5) target bundleno = 1 (0x1), region = 92 }

// kernel: _lambda_.10
= control target key start
LH: loop header
LB: loop body
LE: loop exit
PB: predicated region body
PF: predicated region fallthrough
CT: control target
= control target key end

     0   :  { %s4140_s12 = smov 0   ;;  %s4862_s0 = inlined_call_operand.vmem [shape: f32[2,16,16,32], index: 0, kind: input, shape index: {}]   ;;  %s4863_s1 = inlined_call_operand.vmem [shape: bf16[288,32], index: 1, kind: input, shape index: {}]   ;;  %s4864_s2 = inlined_call_operand.vmem [shape: f32[512,32], index: 2, kind: input, shape index: {}]   ;;  %s4865_s3 = inlined_call_operand.vmem [shape: f32[512,32], index: 3, kind: output, shape index: {}]  }
   0x1 LB: > { %s4146_s13 = sadd.s32 4294967295, %s4117_s12   ;;  %p3166_p0 = scmp.ge.s32.totalorder %s4117_s12, 1  ;;  %s4117_s12 = sphi %s4140_s12, %s13_s12  }
   0x2   : > { %p148_p1 = scmp.lt.s32.totalorder %s4117_s12, 3 }
   0x4   : > { %p149_p2 = pnand %p3166_p0, %p148_p1 }
   0x5   : > { %v4093_v0 = vld [vmem:[%s4863_s1 + $0x10] sm:$0xff] (!%p149_p2)   ;;  %vm195_vm0 = vcmask (!%p149_p2), 261120   ;;  %v4156_v1 = vld [vmem:[%s4863_s1 + $0x40] sm:$0xff] (!%p149_p2)   ;;  %v4161_v2 = vld [vmem:[%s4863_s1 + $0x18] sm:$0xff] (!%p149_p2)   ;;  %v4119_v3 = vmov (!%p149_p2), 0.0   ;;  %vm198_vm1 = vcmask (!%p149_p2), 254976  }
   0x6   : > { %152 = sbr.rel (%p149_p2) target bundleno = 544 (0x220), region = 32  ;;  %3500 = vmatprep.subr.bf16.mxu1 (!%p149_p2), %v4093_v0  ;;  %196 = vst.msk [vmem:[#allocation2] sm:$0xff] (!%p149_p2), %vm195_vm0, %v4119_v3  ;;  %197 = vst.msk [vmem:[#allocation2 + $0x8] sm:$0xff] (!%p149_p2), %vm195_vm0, %v4119_v3  ;;  %3644 = vmatprep.subr.bf16.mxu0 (!%p149_p2), %v4156_v1  ;;  %v4203_v4 = vld [vmem:[%s4863_s1 + $0x48] sm:$0xff] (!%p149_p2)   ;;  %p177_p3 = scmp.lt.s32.totalorder (!%p149_p2), %s4146_s13, 1  ;;  %v4229_v5 = vld [vmem:[%s4863_s1] sm:$0xff] (!%p149_p2)  }
   0x7   : > { %200 = vst.msk [vmem:[#allocation2 + $0x18] sm:$0xff] (!%p149_p2), %vm195_vm0, %v4119_v3  ;;  %201 = vst.msk [vmem:[#allocation2 + $0x20] sm:$0xff] (!%p149_p2), %vm195_vm0, %v4119_v3  ;;  %3501 = vmatpush3.bf16.msra.mxu1 (!%p149_p2), %v4093_v0  ;;  %3645 = vmatpush3.bf16.msra.mxu0 (!%p149_p2), %v4156_v1  ;;  %v4236_v6 = vld [vmem:[%s4863_s1 + $0x50] sm:$0xff] (!%p149_p2)   ;;  %v4099_v40 = vld [vmem:[%s4863_s1 + $0x58] sm:$0xff] (!%p149_p2)  }
   0x8   : > { %203 = vst.msk [vmem:[#allocation2 + $0x30] sm:$0xff] (!%p149_p2), %vm195_vm0, %v4119_v3  ;;  %204 = vst.msk [vmem:[#allocation2 + $0x38] sm:$0xff] (!%p149_p2), %vm195_vm0, %v4119_v3  ;;  %3502 = vmatprep.subr.bf16.mxu1 (!%p149_p2), %v4161_v2  ;;  %3646 = vmatprep.subr.bf16.mxu0 (!%p149_p2), %v4203_v4  ;;  %v4100_v42 = vld [vmem:[%s4863_s1 + $0x8] sm:$0xff] (!%p149_p2)   ;;  %v4315_v47 = vld [vmem:[%s4863_s1 + $0x60] sm:$0xff] (!%p149_p2)  }
   0x9   : > { %206 = vst.msk [vmem:[#allocation2 + $0x48] sm:$0xff] (!%p149_p2), %vm195_vm0, %v4119_v3  ;;  %207 = vst.msk [vmem:[#allocation2 + $0x50] sm:$0xff] (!%p149_p2), %vm195_vm0, %v4119_v3  ;;  %v4353_v0 = vld [vmem:[%s4863_s1 + $0x20] sm:$0xff] (!%p149_p2)  }
   0xa   : > { %209 = vst.msk [vmem:[#allocation2 + $0x60] sm:$0xff] (!%p149_p2), %vm195_vm0, %v4119_v3  ;;  %210 = vst.msk [vmem:[#allocation2 + $0x68] sm:$0xff] (!%p149_p2), %vm195_vm0, %v4119_v3 }
   0xb   : > { %212 = vst.msk [vmem:[#allocation2 + $0x78] sm:$0xff] (!%p149_p2), %vm195_vm0, %v4119_v3  ;;  %213 = vst.msk [vmem:[#allocation2 + $0x80] sm:$0xff] (!%p149_p2), %vm195_vm0, %v4119_v3  ;;  %3503 = vmatpush3.bf16.msra.mxu1 (!%p149_p2), %v4161_v2  ;;  %3647 = vmatpush3.bf16.msra.mxu0 (!%p149_p2), %v4203_v4 }
   0xc   : > { %215 = vst.msk [vmem:[#allocation2 + $0x90] sm:$0xff] (!%p149_p2), %vm195_vm0, %v4119_v3  ;;  %216 = vst.msk [vmem:[#allocation2 + $0x98] sm:$0xff] (!%p149_p2), %vm195_vm0, %v4119_v3  ;;  %3536 = vmatprep.subr.bf16.mxu1 (!%p149_p2), %v4229_v5  ;;  %3680 = vmatprep.subr.bf16.mxu0 (!%p149_p2), %v4236_v6 }
   0xd   : > { %218 = vst.msk [vmem:[#allocation2 + $0xa8] sm:$0xff] %vm195_vm0, %v4119_v3  ;;  %219 = vst.msk [vmem:[#allocation2 + $0xb0] sm:$0xff] %vm195_vm0, %v4119_v3  ;;  %s178_s24 = scalar_select %p177_p3, %s4146_s13, 1  ;;  %v368_v7 = vld [vmem:[#allocation2 + $0x1] sm:$0xff] }
   0xe   : > { %221 = vst.msk [vmem:[#allocation2 + $0xc0] sm:$0xff] %vm195_vm0, %v4119_v3  ;;  %222 = vst.msk [vmem:[#allocation2 + $0xc8] sm:$0xff] %vm195_vm0, %v4119_v3 }
   0xf   : > { %224 = vst.msk [vmem:[#allocation2 + $0xd8] sm:$0xff] %vm195_vm0, %v4119_v3  ;;  %225 = vst.msk [vmem:[#allocation2 + $0xe0] sm:$0xff] %vm195_vm0, %v4119_v3  ;;  %s3337_s27 = sshll.u32 %s178_s24, 8 }
  0x10   : > { %227 = vst.msk [vmem:[#allocation2 + $0xf0] sm:$0xff] %vm195_vm0, %v4119_v3  ;;  %228 = vst.msk [vmem:[#allocation2 + $0xf8] sm:$0xff] %vm195_vm0, %v4119_v3  ;;  %s4243_s30 = scalar_lea.vmem %s4862_s0, %s3337_s27 }
  0x11   : > { %230 = vst.msk [vmem:[#allocation2 + $0x108] sm:$0xff] %vm195_vm0, %v4119_v3  ;;  %231 = vst.msk [vmem:[#allocation2 + $0x110] sm:$0xff] %vm195_vm0, %v4119_v3  ;;  %v251_v8 = vld [vmem:[%s4243_s30] sm:$0xff]  ;;  %v252_v9 = vld [vmem:[%s4243_s30 + $0x8] sm:$0xff] }
  0x12   : > { %233 = vst.msk [vmem:[#allocation2 + $0x120] sm:$0xff] %vm195_vm0, %v4119_v3  ;;  %234 = vst.msk [vmem:[#allocation2 + $0x128] sm:$0xff] %vm195_vm0, %v4119_v3  ;;  %v253_v11 = vld [vmem:[%s4243_s30 + $0x10] sm:$0xff]  ;;  %v254_v12 = vld [vmem:[%s4243_s30 + $0x18] sm:$0xff] }
  0x13   : > { %236 = vst.msk [vmem:[#allocation2 + $0x138] sm:$0xff] %vm195_vm0, %v4119_v3  ;;  %237 = vst.msk [vmem:[#allocation2 + $0x140] sm:$0xff] %vm195_vm0, %v4119_v3  ;;  %v255_v14 = vld [vmem:[%s4243_s30 + $0x20] sm:$0xff]  ;;  %v256_v15 = vld [vmem:[%s4243_s30 + $0x28] sm:$0xff] }
  0x14   : > { %239 = vst.msk [vmem:[#allocation2 + $0x150] sm:$0xff] %vm195_vm0, %v4119_v3  ;;  %240 = vst.msk [vmem:[#allocation2 + $0x158] sm:$0xff] %vm195_vm0, %v4119_v3  ;;  %v257_v16 = vld [vmem:[%s4243_s30 + $0x30] sm:$0xff]  ;;  %v258_v17 = vld [vmem:[%s4243_s30 + $0x38] sm:$0xff] }
  0x15   : > { %242 = vst.msk [vmem:[#allocation2 + $0x168] sm:$0xff] %vm195_vm0, %v4119_v3  ;;  %243 = vst.msk [vmem:[#allocation2 + $0x170] sm:$0xff] %vm195_vm0, %v4119_v3  ;;  %v259_v18 = vld [vmem:[%s4243_s30 + $0x40] sm:$0xff]  ;;  %v260_v19 = vld [vmem:[%s4243_s30 + $0x48] sm:$0xff] }
  0x16   : > { %245 = vst.msk [vmem:[#allocation2 + $0x180] sm:$0xff] %vm195_vm0, %v4119_v3  ;;  %246 = vst.msk [vmem:[#allocation2 + $0x188] sm:$0xff] %vm195_vm0, %v4119_v3  ;;  %v261_v20 = vld [vmem:[%s4243_s30 + $0x50] sm:$0xff]  ;;  %v262_v21 = vld [vmem:[%s4243_s30 + $0x58] sm:$0xff] }
  0x17   : > { %248 = vst.msk [vmem:[#allocation2 + $0x198] sm:$0xff] %vm195_vm0, %v4119_v3  ;;  %249 = vst.msk [vmem:[#allocation2 + $0x1a0] sm:$0xff] %vm195_vm0, %v4119_v3  ;;  %v263_v22 = vld [vmem:[%s4243_s30 + $0x60] sm:$0xff]  ;;  %v264_v23 = vld [vmem:[%s4243_s30 + $0x68] sm:$0xff] }
  0x18   : > { %199 = vst.msk [vmem:[#allocation2 + $0x10] sm:$0x3] %vm198_vm1, %v4119_v3  ;;  %202 = vst.msk [vmem:[#allocation2 + $0x28] sm:$0x3] %vm198_vm1, %v4119_v3  ;;  %v265_v24 = vld [vmem:[%s4243_s30 + $0x70] sm:$0xff]  ;;  %v266_v25 = vld [vmem:[%s4243_s30 + $0x78] sm:$0xff] }
  0x19   : > { %205 = vst.msk [vmem:[#allocation2 + $0x40] sm:$0x3] %vm198_vm1, %v4119_v3  ;;  %208 = vst.msk [vmem:[#allocation2 + $0x58] sm:$0x3] %vm198_vm1, %v4119_v3  ;;  %v267_v26 = vld [vmem:[%s4243_s30 + $0x80] sm:$0xff]  ;;  %v268_v27 = vld [vmem:[%s4243_s30 + $0x88] sm:$0xff] }
  0x1a   : > { %211 = vst.msk [vmem:[#allocation2 + $0x70] sm:$0x3] %vm198_vm1, %v4119_v3  ;;  %214 = vst.msk [vmem:[#allocation2 + $0x88] sm:$0x3] %vm198_vm1, %v4119_v3  ;;  %v269_v28 = vld [vmem:[%s4243_s30 + $0x90] sm:$0xff]  ;;  %v270_v29 = vld [vmem:[%s4243_s30 + $0x98] sm:$0xff] }
  0x1b   : > { %217 = vst.msk [vmem:[#allocation2 + $0xa0] sm:$0x3] %vm198_vm1, %v4119_v3  ;;  %220 = vst.msk [vmem:[#allocation2 + $0xb8] sm:$0x3] %vm198_vm1, %v4119_v3  ;;  %v271_v30 = vld [vmem:[%s4243_s30 + $0xa0] sm:$0xff]  ;;  %v272_v31 = vld [vmem:[%s4243_s30 + $0xa8] sm:$0xff] }
  0x1c   : > { %223 = vst.msk [vmem:[#allocation2 + $0xd0] sm:$0x3] %vm198_vm1, %v4119_v3  ;;  %226 = vst.msk [vmem:[#allocation2 + $0xe8] sm:$0x3] %vm198_vm1, %v4119_v3  ;;  %v273_v50 = vld [vmem:[%s4243_s30 + $0xb0] sm:$0xff]  ;;  %v274_v51 = vld [vmem:[%s4243_s30 + $0xb8] sm:$0xff] }
  0x1d   : > { %229 = vst.msk [vmem:[#allocation2 + $0x100] sm:$0x3] %vm198_vm1, %v4119_v3  ;;  %232 = vst.msk [vmem:[#allocation2 + $0x118] sm:$0x3] %vm198_vm1, %v4119_v3  ;;  %v275_v52 = vld [vmem:[%s4243_s30 + $0xc0] sm:$0xff]  ;;  %v276_v53 = vld [vmem:[%s4243_s30 + $0xc8] sm:$0xff] }
  0x1e   : > { %235 = vst.msk [vmem:[#allocation2 + $0x130] sm:$0x3] %vm198_vm1, %v4119_v3  ;;  %238 = vst.msk [vmem:[#allocation2 + $0x148] sm:$0x3] %vm198_vm1, %v4119_v3  ;;  %v277_v56 = vld [vmem:[%s4243_s30 + $0xd0] sm:$0xff]  ;;  %v278_v57 = vld [vmem:[%s4243_s30 + $0xd8] sm:$0xff] }
  0x1f   : > { %241 = vst.msk [vmem:[#allocation2 + $0x160] sm:$0x3] %vm198_vm1, %v4119_v3  ;;  %244 = vst.msk [vmem:[#allocation2 + $0x178] sm:$0x3] %vm198_vm1, %v4119_v3  ;;  %v369_v10 = vld [vmem:[#allocation2 + $0x9] sm:$0xff]  ;;  %v279_v58 = vld [vmem:[%s4243_s30 + $0xe0] sm:$0xff] }
  0x20   : > { %247 = vst.msk [vmem:[#allocation2 + $0x190] sm:$0x3] %vm198_vm1, %v4119_v3  ;;  %250 = vst.msk [vmem:[#allocation2 + $0x1a8] sm:$0x3] %vm198_vm1, %v4119_v3  ;;  %v400_v13 = vpack.c.bf16 %v369_v10, %v368_v7  ;;  %v280_v59 = vld [vmem:[%s4243_s30 + $0xe8] sm:$0xff] }
  0x21   : > { %284 = vst.msk [vmem:[#allocation2 + $0x19] sm:$0xff] %vm195_vm0, %v251_v8  ;;  %285 = vst.msk [vmem:[#allocation2 + $0x21] sm:$0xff] %vm195_vm0, %v252_v9 }
  0x22   : > { %286 = vst.msk [vmem:[#allocation2 + $0x31] sm:$0xff] %vm195_vm0, %v253_v11  ;;  %287 = vst.msk [vmem:[#allocation2 + $0x39] sm:$0xff] %vm195_vm0, %v254_v12  ;;  %3504 = vmatprep.mubr.msk.bf16.mxu1 %vm195_vm0, %v400_v13 }
  0x23   : > { %288 = vst.msk [vmem:[#allocation2 + $0x49] sm:$0xff] %vm195_vm0, %v255_v14  ;;  %289 = vst.msk [vmem:[#allocation2 + $0x51] sm:$0xff] %vm195_vm0, %v256_v15 }
  0x24   : > { %290 = vst.msk [vmem:[#allocation2 + $0x61] sm:$0xff] %vm195_vm0, %v257_v16  ;;  %291 = vst.msk [vmem:[#allocation2 + $0x69] sm:$0xff] %vm195_vm0, %v258_v17  ;;  %v281_v17 = vld [vmem:[%s4243_s30 + $0xf0] sm:$0xff] }
  0x25   : > { %292 = vst.msk [vmem:[#allocation2 + $0x79] sm:$0xff] %vm195_vm0, %v259_v18  ;;  %293 = vst.msk [vmem:[#allocation2 + $0x81] sm:$0xff] %vm195_vm0, %v260_v19  ;;  %v282_v18 = vld [vmem:[%s4243_s30 + $0xf8] sm:$0xff]  ;;  %s3169_s30 = sshll.u32 %s4146_s13, 5 }
  0x26   : > { %294 = vst.msk [vmem:[#allocation2 + $0x91] sm:$0xff] %vm195_vm0, %v261_v20  ;;  %295 = vst.msk [vmem:[#allocation2 + $0x99] sm:$0xff] %vm195_vm0, %v262_v21  ;;  %p183_p4 = scmp.lt.s32.totalorder %s3169_s30, 63 }
  0x27   : > { %296 = vst.msk [vmem:[#allocation2 + $0xa9] sm:$0xff] %vm195_vm0, %v263_v22  ;;  %297 = vst.msk [vmem:[#allocation2 + $0xb1] sm:$0xff] %vm195_vm0, %v264_v23  ;;  %v4103_v23 = vld [vmem:[%s4863_s1 + $0x68] sm:$0xff]  }
  0x28   : > { %298 = vst.msk [vmem:[#allocation2 + $0xc1] sm:$0xff] %vm195_vm0, %v265_v24  ;;  %299 = vst.msk [vmem:[#allocation2 + $0xc9] sm:$0xff] %vm195_vm0, %v266_v25  ;;  %v370_v32 = vld [vmem:[#allocation2 + $0x19] sm:$0xff]  ;;  %v371_v33 = vld [vmem:[#allocation2 + $0x21] sm:$0xff]  ;;  %s4867_s30 = smov (!%p183_p4, %s3169_s30), 63 }
  0x29   : > { %300 = vst.msk [vmem:[#allocation2 + $0xd9] sm:$0xff] %vm195_vm0, %v267_v26  ;;  %301 = vst.msk [vmem:[#allocation2 + $0xe1] sm:$0xff] %vm195_vm0, %v268_v27  ;;  %v401_v34 = vpack.c.bf16 %v371_v33, %v370_v32  ;;  %v1474_v35 = vld [vmem:[#allocation2 + $0x31] sm:$0xff]  ;;  %v1475_v36 = vld [vmem:[#allocation2 + $0x39] sm:$0xff]  ;;  %s3170_s4 = sshll.u32 %s4867_s30, 3 }
  0x2a   : > { %302 = vst.msk [vmem:[#allocation2 + $0xf1] sm:$0xff] %vm195_vm0, %v269_v28  ;;  %303 = vst.msk [vmem:[#allocation2 + $0xf9] sm:$0xff] %vm195_vm0, %v270_v29  ;;  %v4292_v37 = vpack.c.bf16 %v1475_v36, %v1474_v35  ;;  %v374_v38 = vld [vmem:[#allocation2 + $0x49] sm:$0xff]  ;;  %v375_v39 = vld [vmem:[#allocation2 + $0x51] sm:$0xff]  ;;  %s4751_s7 = scalar_lea.vmem %s4864_s2, %s3170_s4  ;;  %s4758_s9 = scalar_lea.vmem %s4865_s3, %s3170_s4 }
  0x2b   : > { %304 = vst.msk [vmem:[#allocation2 + $0x109] sm:$0xff] %vm195_vm0, %v271_v30  ;;  %305 = vst.msk [vmem:[#allocation2 + $0x111] sm:$0xff] %vm195_vm0, %v272_v31  ;;  %3505 = vmatmul.mubr.msk.bf16.vlgmr.msra.gmra.mrb[0].mxu1 %vm195_vm0, %v401_v34  ;;  %3648 = vmatprep.mubr.msk.bf16.mxu0 %vm195_vm0, %v401_v34  ;;  %v4299_v41 = vpack.c.bf16 %v375_v39, %v374_v38  ;;  %v1478_v43 = vld [vmem:[#allocation2 + $0x61] sm:$0xff]  ;;  %v1479_v44 = vld [vmem:[#allocation2 + $0x69] sm:$0xff] }
  0x2c   : > { %3537 = vmatpush3.bf16.msra.mxu1 %v4229_v5  ;;  %3649 = vmatmul.mubr.msk.bf16.vlgmr.msra.gmra.mrb[0].mxu0 %vm195_vm0, %v4292_v37  ;;  %v378_v45 = vld [vmem:[#allocation2 + $0x79] sm:$0xff]  ;;  %v379_v46 = vld [vmem:[#allocation2 + $0x81] sm:$0xff]  ;;  %v4317_v48 = vpack.c.bf16 %v1479_v44, %v1478_v43  ;;  %306 = vst.msk [vmem:[#allocation2 + $0x121] sm:$0xff] %vm195_vm0, %v273_v50  ;;  %307 = vst.msk [vmem:[#allocation2 + $0x129] sm:$0xff] %vm195_vm0, %v274_v51 }
  0x2d   : > { %3681 = vmatpush3.bf16.msra.mxu0 %v4236_v6  ;;  %3508 = vmatprep.mubr.msk.bf16.mxu1 %vm195_vm0, %v4292_v37  ;;  %v4319_v49 = vpack.c.bf16 %v379_v46, %v378_v45  ;;  %308 = vst.msk [vmem:[#allocation2 + $0x139] sm:$0xff] %vm195_vm0, %v275_v52  ;;  %v1482_v54 = vld [vmem:[#allocation2 + $0x91] sm:$0xff]  ;;  %v1483_v55 = vld [vmem:[#allocation2 + $0x99] sm:$0xff]  ;;  %309 = vst.msk [vmem:[#allocation2 + $0x141] sm:$0xff] %vm195_vm0, %v276_v53 }
  0x2e   : > { %3652 = vmatprep.mubr.msk.bf16.mxu0 %vm195_vm0, %v4299_v41  ;;  %3682 = vmatprep.subr.bf16.mxu0 %v4099_v40  ;;  %310 = vst.msk [vmem:[#allocation2 + $0x151] sm:$0xff] %vm195_vm0, %v277_v56  ;;  %v382_v60 = vld [vmem:[#allocation2 + $0xa9] sm:$0xff]  ;;  %v383_v61 = vld [vmem:[#allocation2 + $0xb1] sm:$0xff]  ;;  %311 = vst.msk [vmem:[#allocation2 + $0x159] sm:$0xff] %vm195_vm0, %v278_v57  ;;  %v4346_v62 = vpack.c.bf16 %v1483_v55, %v1482_v54 }
  0x2f   : > { %3538 = vmatprep.subr.bf16.mxu1 %v4100_v42  ;;  %312 = vst.msk [vmem:[#allocation2 + $0x169] sm:$0xff] %vm195_vm0, %v279_v58  ;;  %313 = vst.msk [vmem:[#allocation2 + $0x171] sm:$0xff] %vm195_vm0, %v280_v59  ;;  %v4348_v63 = vpack.c.bf16 %v383_v61, %v382_v60  ;;  %v1486_v2 = vld [vmem:[#allocation2 + $0xc1] sm:$0xff]  ;;  %v1487_v3 = vld [vmem:[#allocation2 + $0xc9] sm:$0xff] }
  0x30   : > { %3539 = vmatpush3.bf16.msra.mxu1 %v4100_v42  ;;  %v1777_v5 = vld [vmem:[#allocation2 + $0x1a] sm:$0xff]  ;;  %v1778_v6 = vld [vmem:[#allocation2 + $0x22] sm:$0xff]  ;;  %v4364_v7 = vpack.c.bf16 %v1487_v3, %v1486_v2  ;;  %v1779_v11 = vld [vmem:[#allocation2 + $0x32] sm:$0xff]  ;;  %314 = vst.msk [vmem:[#allocation2 + $0x181] sm:$0xff] %vm195_vm0, %v281_v17 }
  0x31   : > { %3683 = vmatpush3.bf16.msra.mxu0 %v4099_v40  ;;  %3572 = vmatprep.subr.bf16.mxu1 %v4353_v0  ;;  %v4366_v8 = vpack.c.bf16 %v1778_v6, %v1777_v5  ;;  %v386_v9 = vld [vmem:[#allocation2 + $0xd9] sm:$0xff]  ;;  %v387_v10 = vld [vmem:[#allocation2 + $0xe1] sm:$0xff]  ;;  %v388_v13 = vld [vmem:[#allocation2 + $0xf1] sm:$0xff]  ;;  %315 = vst.msk [vmem:[#allocation2 + $0x189] sm:$0xff] %vm195_vm0, %v282_v18 }
  0x32   : > { %3716 = vmatprep.subr.bf16.mxu0 %v4315_v47  ;;  %v1780_v12 = vld [vmem:[#allocation2 + $0x3a] sm:$0xff]  ;;  %v1781_v15 = vld [vmem:[#allocation2 + $0x4a] sm:$0xff]  ;;  %v1782_v16 = vld [vmem:[#allocation2 + $0x52] sm:$0xff]  ;;  %v4378_v19 = vpack.c.bf16 %v387_v10, %v386_v9 }
  0x33   : > { %3509 = vmatmul.mubr.msk.bf16.gmra.mrb[4].mxu1 %vm195_vm0, %v4299_v41  ;;  %v389_v14 = vld [vmem:[#allocation2 + $0xf9] sm:$0xff]  ;;  %v4382_v20 = vpack.c.bf16 %v1780_v12, %v1779_v11  ;;  %v4386_v22 = vpack.c.bf16 %v1782_v16, %v1781_v15  ;;  %v390_v24 = vld [vmem:[#allocation2 + $0x109] sm:$0xff]  ;;  %v391_v25 = vld [vmem:[#allocation2 + $0x111] sm:$0xff] }
  0x34   : > { %3653 = vmatmul.mubr.msk.bf16.gmra.mrb[4].mxu0 %vm195_vm0, %v4317_v48  ;;  %3512 = vmatprep.mubr.msk.bf16.mxu1 %vm195_vm0, %v4317_v48  ;;  %v4384_v21 = vpack.c.bf16 %v389_v14, %v388_v13  ;;  %v1783_v26 = vld [vmem:[#allocation2 + $0x62] sm:$0xff]  ;;  %v1784_v27 = vld [vmem:[#allocation2 + $0x6a] sm:$0xff]  ;;  %v1785_v30 = vld [vmem:[#allocation2 + $0x7a] sm:$0xff]  ;;  %v4405_v33 = vpack.c.bf16 %v391_v25, %v390_v24 }
  0x35   : > { %3656 = vmatprep.mubr.msk.bf16.mxu0 %vm195_vm0, %v4319_v49  ;;  %v392_v28 = vld [vmem:[#allocation2 + $0x121] sm:$0xff]  ;;  %v393_v29 = vld [vmem:[#allocation2 + $0x129] sm:$0xff]  ;;  %v4407_v34 = vpack.c.bf16 %v1784_v27, %v1783_v26  ;;  %v394_v38 = vld [vmem:[#allocation2 + $0x139] sm:$0xff] }
  0x36   : > { %v1786_v31 = vld [vmem:[#allocation2 + $0x82] sm:$0xff]  ;;  %v4403_v32 = vld [vmem:[%s4863_s1 + $0x70] sm:$0xff]   ;;  %v4409_v35 = vpack.c.bf16 %v393_v29, %v392_v28  ;;  %v1788_v40 = vld [vmem:[#allocation2 + $0x9a] sm:$0xff] }
  0x37   : > { %v4411_v36 = vpack.c.bf16 %v1786_v31, %v1785_v30  ;;  %v1787_v39 = vld [vmem:[#allocation2 + $0x92] sm:$0xff]  ;;  %v395_v42 = vld [vmem:[#allocation2 + $0x141] sm:$0xff]  ;;  %v1789_v45 = vld [vmem:[#allocation2 + $0xaa] sm:$0xff] }
  0x38   : > { %v396_v43 = vld [vmem:[#allocation2 + $0x151] sm:$0xff]  ;;  %v397_v44 = vld [vmem:[#allocation2 + $0x159] sm:$0xff]  ;;  %v4424_v50 = vpack.c.bf16 %v1788_v40, %v1787_v39  ;;  %v398_v53 = vld [vmem:[#allocation2 + $0x169] sm:$0xff] }
  0x39   : > { %v1790_v46 = vld [vmem:[#allocation2 + $0xb2] sm:$0xff]  ;;  %v4426_v51 = vpack.c.bf16 %v397_v44, %v396_v43  ;;  %v1791_v55 = vld [vmem:[#allocation2 + $0xc2] sm:$0xff]  ;;  %v1792_v56 = vld [vmem:[#allocation2 + $0xca] sm:$0xff] }
  0x3a   : > { %v4428_v52 = vpack.c.bf16 %v1790_v46, %v1789_v45  ;;  %v399_v54 = vld [vmem:[#allocation2 + $0x171] sm:$0xff]  ;;  %v316_v57 = vld [vmem:[#allocation2] sm:$0xff]  ;;  %v317_v58 = vld [vmem:[#allocation2 + $0x8] sm:$0xff]  ;;  %v4440_v2 = vpack.c.bf16 %v1792_v56, %v1791_v55 }
  0x3b   : > { %3513 = vmatmul.mubr.msk.bf16.gmra.mrb[8].mxu1 %vm195_vm0, %v4319_v49  ;;  %v1793_v59 = vld [vmem:[#allocation2 + $0xda] sm:$0xff]  ;;  %v1794_v60 = vld [vmem:[#allocation2 + $0xe2] sm:$0xff]  ;;  %v4438_v61 = vpack.c.bf16 %v399_v54, %v398_v53  ;;  %v348_v3 = vpack.c.bf16 %v317_v58, %v316_v57  ;;  %v1795_v10 = vld [vmem:[#allocation2 + $0xf2] sm:$0xff] }
  0x3c   : > { %3657 = vmatmul.mubr.msk.bf16.gmra.mrb[8].mxu0 %vm195_vm0, %v4346_v62  ;;  %3516 = vmatprep.mubr.msk.bf16.mxu1 %vm195_vm0, %v4346_v62  ;;  %v4442_v5 = vpack.c.bf16 %v1794_v60, %v1793_v59  ;;  %v318_v6 = vld [vmem:[#allocation2 + $0x18] sm:$0xff]  ;;  %v319_v9 = vld [vmem:[#allocation2 + $0x20] sm:$0xff]  ;;  %v320_v12 = vld [vmem:[#allocation2 + $0x30] sm:$0xff] }
  0x3d   : > { %3660 = vmatprep.mubr.msk.bf16.mxu0 %vm195_vm0, %v4348_v63  ;;  %v1796_v11 = vld [vmem:[#allocation2 + $0xfa] sm:$0xff]  ;;  %v1797_v14 = vld [vmem:[#allocation2 + $0x10a] sm:$0xff]  ;;  %v1798_v15 = vld [vmem:[#allocation2 + $0x112] sm:$0xff]  ;;  %v4451_v16 = vpack.c.bf16 %v319_v9, %v318_v6 }
  0x3e   : > { %v321_v13 = vld [vmem:[#allocation2 + $0x38] sm:$0xff]  ;;  %v4453_v17 = vpack.c.bf16 %v1796_v11, %v1795_v10  ;;  %v4104_v24 = vld [vmem:[%s4863_s1 + $0x28] sm:$0xff]   ;;  %v323_v26 = vld [vmem:[#allocation2 + $0x50] sm:$0xff] }
  0x3f   : > { %v4455_v18 = vpack.c.bf16 %v321_v13, %v320_v12  ;;  %v322_v25 = vld [vmem:[#allocation2 + $0x48] sm:$0xff]  ;;  %v324_v29 = vld [vmem:[#allocation2 + $0x60] sm:$0xff]  ;;  %v4474_v31 = vld [vmem:[%s4863_s1 + $0x30] sm:$0xff]  }
  0x40   : > { %v1799_v27 = vld [vmem:[#allocation2 + $0x122] sm:$0xff]  ;;  %v1800_v28 = vld [vmem:[#allocation2 + $0x12a] sm:$0xff]  ;;  %v4476_v39 = vpack.c.bf16 %v323_v26, %v322_v25  ;;  %v326_v44 = vld [vmem:[#allocation2 + $0x78] sm:$0xff] }
  0x41   : > { %v325_v30 = vld [vmem:[#allocation2 + $0x68] sm:$0xff]  ;;  %v4478_v40 = vpack.c.bf16 %v1800_v28, %v1799_v27  ;;  %v327_v45 = vld [vmem:[#allocation2 + $0x80] sm:$0xff]  ;;  %v1803_v46 = vld [vmem:[#allocation2 + $0x152] sm:$0xff] }
  0x42   : > { %v1804_v53 = vld [vmem:[#allocation2 + $0x15a] sm:$0xff]  ;;  %v328_v54 = vld [vmem:[#allocation2 + $0x90] sm:$0xff]  ;;  %v4493_v58 = vpack.c.bf16 %v327_v45, %v326_v44  ;;  %v330_v6 = vld [vmem:[#allocation2 + $0xa8] sm:$0xff] }
  0x43   : > { %3517 = vmatmul.mubr.msk.bf16.gmra.mrb[12].mxu1 %vm195_vm0, %v4348_v63  ;;  %v329_v55 = vld [vmem:[#allocation2 + $0x98] sm:$0xff]  ;;  %v1805_v56 = vld [vmem:[#allocation2 + $0x16a] sm:$0xff]  ;;  %v4495_v59 = vpack.c.bf16 %v1804_v53, %v1803_v46  ;;  %v332_v10 = vld [vmem:[#allocation2 + $0xc0] sm:$0xff] }
  0x44   : > { %3661 = vmatmul.mubr.msk.bf16.gmra.mrb[12].mxu0 %vm195_vm0, %v4364_v7  ;;  %3520 = vmatprep.mubr.msk.bf16.mxu1 %vm195_vm0, %v4364_v7  ;;  %v1806_v57 = vld [vmem:[#allocation2 + $0x172] sm:$0xff]  ;;  %v4497_v60 = vpack.c.bf16 %v329_v55, %v328_v54  ;;  %v1807_v11 = vld [vmem:[#allocation2 + $0x182] sm:$0xff]  ;;  %v1808_v12 = vld [vmem:[#allocation2 + $0x18a] sm:$0xff] }
  0x45   : > { %3684 = vmatprep.mubr.msk.bf16.mxu0 %vm195_vm0, %v4366_v8  ;;  %v331_v9 = vld [vmem:[#allocation2 + $0xb0] sm:$0xff]  ;;  %v333_v13 = vld [vmem:[#allocation2 + $0xc8] sm:$0xff]  ;;  %v334_v25 = vld [vmem:[#allocation2 + $0xd8] sm:$0xff] }
  0x46   : > { %v335_v26 = vld [vmem:[#allocation2 + $0xe0] sm:$0xff]  ;;  %v336_v27 = vld [vmem:[#allocation2 + $0xf0] sm:$0xff]  ;;  %v337_v28 = vld [vmem:[#allocation2 + $0xf8] sm:$0xff] }
  0x47   : > { %v339_v44 = vld [vmem:[#allocation2 + $0x110] sm:$0xff]  ;;  %v340_v45 = vld [vmem:[#allocation2 + $0x120] sm:$0xff]  ;;  %v341_v46 = vld [vmem:[#allocation2 + $0x128] sm:$0xff] }
  0x48   : > { %v4109_v53 = vld [vmem:[%s4863_s1 + $0x80] sm:$0xff]   ;;  %v4544_v55 = vpack.c.bf16 %v341_v46, %v340_v45  ;;  %v4110_v46 = vld [vmem:[%s4863_s1 + $0x88] sm:$0xff]  }
  0x4b   : > { %3521 = vmatmul.mubr.msk.bf16.gmra.mrb[16].mxu1 %vm195_vm0, %v4378_v19 }
  0x4c   : > { %3685 = vmatmul.mubr.msk.bf16.vlgmr.msra.gmra.mrb[0].mxu0 %vm195_vm0, %v4382_v20  ;;  %3524 = vmatprep.mubr.msk.bf16.mxu1 %vm195_vm0, %v4384_v21 }
  0x4d   : > { %3717 = vmatpush3.bf16.msra.mxu0 %v4315_v47  ;;  %3688 = vmatprep.mubr.msk.bf16.mxu0 %vm195_vm0, %v4386_v22  ;;  %v4422_v47 = vpack.c.bf16 %v395_v42, %v394_v38  ;;  %v1802_v38 = vld [vmem:[#allocation2 + $0x142] sm:$0xff]  ;;  %v4480_v42 = vpack.c.bf16 %v325_v30, %v324_v29  ;;  %v4523_v29 = vpack.c.bf16 %v335_v26, %v334_v25  ;;  %v863_v25 = vld [vmem:[#allocation2 + $0xa] sm:$0xff] }
  0x4e   : > { %3718 = vmatprep.subr.bf16.mxu0 %v4103_v23  ;;  %v4525_v30 = vpack.c.bf16 %v337_v28, %v336_v27  ;;  %v4108_v28 = vld [vmem:[%s4863_s1 + $0x38] sm:$0xff]  }
  0x51   : > { %3719 = vmatpush3.bf16.msra.mxu0 %v4103_v23  ;;  %v4457_v23 = vpack.c.bf16 %v1798_v15, %v1797_v14  ;;  %v4509_v14 = vpack.c.bf16 %v331_v9, %v330_v6  ;;  %v4511_v15 = vpack.c.bf16 %v1808_v12, %v1807_v11  ;;  %v345_v6 = vld [vmem:[#allocation2 + $0x158] sm:$0xff]  ;;  %v346_v11 = vld [vmem:[#allocation2 + $0x168] sm:$0xff]  ;;  %v347_v12 = vld [vmem:[#allocation2 + $0x170] sm:$0xff] }
  0x52   : > { %3752 = vmatprep.subr.bf16.mxu0 %v4403_v32  ;;  %v4566_v26 = vpack.c.bf16 %v347_v12, %v346_v11  ;;  %v3002_v12 = vld [vmem:[%s4751_s7 + $0x20] sm:$0xff] }
  0x53   : > { %3525 = vmatmul.mubr.msk.bf16.gmra.mrb[20].mxu1 %vm195_vm0, %v4405_v33 }
  0x54   : > { %3689 = vmatmul.mubr.msk.bf16.gmra.mrb[4].mxu0 %vm195_vm0, %v4407_v34  ;;  %3528 = vmatprep.mubr.msk.bf16.mxu1 %vm195_vm0, %v4409_v35 }
  0x55   : > { %3692 = vmatprep.mubr.msk.bf16.mxu0 %vm195_vm0, %v4411_v36 }
  0x5b   : > { %3529 = vmatmul.mubr.msk.bf16.gmra.mrb[24].mxu1 %vm195_vm0, %v4422_v47 }
  0x5c   : > { %3693 = vmatmul.mubr.msk.bf16.gmra.mrb[8].mxu0 %vm195_vm0, %v4424_v50  ;;  %3532 = vmatprep.mubr.msk.bf16.mxu1 %vm195_vm0, %v4426_v51 }
  0x5d   : > { %3696 = vmatprep.mubr.msk.bf16.mxu0 %vm195_vm0, %v4428_v52 }
  0x63   : > { %3533 = vmatmul.mubr.msk.bf16.gmra.mrb[28].mxu1 %vm195_vm0, %v4438_v61 }
  0x64   : > { %3697 = vmatmul.mubr.msk.bf16.gmra.mrb[12].mxu0 %vm195_vm0, %v4440_v2  ;;  %3540 = vmatprep.mubr.msk.bf16.mxu1 %vm195_vm0, %v348_v3  ;;  %v4499_v3 = vpack.c.bf16 %v1806_v57, %v1805_v56  ;;  %v343_v56 = vld [vmem:[#allocation2 + $0x140] sm:$0xff]  ;;  %v344_v57 = vld [vmem:[#allocation2 + $0x150] sm:$0xff] }
  0x65   : > { %3700 = vmatprep.mubr.msk.bf16.mxu0 %vm195_vm0, %v4442_v5 }
  0x6b   : > { %3541 = vmatmul.mubr.msk.bf16.vlgmr.msra.gmra.mrb[0].mxu1 %vm195_vm0, %v4451_v16 }
  0x6c   : > { %3573 = vmatpush3.bf16.msra.mxu1 %v4353_v0  ;;  %3701 = vmatmul.mubr.msk.bf16.gmra.mrb[16].mxu0 %vm195_vm0, %v4453_v17  ;;  %v1801_v0 = vld [vmem:[#allocation2 + $0x13a] sm:$0xff] }
  0x6d   : > { %3544 = vmatprep.mubr.msk.bf16.mxu1 %vm195_vm0, %v4455_v18  ;;  %3704 = vmatprep.mubr.msk.bf16.mxu0 %vm195_vm0, %v4457_v23  ;;  %v4482_v43 = vpack.c.bf16 %v1802_v38, %v1801_v0  ;;  %v4107_v0 = vld [vmem:[%s4863_s1 + $0x78] sm:$0xff]   ;;  %v338_v38 = vld [vmem:[#allocation2 + $0x108] sm:$0xff] }
  0x6e   : > { %3574 = vmatprep.subr.bf16.mxu1 %v4104_v24  ;;  %v4542_v54 = vpack.c.bf16 %v339_v44, %v338_v38  ;;  %v2113_v38 = vld [vmem:[#allocation2 + $0x198] sm:$0xff]  ;;  %v2114_v44 = vld [vmem:[#allocation2 + $0x1a0] sm:$0xff] }
  0x6f   : > { %v2130_v45 = vpack.c.bf16 %v2114_v44, %v2113_v38 }
  0x70   : > { %3575 = vmatpush3.bf16.msra.mxu1 %v4104_v24  ;;  %v4513_v24 = vpack.c.bf16 %v333_v13, %v332_v10  ;;  %v4556_v10 = vpack.c.bf16 %v345_v6, %v344_v57  ;;  %v862_v13 = vld [vmem:[#allocation2 + $0x2] sm:$0xff] }
  0x71   : > { %3608 = vmatprep.subr.bf16.mxu1 %v4474_v31  ;;  %v894_v27 = vpack.c.bf16 %v863_v25, %v862_v13 }
  0x73   : > { %3545 = vmatmul.mubr.msk.bf16.gmra.mrb[4].mxu1 %vm195_vm0, %v4476_v39 }
  0x74   : > { %3705 = vmatmul.mubr.msk.bf16.gmra.mrb[20].mxu0 %vm195_vm0, %v4478_v40  ;;  %3548 = vmatprep.mubr.msk.bf16.mxu1 %vm195_vm0, %v4480_v42 }
  0x75   : > { %3708 = vmatprep.mubr.msk.bf16.mxu0 %vm195_vm0, %v4482_v43 }
  0x7b   : > { %3549 = vmatmul.mubr.msk.bf16.gmra.mrb[8].mxu1 %vm195_vm0, %v4493_v58 }
  0x7c   : > { %3709 = vmatmul.mubr.msk.bf16.gmra.mrb[24].mxu0 %vm195_vm0, %v4495_v59  ;;  %3552 = vmatprep.mubr.msk.bf16.mxu1 %vm195_vm0, %v4497_v60 }
  0x7d   : > { %3712 = vmatprep.mubr.msk.bf16.mxu0 %vm195_vm0, %v4499_v3 }
  0x83   : > { %3553 = vmatmul.mubr.msk.bf16.gmra.mrb[12].mxu1 %vm195_vm0, %v4509_v14 }
  0x84   : > { %3713 = vmatmul.mubr.msk.bf16.gmra.mrb[28].mxu0 %vm195_vm0, %v4511_v15  ;;  %3556 = vmatprep.mubr.msk.bf16.mxu1 %vm195_vm0, %v4513_v24 }
  0x85   : > { %3720 = vmatprep.mubr.msk.bf16.mxu0 %vm195_vm0, %v4455_v18 }
  0x8b   : > { %3557 = vmatmul.mubr.msk.bf16.gmra.mrb[16].mxu1 %vm195_vm0, %v4523_v29 }
  0x8c   : > { %3721 = vmatmul.mubr.msk.bf16.vlgmr.msra.gmra.mrb[0].mxu0 %vm195_vm0, %v4476_v39  ;;  %3560 = vmatprep.mubr.msk.bf16.mxu1 %vm195_vm0, %v4525_v30 }
  0x8d   : > { %3753 = vmatpush3.bf16.msra.mxu0 %v4403_v32  ;;  %3724 = vmatprep.mubr.msk.bf16.mxu0 %vm195_vm0, %v4480_v42  ;;  %v342_v32 = vld [vmem:[#allocation2 + $0x138] sm:$0xff] }
  0x8e   : > { %3754 = vmatprep.subr.bf16.mxu0 %v4107_v0  ;;  %v4554_v9 = vpack.c.bf16 %v343_v56, %v342_v32 }
  0x91   : > { %3755 = vmatpush3.bf16.msra.mxu0 %v4107_v0 }
  0x92   : > { %3788 = vmatprep.subr.bf16.mxu0 %v4109_v53 }
  0x93   : > { %3561 = vmatmul.mubr.msk.bf16.gmra.mrb[20].mxu1 %vm195_vm0, %v4542_v54 }
  0x94   : > { %3725 = vmatmul.mubr.msk.bf16.gmra.mrb[4].mxu0 %vm195_vm0, %v4493_v58  ;;  %3564 = vmatprep.mubr.msk.bf16.mxu1 %vm195_vm0, %v4544_v55 }
  0x95   : > { %3728 = vmatprep.mubr.msk.bf16.mxu0 %vm195_vm0, %v4497_v60 }
  0x9b   : > { %3565 = vmatmul.mubr.msk.bf16.gmra.mrb[24].mxu1 %vm195_vm0, %v4554_v9 }
  0x9c   : > { %3729 = vmatmul.mubr.msk.bf16.gmra.mrb[8].mxu0 %vm195_vm0, %v4509_v14  ;;  %3568 = vmatprep.mubr.msk.bf16.mxu1 %vm195_vm0, %v4556_v10 }
  0x9d   : > { %3732 = vmatprep.mubr.msk.bf16.mxu0 %vm195_vm0, %v4513_v24 }
  0xa3   : > { %3569 = vmatmul.mubr.msk.bf16.gmra.mrb[28].mxu1 %vm195_vm0, %v4566_v26 }
  0xa4   : > { %3733 = vmatmul.mubr.msk.bf16.gmra.mrb[12].mxu0 %vm195_vm0, %v4523_v29  ;;  %3576 = vmatprep.mubr.msk.bf16.mxu1 %vm195_vm0, %v894_v27 }
  0xa5   : > { %3736 = vmatprep.mubr.msk.bf16.mxu0 %vm195_vm0, %v4525_v30 }
  0xab   : > { %3577 = vmatmul.mubr.msk.bf16.vlgmr.msra.gmra.mrb[0].mxu1 %vm195_vm0, %v4366_v8  ;;  %v2111_v8 = vld [vmem:[#allocation2 + $0x180] sm:$0xff] }
  0xac   : > { %3609 = vmatpush3.bf16.msra.mxu1 %v4474_v31  ;;  %3737 = vmatmul.mubr.msk.bf16.gmra.mrb[16].mxu0 %vm195_vm0, %v4542_v54  ;;  %v2112_v31 = vld [vmem:[#allocation2 + $0x188] sm:$0xff] }
  0xad   : > { %3580 = vmatprep.mubr.msk.bf16.mxu1 %vm195_vm0, %v4382_v20  ;;  %3740 = vmatprep.mubr.msk.bf16.mxu0 %vm195_vm0, %v4544_v55  ;;  %v4596_v0 = vpack.c.bf16 %v2112_v31, %v2111_v8  ;;  %v3003_v31 = vld [vmem:[%s4751_s7 + $0x28] sm:$0xff] }
  0xae   : > { %3610 = vmatprep.subr.bf16.mxu1 %v4108_v28 }
  0xb0   : > { %3611 = vmatpush3.bf16.msra.mxu1 %v4108_v28 }
  0xb1   : > { %3824 = vmatprep.subr.bf16.mxu1 %v4156_v1 }
  0xb3   : > { %3581 = vmatmul.mubr.msk.bf16.gmra.mrb[4].mxu1 %vm195_vm0, %v4386_v22 }
  0xb4   : > { %3741 = vmatmul.mubr.msk.bf16.gmra.mrb[20].mxu0 %vm195_vm0, %v4554_v9  ;;  %3584 = vmatprep.mubr.msk.bf16.mxu1 %vm195_vm0, %v4407_v34 }
  0xb5   : > { %3744 = vmatprep.mubr.msk.bf16.mxu0 %vm195_vm0, %v4556_v10 }
  0xbb   : > { %3585 = vmatmul.mubr.msk.bf16.gmra.mrb[8].mxu1 %vm195_vm0, %v4411_v36 }
  0xbc   : > { %3745 = vmatmul.mubr.msk.bf16.gmra.mrb[24].mxu0 %vm195_vm0, %v4566_v26  ;;  %3588 = vmatprep.mubr.msk.bf16.mxu1 %vm195_vm0, %v4424_v50 }
  0xbd   : > { %3748 = vmatprep.mubr.msk.bf16.mxu0 %vm195_vm0, %v4596_v0 }
  0xc3   : > { %3589 = vmatmul.mubr.msk.bf16.gmra.mrb[12].mxu1 %vm195_vm0, %v4428_v52 }
  0xc4   : > { %3749 = vmatmul.mubr.msk.bf16.gmra.mrb[28].mxu0 %vm195_vm0, %v2130_v45  ;;  %3592 = vmatprep.mubr.msk.bf16.mxu1 %vm195_vm0, %v4440_v2 }
  0xc5   : > { %3756 = vmatprep.mubr.msk.bf16.mxu0 %vm195_vm0, %v4292_v37  ;;  %v2417_v37 = vld [vmem:[#allocation2 + $0x189] sm:$0xff] }
  0xcb   : > { %3593 = vmatmul.mubr.msk.bf16.gmra.mrb[16].mxu1 %vm195_vm0, %v4442_v5 }
  0xcc   : > { %3757 = vmatmul.mubr.msk.bf16.vlgmr.msra.gmra.mrb[0].mxu0 %vm195_vm0, %v4299_v41  ;;  %3596 = vmatprep.mubr.msk.bf16.mxu1 %vm195_vm0, %v4453_v17 }
  0xcd   : > { %3789 = vmatpush3.bf16.msra.mxu0 %v4109_v53  ;;  %3760 = vmatprep.mubr.msk.bf16.mxu0 %vm195_vm0, %v4317_v48  ;;  %v2419_v48 = vld [vmem:[#allocation2 + $0x1a1] sm:$0xff] }
  0xce   : > { %3790 = vmatprep.subr.bf16.mxu0 %v4110_v46 }
  0xd1   : > { %3791 = vmatpush3.bf16.msra.mxu0 %v4110_v46 }
  0xd3   : > { %3597 = vmatmul.mubr.msk.bf16.gmra.mrb[20].mxu1 %vm195_vm0, %v4457_v23 }
  0xd4   : > { %3761 = vmatmul.mubr.msk.bf16.gmra.mrb[4].mxu0 %vm195_vm0, %v4319_v49  ;;  %3600 = vmatprep.mubr.msk.bf16.mxu1 %vm195_vm0, %v4478_v40 }
  0xd5   : > { %3764 = vmatprep.mubr.msk.bf16.mxu0 %vm195_vm0, %v4346_v62  ;;  %v1488_v62 = vld [vmem:[#allocation2 + $0xd9] sm:$0xff] }
  0xdb   : > { %3601 = vmatmul.mubr.msk.bf16.gmra.mrb[24].mxu1 %vm195_vm0, %v4482_v43 }
  0xdc   : > { %3765 = vmatmul.mubr.msk.bf16.gmra.mrb[8].mxu0 %vm195_vm0, %v4348_v63  ;;  %3604 = vmatprep.mubr.msk.bf16.mxu1 %vm195_vm0, %v4495_v59  ;;  %v1489_v63 = vld [vmem:[#allocation2 + $0xe1] sm:$0xff] }
  0xdd   : > { %3768 = vmatprep.mubr.msk.bf16.mxu0 %vm195_vm0, %v4364_v7  ;;  %v1512_v7 = vpack.c.bf16 %v1489_v63, %v1488_v62  ;;  %v3009_v62 = vld [vmem:[%s4751_s7 + $0x58] sm:$0xff] }
  0xe3   : > { %3605 = vmatmul.mubr.msk.bf16.gmra.mrb[28].mxu1 %vm195_vm0, %v4499_v3 }
  0xe4   : > { %3769 = vmatmul.mubr.msk.bf16.gmra.mrb[12].mxu0 %vm195_vm0, %v4378_v19  ;;  %3612 = vmatprep.mubr.msk.bf16.mxu1 %vm195_vm0, %v4451_v16  ;;  %v1492_v19 = vld [vmem:[#allocation2 + $0x109] sm:$0xff] }
  0xe5   : > { %3772 = vmatprep.mubr.msk.bf16.mxu0 %vm195_vm0, %v4384_v21 }
  0xeb   : > { %3613 = vmatmul.mubr.msk.bf16.vlgmr.msra.gmra.mrb[0].mxu1 %vm195_vm0, %v4455_v18 }
  0xec   : > { %3826 = vmatpush3.bf16.msra.mxu1 %v4156_v1  ;;  %3773 = vmatmul.mubr.msk.bf16.gmra.mrb[16].mxu0 %vm195_vm0, %v4405_v33  ;;  %v2416_v1 = vld [vmem:[#allocation2 + $0x181] sm:$0xff] }
  0xed   : > { %3616 = vmatprep.mubr.msk.bf16.mxu1 %vm195_vm0, %v4476_v39  ;;  %3776 = vmatprep.mubr.msk.bf16.mxu0 %vm195_vm0, %v4409_v35  ;;  %v2434_v41 = vpack.c.bf16 %v2417_v37, %v2416_v1  ;;  %v2724_v33 = vld [vmem:[#allocation2 + $0x1a2] sm:$0xff]  ;;  %v3008_v1 = vld [vmem:[%s4751_s7 + $0x50] sm:$0xff] }
  0xee   : > { %3825 = vmatprep.subr.bf16.mxu1 %v4203_v4 }
  0xf0   : > { %3827 = vmatpush3.bf16.msra.mxu1 %v4203_v4  ;;  %v2418_v4 = vld [vmem:[#allocation2 + $0x199] sm:$0xff] }
  0xf1   : > { %v2435_v49 = vpack.c.bf16 %v2419_v48, %v2418_v4  ;;  %v3006_v4 = vld [vmem:[%s4751_s7 + $0x40] sm:$0xff] }
  0xf3   : > { %3617 = vmatmul.mubr.msk.bf16.gmra.mrb[4].mxu1 %vm195_vm0, %v4480_v42 }
  0xf4   : > { %3777 = vmatmul.mubr.msk.bf16.gmra.mrb[20].mxu0 %vm195_vm0, %v4422_v47  ;;  %3620 = vmatprep.mubr.msk.bf16.mxu1 %vm195_vm0, %v4493_v58  ;;  %v3000_v58 = vld [vmem:[%s4751_s7 + $0x10] sm:$0xff] }
  0xf5   : > { %3780 = vmatprep.mubr.msk.bf16.mxu0 %vm195_vm0, %v4426_v51 }
  0xfb   : > { %3621 = vmatmul.mubr.msk.bf16.gmra.mrb[8].mxu1 %vm195_vm0, %v4497_v60 }
  0xfc   : > { %3781 = vmatmul.mubr.msk.bf16.gmra.mrb[24].mxu0 %vm195_vm0, %v4438_v61  ;;  %3624 = vmatprep.mubr.msk.bf16.mxu1 %vm195_vm0, %v4509_v14 }
  0xfd   : > { %3784 = vmatprep.mubr.msk.bf16.mxu0 %vm195_vm0, %v2434_v41 }
 0x103   : > { %3625 = vmatmul.mubr.msk.bf16.gmra.mrb[12].mxu1 %vm195_vm0, %v4513_v24  ;;  %v3001_v24 = vld [vmem:[%s4751_s7 + $0x18] sm:$0xff] }
 0x104   : > { %3785 = vmatmul.mubr.msk.bf16.gmra.mrb[28].mxu0 %vm195_vm0, %v2435_v49  ;;  %3628 = vmatprep.mubr.msk.bf16.mxu1 %vm195_vm0, %v4523_v29 }
 0x105   : > { %3792 = vmatprep.mubr.msk.bf16.mxu0 %vm195_vm0, %v4382_v20  ;;  %v1493_v20 = vld [vmem:[#allocation2 + $0x111] sm:$0xff] }
 0x10b   : > { %3629 = vmatmul.mubr.msk.bf16.gmra.mrb[16].mxu1 %vm195_vm0, %v4525_v30 }
 0x10c   : > { %3793 = vmatmul.mubr.msk.bf16.vlgmr.msra.gmra.mrb[0].mxu0 %vm195_vm0, %v4386_v22  ;;  %3632 = vmatprep.mubr.msk.bf16.mxu1 %vm195_vm0, %v4542_v54  ;;  %v1514_v22 = vpack.c.bf16 %v1493_v20, %v1492_v19  ;;  %v2999_v54 = vld [vmem:[%s4751_s7 + $0x8] sm:$0xff] }
 0x10d   : > { %3796 = vmatprep.mubr.msk.bf16.mxu0 %vm195_vm0, %v4407_v34  ;;  %v3007_v20 = vld [vmem:[%s4751_s7 + $0x48] sm:$0xff] }
 0x113   : > { %3633 = vmatmul.mubr.msk.bf16.gmra.mrb[20].mxu1 %vm195_vm0, %v4544_v55 }
 0x114   : > { %3797 = vmatmul.mubr.msk.bf16.gmra.mrb[4].mxu0 %vm195_vm0, %v4411_v36  ;;  %3636 = vmatprep.mubr.msk.bf16.mxu1 %vm195_vm0, %v4554_v9  ;;  %v3004_v9 = vld [vmem:[%s4751_s7 + $0x30] sm:$0xff] }
 0x115   : > { %3800 = vmatprep.mubr.msk.bf16.mxu0 %vm195_vm0, %v4424_v50 }
 0x11b   : > { %3637 = vmatmul.mubr.msk.bf16.gmra.mrb[24].mxu1 %vm195_vm0, %v4556_v10 }
 0x11c   : > { %3801 = vmatmul.mubr.msk.bf16.gmra.mrb[8].mxu0 %vm195_vm0, %v4428_v52  ;;  %3640 = vmatprep.mubr.msk.bf16.mxu1 %vm195_vm0, %v4566_v26  ;;  %v3005_v26 = vld [vmem:[%s4751_s7 + $0x38] sm:$0xff] }
 0x11d   : > { %3804 = vmatprep.mubr.msk.bf16.mxu0 %vm195_vm0, %v4440_v2 }
 0x123   : > { %3641 = vmatmul.mubr.msk.bf16.gmra.mrb[28].mxu1 %vm195_vm0, %v4596_v0 }
 0x124   : > { %3805 = vmatmul.mubr.msk.bf16.gmra.mrb[12].mxu0 %vm195_vm0, %v4442_v5  ;;  %3664 = vmatprep.mubr.msk.bf16.mxu1 %vm195_vm0, %v1512_v7 }
 0x125   : > { %3808 = vmatprep.mubr.msk.bf16.mxu0 %vm195_vm0, %v4453_v17 }
 0x12b   : > { %3665 = vmatmul.mubr.msk.bf16.vlgmr.msra.gmra.mrb[16].mxu1 %vm195_vm0, %v4384_v21  ;;  %v2723_v21 = vld [vmem:[#allocation2 + $0x19a] sm:$0xff] }
 0x12c   : > { %3809 = vmatmul.mubr.msk.bf16.gmra.mrb[16].mxu0 %vm195_vm0, %v4457_v23  ;;  %3668 = vmatprep.mubr.msk.bf16.mxu1 %vm195_vm0, %v1514_v22  ;;  %v2740_v34 = vpack.c.bf16 %v2724_v33, %v2723_v21 }
 0x12d   : > { %3812 = vmatprep.mubr.msk.bf16.mxu0 %vm195_vm0, %v4478_v40 }
 0x133   : > { %3669 = vmatmul.mubr.msk.bf16.gmra.mrb[20].mxu1 %vm195_vm0, %v4409_v35 }
 0x134   : > { %3813 = vmatmul.mubr.msk.bf16.gmra.mrb[20].mxu0 %vm195_vm0, %v4482_v43  ;;  %3672 = vmatprep.mubr.msk.bf16.mxu1 %vm195_vm0, %v4422_v47 }
 0x135   : > { %3816 = vmatprep.mubr.msk.bf16.mxu0 %vm195_vm0, %v4495_v59 }
 0x13b   : > { %3673 = vmatmul.mubr.msk.bf16.gmra.mrb[24].mxu1 %vm195_vm0, %v4426_v51 }
 0x13c   : > { %3817 = vmatmul.mubr.msk.bf16.gmra.mrb[24].mxu0 %vm195_vm0, %v4499_v3  ;;  %3676 = vmatprep.mubr.msk.bf16.mxu1 %vm195_vm0, %v4438_v61  ;;  %v2998_v3 = vld [vmem:[%s4751_s7] sm:$0xff] }
 0x13d   : > { %3820 = vmatprep.mubr.msk.bf16.mxu0 %vm195_vm0, %v4511_v15 }
 0x143   : > { %3677 = vmatmul.mubr.msk.bf16.gmra.mrb[28].mxu1 %vm195_vm0, %v2434_v41 }
 0x144   : > { %3821 = vmatmul.mubr.msk.bf16.gmra.mrb[28].mxu0 %vm195_vm0, %v2740_v34 }
 0x1be   : > { %v3614_v35 = vpop.f32.mrb[0].mxu1 }
 0x1bf   : > { %v1313_v36 = vpop.f32.mrb[1].mxu1 }
 0x1c0   : > { %v3615_v47 = vpop.f32.mrb[2].mxu1 }
 0x1c1   : > { %v1316_v50 = vpop.f32.mrb[3].mxu1 }
 0x1c6   : > { %v3618_v51 = vpop.f32.mrb[4].mxu1 }
 0x1c7   : > { %v1329_v52 = vpop.f32.mrb[5].mxu1 }
 0x1c8   : > { %v3619_v2 = vpop.f32.mrb[6].mxu1 }
 0x1c9   : > { %v1332_v5 = vpop.f32.mrb[7].mxu1 }
 0x1ce   : > { %v3622_v61 = vpop.f32.mrb[8].mxu1 }
 0x1cf   : > { %v1345_v16 = vpop.f32.mrb[9].mxu1 }
 0x1d0   : > { %v3623_v17 = vpop.f32.mrb[10].mxu1 }
 0x1d1   : > { %v4738_v18 = vpop.f32.mrb[11].mxu1 }
 0x1d6   : > { %v4740_v23 = vpop.f32.mrb[12].mxu1 }
 0x1d7   : > { %v4742_v39 = vpop.f32.mrb[13].mxu1 }
 0x1d8   : > { %v4744_v40 = vpop.f32.mrb[14].mxu1 }
 0x1d9   : > { %v4746_v42 = vpop.f32.mrb[15].mxu1 }
 0x1df   : > { %v3794_v43 = vpop.f32.mrb[0].mxu0 }
 0x1e0   : > { %v3828_v59 = vadd.f32 %v3794_v43, %v3614_v35  ;;  %v2839_v60 = vpop.f32.mrb[1].mxu0 }
 0x1e1   : > { %v3829_v14 = vadd.f32 %v2839_v60, %v1313_v36  ;;  %v3795_v15 = vpop.f32.mrb[2].mxu0  ;;  %v3012_v36 = vld [vmem:[%s4751_s7 + $0x70] sm:$0xff] }
 0x1e2   : > { %v3032_v29 = vadd.f32 %v3828_v59, %v3000_v58  ;;  %v3830_v30 = vadd.f32 %v3795_v15, %v3615_v47  ;;  %v2842_v53 = vpop.f32.mrb[3].mxu0 }
 0x1e3   : > { %v3030_v55 = vadd.f32 %v3829_v14, %v2998_v3  ;;  %v3831_v32 = vadd.f32 %v2842_v53, %v1316_v50  ;;  %v3016_v3 = vld [vmem:[%s4751_s7 + $0x90] sm:$0xff] }
 0x1e4   : > { %3064 = vst.msk [vmem:[%s4758_s9 + $0x10] sm:$0xff] %vm195_vm0, %v3032_v29  ;;  %v3033_v56 = vadd.f32 %v3830_v30, %v3001_v24  ;;  %v3014_v24 = vld [vmem:[%s4751_s7 + $0x80] sm:$0xff] }
 0x1e5   : > { %3062 = vst.msk [vmem:[%s4758_s9] sm:$0xff] %vm195_vm0, %v3030_v55  ;;  %v3031_v57 = vadd.f32 %v3831_v32, %v2999_v54  ;;  %v3017_v54 = vld [vmem:[%s4751_s7 + $0x98] sm:$0xff] }
 0x1e6   : > { %3065 = vst.msk [vmem:[%s4758_s9 + $0x18] sm:$0xff] %vm195_vm0, %v3033_v56 }
 0x1e7   : > { %3063 = vst.msk [vmem:[%s4758_s9 + $0x8] sm:$0xff] %vm195_vm0, %v3031_v57  ;;  %v3798_v6 = vpop.f32.mrb[4].mxu0  ;;  %v3015_v57 = vld [vmem:[%s4751_s7 + $0x88] sm:$0xff] }
 0x1e8   : > { %v3832_v10 = vadd.f32 %v3798_v6, %v3618_v51  ;;  %v2855_v11 = vpop.f32.mrb[5].mxu0  ;;  %v3010_v51 = vld [vmem:[%s4751_s7 + $0x60] sm:$0xff] }
 0x1e9   : > { %v3833_v13 = vadd.f32 %v2855_v11, %v1329_v52  ;;  %v3799_v25 = vpop.f32.mrb[6].mxu0 }
 0x1ea   : > { %v3036_v27 = vadd.f32 %v3832_v10, %v3004_v9  ;;  %v3834_v28 = vadd.f32 %v3799_v25, %v3619_v2  ;;  %v2858_v8 = vpop.f32.mrb[7].mxu0 }
 0x1eb   : > { %v3034_v0 = vadd.f32 %v3833_v13, %v3002_v12  ;;  %v3835_v38 = vadd.f32 %v2858_v8, %v1332_v5  ;;  %v3013_v5 = vld [vmem:[%s4751_s7 + $0x78] sm:$0xff] }
 0x1ec   : > { %3068 = vst.msk [vmem:[%s4758_s9 + $0x30] sm:$0xff] %vm195_vm0, %v3036_v27  ;;  %v3037_v44 = vadd.f32 %v3834_v28, %v3005_v26  ;;  %v3020_v26 = vld [vmem:[%s4751_s7 + $0xb0] sm:$0xff] }
 0x1ed   : > { %3066 = vst.msk [vmem:[%s4758_s9 + $0x20] sm:$0xff] %vm195_vm0, %v3034_v0  ;;  %v3035_v45 = vadd.f32 %v3835_v38, %v3003_v31  ;;  %v3018_v31 = vld [vmem:[%s4751_s7 + $0xa0] sm:$0xff] }
 0x1ee   : > { %3069 = vst.msk [vmem:[%s4758_s9 + $0x38] sm:$0xff] %vm195_vm0, %v3037_v44 }
 0x1ef   : > { %3067 = vst.msk [vmem:[%s4758_s9 + $0x28] sm:$0xff] %vm195_vm0, %v3035_v45  ;;  %v3802_v46 = vpop.f32.mrb[8].mxu0  ;;  %v3021_v45 = vld [vmem:[%s4751_s7 + $0xb8] sm:$0xff] }
 0x1f0   : > { %v3836_v37 = vadd.f32 %v3802_v46, %v3622_v61  ;;  %v2871_v41 = vpop.f32.mrb[9].mxu0 }
 0x1f1   : > { %v3837_v48 = vadd.f32 %v2871_v41, %v1345_v16  ;;  %v3803_v49 = vpop.f32.mrb[10].mxu0  ;;  %v3019_v41 = vld [vmem:[%s4751_s7 + $0xa8] sm:$0xff] }
 0x1f2   : > { %v3040_v63 = vadd.f32 %v3836_v37, %v3008_v1  ;;  %v3838_v7 = vadd.f32 %v3803_v49, %v3623_v17  ;;  %v2874_v19 = vpop.f32.mrb[11].mxu0 }
 0x1f3   : > { %v3038_v22 = vadd.f32 %v3837_v48, %v3006_v4  ;;  %v3839_v21 = vadd.f32 %v2874_v19, %v4738_v18  ;;  %v3011_v18 = vld [vmem:[%s4751_s7 + $0x68] sm:$0xff] }
 0x1f4   : > { %3072 = vst.msk [vmem:[%s4758_s9 + $0x50] sm:$0xff] %vm195_vm0, %v3040_v63  ;;  %v3041_v33 = vadd.f32 %v3838_v7, %v3009_v62 }
 0x1f5   : > { %3070 = vst.msk [vmem:[%s4758_s9 + $0x40] sm:$0xff] %vm195_vm0, %v3038_v22  ;;  %v3039_v34 = vadd.f32 %v3839_v21, %v3007_v20  ;;  %v3024_v20 = vld [vmem:[%s4751_s7 + $0xd0] sm:$0xff] }
 0x1f6   : > { %3073 = vst.msk [vmem:[%s4758_s9 + $0x58] sm:$0xff] %vm195_vm0, %v3041_v33 }
 0x1f7   : > { %3071 = vst.msk [vmem:[%s4758_s9 + $0x48] sm:$0xff] %vm195_vm0, %v3039_v34  ;;  %v3806_v35 = vpop.f32.mrb[12].mxu0  ;;  %v3022_v34 = vld [vmem:[%s4751_s7 + $0xc0] sm:$0xff] }
 0x1f8   : > { %v3840_v47 = vadd.f32 %v3806_v35, %v4740_v23  ;;  %v2887_v50 = vpop.f32.mrb[13].mxu0 }
 0x1f9   : > { %v3841_v52 = vadd.f32 %v2887_v50, %v4742_v39  ;;  %v3807_v2 = vpop.f32.mrb[14].mxu0  ;;  %v3025_v50 = vld [vmem:[%s4751_s7 + $0xd8] sm:$0xff] }
 0x1fa   : > { %v3044_v61 = vadd.f32 %v3840_v47, %v3012_v36  ;;  %v3842_v16 = vadd.f32 %v3807_v2, %v4744_v40  ;;  %v2890_v17 = vpop.f32.mrb[15].mxu0 }
 0x1fb   : > { %v3042_v43 = vadd.f32 %v3841_v52, %v3010_v51  ;;  %v3843_v58 = vadd.f32 %v2890_v17, %v4746_v42 }
 0x1fc   : > { %3076 = vst.msk [vmem:[%s4758_s9 + $0x70] sm:$0xff] %vm195_vm0, %v3044_v61  ;;  %v3045_v23 = vadd.f32 %v3842_v16, %v3013_v5  ;;  %v3023_v5 = vld [vmem:[%s4751_s7 + $0xc8] sm:$0xff] }
 0x1fd   : > { %3074 = vst.msk [vmem:[%s4758_s9 + $0x60] sm:$0xff] %vm195_vm0, %v3042_v43  ;;  %v3043_v59 = vadd.f32 %v3843_v58, %v3011_v18 }
 0x1fe   : > { %3077 = vst.msk [vmem:[%s4758_s9 + $0x78] sm:$0xff] %vm195_vm0, %v3045_v23  ;;  %v3666_v39 = vpop.f32.mrb[16].mxu1 }
 0x1ff   : > { %3075 = vst.msk [vmem:[%s4758_s9 + $0x68] sm:$0xff] %vm195_vm0, %v3043_v59  ;;  %v1682_v40 = vpop.f32.mrb[17].mxu1  ;;  %v3810_v60 = vpop.f32.mrb[16].mxu0  ;;  %v3028_v59 = vld [vmem:[%s4751_s7 + $0xf0] sm:$0xff] }
 0x200   : > { %v3844_v14 = vadd.f32 %v3810_v60, %v3666_v39  ;;  %v3667_v42 = vpop.f32.mrb[18].mxu1  ;;  %v2903_v15 = vpop.f32.mrb[17].mxu0 }
 0x201   : > { %v3845_v29 = vadd.f32 %v2903_v15, %v1682_v40  ;;  %v1685_v30 = vpop.f32.mrb[19].mxu1  ;;  %v3811_v53 = vpop.f32.mrb[18].mxu0 }
 0x202   : > { %v3048_v55 = vadd.f32 %v3844_v14, %v3016_v3  ;;  %v3846_v32 = vadd.f32 %v3811_v53, %v3667_v42  ;;  %v2906_v56 = vpop.f32.mrb[19].mxu0  ;;  %v3026_v3 = vld [vmem:[%s4751_s7 + $0xe0] sm:$0xff] }
 0x203   : > { %v3046_v6 = vadd.f32 %v3845_v29, %v3014_v24  ;;  %v3847_v9 = vadd.f32 %v2906_v56, %v1685_v30  ;;  %v3029_v24 = vld [vmem:[%s4751_s7 + $0xf8] sm:$0xff] }
 0x204   : > { %3080 = vst.msk [vmem:[%s4758_s9 + $0x90] sm:$0xff] %vm195_vm0, %v3048_v55  ;;  %v3049_v10 = vadd.f32 %v3846_v32, %v3017_v54  ;;  %v3027_v54 = vld [vmem:[%s4751_s7 + $0xe8] sm:$0xff] }
 0x205   : > { %3078 = vst.msk [vmem:[%s4758_s9 + $0x80] sm:$0xff] %vm195_vm0, %v3046_v6  ;;  %v3047_v11 = vadd.f32 %v3847_v9, %v3015_v57 }
 0x206   : > { %3081 = vst.msk [vmem:[%s4758_s9 + $0x98] sm:$0xff] %vm195_vm0, %v3049_v10  ;;  %v3670_v12 = vpop.f32.mrb[20].mxu1 }
 0x207   : > { %3079 = vst.msk [vmem:[%s4758_s9 + $0x88] sm:$0xff] %vm195_vm0, %v3047_v11  ;;  %v1698_v13 = vpop.f32.mrb[21].mxu1  ;;  %v3814_v25 = vpop.f32.mrb[20].mxu0 }
 0x208   : > { %v3848_v27 = vadd.f32 %v3814_v25, %v3670_v12  ;;  %v3671_v28 = vpop.f32.mrb[22].mxu1  ;;  %v2919_v8 = vpop.f32.mrb[21].mxu0 }
 0x209   : > { %v3849_v0 = vadd.f32 %v2919_v8, %v1698_v13  ;;  %v1701_v38 = vpop.f32.mrb[23].mxu1  ;;  %v3815_v44 = vpop.f32.mrb[22].mxu0 }
 0x20a   : > { %v3052_v46 = vadd.f32 %v3848_v27, %v3020_v26  ;;  %v3850_v1 = vadd.f32 %v3815_v44, %v3671_v28  ;;  %v2922_v37 = vpop.f32.mrb[23].mxu0 }
 0x20b   : > { %v3050_v4 = vadd.f32 %v3849_v0, %v3018_v31  ;;  %v3851_v48 = vadd.f32 %v2922_v37, %v1701_v38 }
 0x20c   : > { %3084 = vst.msk [vmem:[%s4758_s9 + $0xb0] sm:$0xff] %vm195_vm0, %v3052_v46  ;;  %v3053_v49 = vadd.f32 %v3850_v1, %v3021_v45 }
 0x20d   : > { %3082 = vst.msk [vmem:[%s4758_s9 + $0xa0] sm:$0xff] %vm195_vm0, %v3050_v4  ;;  %v3051_v62 = vadd.f32 %v3851_v48, %v3019_v41 }
 0x20e   : > { %3085 = vst.msk [vmem:[%s4758_s9 + $0xb8] sm:$0xff] %vm195_vm0, %v3053_v49  ;;  %v3674_v63 = vpop.f32.mrb[24].mxu1 }
 0x20f   : > { %3083 = vst.msk [vmem:[%s4758_s9 + $0xa8] sm:$0xff] %vm195_vm0, %v3051_v62  ;;  %v1714_v7 = vpop.f32.mrb[25].mxu1  ;;  %v3818_v19 = vpop.f32.mrb[24].mxu0 }
 0x210   : > { %v3852_v22 = vadd.f32 %v3818_v19, %v3674_v63  ;;  %v3675_v21 = vpop.f32.mrb[26].mxu1  ;;  %v2935_v33 = vpop.f32.mrb[25].mxu0 }
 0x211   : > { %v3853_v35 = vadd.f32 %v2935_v33, %v1714_v7  ;;  %v1717_v36 = vpop.f32.mrb[27].mxu1  ;;  %v3819_v47 = vpop.f32.mrb[26].mxu0 }
 0x212   : > { %v3056_v51 = vadd.f32 %v3852_v22, %v3024_v20  ;;  %v3854_v52 = vadd.f32 %v3819_v47, %v3675_v21  ;;  %v2938_v2 = vpop.f32.mrb[27].mxu0 }
 0x213   : > { %v3054_v61 = vadd.f32 %v3853_v35, %v3022_v34  ;;  %v3855_v16 = vadd.f32 %v2938_v2, %v1717_v36 }
 0x214   : > { %3088 = vst.msk [vmem:[%s4758_s9 + $0xd0] sm:$0xff] %vm195_vm0, %v3056_v51  ;;  %v3057_v17 = vadd.f32 %v3854_v52, %v3025_v50 }
 0x215   : > { %3086 = vst.msk [vmem:[%s4758_s9 + $0xc0] sm:$0xff] %vm195_vm0, %v3054_v61  ;;  %v3055_v18 = vadd.f32 %v3855_v16, %v3023_v5 }
 0x216   : > { %3089 = vst.msk [vmem:[%s4758_s9 + $0xd8] sm:$0xff] %vm195_vm0, %v3057_v17  ;;  %v3678_v43 = vpop.f32.mrb[28].mxu1 }
 0x217   : > { %3087 = vst.msk [vmem:[%s4758_s9 + $0xc8] sm:$0xff] %vm195_vm0, %v3055_v18  ;;  %v1730_v58 = vpop.f32.mrb[29].mxu1  ;;  %v3822_v23 = vpop.f32.mrb[28].mxu0 }
 0x218   : > { %v3856_v39 = vadd.f32 %v3822_v23, %v3678_v43  ;;  %v3679_v40 = vpop.f32.mrb[30].mxu1  ;;  %v2951_v60 = vpop.f32.mrb[29].mxu0 }
 0x219   : > { %v3857_v14 = vadd.f32 %v2951_v60, %v1730_v58  ;;  %v1733_v42 = vpop.f32.mrb[31].mxu1  ;;  %v3823_v15 = vpop.f32.mrb[30].mxu0 }
 0x21a   : > { %v3060_v29 = vadd.f32 %v3856_v39, %v3028_v59  ;;  %v3858_v30 = vadd.f32 %v3823_v15, %v3679_v40  ;;  %v2954_v53 = vpop.f32.mrb[31].mxu0 }
 0x21b   : > { %v3058_v55 = vadd.f32 %v3857_v14, %v3026_v3  ;;  %v3859_v32 = vadd.f32 %v2954_v53, %v1733_v42 }
 0x21c   : > { %3092 = vst.msk [vmem:[%s4758_s9 + $0xf0] sm:$0xff] %vm195_vm0, %v3060_v29  ;;  %v3061_v56 = vadd.f32 %v3858_v30, %v3029_v24 }
 0x21d   : > { %3090 = vst.msk [vmem:[%s4758_s9 + $0xe0] sm:$0xff] %vm195_vm0, %v3058_v55  ;;  %v3059_v57 = vadd.f32 %v3859_v32, %v3027_v54 }
 0x21e   : > { %3093 = vst.msk [vmem:[%s4758_s9 + $0xf8] sm:$0xff] %vm195_vm0, %v3061_v56 }
 0x21f   : > { %3091 = vst.msk [vmem:[%s4758_s9 + $0xe8] sm:$0xff] %vm195_vm0, %v3059_v57 }
 0x220 PF: > { %s13_s12 = sadd.s32 1, %s4117_s12  }
 0x221   : > { %p10_p5 = scmp.ge.s32.totalorder %s13_s12, 4  }
 0x223   :  { %12 = sbr.rel (!%p10_p5) target bundleno = 1 (0x1), region = 67 }

// kernel: _lambda_.11
= control target key start
LH: loop header
LB: loop body
LE: loop exit
PB: predicated region body
PF: predicated region fallthrough
CT: control target
= control target key end

     0   :  { %s2528_s21 = smov 0   ;;  %s2873_s0 = inlined_call_operand.vmem [shape: bf16[8,9,9,32], index: 0, kind: input, shape index: {}]   ;;  %s2874_s1 = inlined_call_operand.vmem [shape: bf16[288,64], index: 1, kind: input, shape index: {}]   ;;  %s2875_s2 = inlined_call_operand.vmem [shape: bf16[32,64], index: 2, kind: input, shape index: {}]   ;;  %s2876_s3 = inlined_call_operand.vmem [shape: f32[1,64], index: 3, kind: input, shape index: {}]   ;;  %s2877_s4 = inlined_call_operand.vmem [shape: f32[1,64], index: 4, kind: input, shape index: {}]   ;;  %s2878_s5 = inlined_call_operand.vmem [shape: f32[128,64], index: 5, kind: output, shape index: {0}]   ;;  %s2879_s6 = inlined_call_operand.vmem [shape: f32[128,64], index: 6, kind: output, shape index: {1}]  }
   0x1 LB: > { %s2005_s22 = sadd.s32 4294967295, %s2491_s21   ;;  %p2009_p0 = scmp.ge.s32.totalorder %s2491_s21, 1  ;;  %s2491_s21 = sphi %s2528_s21, %s17_s21  }
   0x2   : > { %p217_p1 = scmp.lt.s32.totalorder %s2491_s21, 3 }
   0x4   : > { %p218_p2 = pnand %p2009_p0, %p217_p1 }
   0x5   : > { %v2441_v0 = vld [vmem:[%s2874_s1 + $0x40] sm:$0xff] (!%p218_p2)   ;;  %s2010_s25 = sshll.u32 (!%p218_p2), %s2005_s22, 2  ;;  %v2442_v1 = vld [vmem:[%s2874_s1 + $0x10] sm:$0xff] (!%p218_p2)   ;;  %v2443_v2 = vld [vmem:[%s2874_s1 + $0x48] sm:$0xff] (!%p218_p2)   ;;  %vm330_vm0 = vcmask (!%p218_p2), 261120   ;;  %vm1817_vm4 = vcmask (!%p218_p2), 523264  }
   0x6   : > { %221 = sbr.rel (%p218_p2) target bundleno = 320 (0x140), region = 40  ;;  %p254_p3 = scmp.lt.s32.totalorder (!%p218_p2), %s2010_s25, 7  ;;  %2296 = vmatprep.subr.bf16.mxu0 (!%p218_p2), %v2441_v0  ;;  %2248 = vmatprep.subr.bf16.mxu1 (!%p218_p2), %v2442_v1  ;;  %v2444_v3 = vld [vmem:[%s2874_s1 + $0x18] sm:$0xff] (!%p218_p2)   ;;  %v2447_v4 = vld [vmem:[%s2874_s1 + $0x50] sm:$0xff] (!%p218_p2)   ;;  %v2454_v5 = vld [vmem:[%s2874_s1] sm:$0xff] (!%p218_p2)  }
   0x7   : > { %2297 = vmatpush3.bf16.msra.mxu0 (!%p218_p2), %v2441_v0  ;;  %2249 = vmatpush3.bf16.msra.mxu1 (!%p218_p2), %v2442_v1  ;;  %v2452_v8 = vld [vmem:[%s2874_s1 + $0x58] sm:$0xff] (!%p218_p2)   ;;  %v2456_v10 = vld [vmem:[%s2874_s1 + $0x8] sm:$0xff] (!%p218_p2)   ;;  %vm533_vm1 = vsmask.f32 (!%p218_p2), 3328  ;;  %vm534_vm2 = vsmask.f32 (!%p218_p2), 7440 }
   0x8   : > { %2298 = vmatprep.subr.bf16.mxu0 (!%p218_p2), %v2443_v2  ;;  %2250 = vmatprep.subr.bf16.mxu1 (!%p218_p2), %v2444_v3  ;;  %v2600_v26 = vld [vmem:[%s2874_s1 + $0x60] sm:$0xff] (!%p218_p2)   ;;  %vm2611_vm3 = vmor (!%p218_p2), %vm533_vm1, %vm534_vm2  ;;  %v2464_v53 = vld [vmem:[%s2874_s1 + $0x28] sm:$0xff] (!%p218_p2)  }
   0x9   : > { %v2463_v32 = vld [vmem:[%s2874_s1 + $0x20] sm:$0xff] (!%p218_p2)  }
   0xb   : > { %2299 = vmatpush3.bf16.msra.mxu0 (!%p218_p2), %v2443_v2  ;;  %2251 = vmatpush3.bf16.msra.mxu1 (!%p218_p2), %v2444_v3 }
   0xc   : > { %2308 = vmatprep.subr.bf16.mxu0 (!%p218_p2), %v2447_v4  ;;  %2260 = vmatprep.subr.bf16.mxu1 (!%p218_p2), %v2454_v5 }
   0xd   : > { %s2883_s25 = smov (!%p254_p3, %s2010_s25), 7 }
   0xe   : > { %s2432_s10 = smul.u32 72, %s2883_s25 }
  0x10   : > { %s2559_s15 = scalar_lea.vmem %s2873_s0, %s2432_s10 }
  0x11   : > { %v2445_v6 = vld [vmem:[%s2559_s15 + $0x48] ss:$8 sps:$4 sm:$0xff]   ;;  %v2563_v7 = vld [vmem:[%s2559_s15 + $0xd8] ss:$8 sps:$4 sm:$0xff]   ;;  %v2091_v18 = vld [vmem:[%s2559_s15 + $0x94] sm:$0x1] }
  0x12   : > { %2252 = vmatprep.mubr.msk.bf16.mxu1 %vm330_vm0, %v2445_v6  ;;  %v2448_v9 = vld [vmem:[%s2559_s15 + $0x58] ss:$8 sps:$4 sm:$0xff]   ;;  %2300 = vmatprep.mubr.msk.bf16.mxu0 %vm330_vm0, %v2563_v7  ;;  %v2576_v11 = vld [vmem:[%s2559_s15 + $0xe8] ss:$8 sps:$4 sm:$0xff]   ;;  %v2093_v22 = vld [vmem:[%s2559_s15 + $0x9c] sm:$0x1] }
  0x13   : > { %2253 = vmatmul.mubr.msk.bf16.vlgmr.msra.gmra.mrb[0].mxu1 %vm330_vm0, %v2448_v9  ;;  %v2450_v12 = vld [vmem:[%s2559_s15 + $0x68] ss:$8 sps:$4 sm:$0xff]   ;;  %2301 = vmatmul.mubr.msk.bf16.vlgmr.msra.gmra.mrb[0].mxu0 %vm330_vm0, %v2576_v11  ;;  %v2583_v13 = vld [vmem:[%s2559_s15 + $0xf8] ss:$8 sps:$4 sm:$0xff]   ;;  %v1047_v23 = vshll.u32 %v2091_v18, 16  ;;  %v1061_v29 = vshll.u32 %v2093_v22, 16 }
  0x14   : > { %2261 = vmatpush3.bf16.msra.mxu1 %v2454_v5  ;;  %2309 = vmatpush3.bf16.msra.mxu0 %v2447_v4  ;;  %v2453_v14 = vld [vmem:[%s2559_s15 + $0x78] ss:$8 sps:$4 sm:$0xff]   ;;  %v2590_v15 = vld [vmem:[%s2559_s15 + $0x108] ss:$8 sps:$4 sm:$0xff]   ;;  %v2095_v40 = vld [vmem:[%s2559_s15 + $0xa4] sm:$0x1] }
  0x15   : > { %2256 = vmatprep.mubr.msk.bf16.mxu1 %vm330_vm0, %v2450_v12  ;;  %2304 = vmatprep.mubr.msk.bf16.mxu0 %vm330_vm0, %v2583_v13  ;;  %v2457_v16 = vld [vmem:[%s2559_s15] ss:$8 sps:$4 sm:$0xff]   ;;  %v2090_v17 = vld [vmem:[%s2559_s15 + $0x90] sm:$0xf]  ;;  %v2092_v19 = vld [vmem:[%s2559_s15 + $0x98] sm:$0xf] }
  0x16   : > { %2310 = vmatprep.subr.bf16.mxu0 %v2452_v8  ;;  %2262 = vmatprep.subr.bf16.mxu1 %v2456_v10  ;;  %v1038_v20 = vshrl.u32 %v2090_v17, 16  ;;  %v1041_v21 = vshll.u32 %v2090_v17, 16  ;;  %v1052_v24 = vshrl.u32 %v2092_v19, 16  ;;  %v1055_v25 = vshll.u32 %v2092_v19, 16  ;;  %v2459_v38 = vld [vmem:[%s2559_s15 + $0x10] ss:$8 sps:$4 sm:$0xff]  }
  0x17   : > { %v1049_v35 = vrot.slane %v1047_v23, 5  ;;  %v1063_v36 = vrot.slane %v1061_v29, 5  ;;  %v2094_v39 = vld [vmem:[%s2559_s15 + $0xa0] sm:$0xf]  ;;  %v2096_v42 = vld [vmem:[%s2559_s15 + $0xa8] sm:$0xf] }
  0x18   : > { %2263 = vmatpush3.bf16.msra.mxu1 %v2456_v10  ;;  %2311 = vmatpush3.bf16.msra.mxu0 %v2452_v8  ;;  %v1040_v27 = vrot.slane %v1038_v20, 4  ;;  %v1043_v28 = vrot.slane %v1041_v21, 5  ;;  %v1054_v30 = vrot.slane %v1052_v24, 4  ;;  %v1057_v31 = vrot.slane %v1055_v25, 5  ;;  %v2097_v43 = vld [vmem:[%s2559_s15 + $0xac] sm:$0x1] }
  0x19   : > { %2320 = vmatprep.subr.bf16.mxu0 %v2600_v26  ;;  %2272 = vmatprep.subr.bf16.mxu1 %v2463_v32  ;;  %v1066_v44 = vshrl.u32 %v2094_v39, 16  ;;  %v1069_v46 = vshll.u32 %v2094_v39, 16  ;;  %v1075_v47 = vshll.u32 %v2095_v40, 16  ;;  %v1080_v48 = vshrl.u32 %v2096_v42, 16  ;;  %v2460_v58 = vld [vmem:[%s2559_s15 + $0x20] ss:$8 sps:$4 sm:$0xff]  }
  0x1a   : > { %v1044_v34 = vor.u32 %v1043_v28, %v1040_v27  ;;  %v1058_v37 = vor.u32 %v1057_v31, %v1054_v30  ;;  %v1083_v51 = vshll.u32 %v2096_v42, 16  ;;  %v1089_v52 = vshll.u32 %v2097_v43, 16  ;;  %v2098_v62 = vld [vmem:[%s2559_s15 + $0xb0] sm:$0xf]  ;;  %v2099_v63 = vld [vmem:[%s2559_s15 + $0xb4] sm:$0x1] }
  0x1b   : > { %2257 = vmatmul.mubr.msk.bf16.gmra.mrb[4].mxu1 %vm330_vm0, %v2453_v14  ;;  %2305 = vmatmul.mubr.msk.bf16.gmra.mrb[4].mxu0 %vm330_vm0, %v2590_v15  ;;  %v1068_v50 = vrot.slane %v1066_v44, 4  ;;  %v1071_v55 = vrot.slane %v1069_v46, 5  ;;  %v1077_v56 = vrot.slane %v1075_v47, 5  ;;  %v1082_v57 = vrot.slane %v1080_v48, 4  ;;  %v2100_v1 = vld [vmem:[%s2559_s15 + $0xb8] sm:$0xf] }
  0x1c   : > { %2264 = vmatprep.mubr.msk.bf16.mxu1 %vm330_vm0, %v2457_v16  ;;  %v1045_v41 = vrot.slane %v1044_v34, 4  ;;  %v1059_v45 = vrot.slane %v1058_v37, 4  ;;  %v1085_v60 = vrot.slane %v1083_v51, 5  ;;  %v1091_v61 = vrot.slane %v1089_v52, 5  ;;  %v2101_v2 = vld [vmem:[%s2559_s15 + $0xbc] sm:$0x1] }
  0x1d   : > { %v1072_v0 = vor.u32 %v1071_v55, %v1068_v50  ;;  %v1094_v3 = vshrl.u32 %v2098_v62, 16  ;;  %v1097_v4 = vshll.u32 %v2098_v62, 16  ;;  %v1103_v6 = vshll.u32 %v2099_v63, 16  ;;  %v2639_v10 = vld [vmem:[%s2874_s1 + $0x30] sm:$0xff]   ;;  %v2461_v25 = vld [vmem:[%s2874_s1 + $0x68] sm:$0xff]  }
  0x1e   : > { %v1050_v49 = vsel %vm2611_vm3, %v1045_v41, %v1049_v35  ;;  %v1064_v54 = vsel %vm2611_vm3, %v1059_v45, %v1063_v36  ;;  %v1086_v5 = vor.u32 %v1085_v60, %v1082_v57  ;;  %v1108_v8 = vshrl.u32 %v2100_v1, 16  ;;  %v2462_v27 = vld [vmem:[%s2559_s15 + $0x30] ss:$8 sps:$4 sm:$0xff]   ;;  %v2102_v30 = vld [vmem:[%s2559_s15 + $0xc0] sm:$0xf] }
  0x1f   : > { %v2106_v59 = vcombine.low %v1050_v49, %v1064_v54  ;;  %v1111_v9 = vshll.u32 %v2100_v1, 16  ;;  %v1073_v12 = vrot.slane %v1072_v0, 4  ;;  %v1096_v14 = vrot.slane %v1094_v3, 4  ;;  %v2103_v34 = vld [vmem:[%s2559_s15 + $0xc4] sm:$0x1]  ;;  %v2664_v50 = vld [vmem:[%s2874_s1 + $0x70] sm:$0xff]  }
  0x20   : > { %v1099_v16 = vrot.slane %v1097_v4, 5  ;;  %v1117_v17 = vshll.u32 %v2101_v2, 16  ;;  %v1087_v18 = vrot.slane %v1086_v5, 4  ;;  %v1110_v19 = vrot.slane %v1108_v8, 4  ;;  %v2104_v35 = vld [vmem:[%s2559_s15 + $0xc8] sm:$0xf] }
  0x21   : > { %2312 = vmatprep.mubr.msk.bf16.mxu0 %vm330_vm0, %v2106_v59  ;;  %v1113_v20 = vrot.slane %v1111_v9, 5  ;;  %v1078_v21 = vsel %vm2611_vm3, %v1073_v12, %v1077_v56  ;;  %v1105_v23 = vrot.slane %v1103_v6, 5  ;;  %v1122_v36 = vshrl.u32 %v2102_v30, 16  ;;  %v517_v54 = vld [vmem:[%s2559_s15] sm:$0xf] }
  0x22   : > { %v1100_v22 = vor.u32 %v1099_v16, %v1096_v14  ;;  %v1119_v24 = vrot.slane %v1117_v17, 5  ;;  %v1092_v28 = vsel %vm2611_vm3, %v1087_v18, %v1091_v61  ;;  %v1125_v39 = vshll.u32 %v2102_v30, 16  ;;  %v518_v55 = vld [vmem:[%s2559_s15 + $0x4] sm:$0x1]  ;;  %v519_v57 = vld [vmem:[%s2559_s15 + $0x8] sm:$0xf] }
  0x23   : > { %2265 = vmatmul.mubr.msk.bf16.vlgmr.msra.gmra.mrb[0].mxu1 %vm330_vm0, %v2459_v38  ;;  %v1114_v29 = vor.u32 %v1113_v20, %v1110_v19  ;;  %v2107_v31 = vcombine.low %v1078_v21, %v1092_v28  ;;  %v2105_v38 = vld [vmem:[%s2559_s15 + $0xcc] sm:$0x1]  ;;  %v1131_v40 = vshll.u32 %v2103_v34, 16  ;;  %v1136_v41 = vshrl.u32 %v2104_v35, 16  ;;  %v2465_v8 = vld [vmem:[%s2559_s15 + $0x8] ss:$8 sps:$4 sm:$0xff]  }
  0x24   : > { %2268 = vmatprep.mubr.msk.bf16.mxu1 %vm330_vm0, %v2460_v58  ;;  %2273 = vmatpush3.bf16.msra.mxu1 %v2463_v32  ;;  %v1101_v32 = vrot.slane %v1100_v22, 4  ;;  %v1124_v43 = vrot.slane %v1122_v36, 4  ;;  %v1139_v44 = vshll.u32 %v2104_v35, 16  ;;  %v1145_v45 = vshll.u32 %v2105_v38, 16  ;;  %v521_v19 = vld [vmem:[%s2559_s15 + $0x10] sm:$0xf] }
  0x25   : > { %2274 = vmatprep.subr.bf16.mxu1 %v2464_v53  ;;  %v1115_v37 = vrot.slane %v1114_v29, 4  ;;  %2313 = vmatmul.mubr.msk.bf16.vlgmr.msra.gmra.mrb[0].mxu0 %vm330_vm0, %v2107_v31  ;;  %v1127_v47 = vrot.slane %v1125_v39, 5  ;;  %v1133_v48 = vrot.slane %v1131_v40, 5  ;;  %v1138_v49 = vrot.slane %v1136_v41, 4  ;;  %v522_v20 = vld [vmem:[%s2559_s15 + $0x14] sm:$0x1] }
  0x26   : > { %v1106_v42 = vsel %vm2611_vm3, %v1101_v32, %v1105_v23  ;;  %2321 = vmatpush3.bf16.msra.mxu0 %v2600_v26  ;;  %v1141_v52 = vrot.slane %v1139_v44, 5  ;;  %v520_v26 = vld [vmem:[%s2559_s15 + $0xc] sm:$0x1]  ;;  %v537_v58 = vshrl.u32 %v517_v54, 16  ;;  %v540_v59 = vshll.u32 %v517_v54, 16 }
  0x27   : > { %v1120_v46 = vsel %vm2611_vm3, %v1115_v37, %v1119_v24  ;;  %2322 = vmatprep.subr.bf16.mxu0 %v2461_v25  ;;  %v1128_v56 = vor.u32 %v1127_v47, %v1124_v43  ;;  %v546_v61 = vshll.u32 %v518_v55, 16  ;;  %v551_v62 = vshrl.u32 %v519_v57, 16  ;;  %v523_v21 = vld [vmem:[%s2559_s15 + $0x18] sm:$0xf]  ;;  %v524_v24 = vld [vmem:[%s2559_s15 + $0x1c] sm:$0x1] }
  0x28   : > { %2275 = vmatpush3.bf16.msra.mxu1 %v2464_v53  ;;  %v2108_v51 = vcombine.low %v1106_v42, %v1120_v46  ;;  %v1147_v53 = vrot.slane %v1145_v45, 5  ;;  %v1142_v60 = vor.u32 %v1141_v52, %v1138_v49  ;;  %v554_v63 = vshll.u32 %v519_v57, 16  ;;  %v2467_v44 = vld [vmem:[%s2559_s15 + $0x18] ss:$8 sps:$4 sm:$0xff]   ;;  %v526_v46 = vld [vmem:[%s2559_s15 + $0x24] sm:$0x1] }
  0x29   : > { %2284 = vmatprep.subr.bf16.mxu1 %v2639_v10  ;;  %v1129_v0 = vrot.slane %v1128_v56, 4  ;;  %v539_v1 = vrot.slane %v537_v58, 4  ;;  %v542_v2 = vrot.slane %v540_v59, 5  ;;  %v560_v3 = vshll.u32 %v520_v26, 16  ;;  %v525_v45 = vld [vmem:[%s2559_s15 + $0x20] sm:$0xf] }
  0x2a   : > { %2316 = vmatprep.mubr.msk.bf16.mxu0 %vm330_vm0, %v2108_v51  ;;  %2323 = vmatpush3.bf16.msra.mxu0 %v2461_v25  ;;  %v1143_v4 = vrot.slane %v1142_v60, 4  ;;  %v553_v5 = vrot.slane %v551_v62, 4  ;;  %v556_v6 = vrot.slane %v554_v63, 5  ;;  %v548_v14 = vrot.slane %v546_v61, 5  ;;  %v528_v49 = vld [vmem:[%s2559_s15 + $0x2c] sm:$0x1] }
  0x2b   : > { %2269 = vmatmul.mubr.msk.bf16.gmra.mrb[4].mxu1 %vm330_vm0, %v2462_v27  ;;  %2332 = vmatprep.subr.bf16.mxu0 %v2664_v50  ;;  %v1134_v9 = vsel %vm2611_vm3, %v1129_v0, %v1133_v48  ;;  %v543_v12 = vor.u32 %v542_v2, %v539_v1  ;;  %v562_v16 = vrot.slane %v560_v3, 5  ;;  %v565_v25 = vshrl.u32 %v521_v19, 16  ;;  %v527_v48 = vld [vmem:[%s2559_s15 + $0x28] sm:$0xf]  ;;  %v2469_v0 = vld [vmem:[%s2874_s1 + $0x78] sm:$0xff]  }
  0x2c   : > { %v1148_v17 = vsel %vm2611_vm3, %v1143_v4, %v1147_v53  ;;  %v557_v18 = vor.u32 %v556_v6, %v553_v5  ;;  %v568_v27 = vshll.u32 %v521_v19, 16  ;;  %v574_v29 = vshll.u32 %v522_v20, 16  ;;  %v2468_v63 = vld [vmem:[%s2559_s15 + $0x28] ss:$8 sps:$4 sm:$0xff]   ;;  %v2472_v1 = vld [vmem:[%s2874_s1 + $0x38] sm:$0xff]  }
  0x2d   : > { %v2109_v22 = vcombine.low %v1134_v9, %v1148_v17  ;;  %v544_v23 = vrot.slane %v543_v12, 4  ;;  %v579_v30 = vshrl.u32 %v523_v21, 16  ;;  %v582_v31 = vshll.u32 %v523_v21, 16  ;;  %v529_v9 = vld [vmem:[%s2559_s15 + $0x30] sm:$0xf] }
  0x2e   : > { %v558_v28 = vrot.slane %v557_v18, 4  ;;  %v567_v34 = vrot.slane %v565_v25, 4  ;;  %v570_v35 = vrot.slane %v568_v27, 5  ;;  %v588_v36 = vshll.u32 %v524_v24, 16  ;;  %v530_v12 = vld [vmem:[%s2559_s15 + $0x34] sm:$0x1] }
  0x2f   : > { %2317 = vmatmul.mubr.msk.bf16.gmra.mrb[4].mxu0 %vm330_vm0, %v2109_v22  ;;  %v549_v32 = vsel %vm2611_vm3, %v544_v23, %v548_v14  ;;  %v581_v38 = vrot.slane %v579_v30, 4  ;;  %v584_v39 = vrot.slane %v582_v31, 5  ;;  %v576_v42 = vrot.slane %v574_v29, 5  ;;  %v531_v14 = vld [vmem:[%s2559_s15 + $0x38] sm:$0xf] }
  0x30   : > { %v563_v37 = vsel %vm2611_vm3, %v558_v28, %v562_v16  ;;  %2324 = vmatprep.mubr.msk.bf16.mxu0 %vm330_vm0, %v2465_v8  ;;  %v571_v41 = vor.u32 %v570_v35, %v567_v34  ;;  %v590_v43 = vrot.slane %v588_v36, 5  ;;  %v593_v51 = vshrl.u32 %v525_v45, 16  ;;  %v2475_v16 = vld [vmem:[%s2874_s1 + $0x80] sm:$0xff]   ;;  %v532_v18 = vld [vmem:[%s2559_s15 + $0x3c] sm:$0x1] }
  0x31   : > { %v2044_v40 = vcombine.low %v549_v32, %v563_v37  ;;  %v585_v47 = vor.u32 %v584_v39, %v581_v38  ;;  %v596_v52 = vshll.u32 %v525_v45, 16  ;;  %v602_v54 = vshll.u32 %v526_v46, 16  ;;  %v2483_v35 = vld [vmem:[%s2875_s2] sm:$0xff]  }
  0x32   : > { %v572_v53 = vrot.slane %v571_v41, 4  ;;  %v607_v55 = vshrl.u32 %v527_v48, 16  ;;  %v610_v56 = vshll.u32 %v527_v48, 16  ;;  %v595_v26 = vrot.slane %v593_v51, 4  ;;  %v2471_v38 = vld [vmem:[%s2559_s15 + $0x38] ss:$8 sps:$4 sm:$0xff]  }
  0x33   : > { %2276 = vmatprep.mubr.msk.bf16.mxu1 %vm330_vm0, %v2044_v40  ;;  %v586_v57 = vrot.slane %v585_v47, 4  ;;  %v598_v58 = vrot.slane %v596_v52, 5  ;;  %v616_v59 = vshll.u32 %v528_v49, 16  ;;  %v604_v4 = vrot.slane %v602_v54, 5  ;;  %v2474_v41 = vld [vmem:[%s2559_s15 + $0x50] ss:$8 sps:$4 sm:$0xff]  }
  0x34   : > { %v577_v60 = vsel %vm2611_vm3, %v572_v53, %v576_v42  ;;  %v609_v61 = vrot.slane %v607_v55, 4  ;;  %v612_v62 = vrot.slane %v610_v56, 5  ;;  %v621_v19 = vshrl.u32 %v529_v9, 16  ;;  %v2477_v46 = vld [vmem:[%s2559_s15 + $0x60] ss:$8 sps:$4 sm:$0xff]  }
  0x35   : > { %v591_v2 = vsel %vm2611_vm3, %v586_v57, %v590_v43  ;;  %v599_v3 = vor.u32 %v598_v58, %v595_v26  ;;  %v618_v5 = vrot.slane %v616_v59, 5  ;;  %v624_v20 = vshll.u32 %v529_v9, 16  ;;  %v2480_v47 = vld [vmem:[%s2874_s1 + $0x88] sm:$0xff]   ;;  %v2479_v48 = vld [vmem:[%s2559_s15 + $0x70] ss:$8 sps:$4 sm:$0xff]  }
  0x36   : > { %v2045_v6 = vcombine.low %v577_v60, %v591_v2  ;;  %v613_v8 = vor.u32 %v612_v62, %v609_v61  ;;  %v630_v21 = vshll.u32 %v530_v12, 16  ;;  %v635_v23 = vshrl.u32 %v531_v14, 16  ;;  %v2476_v49 = vld [vmem:[%s2559_s15 + $0xa0] ss:$8 sps:$4 sm:$0xff]   ;;  %v2478_v51 = vld [vmem:[%s2559_s15 + $0xb0] ss:$8 sps:$4 sm:$0xff]  }
  0x37   : > { %2325 = vmatmul.mubr.msk.bf16.vlgmr.msra.gmra.mrb[0].mxu0 %vm330_vm0, %v2467_v44  ;;  %v600_v17 = vrot.slane %v599_v3, 4  ;;  %v638_v24 = vshll.u32 %v531_v14, 16  ;;  %v644_v25 = vshll.u32 %v532_v18, 16  ;;  %v623_v28 = vrot.slane %v621_v19, 4  ;;  %v2473_v44 = vld [vmem:[%s2559_s15 + $0x90] ss:$8 sps:$4 sm:$0xff]  }
  0x38   : > { %2333 = vmatpush3.bf16.msra.mxu0 %v2664_v50  ;;  %2328 = vmatprep.mubr.msk.bf16.mxu0 %vm330_vm0, %v2468_v63  ;;  %v614_v22 = vrot.slane %v613_v8, 4  ;;  %v626_v50 = vrot.slane %v624_v20, 5  ;;  %v632_v29 = vrot.slane %v630_v21, 5  ;;  %v637_v31 = vrot.slane %v635_v23, 4  ;;  %v2152_v52 = vld [vmem:[%s2559_s15 + $0x8] sm:$0xf] }
  0x39   : > { %2277 = vmatmul.mubr.msk.bf16.vlgmr.msra.gmra.mrb[0].mxu1 %vm330_vm0, %v2045_v6  ;;  %2334 = vmatprep.subr.bf16.mxu0 %v2469_v0  ;;  %v605_v27 = vsel %vm2611_vm3, %v600_v17, %v604_v4  ;;  %v640_v32 = vrot.slane %v638_v24, 5  ;;  %v646_v34 = vrot.slane %v644_v25, 5  ;;  %v2153_v53 = vld [vmem:[%s2559_s15 + $0xc] sm:$0x1]  ;;  %v2154_v54 = vld [vmem:[%s2559_s15 + $0x10] sm:$0xf] }
  0x3a   : > { %2285 = vmatpush3.bf16.msra.mxu1 %v2639_v10  ;;  %v619_v30 = vsel %vm2611_vm3, %v614_v22, %v618_v5  ;;  %v627_v37 = vor.u32 %v626_v50, %v623_v28  ;;  %v2484_v55 = vld [vmem:[%s2875_s2 + $0x8] sm:$0xff]   ;;  %v2155_v57 = vld [vmem:[%s2559_s15 + $0x14] sm:$0x1]  ;;  %v1539_v26 = vshrl.u32 %v2152_v52, 16  ;;  %v1542_v58 = vshll.u32 %v2152_v52, 16 }
  0x3b   : > { %2286 = vmatprep.subr.bf16.mxu1 %v2472_v1  ;;  %v2046_v36 = vcombine.low %v605_v27, %v619_v30  ;;  %v641_v39 = vor.u32 %v640_v32, %v637_v31  ;;  %v2482_v56 = vld [vmem:[%s2559_s15 + $0x80] ss:$8 sps:$4 sm:$0xff]   ;;  %v1548_v59 = vshll.u32 %v2153_v53, 16  ;;  %v1553_v60 = vshrl.u32 %v2154_v54, 16  ;;  %v2156_v63 = vld [vmem:[%s2559_s15 + $0x18] sm:$0xf] }
  0x3c   : > { %2335 = vmatpush3.bf16.msra.mxu0 %v2469_v0  ;;  %v628_v10 = vrot.slane %v627_v37, 4  ;;  %v1556_v61 = vshll.u32 %v2154_v54, 16  ;;  %v1562_v62 = vshll.u32 %v2155_v57, 16  ;;  %v2157_v0 = vld [vmem:[%s2559_s15 + $0x1c] sm:$0x1]  ;;  %v1544_v2 = vrot.slane %v1542_v58, 5 }
  0x3d   : > { %2344 = vmatprep.subr.bf16.mxu0 %v2475_v16  ;;  %2280 = vmatprep.mubr.msk.bf16.mxu1 %vm330_vm0, %v2046_v36  ;;  %v642_v40 = vrot.slane %v641_v39, 4  ;;  %v1550_v3 = vrot.slane %v1548_v59, 5  ;;  %v1555_v4 = vrot.slane %v1553_v60, 4  ;;  %v2158_v5 = vld [vmem:[%s2559_s15 + $0x20] sm:$0xf]  ;;  %v1567_v12 = vshrl.u32 %v2156_v63, 16 }
  0x3e   : > { %2287 = vmatpush3.bf16.msra.mxu1 %v2472_v1  ;;  %v633_v42 = vsel %vm2611_vm3, %v628_v10, %v632_v29  ;;  %v1541_v1 = vrot.slane %v1539_v26, 4  ;;  %v1558_v6 = vrot.slane %v1556_v61, 5  ;;  %v1564_v8 = vrot.slane %v1562_v62, 5  ;;  %v2159_v9 = vld [vmem:[%s2559_s15 + $0x24] sm:$0x1] }
  0x3f   : > { %2329 = vmatmul.mubr.msk.bf16.gmra.mrb[4].mxu0 %vm330_vm0, %v2471_v38  ;;  %2356 = vmatprep.subr.bf16.mxu1 %v2483_v35  ;;  %v647_v43 = vsel %vm2611_vm3, %v642_v40, %v646_v34  ;;  %v1570_v14 = vshll.u32 %v2156_v63, 16  ;;  %v1576_v17 = vshll.u32 %v2157_v0, 16  ;;  %v1581_v18 = vshrl.u32 %v2158_v5, 16  ;;  %v2481_v20 = vld [vmem:[%s2559_s15 + $0xc0] ss:$8 sps:$4 sm:$0xff]  }
  0x40   : > { %2336 = vmatprep.mubr.msk.bf16.mxu0 %vm330_vm0, %v2474_v41  ;;  %v2047_v45 = vcombine.low %v633_v42, %v647_v43  ;;  %v1584_v19 = vshll.u32 %v2158_v5, 16  ;;  %v1559_v21 = vor.u32 %v1558_v6, %v1555_v4  ;;  %v1569_v22 = vrot.slane %v1567_v12, 4  ;;  %v2160_v29 = vld [vmem:[%s2559_s15 + $0x28] sm:$0xf]  ;;  %v2161_v34 = vld [vmem:[%s2559_s15 + $0x2c] sm:$0x1] }
  0x41   : > { %v1572_v23 = vrot.slane %v1570_v14, 5  ;;  %v1590_v24 = vshll.u32 %v2159_v9, 16  ;;  %v1578_v27 = vrot.slane %v1576_v17, 5  ;;  %v1583_v28 = vrot.slane %v1581_v18, 4  ;;  %v2163_v38 = vld [vmem:[%s2559_s15 + $0x34] sm:$0x1] }
  0x42   : > { %2281 = vmatmul.mubr.msk.bf16.gmra.mrb[4].mxu1 %vm330_vm0, %v2047_v45  ;;  %v1586_v50 = vrot.slane %v1584_v19, 5  ;;  %v1560_v30 = vrot.slane %v1559_v21, 4  ;;  %v1595_v39 = vshrl.u32 %v2160_v29, 16  ;;  %v1598_v10 = vshll.u32 %v2160_v29, 16  ;;  %v2167_v61 = vld [vmem:[%s2559_s15 + $0x44] sm:$0x1] }
  0x43   : > { %2288 = vmatprep.mubr.msk.bf16.mxu1 %vm330_vm0, %v2473_v44  ;;  %v1573_v31 = vor.u32 %v1572_v23, %v1569_v22  ;;  %v1592_v32 = vrot.slane %v1590_v24, 5  ;;  %v1604_v42 = vshll.u32 %v2161_v34, 16  ;;  %v2164_v44 = vld [vmem:[%s2559_s15 + $0x38] sm:$0xf]  ;;  %v1618_v26 = vshll.u32 %v2163_v38, 16 }
  0x44   : > { %v1587_v37 = vor.u32 %v1586_v50, %v1583_v28  ;;  %v1565_v40 = vsel %vm2611_vm3, %v1560_v30, %v1564_v8  ;;  %v1623_v58 = vshrl.u32 %v2164_v44, 16  ;;  %v1626_v62 = vshll.u32 %v2164_v44, 16 }
  0x45   : > { %v1574_v41 = vrot.slane %v1573_v31, 4  ;;  %v1606_v52 = vrot.slane %v1604_v42, 5  ;;  %v1620_v4 = vrot.slane %v1618_v26, 5 }
  0x46   : > { %v1628_v5 = vrot.slane %v1626_v62, 5 }
  0x47   : > { %2337 = vmatmul.mubr.msk.bf16.vlgmr.msra.gmra.mrb[0].mxu0 %vm330_vm0, %v2477_v46  ;;  %v1588_v46 = vrot.slane %v1587_v37, 4 }
  0x48   : > { %2345 = vmatpush3.bf16.msra.mxu0 %v2475_v16  ;;  %2340 = vmatprep.mubr.msk.bf16.mxu0 %vm330_vm0, %v2479_v48  ;;  %v1545_v16 = vor.u32 %v1544_v2, %v1541_v1  ;;  %v1600_v48 = vrot.slane %v1598_v10, 5  ;;  %v1625_v1 = vrot.slane %v1623_v58, 4 }
  0x49   : > { %2346 = vmatprep.subr.bf16.mxu0 %v2480_v47 }
  0x4a   : > { %2289 = vmatmul.mubr.msk.bf16.vlgmr.msra.gmra.mrb[0].mxu1 %vm330_vm0, %v2476_v49  ;;  %v1546_v25 = vrot.slane %v1545_v16, 4  ;;  %v2165_v49 = vld [vmem:[%s2559_s15 + $0x3c] sm:$0x1]  ;;  %v1629_v16 = vor.u32 %v1628_v5, %v1625_v1 }
  0x4b   : > { %2292 = vmatprep.mubr.msk.bf16.mxu1 %vm330_vm0, %v2478_v51  ;;  %2357 = vmatpush3.bf16.msra.mxu1 %v2483_v35  ;;  %v2162_v35 = vld [vmem:[%s2559_s15 + $0x30] sm:$0xf]  ;;  %v1579_v51 = vsel %vm2611_vm3, %v1574_v41, %v1578_v27  ;;  %v1632_v63 = vshll.u32 %v2165_v49, 16 }
  0x4c   : > { %2347 = vmatpush3.bf16.msra.mxu0 %v2480_v47  ;;  %2358 = vmatprep.subr.bf16.mxu1 %v2484_v55  ;;  %v1551_v36 = vsel %vm2611_vm3, %v1546_v25, %v1550_v3  ;;  %v1609_v43 = vshrl.u32 %v2162_v35, 16  ;;  %v1597_v47 = vrot.slane %v1595_v39, 4  ;;  %v1612_v54 = vshll.u32 %v2162_v35, 16 }
  0x4d   : > { %v2168_v45 = vcombine.low %v1551_v36, %v1565_v40  ;;  %v1634_v8 = vrot.slane %v1632_v63, 5  ;;  %v1630_v19 = vrot.slane %v1629_v16, 4  ;;  %v2810_v36 = vld [vmem:[%s2877_s4] ss:$0 sm:$0xff] }
  0x4e   : > { %v1611_v53 = vrot.slane %v1609_v43, 4  ;;  %v1601_v57 = vor.u32 %v1600_v48, %v1597_v47  ;;  %v1614_v60 = vrot.slane %v1612_v54, 5 }
  0x4f   : > { %2341 = vmatmul.mubr.msk.bf16.gmra.mrb[4].mxu0 %vm330_vm0, %v2482_v56  ;;  %2359 = vmatpush3.bf16.msra.mxu1 %v2484_v55  ;;  %v2166_v55 = vld [vmem:[%s2559_s15 + $0x40] sm:$0xf]  ;;  %v1593_v56 = vsel %vm2611_vm3, %v1588_v46, %v1592_v32  ;;  %v1635_v23 = vsel %vm2611_vm3, %v1630_v19, %v1634_v8  ;;  %s2012_s15 = sshll.u32 %s2005_s22, 3 }
  0x50   : > { %2348 = vmatprep.mubr.msk.bf16.mxu0 %vm330_vm0, %v2168_v45  ;;  %v2169_v59 = vcombine.low %v1579_v51, %v1593_v56  ;;  %v1602_v0 = vrot.slane %v1601_v57, 4  ;;  %v1637_v2 = vshrl.u32 %v2166_v55, 16  ;;  %v1615_v3 = vor.u32 %v1614_v60, %v1611_v53  ;;  %p261_p4 = scmp.lt.s32.totalorder %s2012_s15, 15 }
  0x51   : > { %v1640_v6 = vshll.u32 %v2166_v55, 16 }
  0x52   : > { %2293 = vmatmul.mubr.msk.bf16.gmra.mrb[4].mxu1 %vm330_vm0, %v2481_v20  ;;  %v1639_v9 = vrot.slane %v1637_v2, 4  ;;  %v1607_v12 = vsel %vm2611_vm3, %v1602_v0, %v1606_v52  ;;  %v1616_v14 = vrot.slane %v1615_v3, 4  ;;  %s2885_s15 = smov (!%p261_p4, %s2012_s15), 15 }
  0x53   : > { %2360 = vmatprep.mubr.msk.bf16.mxu1 %vm330_vm0, %v2563_v7  ;;  %v1646_v7 = vshll.u32 %v2167_v61, 16  ;;  %v1642_v17 = vrot.slane %v1640_v6, 5  ;;  %s2013_s25 = sshll.u32 %s2885_s15, 3 }
  0x54   : > { %v1621_v18 = vsel %vm2611_vm3, %v1616_v14, %v1620_v4  ;;  %s2815_s7 = scalar_lea.vmem %s2879_s6, %s2013_s25  ;;  %s2830_s10 = scalar_lea.vmem %s2878_s5, %s2013_s25 }
  0x55   : > { %v1643_v20 = vor.u32 %v1642_v17, %v1639_v9  ;;  %v1648_v21 = vrot.slane %v1646_v7, 5  ;;  %v2170_v22 = vcombine.low %v1607_v12, %v1621_v18 }
  0x57   : > { %2349 = vmatmul.mubr.msk.bf16.vlgmr.msra.gmra.mrb[0].mxu0 %vm330_vm0, %v2169_v59  ;;  %v1644_v24 = vrot.slane %v1643_v20, 4 }
  0x58   : > { %2352 = vmatprep.mubr.msk.bf16.mxu0 %vm330_vm0, %v2170_v22 }
  0x59   : > { %v1649_v25 = vsel %vm2611_vm3, %v1644_v24, %v1648_v21 }
  0x5a   : > { %2361 = vmatmul.mubr.msk.bf16.vlgmr.msra.gmra.mrb[8].mxu1 %vm330_vm0, %v2576_v11  ;;  %v2171_v11 = vcombine.low %v1635_v23, %v1649_v25 }
  0x5b   : > { %2364 = vmatprep.mubr.msk.bf16.mxu1 %vm330_vm0, %v2583_v13 }
  0x5f   : > { %2353 = vmatmul.mubr.msk.bf16.gmra.mrb[4].mxu0 %vm330_vm0, %v2171_v11 }
  0x62   : > { %2365 = vmatmul.mubr.msk.bf16.gmra.mrb[12].mxu1 %vm330_vm0, %v2590_v15  ;;  %v2805_v15 = vld [vmem:[%s2876_s3] ss:$0 sm:$0xff] }
 0x11d   : > { %v2290_v27 = vpop.f32.mrb[0].mxu1 }
 0x11e   : > { %v852_v28 = vpop.f32.mrb[1].mxu1 }
 0x11f   : > { %v2291_v13 = vpop.f32.mrb[2].mxu1 }
 0x120   : > { %v855_v50 = vpop.f32.mrb[3].mxu1 }
 0x125   : > { %v2294_v29 = vpop.f32.mrb[4].mxu1 }
 0x126   : > { %v868_v30 = vpop.f32.mrb[5].mxu1 }
 0x127   : > { %v2295_v33 = vpop.f32.mrb[6].mxu1 }
 0x128   : > { %v871_v31 = vpop.f32.mrb[7].mxu1 }
 0x12a   : > { %v2350_v32 = vpop.f32.mrb[0].mxu0 }
 0x12b   : > { %v2368_v34 = vadd.f32 %v2350_v32, %v2290_v27  ;;  %v1724_v35 = vpop.f32.mrb[1].mxu0 }
 0x12c   : > { %v2369_v37 = vadd.f32 %v1724_v35, %v852_v28  ;;  %v2351_v38 = vpop.f32.mrb[2].mxu0 }
 0x12d   : > { %v1772_v39 = vmul.f32 %v2368_v34, %v2805_v15  ;;  %v2370_v10 = vadd.f32 %v2351_v38, %v2291_v13  ;;  %v1727_v40 = vpop.f32.mrb[3].mxu0  ;;  %v2362_v43 = vpop.f32.mrb[8].mxu1 }
 0x12e   : > { %v1770_v41 = vmul.f32 %v2369_v37, %v2805_v15  ;;  %v2371_v42 = vadd.f32 %v1727_v40, %v855_v50  ;;  %1909 = vst.msk [vmem:[%s2815_s7 + $0x10] sm:$0xff] %vm1817_vm4, %v2362_v43  ;;  %v1876_v46 = vpop.f32.mrb[9].mxu1 }
 0x12f   : > { %v1787_v44 = vadd.f32 %v2810_v36, %v1772_v39  ;;  %v1773_v45 = vmul.f32 %v2370_v10, %v2805_v15  ;;  %1907 = vst.msk [vmem:[%s2815_s7] sm:$0xff] %vm1817_vm4, %v1876_v46  ;;  %v2363_v49 = vpop.f32.mrb[10].mxu1 }
 0x130   : > { %v1785_v47 = vadd.f32 %v2810_v36, %v1770_v41  ;;  %v1771_v48 = vmul.f32 %v2371_v42, %v2805_v15  ;;  %1910 = vst.msk [vmem:[%s2815_s7 + $0x18] sm:$0xff] %vm1817_vm4, %v2363_v49  ;;  %v1879_v53 = vpop.f32.mrb[11].mxu1 }
 0x131   : > { %vm1795_vm5 = vcmp.ge.f32.partialorder %v1787_v44, 0.0  ;;  %v1803_v51 = vmul.f32 0.1, %v1787_v44  ;;  %v1788_v52 = vadd.f32 %v2810_v36, %v1773_v45  ;;  %1908 = vst.msk [vmem:[%s2815_s7 + $0x8] sm:$0xff] %vm1817_vm4, %v1879_v53 }
 0x132   : > { %vm1793_vm6 = vcmp.ge.f32.partialorder %v1785_v47, 0.0  ;;  %v1801_v54 = vmul.f32 0.1, %v1785_v47  ;;  %v1786_v55 = vadd.f32 %v2810_v36, %v1771_v48  ;;  %v2354_v60 = vpop.f32.mrb[4].mxu0 }
 0x133   : > { %v1811_v56 = vsel %vm1795_vm5, %v1787_v44, %v1803_v51  ;;  %vm1796_vm7 = vcmp.ge.f32.partialorder %v1788_v52, 0.0  ;;  %v1804_v57 = vmul.f32 0.1, %v1788_v52  ;;  %v2372_v62 = vadd.f32 %v2354_v60, %v2294_v29  ;;  %v1740_v63 = vpop.f32.mrb[5].mxu0 }
 0x134   : > { %1820 = vst.msk [vmem:[%s2830_s10 + $0x10] sm:$0xff] %vm1817_vm4, %v1811_v56  ;;  %v1809_v26 = vsel %vm1793_vm6, %v1785_v47, %v1801_v54  ;;  %vm1794_vm8 = vcmp.ge.f32.partialorder %v1786_v55, 0.0  ;;  %v1802_v58 = vmul.f32 0.1, %v1786_v55  ;;  %v2373_v1 = vadd.f32 %v1740_v63, %v868_v30  ;;  %v2355_v2 = vpop.f32.mrb[6].mxu0 }
 0x135   : > { %1818 = vst.msk [vmem:[%s2830_s10] sm:$0xff] %vm1817_vm4, %v1809_v26  ;;  %v1812_v59 = vsel %vm1796_vm7, %v1788_v52, %v1804_v57  ;;  %v2366_v0 = vpop.f32.mrb[12].mxu1  ;;  %v1776_v4 = vmul.f32 %v2372_v62, %v2805_v15  ;;  %v2374_v5 = vadd.f32 %v2355_v2, %v2295_v33  ;;  %v1743_v6 = vpop.f32.mrb[7].mxu0 }
 0x136   : > { %1821 = vst.msk [vmem:[%s2830_s10 + $0x18] sm:$0xff] %vm1817_vm4, %v1812_v59  ;;  %v1810_v61 = vsel %vm1794_vm8, %v1786_v55, %v1802_v58  ;;  %1913 = vst.msk [vmem:[%s2815_s7 + $0x30] sm:$0xff] %vm1817_vm4, %v2366_v0  ;;  %v1892_v3 = vpop.f32.mrb[13].mxu1  ;;  %v1774_v9 = vmul.f32 %v2373_v1, %v2805_v15  ;;  %v2375_v7 = vadd.f32 %v1743_v6, %v871_v31 }
 0x137   : > { %1819 = vst.msk [vmem:[%s2830_s10 + $0x8] sm:$0xff] %vm1817_vm4, %v1810_v61  ;;  %1911 = vst.msk [vmem:[%s2815_s7 + $0x20] sm:$0xff] %vm1817_vm4, %v1892_v3  ;;  %v2367_v8 = vpop.f32.mrb[14].mxu1  ;;  %v1791_v14 = vadd.f32 %v2810_v36, %v1776_v4  ;;  %v1777_v16 = vmul.f32 %v2374_v5, %v2805_v15 }
 0x138   : > { %1914 = vst.msk [vmem:[%s2815_s7 + $0x38] sm:$0xff] %vm1817_vm4, %v2367_v8  ;;  %v1895_v12 = vpop.f32.mrb[15].mxu1  ;;  %v1789_v17 = vadd.f32 %v2810_v36, %v1774_v9  ;;  %v1775_v18 = vmul.f32 %v2375_v7, %v2805_v15 }
 0x139   : > { %1912 = vst.msk [vmem:[%s2815_s7 + $0x28] sm:$0xff] %vm1817_vm4, %v1895_v12  ;;  %vm1799_vm9 = vcmp.ge.f32.partialorder %v1791_v14, 0.0  ;;  %v1807_v19 = vmul.f32 0.1, %v1791_v14  ;;  %v1792_v20 = vadd.f32 %v2810_v36, %v1777_v16 }
 0x13a   : > { %vm1797_vm10 = vcmp.ge.f32.partialorder %v1789_v17, 0.0  ;;  %v1805_v21 = vmul.f32 0.1, %v1789_v17  ;;  %v1790_v22 = vadd.f32 %v2810_v36, %v1775_v18 }
 0x13b   : > { %v1815_v23 = vsel %vm1799_vm9, %v1791_v14, %v1807_v19  ;;  %vm1800_vm11 = vcmp.ge.f32.partialorder %v1792_v20, 0.0  ;;  %v1808_v24 = vmul.f32 0.1, %v1792_v20 }
 0x13c   : > { %1824 = vst.msk [vmem:[%s2830_s10 + $0x30] sm:$0xff] %vm1817_vm4, %v1815_v23  ;;  %v1813_v25 = vsel %vm1797_vm10, %v1789_v17, %v1805_v21  ;;  %vm1798_vm12 = vcmp.ge.f32.partialorder %v1790_v22, 0.0  ;;  %v1806_v11 = vmul.f32 0.1, %v1790_v22 }
 0x13d   : > { %1822 = vst.msk [vmem:[%s2830_s10 + $0x20] sm:$0xff] %vm1817_vm4, %v1813_v25  ;;  %v1816_v27 = vsel %vm1800_vm11, %v1792_v20, %v1808_v24 }
 0x13e   : > { %1825 = vst.msk [vmem:[%s2830_s10 + $0x38] sm:$0xff] %vm1817_vm4, %v1816_v27  ;;  %v1814_v28 = vsel %vm1798_vm12, %v1790_v22, %v1806_v11 }
 0x13f   : > { %1823 = vst.msk [vmem:[%s2830_s10 + $0x28] sm:$0xff] %vm1817_vm4, %v1814_v28 }
 0x140 PF: > { %s17_s21 = sadd.s32 1, %s2491_s21  }
 0x141   : > { %p14_p5 = scmp.ge.s32.totalorder %s17_s21, 4  }
 0x143   :  { %16 = sbr.rel (!%p14_p5) target bundleno = 1 (0x1), region = 87 }

// kernel: _lambda_.13
= control target key start
LH: loop header
LB: loop body
LE: loop exit
PB: predicated region body
PF: predicated region fallthrough
CT: control target
= control target key end

     0   :  { %s2230_s24 = smov 0   ;;  %s2705_s0 = inlined_call_operand.vmem [shape: bf16[8,5,5,64], index: 0, kind: input, shape index: {}, may-alias: {0,1}]   ;;  %s2706_s1 = inlined_call_operand.vmem [shape: bf16[8,5,5,64], index: 1, kind: input, shape index: {}, may-alias: {0,1}]   ;;  %s2707_s2 = inlined_call_operand.vmem [shape: bf16[576,128], index: 2, kind: input, shape index: {}]   ;;  %s2708_s3 = inlined_call_operand.vmem [shape: bf16[64,128], index: 3, kind: input, shape index: {}]   ;;  %s2709_s4 = inlined_call_operand.vmem [shape: f32[1,128], index: 4, kind: input, shape index: {}]   ;;  %s2710_s5 = inlined_call_operand.vmem [shape: f32[1,128], index: 5, kind: input, shape index: {}]   ;;  %s2711_s6 = inlined_call_operand.vmem [shape: f32[32,128], index: 6, kind: output, shape index: {0}]   ;;  %s2712_s7 = inlined_call_operand.vmem [shape: f32[32,128], index: 7, kind: output, shape index: {1}]  }
   0x1 LB: > { %s2236_s25 = sadd.s32 4294967295, %s2185_s24   ;;  %p1848_p0 = scmp.ge.s32.totalorder %s2185_s24, 1  ;;  %s2185_s24 = sphi %s2230_s24, %s18_s24  }
   0x2   : > { %p306_p1 = scmp.lt.s32.totalorder %s2185_s24, 3 }
   0x4   : > { %p307_p2 = pnand %p1848_p0, %p306_p1 }
   0x5   : > { %v2139_v0 = vld [vmem:[%s2707_s2 + $0x20] sm:$0xff] (!%p307_p2)   ;;  %v2187_v1 = vmov (!%p307_p2), 0.0   ;;  %v2141_v3 = vld [vmem:[%s2707_s2 + $0x28] sm:$0xff] (!%p307_p2)   ;;  %vm2188_vm0 = vmmov (!%p307_p2), 0   ;;  %s1849_s9 = sshll.u32 (!%p307_p2), %s2236_s25, 2  ;;  %s370_s12 = sadd.s32 (!%p307_p2), 1, %s2236_s25  ;;  %v585_v33 = vlaneseq (!%p307_p2) }
   0x6   : > { %310 = sbr.rel (%p307_p2) target bundleno = 348 (0x15c), region = 44  ;;  %1976 = vmatprep.subr.bf16.mxu1 (!%p307_p2), %v2187_v1  ;;  %2024 = vmatprep.subr.bf16.mxu0 (!%p307_p2), %v2187_v1  ;;  %v2140_v2 = vld [vmem:[%s2707_s2 + $0x80] sm:$0xff] (!%p307_p2)   ;;  %v2142_v4 = vld [vmem:[%s2707_s2 + $0x88] sm:$0xff] (!%p307_p2)   ;;  %p364_p3 = scmp.lt.s32.totalorder (!%p307_p2), %s1849_s9, 7  ;;  %v2143_v5 = vld [vmem:[%s2707_s2 + $0x30] sm:$0xff] (!%p307_p2)   ;;  %vm621_vm1 = vcmask (!%p307_p2), 523264  }
   0x7   : > { %1977 = vmatpush3.bf16.msra.mxu1 (!%p307_p2), %v2139_v0  ;;  %1984 = vmatprep.mubr.msk.bf16.mxu1 (!%p307_p2), %vm2188_vm0, %v2187_v1  ;;  %v2144_v6 = vld [vmem:[%s2707_s2 + $0x90] sm:$0xff] (!%p307_p2)   ;;  %p371_p4 = scmp.lt.s32.totalorder (!%p307_p2), %s370_s12, 0  ;;  %s372_s18 = ssub.s32 (!%p307_p2), 0, %s370_s12  ;;  %v2145_v7 = vld [vmem:[%s2707_s2 + $0x38] sm:$0xff] (!%p307_p2)   ;;  %v2189_v31 = vmov (!%p307_p2), 1983009808  }
   0x8   : > { %2025 = vmatpush3.bf16.msra.mxu0 (!%p307_p2), %v2140_v2  ;;  %1978 = vmatprep.subr.bf16.mxu1 (!%p307_p2), %v2187_v1  ;;  %s1851_s22 = smin.u32 (!%p307_p2), %s372_s18, %s370_s12  ;;  %v2146_v10 = vld [vmem:[%s2707_s2 + $0x98] sm:$0xff] (!%p307_p2)   ;;  %v583_v32 = vunpack.c.l.s4 (!%p307_p2), %v2189_v31  ;;  %v586_v39 = vshrl.u32 (!%p307_p2), %v585_v33, 7  ;;  %vm787_vm2 = vsmask.f32 (!%p307_p2), 1280  ;;  %vm788_vm3 = vsmask.f32 (!%p307_p2), 3336 }
   0x9   : > { %2026 = vmatprep.subr.bf16.mxu0 (!%p307_p2), %v2187_v1  ;;  %2032 = vmatprep.mubr.msk.bf16.mxu0 (!%p307_p2), %vm2188_vm0, %v2187_v1  ;;  %s374_s27 = sand.u32 (!%p307_p2), 1, %s1851_s22   ;;  %vm790_vm4 = vsmask.f32 (!%p307_p2), 5392  ;;  %vm792_vm5 = vsmask.f32 (!%p307_p2), 7448  ;;  %vm2463_vm6 = vmor (!%p307_p2), %vm787_vm2, %vm788_vm3 }
   0xa   : > { %s375_s30 = ssub.s32 (!%p307_p2), 0, %s374_s27  ;;  %v584_v38 = vunpack.c.0.s8 (!%p307_p2), %v583_v32  ;;  %vm2479_vm7 = vmor (!%p307_p2), %vm2463_vm6, %vm790_vm4 }
   0xb   : > { %1979 = vmatpush3.bf16.msra.mxu1 (!%p307_p2), %v2141_v3  ;;  %vm2491_vm8 = vmor (!%p307_p2), %vm2479_vm7, %vm792_vm5 }
   0xc   : > { %2027 = vmatpush3.bf16.msra.mxu0 (!%p307_p2), %v2142_v4  ;;  %1980 = vmatprep.subr.bf16.mxu1 (!%p307_p2), %v2187_v1  ;;  %v2314_v45 = vsub.s32 (!%p307_p2), %v584_v38, %v586_v39 }
   0xd   : > { %s2720_s9 = smov (!%p364_p3, %s1849_s9), 7  ;;  %2028 = vmatprep.subr.bf16.mxu0 %v2187_v1  ;;  %s2722_s30 = smov (!%p371_p4, %s375_s30), %s374_s27 }
   0xe   : > { %s2126_s17 = smul.u32 20, %s2720_s9  ;;  %p1853_p5 = scmp.lt.s32.totalorder %s2722_s30, 0 }
   0xf   : > { %1981 = vmatpush3.bf16.msra.mxu1 %v2143_v5  ;;  %s381_s8 = sadd.s32 2, %s2722_s30 }
  0x10   : > { %s2273_s21 = scalar_lea.vmem %s2705_s0, %s2126_s17  ;;  %2029 = vmatpush3.bf16.msra.mxu0 %v2144_v6  ;;  %1982 = vmatprep.subr.bf16.mxu1 %v2187_v1  ;;  %s2724_s8 = smov (!%p1853_p5, %s381_s8), %s2722_s30 }
  0x11   : > { %v421_v8 = vld [vmem:[%s2273_s21 + $0x14] sm:$0x7]  ;;  %v422_v9 = vld [vmem:[%s2273_s21 + $0x18] sm:$0x7]  ;;  %v423_v11 = vld [vmem:[%s2273_s21 + $0x1c] sm:$0x7]  ;;  %2030 = vmatprep.subr.bf16.mxu0 %v2187_v1 }
  0x12   : > { %v424_v12 = vld [vmem:[%s2273_s21 + $0x20] sm:$0x7]  ;;  %v439_v13 = vunpack.c.l.bf16 %v421_v8  ;;  %v440_v14 = vunpack.c.l.bf16 %v422_v9  ;;  %v425_v15 = vld [vmem:[%s2273_s21 + $0x24] sm:$0x7]  ;;  %v441_v16 = vunpack.c.l.bf16 %v423_v11  ;;  %v430_v18 = vld [vmem:[%s2273_s21 + $0x3c] sm:$0x7] }
  0x13   : > { %v442_v17 = vunpack.c.l.bf16 %v424_v12  ;;  %v431_v19 = vld [vmem:[%s2273_s21 + $0x40] sm:$0x7]  ;;  %v443_v20 = vunpack.c.l.bf16 %v425_v15  ;;  %v432_v21 = vld [vmem:[%s2273_s21 + $0x44] sm:$0x7]  ;;  %1983 = vmatpush3.bf16.msra.mxu1 %v2145_v7  ;;  %v448_v24 = vunpack.c.l.bf16 %v430_v18  ;;  %v433_v27 = vld [vmem:[%s2273_s21 + $0x48] sm:$0x7] }
  0x14   : > { %v2292_v22 = vmul.f32 0.9, %v439_v13  ;;  %v2294_v23 = vmul.f32 0.9, %v440_v14  ;;  %v449_v25 = vunpack.c.l.bf16 %v431_v19  ;;  %2031 = vmatpush3.bf16.msra.mxu0 %v2146_v10  ;;  %1988 = vmatprep.subr.bf16.mxu1 %v2187_v1  ;;  %v459_v26 = vmul.f32 0.9, %v441_v16 }
  0x15   : > { %2036 = vmatprep.subr.bf16.mxu0 %v2187_v1  ;;  %v460_v28 = vmul.f32 0.9, %v442_v17  ;;  %v461_v29 = vmul.f32 0.9, %v443_v20  ;;  %v450_v30 = vunpack.c.l.bf16 %v432_v21  ;;  %v466_v34 = vmul.f32 0.9, %v448_v24 }
  0x16   : > { %s1854_s9 = sshll.u32 %s2724_s8, 2  ;;  %v451_v35 = vunpack.c.l.bf16 %v433_v27  ;;  %v467_v36 = vmul.f32 0.9, %v449_v25  ;;  %v416_v41 = vld [vmem:[%s2273_s21] sm:$0x7]  ;;  %s1856_s17 = sshll.u32 %s2236_s25, 1 }
  0x17   : > { %p384_p6 = scmp.lt.s32.totalorder %s1854_s9, 7  ;;  %v468_v37 = vmul.f32 0.9, %v450_v30  ;;  %v417_v42 = vld [vmem:[%s2273_s21 + $0x4] sm:$0x7]  ;;  %v434_v51 = vunpack.c.l.bf16 %v416_v41  ;;  %p404_p7 = scmp.lt.s32.totalorder %s1856_s17, 3 }
  0x18   : > { %v2299_v40 = vmul.f32 0.9, %v451_v35  ;;  %v2304_v43 = vld [vmem:[%s2273_s21 + $0x8] sm:$0x7]  ;;  %v2307_v44 = vld [vmem:[%s2273_s21 + $0xc] sm:$0x7]  ;;  %v435_v52 = vunpack.c.l.bf16 %v417_v42 }
  0x19   : > { %s2726_s9 = smov (!%p384_p6, %s1854_s9), 7  ;;  %v2317_v46 = vld [vmem:[%s2273_s21 + $0x28] sm:$0x7]  ;;  %v2320_v47 = vld [vmem:[%s2273_s21 + $0x2c] sm:$0x7]  ;;  %v436_v53 = vunpack.c.l.bf16 %v2304_v43  ;;  %v437_v54 = vunpack.c.l.bf16 %v2307_v44  ;;  %s2728_s17 = smov (!%p404_p7, %s1856_s17), 3 }
  0x1a   : > { %s2127_s10 = smul.u32 20, %s2726_s9  ;;  %v444_v61 = vunpack.c.l.bf16 %v2317_v46  ;;  %v445_v5 = vunpack.c.l.bf16 %v2320_v47  ;;  %v428_v35 = vld [vmem:[%s2273_s21 + $0x30] sm:$0x7]  ;;  %v452_v41 = vmul.f32 0.9, %v434_v51  ;;  %s1857_s18 = sshll.u32 %s2728_s17, 3 }
  0x1b   : > { %v453_v42 = vmul.f32 0.9, %v435_v52  ;;  %v429_v43 = vld [vmem:[%s2273_s21 + $0x34] sm:$0x7]  ;;  %v455_v47 = vmul.f32 0.9, %v437_v54  ;;  %v446_v52 = vunpack.c.l.bf16 %v428_v35  ;;  %s407_s28 = scalar_lea.vmem %s2711_s6, %s1857_s18 }
  0x1c   : > { %s2312_s13 = scalar_lea.vmem %s2706_s1, %s2127_s10 }
  0x1d   : > { %v475_v48 = vld [vmem:[%s2312_s13 + $0x14] sm:$0x7]  ;;  %v476_v49 = vld [vmem:[%s2312_s13 + $0x18] sm:$0x7]  ;;  %v477_v50 = vld [vmem:[%s2312_s13 + $0x1c] sm:$0x7] }
  0x1e   : > { %v478_v55 = vld [vmem:[%s2312_s13 + $0x20] sm:$0x7]  ;;  %v479_v56 = vld [vmem:[%s2312_s13 + $0x24] sm:$0x7]  ;;  %v493_v57 = vunpack.c.l.bf16 %v475_v48  ;;  %v494_v58 = vunpack.c.l.bf16 %v476_v49  ;;  %v495_v59 = vunpack.c.l.bf16 %v477_v50  ;;  %v484_v60 = vld [vmem:[%s2312_s13 + $0x3c] sm:$0x7] }
  0x1f   : > { %v496_v62 = vunpack.c.l.bf16 %v478_v55  ;;  %v497_v63 = vunpack.c.l.bf16 %v479_v56  ;;  %v485_v0 = vld [vmem:[%s2312_s13 + $0x40] sm:$0x7]  ;;  %v486_v2 = vld [vmem:[%s2312_s13 + $0x44] sm:$0x7]  ;;  %v487_v3 = vld [vmem:[%s2312_s13 + $0x48] sm:$0x7]  ;;  %v502_v4 = vunpack.c.l.bf16 %v484_v60 }
  0x20   : > { %v511_v6 = vmul.f32 0.1, %v493_v57  ;;  %v512_v7 = vmul.f32 0.1, %v494_v58  ;;  %v513_v8 = vmul.f32 0.1, %v495_v59  ;;  %v503_v9 = vunpack.c.l.bf16 %v485_v0 }
  0x21   : > { %v514_v10 = vmul.f32 0.1, %v496_v62  ;;  %v515_v11 = vmul.f32 0.1, %v497_v63  ;;  %v504_v12 = vunpack.c.l.bf16 %v486_v2  ;;  %v505_v13 = vunpack.c.l.bf16 %v487_v3  ;;  %v471_v27 = vld [vmem:[%s2312_s13 + $0x4] sm:$0x7] }
  0x22   : > { %v529_v14 = vadd.f32 %v511_v6, %v2292_v22  ;;  %v2337_v15 = vadd.f32 %v512_v7, %v2294_v23  ;;  %v2339_v16 = vadd.f32 %v513_v8, %v459_v26  ;;  %v520_v17 = vmul.f32 0.1, %v502_v4  ;;  %v470_v26 = vld [vmem:[%s2312_s13] sm:$0x7]  ;;  %v472_v32 = vld [vmem:[%s2312_s13 + $0x8] sm:$0x7] }
  0x23   : > { %v2341_v18 = vadd.f32 %v514_v10, %v460_v28  ;;  %v2343_v19 = vadd.f32 %v515_v11, %v461_v29  ;;  %v521_v20 = vmul.f32 0.1, %v503_v9  ;;  %v522_v21 = vmul.f32 0.1, %v504_v12  ;;  %v473_v33 = vld [vmem:[%s2312_s13 + $0xc] sm:$0x7] }
  0x24   : > { %v1860_v24 = vpack.c.bf16 %v2337_v15, %v529_v14  ;;  %v1905_v22 = vpack.c.bf16 %v2339_v16, %v2337_v15  ;;  %v523_v25 = vmul.f32 0.1, %v505_v13  ;;  %v538_v23 = vadd.f32 %v520_v17, %v466_v34  ;;  %v2147_v34 = vld [vmem:[%s2707_s2] sm:$0xff]   ;;  %v480_v56 = vld [vmem:[%s2312_s13 + $0x28] sm:$0x7] }
  0x25   : > { %v1861_v30 = vpack.c.bf16 %v2341_v18, %v2339_v16  ;;  %v1906_v28 = vpack.c.bf16 %v2343_v19, %v2341_v18  ;;  %v539_v29 = vadd.f32 %v521_v20, %v467_v36  ;;  %v540_v31 = vadd.f32 %v522_v21, %v468_v37  ;;  %v481_v59 = vld [vmem:[%s2312_s13 + $0x2c] sm:$0x7]  ;;  %v482_v0 = vld [vmem:[%s2312_s13 + $0x30] sm:$0x7]  ;;  %v483_v11 = vld [vmem:[%s2312_s13 + $0x34] sm:$0x7] }
  0x26   : > { %v588_v38 = vrot.slane %v1860_v24, %v2314_v45  ;;  %v541_v39 = vadd.f32 %v523_v25, %v2299_v40  ;;  %v454_v37 = vmul.f32 0.9, %v436_v53  ;;  %v488_v49 = vunpack.c.l.bf16 %v470_v26  ;;  %v2148_v40 = vld [vmem:[%s2707_s2 + $0xa0] sm:$0xff]   ;;  %v2149_v53 = vld [vmem:[%s2707_s2 + $0x8] sm:$0xff]   ;;  %v2151_v24 = vld [vmem:[%s2707_s2 + $0x10] sm:$0xff]  }
  0x27   : > { %v595_v44 = vrot.slane %v1861_v30, %v2314_v45  ;;  %v1886_v36 = vpack.c.bf16 %v539_v29, %v538_v23  ;;  %v489_v50 = vunpack.c.l.bf16 %v471_v27  ;;  %v490_v55 = vunpack.c.l.bf16 %v472_v32  ;;  %v2160_v18 = vld [vmem:[%s2707_s2 + $0xd0] sm:$0xff]  }
  0x28   : > { %v1887_v48 = vpack.c.bf16 %v541_v39, %v540_v31  ;;  %v491_v51 = vunpack.c.l.bf16 %v473_v33  ;;  %v506_v54 = vmul.f32 0.1, %v488_v49  ;;  %v447_v3 = vunpack.c.l.bf16 %v429_v43 }
  0x29   : > { %v596_v57 = vcombine.low %v588_v38, %v595_v44  ;;  %v1064_v58 = vrot.slane %v1886_v36, %v2314_v45  ;;  %v507_v62 = vmul.f32 0.1, %v489_v50  ;;  %v508_v63 = vmul.f32 0.1, %v490_v55  ;;  %v2153_v36 = vld [vmem:[%s2707_s2 + $0x18] sm:$0xff]  }
  0x2a   : > { %v1071_v60 = vrot.slane %v1887_v48, %v2314_v45  ;;  %v509_v2 = vmul.f32 0.1, %v491_v51  ;;  %v462_v4 = vmul.f32 0.9, %v444_v61  ;;  %v463_v6 = vmul.f32 0.9, %v445_v5 }
  0x2b   : > { %1985 = vmatmul.mubr.msk.bf16.vlgmr.msra.gmra.mrb[0].mxu1 %vm621_vm1, %v596_v57  ;;  %v524_v8 = vadd.f32 %v506_v54, %v452_v41  ;;  %v2382_v9 = vadd.f32 %v507_v62, %v453_v42  ;;  %v464_v10 = vmul.f32 0.9, %v446_v52  ;;  %v2386_v12 = vadd.f32 %v508_v63, %v454_v37  ;;  %v2150_v5 = vld [vmem:[%s2707_s2 + $0xa8] sm:$0xff]   ;;  %v2152_v41 = vld [vmem:[%s2707_s2 + $0xb0] sm:$0xff]   ;;  %v2154_v50 = vld [vmem:[%s2707_s2 + $0xb8] sm:$0xff]  }
  0x2c   : > { %1989 = vmatpush3.bf16.msra.mxu1 %v2147_v34  ;;  %v2378_v7 = vcombine.low %v1064_v58, %v1071_v60  ;;  %1996 = vmatprep.mubr.msk.bf16.mxu1 %vm2188_vm0, %v2187_v1  ;;  %v2388_v13 = vadd.f32 %v509_v2, %v455_v47  ;;  %v465_v46 = vmul.f32 0.9, %v447_v3  ;;  %v498_v61 = vunpack.c.l.bf16 %v480_v56 }
  0x2d   : > { %1990 = vmatprep.subr.bf16.mxu1 %v2187_v1  ;;  %v542_v14 = vpack.c.bf16 %v524_v8, %v524_v8  ;;  %v543_v17 = vpack.c.bf16 %v2382_v9, %v2382_v9  ;;  %v1867_v20 = vpack.c.bf16 %v2382_v9, %v524_v8  ;;  %v499_v21 = vunpack.c.l.bf16 %v481_v59 }
  0x2e   : > { %2033 = vmatmul.mubr.msk.bf16.vlgmr.msra.gmra.mrb[0].mxu0 %vm621_vm1, %v2378_v7  ;;  %v544_v25 = vpack.c.bf16 %v2386_v12, %v2386_v12  ;;  %v545_v23 = vpack.c.bf16 %v2388_v13, %v2388_v13  ;;  %v1868_v26 = vpack.c.bf16 %v2388_v13, %v2386_v12  ;;  %v500_v27 = vunpack.c.l.bf16 %v482_v0 }
  0x2f   : > { %2037 = vmatpush3.bf16.msra.mxu0 %v2148_v40  ;;  %2044 = vmatprep.mubr.msk.bf16.mxu0 %vm2188_vm0, %v2187_v1  ;;  %v678_v30 = vrot.slane %v1867_v20, %v2314_v45  ;;  %v2412_v29 = vrot.slane %v542_v14, %v2314_v45  ;;  %v501_v31 = vunpack.c.l.bf16 %v483_v11  ;;  %v516_v32 = vmul.f32 0.1, %v498_v61  ;;  %v2155_v40 = vld [vmem:[%s2707_s2 + $0x40] sm:$0xff]  }
  0x30   : > { %2038 = vmatprep.subr.bf16.mxu0 %v2187_v1  ;;  %1991 = vmatpush3.bf16.msra.mxu1 %v2149_v53  ;;  %v685_v33 = vrot.slane %v1868_v26, %v2314_v45  ;;  %v517_v35 = vmul.f32 0.1, %v499_v21  ;;  %v518_v38 = vmul.f32 0.1, %v500_v27  ;;  %v2445_v57 = vrot.slane %v543_v17, %v2314_v45 }
  0x31   : > { %1992 = vmatprep.subr.bf16.mxu1 %v2187_v1  ;;  %v519_v34 = vmul.f32 0.1, %v501_v31  ;;  %v2416_v39 = vadd.f32 %v516_v32, %v462_v4  ;;  %v762_v48 = vcombine.high %v2412_v29, %v2412_v29  ;;  %v795_v49 = vshrl.u32 %v2412_v29, 16  ;;  %v2157_v32 = vld [vmem:[%s2707_s2 + $0x48] sm:$0xff]  }
  0x32   : > { %v686_v42 = vcombine.low %v678_v30, %v685_v33  ;;  %v2421_v43 = vadd.f32 %v517_v35, %v463_v6  ;;  %v2423_v44 = vadd.f32 %v518_v38, %v464_v10  ;;  %v2448_v58 = vrot.slane %v544_v25, %v2314_v45  ;;  %v2174_v33 = vld [vmem:[%s2707_s2 + $0x110] sm:$0xff]  }
  0x33   : > { %2039 = vmatpush3.bf16.msra.mxu0 %v2150_v5  ;;  %v2429_v37 = vadd.f32 %v519_v34, %v465_v46  ;;  %v552_v47 = vpack.c.bf16 %v2416_v39, %v2416_v39  ;;  %v2457_v59 = vrot.slane %v545_v23, %v2314_v45  ;;  %v2459_v60 = vrot.slane %v795_v49, 6 }
  0x34   : > { %2040 = vmatprep.subr.bf16.mxu0 %v2187_v1  ;;  %1993 = vmatpush3.bf16.msra.mxu1 %v2151_v24  ;;  %v553_v55 = vpack.c.bf16 %v2421_v43, %v2421_v43  ;;  %v554_v56 = vpack.c.bf16 %v2423_v44, %v2423_v44  ;;  %v770_v63 = vcombine.high %v2445_v57, %v2445_v57 }
  0x35   : > { %1994 = vmatprep.subr.bf16.mxu1 %v2187_v1  ;;  %v555_v51 = vpack.c.bf16 %v2429_v37, %v2429_v37  ;;  %v1149_v52 = vrot.slane %v552_v47, %v2314_v45  ;;  %v778_v0 = vcombine.high %v2448_v58, %v2448_v58 }
  0x36   : > { %v1157_v54 = vrot.slane %v553_v55, %v2314_v45  ;;  %v1165_v62 = vrot.slane %v554_v56, %v2314_v45 }
  0x37   : > { %2041 = vmatpush3.bf16.msra.mxu0 %v2152_v41  ;;  %v1150_v2 = vcombine.high %v1149_v52, %v1149_v52  ;;  %v1173_v3 = vrot.slane %v555_v51, %v2314_v45  ;;  %v1176_v4 = vshrl.u32 %v1149_v52, 16  ;;  %v1179_v6 = vshll.u32 %v1149_v52, 16 }
  0x38   : > { %2042 = vmatprep.subr.bf16.mxu0 %v2187_v1  ;;  %1995 = vmatpush3.bf16.msra.mxu1 %v2153_v36  ;;  %v1158_v8 = vcombine.high %v1157_v54, %v1157_v54  ;;  %v1166_v10 = vcombine.high %v1165_v62, %v1165_v62  ;;  %v1190_v11 = vshrl.u32 %v1157_v54, 16  ;;  %v1193_v46 = vshll.u32 %v1157_v54, 16 }
  0x39   : > { %2000 = vmatprep.subr.bf16.mxu1 %v2187_v1  ;;  %v1174_v5 = vcombine.high %v1173_v3, %v1173_v3  ;;  %v1178_v14 = vrot.slane %v1176_v4, 6  ;;  %v1181_v17 = vrot.slane %v1179_v6, 7  ;;  %v1185_v20 = vshll.u32 %v1150_v2, 16 }
  0x3a   : > { %v1192_v21 = vrot.slane %v1190_v11, 6  ;;  %v1195_v24 = vrot.slane %v1193_v46, 7  ;;  %v1199_v25 = vshll.u32 %v1158_v8, 16  ;;  %v1204_v23 = vshrl.u32 %v1165_v62, 16 }
  0x3b   : > { %2043 = vmatpush3.bf16.msra.mxu0 %v2154_v50  ;;  %1997 = vmatmul.mubr.msk.bf16.vlgmr.msra.gmra.mrb[0].mxu1 %vm621_vm1, %v686_v42  ;;  %v1182_v26 = vor.u32 %v1181_v17, %v1178_v14  ;;  %v1187_v27 = vrot.slane %v1185_v20, 7  ;;  %v1207_v30 = vshll.u32 %v1165_v62, 16  ;;  %v1213_v31 = vshll.u32 %v1166_v10, 16 }
  0x3c   : > { %2048 = vmatprep.subr.bf16.mxu0 %v2187_v1  ;;  %2001 = vmatpush3.bf16.msra.mxu1 %v2155_v40  ;;  %v1196_v35 = vor.u32 %v1195_v24, %v1192_v21  ;;  %v1201_v38 = vrot.slane %v1199_v25, 7  ;;  %v1206_v34 = vrot.slane %v1204_v23, 6  ;;  %v1218_v41 = vshrl.u32 %v1173_v3, 16  ;;  %v2159_v40 = vld [vmem:[%s2707_s2 + $0x50] sm:$0xff]   ;;  %v2161_v21 = vld [vmem:[%s2707_s2 + $0x58] sm:$0xff]  }
  0x3d   : > { %2002 = vmatprep.subr.bf16.mxu1 %v2187_v1  ;;  %2008 = vmatprep.mubr.msk.bf16.mxu1 %vm2188_vm0, %v2187_v1  ;;  %v1183_v42 = vrot.slane %v1182_v26, 2  ;;  %v1209_v36 = vrot.slane %v1207_v30, 7  ;;  %v1215_v47 = vrot.slane %v1213_v31, 7  ;;  %v1221_v49 = vshll.u32 %v1173_v3, 16  ;;  %v420_v26 = vld [vmem:[%s2273_s21 + $0x10] sm:$0x7]  ;;  %s413_s21 = scalar_lea.vmem %s2712_s7, %s1857_s18 }
  0x3e   : > { %v1197_v50 = vrot.slane %v1196_v35, 2  ;;  %v1220_v55 = vrot.slane %v1218_v41, 6  ;;  %v1227_v56 = vshll.u32 %v1174_v5, 16  ;;  %v786_v51 = vcombine.high %v2457_v59, %v2457_v59  ;;  %v474_v41 = vld [vmem:[%s2312_s13 + $0x10] sm:$0x7] }
  0x3f   : > { %v1188_v52 = vsel %vm2491_vm8, %v1183_v42, %v1187_v27  ;;  %v1210_v53 = vor.u32 %v1209_v36, %v1206_v34  ;;  %v1223_v54 = vrot.slane %v1221_v49, 7  ;;  %v798_v62 = vshll.u32 %v2412_v29, 16  ;;  %v2156_v42 = vld [vmem:[%s2707_s2 + $0xc0] sm:$0xff]  }
  0x40   : > { %2003 = vmatpush3.bf16.msra.mxu1 %v2157_v32  ;;  %v1202_v2 = vsel %vm2491_vm8, %v1197_v50, %v1201_v38  ;;  %v1229_v3 = vrot.slane %v1227_v56, 7  ;;  %v804_v4 = vshll.u32 %v762_v48, 16  ;;  %v809_v6 = vshrl.u32 %v2445_v57, 16 }
  0x41   : > { %2004 = vmatprep.subr.bf16.mxu1 %v2187_v1  ;;  %v1211_v8 = vrot.slane %v1210_v53, 2  ;;  %v1224_v10 = vor.u32 %v1223_v54, %v1220_v55  ;;  %v1239_v11 = vcombine.low %v1188_v52, %v1202_v2  ;;  %v800_v46 = vrot.slane %v798_v62, 7 }
  0x42   : > { %v806_v61 = vrot.slane %v804_v4, 7  ;;  %v811_v5 = vrot.slane %v809_v6, 6  ;;  %v812_v14 = vshll.u32 %v2445_v57, 16  ;;  %v818_v17 = vshll.u32 %v770_v63, 16 }
  0x43   : > { %v1216_v20 = vsel %vm2491_vm8, %v1211_v8, %v1215_v47  ;;  %v1225_v29 = vrot.slane %v1224_v10, 2  ;;  %v1247_v48 = vrot.slane %v1239_v11, %v2314_v45  ;;  %v801_v24 = vor.u32 %v800_v46, %v2459_v60 }
  0x44   : > { %2005 = vmatpush3.bf16.msra.mxu1 %v2159_v40  ;;  %v814_v25 = vrot.slane %v812_v14, 7  ;;  %v820_v23 = vrot.slane %v818_v17, 7  ;;  %v823_v57 = vshrl.u32 %v2448_v58, 16  ;;  %v826_v63 = vshll.u32 %v2448_v58, 16 }
  0x45   : > { %2006 = vmatprep.subr.bf16.mxu1 %v2187_v1  ;;  %v1230_v27 = vsel %vm2491_vm8, %v1225_v29, %v1229_v3  ;;  %v802_v30 = vrot.slane %v801_v24, 2  ;;  %v832_v31 = vshll.u32 %v778_v0, 16  ;;  %v837_v32 = vshrl.u32 %v2457_v59, 16  ;;  %v2162_v29 = vld [vmem:[%s2707_s2 + $0xd8] sm:$0xff]  }
  0x46   : > { %v1240_v60 = vcombine.low %v1216_v20, %v1230_v27  ;;  %v815_v35 = vor.u32 %v814_v25, %v811_v5  ;;  %v825_v38 = vrot.slane %v823_v57, 6  ;;  %v828_v34 = vrot.slane %v826_v63, 7  ;;  %v2166_v27 = vld [vmem:[%s2707_s2 + $0xe8] sm:$0xff]  }
  0x47   : > { %v807_v36 = vsel %vm2491_vm8, %v802_v30, %v806_v61  ;;  %v839_v47 = vrot.slane %v837_v32, 6  ;;  %v840_v49 = vshll.u32 %v2457_v59, 16  ;;  %v846_v55 = vshll.u32 %v786_v51, 16  ;;  %v2158_v51 = vld [vmem:[%s2707_s2 + $0xc8] sm:$0xff]   ;;  %v2169_v30 = vld [vmem:[%s2707_s2 + $0x78] sm:$0xff]  }
  0x48   : > { %2007 = vmatpush3.bf16.msra.mxu1 %v2161_v21  ;;  %v1254_v58 = vrot.slane %v1240_v60, %v2314_v45  ;;  %v816_v0 = vrot.slane %v815_v35, 2  ;;  %v829_v50 = vor.u32 %v828_v34, %v825_v38  ;;  %v834_v56 = vrot.slane %v832_v31, 7  ;;  %v2165_v21 = vld [vmem:[%s2707_s2 + $0x68] sm:$0xff]   ;;  %v2168_v31 = vld [vmem:[%s2707_s2 + $0xf0] sm:$0xff]   ;;  %v2173_v34 = vld [vmem:[%s2708_s3] sm:$0xff]  }
  0x49   : > { %2012 = vmatprep.subr.bf16.mxu1 %v2187_v1  ;;  %v842_v40 = vrot.slane %v840_v49, 7  ;;  %v438_v52 = vunpack.c.l.bf16 %v420_v26  ;;  %v492_v53 = vunpack.c.l.bf16 %v474_v41  ;;  %v848_v4 = vrot.slane %v846_v55, 7  ;;  %v2167_v26 = vld [vmem:[%s2707_s2 + $0x70] sm:$0xff]   ;;  %v2170_v41 = vld [vmem:[%s2707_s2 + $0xf8] sm:$0xff]   ;;  %v2171_v49 = vld [vmem:[%s2707_s2 + $0x100] sm:$0xff]  }
  0x4a   : > { %v1255_v54 = vcombine.low %v1247_v48, %v1254_v58  ;;  %v2545_v62 = vsel %vm2491_vm8, %v816_v0, %v820_v23  ;;  %v830_v2 = vrot.slane %v829_v50, 2  ;;  %v2562_v61 = vrot.slane %v1905_v22, %v2314_v45  ;;  %v2164_v23 = vld [vmem:[%s2707_s2 + $0xe0] sm:$0xff]   ;;  %v2177_v50 = vld [vmem:[%s2708_s3 + $0x10] sm:$0xff]   ;;  %v2172_v55 = vld [vmem:[%s2707_s2 + $0x108] sm:$0xff]  }
  0x4b   : > { %v843_v3 = vor.u32 %v842_v40, %v839_v47  ;;  %v456_v59 = vmul.f32 0.9, %v438_v52  ;;  %v510_v6 = vmul.f32 0.1, %v492_v53  ;;  %v858_v8 = vcombine.low %v807_v36, %v2545_v62  ;;  %v2175_v47 = vld [vmem:[%s2708_s3 + $0x8] sm:$0xff]   ;;  %v2178_v40 = vld [vmem:[%s2708_s3 + $0x18] sm:$0xff]  }
  0x4c   : > { %2045 = vmatmul.mubr.msk.bf16.vlgmr.msra.gmra.mrb[0].mxu0 %vm621_vm1, %v1255_v54  ;;  %v2556_v10 = vsel %vm2491_vm8, %v830_v2, %v834_v56  ;;  %v2569_v5 = vrot.slane %v1906_v28, %v2314_v45  ;;  %v1898_v17 = vpack.c.bf16 %v2386_v12, %v2382_v9  ;;  %v2163_v28 = vld [vmem:[%s2707_s2 + $0x60] sm:$0xff]   ;;  %v1879_v57 = vpack.c.bf16 %v2421_v43, %v2416_v39 }
  0x4d   : > { %2049 = vmatpush3.bf16.msra.mxu0 %v2156_v42  ;;  %2056 = vmatprep.mubr.msk.bf16.mxu0 %vm2188_vm0, %v2187_v1  ;;  %v844_v11 = vrot.slane %v843_v3, 2  ;;  %v528_v46 = vadd.f32 %v510_v6, %v456_v59  ;;  %v866_v16 = vrot.slane %v858_v8, %v2314_v45  ;;  %v1880_v63 = vpack.c.bf16 %v2429_v37, %v2423_v44 }
  0x4e   : > { %2050 = vmatprep.subr.bf16.mxu0 %v2187_v1  ;;  %v1447_v20 = vcombine.low %v2562_v61, %v2569_v5  ;;  %v1343_v12 = vrot.slane %v1898_v17, %v2314_v45  ;;  %v965_v44 = vrot.slane %v1879_v57, %v2314_v45  ;;  %v1548_v52 = vcombine.low %v2545_v62, %v2556_v10  ;;  %v2176_v62 = vld [vmem:[%s2707_s2 + $0x118] sm:$0xff]   ;;  %v1918_v5 = vld [vmem:[%s2710_s5] ss:$0 sm:$0xff] }
  0x4f   : > { %v2573_v14 = vsel %vm2491_vm8, %v844_v11, %v848_v4  ;;  %v1899_v22 = vpack.c.bf16 %v528_v46, %v2388_v13  ;;  %v546_v48 = vpack.c.bf16 %v528_v46, %v528_v46  ;;  %v972_v37 = vrot.slane %v1880_v63, %v2314_v45  ;;  %v1917_v11 = vld [vmem:[%s2709_s4] ss:$0 sm:$0xff] }
  0x50   : > { %v859_v15 = vcombine.low %v2556_v10, %v2573_v14  ;;  %v1556_v54 = vrot.slane %v1548_v52, %v2314_v45 }
  0x51   : > { %2051 = vmatpush3.bf16.msra.mxu0 %v2158_v51  ;;  %v1350_v13 = vrot.slane %v1899_v22, %v2314_v45  ;;  %v1524_v25 = vrot.slane %v546_v48, %v2314_v45  ;;  %v973_v38 = vcombine.low %v965_v44, %v972_v37 }
  0x52   : > { %2052 = vmatprep.subr.bf16.mxu0 %v2187_v1  ;;  %v873_v19 = vrot.slane %v859_v15, %v2314_v45 }
  0x53   : > { %v1351_v24 = vcombine.low %v1343_v12, %v1350_v13  ;;  %v1527_v39 = vshrl.u32 %v1524_v25, 16  ;;  %v1530_v43 = vshll.u32 %v1524_v25, 16  ;;  %v1525_v32 = vcombine.high %v1524_v25, %v1524_v25 }
  0x54   : > { %v874_v9 = vcombine.low %v866_v16, %v873_v19 }
  0x55   : > { %2053 = vmatpush3.bf16.msra.mxu0 %v2160_v18  ;;  %v1529_v60 = vrot.slane %v1527_v39, 6  ;;  %v1532_v35 = vrot.slane %v1530_v43, 7  ;;  %v1536_v36 = vshll.u32 %v1525_v32, 16 }
  0x56   : > { %2054 = vmatprep.subr.bf16.mxu0 %v2187_v1  ;;  %2009 = vmatmul.mubr.msk.bf16.vlgmr.msra.gmra.mrb[0].mxu1 %vm621_vm1, %v874_v9 }
  0x57   : > { %2013 = vmatpush3.bf16.msra.mxu1 %v2163_v28  ;;  %2020 = vmatprep.mubr.msk.bf16.mxu1 %vm2188_vm0, %v2187_v1  ;;  %v1533_v42 = vor.u32 %v1532_v35, %v1529_v60  ;;  %v1538_v0 = vrot.slane %v1536_v36, 7 }
  0x58   : > { %2014 = vmatprep.subr.bf16.mxu1 %v2187_v1 }
  0x59   : > { %2055 = vmatpush3.bf16.msra.mxu0 %v2162_v29  ;;  %v1534_v58 = vrot.slane %v1533_v42, 2 }
  0x5a   : > { %2060 = vmatprep.subr.bf16.mxu0 %v2187_v1 }
  0x5b   : > { %2015 = vmatpush3.bf16.msra.mxu1 %v2165_v21  ;;  %v1539_v56 = vsel %vm2491_vm8, %v1534_v58, %v1538_v0 }
  0x5c   : > { %2057 = vmatmul.mubr.msk.bf16.vlgmr.msra.gmra.mrb[0].mxu0 %vm621_vm1, %v1351_v24  ;;  %2016 = vmatprep.subr.bf16.mxu1 %v2187_v1  ;;  %v1549_v53 = vcombine.low %v2573_v14, %v1539_v56 }
  0x5d   : > { %2061 = vmatpush3.bf16.msra.mxu0 %v2164_v23  ;;  %2068 = vmatprep.mubr.msk.bf16.mxu0 %vm2188_vm0, %v2187_v1 }
  0x5e   : > { %2062 = vmatprep.subr.bf16.mxu0 %v2187_v1  ;;  %v1563_v2 = vrot.slane %v1549_v53, %v2314_v45 }
  0x5f   : > { %2017 = vmatpush3.bf16.msra.mxu1 %v2167_v26 }
  0x60   : > { %2018 = vmatprep.subr.bf16.mxu1 %v2187_v1  ;;  %v1564_v3 = vcombine.low %v1556_v54, %v1563_v2 }
  0x61   : > { %2063 = vmatpush3.bf16.msra.mxu0 %v2166_v27 }
  0x62   : > { %2064 = vmatprep.subr.bf16.mxu0 %v2187_v1 }
  0x63   : > { %2019 = vmatpush3.bf16.msra.mxu1 %v2169_v30 }
  0x64   : > { %2084 = vmatprep.subr.bf16.mxu1 %v2187_v1 }
  0x65   : > { %2065 = vmatpush3.bf16.msra.mxu0 %v2168_v31 }
  0x66   : > { %2066 = vmatprep.subr.bf16.mxu0 %v2187_v1  ;;  %2021 = vmatmul.mubr.msk.bf16.vlgmr.msra.gmra.mrb[0].mxu1 %vm621_vm1, %v973_v38 }
  0x67   : > { %2085 = vmatpush3.bf16.msra.mxu1 %v2173_v34  ;;  %2092 = vmatprep.mubr.msk.bf16.mxu1 %vm2188_vm0, %v2187_v1 }
  0x68   : > { %2086 = vmatprep.subr.bf16.mxu1 %v2187_v1 }
  0x69   : > { %2067 = vmatpush3.bf16.msra.mxu0 %v2170_v41 }
  0x6a   : > { %2072 = vmatprep.subr.bf16.mxu0 %v2187_v1 }
  0x6b   : > { %2087 = vmatpush3.bf16.msra.mxu1 %v2175_v47 }
  0x6c   : > { %2069 = vmatmul.mubr.msk.bf16.vlgmr.msra.gmra.mrb[0].mxu0 %vm621_vm1, %v1447_v20  ;;  %2088 = vmatprep.subr.bf16.mxu1 %v2187_v1 }
  0x6d   : > { %2073 = vmatpush3.bf16.msra.mxu0 %v2171_v49  ;;  %2080 = vmatprep.mubr.msk.bf16.mxu0 %vm2188_vm0, %v2187_v1 }
  0x6e   : > { %2074 = vmatprep.subr.bf16.mxu0 %v2187_v1 }
  0x6f   : > { %2089 = vmatpush3.bf16.msra.mxu1 %v2177_v50 }
  0x70   : > { %2090 = vmatprep.subr.bf16.mxu1 %v2187_v1 }
  0x71   : > { %2075 = vmatpush3.bf16.msra.mxu0 %v2172_v55 }
  0x72   : > { %2076 = vmatprep.subr.bf16.mxu0 %v2187_v1 }
  0x73   : > { %2091 = vmatpush3.bf16.msra.mxu1 %v2178_v40 }
  0x75   : > { %2077 = vmatpush3.bf16.msra.mxu0 %v2174_v33 }
  0x76   : > { %2078 = vmatprep.subr.bf16.mxu0 %v2187_v1  ;;  %2093 = vmatmul.mubr.msk.bf16.vlgmr.msra.gmra.mrb[4].mxu1 %vm621_vm1, %v2378_v7 }
  0x79   : > { %2079 = vmatpush3.bf16.msra.mxu0 %v2176_v62 }
  0x7c   : > { %2081 = vmatmul.mubr.msk.bf16.vlgmr.msra.gmra.mrb[0].mxu0 %vm621_vm1, %v1564_v3 }
 0x139   : > { %v1035_v4 = vpop.f32.mrb[0].mxu1 }
 0x13a   : > { %v2022_v59 = vpop.f32.mrb[1].mxu1 }
 0x13b   : > { %v1038_v6 = vpop.f32.mrb[2].mxu1 }
 0x13c   : > { %v2023_v8 = vpop.f32.mrb[3].mxu1 }
 0x149   : > { %v1727_v1 = vpop.f32.mrb[4].mxu1 }
 0x14a   : > { %1734 = vst [vmem:[%s413_s21] sm:$0xff] %v1727_v1  ;;  %v2094_v45 = vpop.f32.mrb[5].mxu1 }
 0x14b   : > { %v1730_v7 = vpop.f32.mrb[6].mxu1 }
 0x14c   : > { %1735 = vst [vmem:[%s413_s21 + $0x8] sm:$0xff] %v1730_v7  ;;  %v2095_v51 = vpop.f32.mrb[7].mxu1 }
 0x14f   : > { %v1626_v10 = vpop.f32.mrb[0].mxu0 }
 0x150   : > { %v2096_v46 = vadd.f32 %v1626_v10, %v1035_v4  ;;  %v2082_v61 = vpop.f32.mrb[1].mxu0 }
 0x151   : > { %v1629_v14 = vpop.f32.mrb[2].mxu0 }
 0x152   : > { %v1642_v17 = vmul.f32 %v2096_v46, %v1917_v11  ;;  %v2097_v15 = vadd.f32 %v1629_v14, %v1038_v6  ;;  %v2083_v16 = vpop.f32.mrb[3].mxu0 }
 0x154   : > { %v1651_v22 = vadd.f32 %v1918_v5, %v1642_v17  ;;  %v1643_v20 = vmul.f32 %v2097_v15, %v1917_v11 }
 0x156   : > { %v1655_v18 = vmul.f32 0.1, %v1651_v22  ;;  %v1652_v19 = vadd.f32 %v1918_v5, %v1643_v20  ;;  %vm1653_vm9 = vcmp.ge.f32.partialorder %v1651_v22, 0.0 }
 0x158   : > { %vm1654_vm10 = vcmp.ge.f32.partialorder %v1652_v19, 0.0  ;;  %v1656_v28 = vmul.f32 0.1, %v1652_v19  ;;  %v1657_v9 = vsel %vm1653_vm9, %v1651_v22, %v1655_v18 }
 0x159   : > { %1659 = vst [vmem:[%s407_s28] sm:$0xff] %v1657_v9 }
 0x15a   : > { %v1658_v12 = vsel %vm1654_vm10, %v1652_v19, %v1656_v28 }
 0x15b   : > { %1660 = vst [vmem:[%s407_s28 + $0x8] sm:$0xff] %v1658_v12 }
 0x15c PF: > { %s18_s24 = sadd.s32 1, %s2185_s24  }
 0x15d   : > { %p15_p8 = scmp.ge.s32.totalorder %s18_s24, 4  }
 0x15f   :  { %17 = sbr.rel (!%p15_p8) target bundleno = 1 (0x1), region = 89 }

// kernel: _lambda_.12
= control target key start
LH: loop header
LB: loop body
LE: loop exit
PB: predicated region body
PF: predicated region fallthrough
CT: control target
= control target key end

     0   :  { %s1920_s12 = smov 0   ;;  %s2199_s0 = inlined_call_operand.vmem [shape: f32[2,8,8,64], index: 0, kind: input, shape index: {}]   ;;  %s2200_s1 = inlined_call_operand.vmem [shape: bf16[576,64], index: 1, kind: input, shape index: {}]   ;;  %s2201_s2 = inlined_call_operand.vmem [shape: f32[128,64], index: 2, kind: input, shape index: {}]   ;;  %s2202_s3 = inlined_call_operand.vmem [shape: f32[128,64], index: 3, kind: output, shape index: {}]  }
   0x1 LB: > { %s1926_s13 = sadd.s32 4294967295, %s1897_s12   ;;  %p1476_p0 = scmp.ge.s32.totalorder %s1897_s12, 1  ;;  %s1897_s12 = sphi %s1920_s12, %s13_s12  }
   0x2   : > { %p148_p1 = scmp.lt.s32.totalorder %s1897_s12, 3 }
   0x4   : > { %p149_p2 = pnand %p1476_p0, %p148_p1 }
   0x5   : > { %v1855_v0 = vld [vmem:[%s2200_s1 + $0x20] sm:$0xff] (!%p149_p2)   ;;  %p177_p3 = scmp.lt.s32.totalorder (!%p149_p2), %s1926_s13, 1  ;;  %vm195_vm0 = vcmask (!%p149_p2), 523264   ;;  %v1857_v2 = vld [vmem:[%s2200_s1 + $0x28] sm:$0xff] (!%p149_p2)   ;;  %v1859_v4 = vld [vmem:[%s2200_s1 + $0x30] sm:$0xff] (!%p149_p2)   ;;  %v1899_v5 = vmov (!%p149_p2), 0.0  }
   0x6   : > { %152 = sbr.rel (%p149_p2) target bundleno = 313 (0x139), region = 32  ;;  %v1856_v1 = vld [vmem:[%s2200_s1 + $0x80] sm:$0xff] (!%p149_p2)   ;;  %1630 = vmatprep.subr.bf16.mxu1 (!%p149_p2), %v1855_v0  ;;  %v1858_v3 = vld [vmem:[%s2200_s1 + $0x88] sm:$0xff] (!%p149_p2)   ;;  %196 = vst.msk [vmem:[#allocation2] sm:$0xff] (!%p149_p2), %vm195_vm0, %v1899_v5  ;;  %199 = vst.msk [vmem:[#allocation2 + $0x10] sm:$0xff] (!%p149_p2), %vm195_vm0, %v1899_v5  ;;  %vm197_vm1 = vcmask (!%p149_p2), 517120  }
   0x7   : > { %1694 = vmatprep.subr.bf16.mxu0 (!%p149_p2), %v1856_v1  ;;  %1631 = vmatpush3.bf16.msra.mxu1 (!%p149_p2), %v1855_v0  ;;  %201 = vst.msk [vmem:[#allocation2 + $0x20] sm:$0xff] (!%p149_p2), %vm195_vm0, %v1899_v5  ;;  %203 = vst.msk [vmem:[#allocation2 + $0x30] sm:$0xff] (!%p149_p2), %vm195_vm0, %v1899_v5  ;;  %v1860_v6 = vld [vmem:[%s2200_s1 + $0x90] sm:$0xff] (!%p149_p2)   ;;  %v1861_v7 = vld [vmem:[%s2200_s1 + $0x38] sm:$0xff] (!%p149_p2)   ;;  %s1479_s16 = sshll.u32 (!%p149_p2), %s1926_s13, 3 }
   0x8   : > { %1695 = vmatpush3.bf16.msra.mxu0 (!%p149_p2), %v1856_v1  ;;  %1632 = vmatprep.subr.bf16.mxu1 (!%p149_p2), %v1857_v2  ;;  %205 = vst.msk [vmem:[#allocation2 + $0x40] sm:$0xff] (!%p149_p2), %vm195_vm0, %v1899_v5  ;;  %207 = vst.msk [vmem:[#allocation2 + $0x50] sm:$0xff] (!%p149_p2), %vm195_vm0, %v1899_v5  ;;  %v1862_v11 = vld [vmem:[%s2200_s1 + $0x98] sm:$0xff] (!%p149_p2)   ;;  %v1863_v13 = vld [vmem:[%s2200_s1] sm:$0xff] (!%p149_p2)   ;;  %p183_p4 = scmp.lt.s32.totalorder (!%p149_p2), %s1479_s16, 15 }
   0x9   : > { %209 = vst.msk [vmem:[#allocation2 + $0x60] sm:$0xff] (!%p149_p2), %vm195_vm0, %v1899_v5  ;;  %211 = vst.msk [vmem:[#allocation2 + $0x70] sm:$0xff] (!%p149_p2), %vm195_vm0, %v1899_v5  ;;  %1696 = vmatprep.subr.bf16.mxu0 (!%p149_p2), %v1858_v3  ;;  %v1864_v15 = vld [vmem:[%s2200_s1 + $0xa0] sm:$0xff] (!%p149_p2)   ;;  %v1865_v26 = vld [vmem:[%s2200_s1 + $0x8] sm:$0xff] (!%p149_p2)  }
   0xa   : > { %213 = vst.msk [vmem:[#allocation2 + $0x80] sm:$0xff] (!%p149_p2), %vm195_vm0, %v1899_v5  ;;  %215 = vst.msk [vmem:[#allocation2 + $0x90] sm:$0xff] (!%p149_p2), %vm195_vm0, %v1899_v5  ;;  %v1866_v29 = vld [vmem:[%s2200_s1 + $0xa8] sm:$0xff] (!%p149_p2)   ;;  %v1867_v31 = vld [vmem:[%s2200_s1 + $0x10] sm:$0xff] (!%p149_p2)  }
   0xb   : > { %198 = vst.msk [vmem:[#allocation2 + $0x8] sm:$0x3] (!%p149_p2), %vm197_vm1, %v1899_v5  ;;  %200 = vst.msk [vmem:[#allocation2 + $0x18] sm:$0x3] (!%p149_p2), %vm197_vm1, %v1899_v5  ;;  %1633 = vmatpush3.bf16.msra.mxu1 (!%p149_p2), %v1857_v2  ;;  %v1868_v35 = vld [vmem:[%s2200_s1 + $0xb0] sm:$0xff] (!%p149_p2)   ;;  %v1869_v44 = vld [vmem:[%s2200_s1 + $0x18] sm:$0xff] (!%p149_p2)  }
   0xc   : > { %202 = vst.msk [vmem:[#allocation2 + $0x28] sm:$0x3] (!%p149_p2), %vm197_vm1, %v1899_v5  ;;  %204 = vst.msk [vmem:[#allocation2 + $0x38] sm:$0x3] (!%p149_p2), %vm197_vm1, %v1899_v5  ;;  %1697 = vmatpush3.bf16.msra.mxu0 (!%p149_p2), %v1858_v3  ;;  %1634 = vmatprep.subr.bf16.mxu1 (!%p149_p2), %v1859_v4  ;;  %v1870_v45 = vld [vmem:[%s2200_s1 + $0xb8] sm:$0xff] (!%p149_p2)   ;;  %v1871_v50 = vld [vmem:[%s2200_s1 + $0x40] sm:$0xff] (!%p149_p2)  }
   0xd   : > { %s178_s20 = scalar_select %p177_p3, %s1926_s13, 1  ;;  %206 = vst.msk [vmem:[#allocation2 + $0x48] sm:$0x3] %vm197_vm1, %v1899_v5  ;;  %208 = vst.msk [vmem:[#allocation2 + $0x58] sm:$0x3] %vm197_vm1, %v1899_v5  ;;  %1698 = vmatprep.subr.bf16.mxu0 %v1860_v6  ;;  %v234_v38 = vld [vmem:[#allocation2] sm:$0xff] }
   0xe   : > { %210 = vst.msk [vmem:[#allocation2 + $0x68] sm:$0x3] %vm197_vm1, %v1899_v5  ;;  %212 = vst.msk [vmem:[#allocation2 + $0x78] sm:$0x3] %vm197_vm1, %v1899_v5  ;;  %v1872_v53 = vld [vmem:[%s2200_s1 + $0xc0] sm:$0xff]   ;;  %v1873_v57 = vld [vmem:[%s2200_s1 + $0x48] sm:$0xff]  }
   0xf   : > { %s1557_s25 = sshll.u32 %s178_s20, 6  ;;  %214 = vst.msk [vmem:[#allocation2 + $0x88] sm:$0x3] %vm197_vm1, %v1899_v5  ;;  %216 = vst.msk [vmem:[#allocation2 + $0x98] sm:$0x3] %vm197_vm1, %v1899_v5  ;;  %1635 = vmatpush3.bf16.msra.mxu1 %v1859_v4  ;;  %v1874_v61 = vld [vmem:[%s2200_s1 + $0xc8] sm:$0xff]  }
  0x10   : > { %s1963_s30 = scalar_lea.vmem %s2199_s0, %s1557_s25  ;;  %1699 = vmatpush3.bf16.msra.mxu0 %v1860_v6  ;;  %1636 = vmatprep.subr.bf16.mxu1 %v1861_v7  ;;  %v1875_v2 = vld [vmem:[%s2200_s1 + $0x50] sm:$0xff]   ;;  %s2204_s16 = smov (!%p183_p4, %s1479_s16), 15 }
  0x11   : > { %v217_v8 = vld [vmem:[%s1963_s30] sm:$0xff]  ;;  %v218_v9 = vld [vmem:[%s1963_s30 + $0x8] sm:$0xff]  ;;  %v219_v10 = vld [vmem:[%s1963_s30 + $0x10] sm:$0xff]  ;;  %1700 = vmatprep.subr.bf16.mxu0 %v1862_v11  ;;  %s1480_s17 = sshll.u32 %s2204_s16, 3 }
  0x12   : > { %226 = vst.msk [vmem:[#allocation2 + $0x11] sm:$0xff] %vm195_vm0, %v217_v8  ;;  %227 = vst.msk [vmem:[#allocation2 + $0x21] sm:$0xff] %vm195_vm0, %v218_v9  ;;  %v220_v12 = vld [vmem:[%s1963_s30 + $0x18] sm:$0xff]  ;;  %v254_v14 = vld [vmem:[#allocation2 + $0x1] sm:$0xff]  ;;  %s186_s19 = scalar_lea.vmem %s2201_s2, %s1480_s17  ;;  %s2178_s22 = scalar_lea.vmem %s2202_s3, %s1480_s17 }
  0x13   : > { %228 = vst.msk [vmem:[#allocation2 + $0x31] sm:$0xff] %vm195_vm0, %v219_v10  ;;  %229 = vst.msk [vmem:[#allocation2 + $0x41] sm:$0xff] %vm195_vm0, %v220_v12  ;;  %v221_v16 = vld [vmem:[%s1963_s30 + $0x20] sm:$0xff]  ;;  %v222_v17 = vld [vmem:[%s1963_s30 + $0x28] sm:$0xff]  ;;  %1637 = vmatpush3.bf16.msra.mxu1 %v1861_v7 }
  0x14   : > { %230 = vst.msk [vmem:[#allocation2 + $0x51] sm:$0xff] %vm195_vm0, %v221_v16  ;;  %v223_v18 = vld [vmem:[%s1963_s30 + $0x30] sm:$0xff]  ;;  %231 = vst.msk [vmem:[#allocation2 + $0x61] sm:$0xff] %vm195_vm0, %v222_v17  ;;  %v224_v19 = vld [vmem:[%s1963_s30 + $0x38] sm:$0xff]  ;;  %1701 = vmatpush3.bf16.msra.mxu0 %v1862_v11  ;;  %1646 = vmatprep.subr.bf16.mxu1 %v1863_v13 }
  0x15   : > { %232 = vst.msk [vmem:[#allocation2 + $0x71] sm:$0xff] %vm195_vm0, %v223_v18  ;;  %233 = vst.msk [vmem:[#allocation2 + $0x81] sm:$0xff] %vm195_vm0, %v224_v19  ;;  %1710 = vmatprep.subr.bf16.mxu0 %v1864_v15  ;;  %v1876_v5 = vld [vmem:[%s2200_s1 + $0xd0] sm:$0xff]   ;;  %v476_v7 = vld [vmem:[#allocation2 + $0x2] sm:$0xff] }
  0x16   : > { %v1877_v9 = vld [vmem:[%s2200_s1 + $0x58] sm:$0xff]   ;;  %v1879_v12 = vld [vmem:[%s2200_s1 + $0x60] sm:$0xff]   ;;  %v1882_v16 = vld [vmem:[%s2200_s1 + $0xe8] sm:$0xff]  }
  0x17   : > { %v1878_v10 = vld [vmem:[%s2200_s1 + $0xd8] sm:$0xff]   ;;  %v1883_v18 = vld [vmem:[%s2200_s1 + $0x70] sm:$0xff]  }
  0x19   : > { %v255_v20 = vld [vmem:[#allocation2 + $0x11] sm:$0xff]  ;;  %v735_v21 = vld [vmem:[#allocation2 + $0x21] sm:$0xff] }
  0x1a   : > { %v257_v22 = vld [vmem:[#allocation2 + $0x31] sm:$0xff]  ;;  %v262_v23 = vpack.c.bf16 %v255_v20, %v254_v14  ;;  %v742_v24 = vpack.c.bf16 %v735_v21, %v255_v20  ;;  %v737_v27 = vld [vmem:[#allocation2 + $0x41] sm:$0xff] }
  0x1b   : > { %v1993_v25 = vpack.c.bf16 %v257_v22, %v735_v21  ;;  %v743_v28 = vpack.c.bf16 %v737_v27, %v257_v22  ;;  %v259_v30 = vld [vmem:[#allocation2 + $0x51] sm:$0xff]  ;;  %v739_v33 = vld [vmem:[#allocation2 + $0x61] sm:$0xff] }
  0x1c   : > { %1638 = vmatprep.mubr.msk.bf16.mxu1 %vm195_vm0, %v262_v23  ;;  %1702 = vmatprep.mubr.msk.bf16.mxu0 %vm195_vm0, %v742_v24  ;;  %v2009_v32 = vpack.c.bf16 %v259_v30, %v737_v27  ;;  %v261_v34 = vld [vmem:[#allocation2 + $0x71] sm:$0xff]  ;;  %v744_v36 = vpack.c.bf16 %v739_v33, %v259_v30  ;;  %v2014_v37 = vld [vmem:[#allocation2 + $0x81] sm:$0xff] }
  0x1d   : > { %1639 = vmatmul.mubr.msk.bf16.vlgmr.msra.gmra.mrb[0].mxu1 %vm195_vm0, %v1993_v25  ;;  %1703 = vmatmul.mubr.msk.bf16.vlgmr.msra.gmra.mrb[0].mxu0 %vm195_vm0, %v743_v28  ;;  %v2018_v39 = vpack.c.bf16 %v261_v34, %v739_v33  ;;  %v2020_v40 = vld [vmem:[#allocation2 + $0x10] sm:$0xff]  ;;  %v745_v42 = vpack.c.bf16 %v2014_v37, %v261_v34  ;;  %v2026_v43 = vld [vmem:[#allocation2 + $0x22] sm:$0xff]  ;;  %v1885_v24 = vld [vmem:[%s2200_s1 + $0x78] sm:$0xff]  }
  0x1e   : > { %1647 = vmatpush3.bf16.msra.mxu1 %v1863_v13  ;;  %1711 = vmatpush3.bf16.msra.mxu0 %v1864_v15  ;;  %v2022_v41 = vld [vmem:[#allocation2 + $0x12] sm:$0xff]  ;;  %v242_v46 = vpack.c.bf16 %v2020_v40, %v234_v38  ;;  %v2039_v48 = vld [vmem:[#allocation2 + $0x20] sm:$0xff]  ;;  %v1881_v15 = vld [vmem:[%s2200_s1 + $0x68] sm:$0xff]  }
  0x1f   : > { %1648 = vmatprep.subr.bf16.mxu1 %v1865_v26  ;;  %1712 = vmatprep.subr.bf16.mxu0 %v1866_v29  ;;  %v871_v47 = vpack.c.bf16 %v2026_v43, %v2022_v41  ;;  %v2042_v49 = vld [vmem:[#allocation2 + $0x30] sm:$0xff]  ;;  %v866_v52 = vld [vmem:[#allocation2 + $0x42] sm:$0xff]  ;;  %v484_v11 = vpack.c.bf16 %v2022_v41, %v476_v7  ;;  %v613_v27 = vpack.c.bf16 %v2039_v48, %v2020_v40 }
  0x20   : > { %1642 = vmatprep.mubr.msk.bf16.mxu1 %vm195_vm0, %v2009_v32  ;;  %1706 = vmatprep.mubr.msk.bf16.mxu0 %vm195_vm0, %v744_v36  ;;  %v865_v51 = vld [vmem:[#allocation2 + $0x32] sm:$0xff]  ;;  %v2051_v54 = vld [vmem:[#allocation2 + $0x40] sm:$0xff]  ;;  %v243_v56 = vpack.c.bf16 %v2042_v49, %v2039_v48  ;;  %v1888_v30 = vld [vmem:[%s2200_s1 + $0x108] sm:$0xff]  }
  0x21   : > { %v2053_v55 = vld [vmem:[#allocation2 + $0x50] sm:$0xff]  ;;  %v872_v59 = vpack.c.bf16 %v866_v52, %v865_v51  ;;  %v868_v60 = vld [vmem:[#allocation2 + $0x62] sm:$0xff]  ;;  %v2103_v14 = vpack.c.bf16 %v865_v51, %v2026_v43 }
  0x22   : > { %1649 = vmatpush3.bf16.msra.mxu1 %v1865_v26  ;;  %1713 = vmatpush3.bf16.msra.mxu0 %v1866_v29  ;;  %v867_v58 = vld [vmem:[#allocation2 + $0x52] sm:$0xff]  ;;  %v244_v62 = vpack.c.bf16 %v2053_v55, %v2051_v54  ;;  %v2066_v63 = vld [vmem:[#allocation2 + $0x60] sm:$0xff]  ;;  %v614_v29 = vpack.c.bf16 %v2051_v54, %v2042_v49 }
  0x23   : > { %1650 = vmatprep.subr.bf16.mxu1 %v1867_v31  ;;  %1714 = vmatprep.subr.bf16.mxu0 %v1868_v35  ;;  %v2068_v0 = vld [vmem:[#allocation2 + $0x70] sm:$0xff]  ;;  %v873_v1 = vpack.c.bf16 %v868_v60, %v867_v58  ;;  %v2075_v4 = vld [vmem:[#allocation2 + $0x82] sm:$0xff]  ;;  %v2111_v17 = vpack.c.bf16 %v867_v58, %v866_v52  ;;  %v1886_v26 = vld [vmem:[%s2200_s1 + $0xf8] sm:$0xff]  }
  0x24   : > { %v869_v3 = vld [vmem:[#allocation2 + $0x72] sm:$0xff]  ;;  %v245_v6 = vpack.c.bf16 %v2068_v0, %v2066_v63  ;;  %v1880_v13 = vld [vmem:[%s2200_s1 + $0xe0] sm:$0xff]  }
  0x25   : > { %1643 = vmatmul.mubr.msk.bf16.gmra.mrb[4].mxu1 %vm195_vm0, %v2018_v39  ;;  %1707 = vmatmul.mubr.msk.bf16.gmra.mrb[4].mxu0 %vm195_vm0, %v745_v42  ;;  %v874_v8 = vpack.c.bf16 %v2075_v4, %v869_v3  ;;  %v999_v19 = vld [vmem:[#allocation2 + $0x80] sm:$0xff]  ;;  %v1000_v20 = vld [vmem:[#allocation2 + $0x90] sm:$0xff]  ;;  %v487_v22 = vpack.c.bf16 %v869_v3, %v868_v60 }
  0x26   : > { %1651 = vmatpush3.bf16.msra.mxu1 %v1867_v31  ;;  %1715 = vmatpush3.bf16.msra.mxu0 %v1868_v35  ;;  %v1884_v21 = vld [vmem:[%s2200_s1 + $0xf0] sm:$0xff]   ;;  %v1004_v23 = vpack.c.bf16 %v1000_v20, %v999_v19  ;;  %v1887_v28 = vld [vmem:[%s2200_s1 + $0x100] sm:$0xff]   ;;  %v615_v31 = vpack.c.bf16 %v2066_v63, %v2053_v55  ;;  %v616_v34 = vpack.c.bf16 %v999_v19, %v2068_v0 }
  0x27   : > { %1652 = vmatprep.subr.bf16.mxu1 %v1869_v44  ;;  %1716 = vmatprep.subr.bf16.mxu0 %v1870_v45  ;;  %v1889_v33 = vld [vmem:[%s2200_s1 + $0x110] sm:$0xff]   ;;  %v1384_v60 = vld [vmem:[%s186_s19 + $0x20] sm:$0xff] }
  0x28   : > { %1654 = vmatprep.mubr.msk.bf16.mxu1 %vm195_vm0, %v242_v46  ;;  %1718 = vmatprep.mubr.msk.bf16.mxu0 %vm195_vm0, %v871_v47  ;;  %v1258_v36 = vld [vmem:[#allocation2 + $0x92] sm:$0xff]  ;;  %v1380_v63 = vld [vmem:[%s186_s19] sm:$0xff] }
  0x29   : > { %v1386_v55 = vld [vmem:[%s186_s19 + $0x30] sm:$0xff] }
  0x2a   : > { %1653 = vmatpush3.bf16.msra.mxu1 %v1869_v44  ;;  %1717 = vmatpush3.bf16.msra.mxu0 %v1870_v45 }
  0x2b   : > { %1662 = vmatprep.subr.bf16.mxu1 %v1871_v50  ;;  %1726 = vmatprep.subr.bf16.mxu0 %v1872_v53 }
  0x2d   : > { %1655 = vmatmul.mubr.msk.bf16.vlgmr.msra.gmra.mrb[0].mxu1 %vm195_vm0, %v243_v56  ;;  %1719 = vmatmul.mubr.msk.bf16.vlgmr.msra.gmra.mrb[0].mxu0 %vm195_vm0, %v872_v59 }
  0x2e   : > { %1663 = vmatpush3.bf16.msra.mxu1 %v1871_v50  ;;  %1727 = vmatpush3.bf16.msra.mxu0 %v1872_v53 }
  0x2f   : > { %1664 = vmatprep.subr.bf16.mxu1 %v1873_v57  ;;  %1728 = vmatprep.subr.bf16.mxu0 %v1874_v61 }
  0x30   : > { %1658 = vmatprep.mubr.msk.bf16.mxu1 %vm195_vm0, %v244_v62  ;;  %1722 = vmatprep.mubr.msk.bf16.mxu0 %vm195_vm0, %v873_v1 }
  0x32   : > { %1665 = vmatpush3.bf16.msra.mxu1 %v1873_v57  ;;  %1729 = vmatpush3.bf16.msra.mxu0 %v1874_v61  ;;  %v1382_v57 = vld [vmem:[%s186_s19 + $0x10] sm:$0xff] }
  0x33   : > { %1666 = vmatprep.subr.bf16.mxu1 %v1875_v2  ;;  %1730 = vmatprep.subr.bf16.mxu0 %v1876_v5 }
  0x35   : > { %1659 = vmatmul.mubr.msk.bf16.gmra.mrb[4].mxu1 %vm195_vm0, %v245_v6  ;;  %1723 = vmatmul.mubr.msk.bf16.gmra.mrb[4].mxu0 %vm195_vm0, %v874_v8 }
  0x36   : > { %1667 = vmatpush3.bf16.msra.mxu1 %v1875_v2  ;;  %1731 = vmatpush3.bf16.msra.mxu0 %v1876_v5  ;;  %v1387_v2 = vld [vmem:[%s186_s19 + $0x38] sm:$0xff] }
  0x37   : > { %1668 = vmatprep.subr.bf16.mxu1 %v1877_v9  ;;  %1732 = vmatprep.subr.bf16.mxu0 %v1878_v10 }
  0x38   : > { %1670 = vmatprep.mubr.msk.bf16.mxu1 %vm195_vm0, %v484_v11  ;;  %1734 = vmatprep.mubr.msk.bf16.mxu0 %vm195_vm0, %v243_v56 }
  0x3a   : > { %1669 = vmatpush3.bf16.msra.mxu1 %v1877_v9  ;;  %1733 = vmatpush3.bf16.msra.mxu0 %v1878_v10  ;;  %v1385_v9 = vld [vmem:[%s186_s19 + $0x28] sm:$0xff] }
  0x3b   : > { %1678 = vmatprep.subr.bf16.mxu1 %v1879_v12  ;;  %1742 = vmatprep.subr.bf16.mxu0 %v1880_v13 }
  0x3d   : > { %1671 = vmatmul.mubr.msk.bf16.vlgmr.msra.gmra.mrb[0].mxu1 %vm195_vm0, %v2103_v14  ;;  %1735 = vmatmul.mubr.msk.bf16.vlgmr.msra.gmra.mrb[0].mxu0 %vm195_vm0, %v244_v62 }
  0x3e   : > { %1679 = vmatpush3.bf16.msra.mxu1 %v1879_v12  ;;  %1743 = vmatpush3.bf16.msra.mxu0 %v1880_v13 }
  0x3f   : > { %1680 = vmatprep.subr.bf16.mxu1 %v1881_v15  ;;  %1744 = vmatprep.subr.bf16.mxu0 %v1882_v16 }
  0x40   : > { %1674 = vmatprep.mubr.msk.bf16.mxu1 %vm195_vm0, %v2111_v17  ;;  %1738 = vmatprep.mubr.msk.bf16.mxu0 %vm195_vm0, %v245_v6  ;;  %v1383_v6 = vld [vmem:[%s186_s19 + $0x18] sm:$0xff] }
  0x42   : > { %1681 = vmatpush3.bf16.msra.mxu1 %v1881_v15  ;;  %1745 = vmatpush3.bf16.msra.mxu0 %v1882_v16 }
  0x43   : > { %1682 = vmatprep.subr.bf16.mxu1 %v1883_v18  ;;  %1746 = vmatprep.subr.bf16.mxu0 %v1884_v21 }
  0x45   : > { %1675 = vmatmul.mubr.msk.bf16.gmra.mrb[4].mxu1 %vm195_vm0, %v487_v22  ;;  %1739 = vmatmul.mubr.msk.bf16.gmra.mrb[4].mxu0 %vm195_vm0, %v1004_v23 }
  0x46   : > { %1683 = vmatpush3.bf16.msra.mxu1 %v1883_v18  ;;  %1747 = vmatpush3.bf16.msra.mxu0 %v1884_v21 }
  0x47   : > { %1684 = vmatprep.subr.bf16.mxu1 %v1885_v24  ;;  %1748 = vmatprep.subr.bf16.mxu0 %v1886_v26 }
  0x48   : > { %1686 = vmatprep.mubr.msk.bf16.mxu1 %vm195_vm0, %v613_v27  ;;  %1750 = vmatprep.mubr.msk.bf16.mxu0 %vm195_vm0, %v1993_v25  ;;  %v1129_v25 = vld [vmem:[#allocation2 + $0x91] sm:$0xff] }
  0x49   : > { %v1133_v35 = vpack.c.bf16 %v1129_v25, %v2014_v37  ;;  %v1262_v37 = vpack.c.bf16 %v1258_v36, %v2075_v4 }
  0x4a   : > { %1685 = vmatpush3.bf16.msra.mxu1 %v1885_v24  ;;  %1749 = vmatpush3.bf16.msra.mxu0 %v1886_v26 }
  0x4b   : > { %1774 = vmatprep.subr.bf16.mxu1 %v1887_v28  ;;  %1758 = vmatprep.subr.bf16.mxu0 %v1887_v28 }
  0x4d   : > { %1687 = vmatmul.mubr.msk.bf16.vlgmr.msra.gmra.mrb[0].mxu1 %vm195_vm0, %v614_v29  ;;  %1751 = vmatmul.mubr.msk.bf16.vlgmr.msra.gmra.mrb[0].mxu0 %vm195_vm0, %v2009_v32  ;;  %v1890_v32 = vld [vmem:[%s2200_s1 + $0x118] sm:$0xff]  }
  0x4e   : > { %1778 = vmatpush3.bf16.msra.mxu1 %v1887_v28  ;;  %1759 = vmatpush3.bf16.msra.mxu0 %v1887_v28 }
  0x4f   : > { %1775 = vmatprep.subr.bf16.mxu1 %v1888_v30  ;;  %1760 = vmatprep.subr.bf16.mxu0 %v1888_v30 }
  0x50   : > { %1690 = vmatprep.mubr.msk.bf16.mxu1 %vm195_vm0, %v615_v31  ;;  %1754 = vmatprep.mubr.msk.bf16.mxu0 %vm195_vm0, %v2018_v39 }
  0x52   : > { %1779 = vmatpush3.bf16.msra.mxu1 %v1888_v30  ;;  %1761 = vmatpush3.bf16.msra.mxu0 %v1888_v30 }
  0x53   : > { %1776 = vmatprep.subr.bf16.mxu1 %v1889_v33  ;;  %1762 = vmatprep.subr.bf16.mxu0 %v1889_v33 }
  0x55   : > { %1691 = vmatmul.mubr.msk.bf16.gmra.mrb[4].mxu1 %vm195_vm0, %v616_v34  ;;  %1755 = vmatmul.mubr.msk.bf16.gmra.mrb[4].mxu0 %vm195_vm0, %v1133_v35 }
  0x56   : > { %1780 = vmatpush3.bf16.msra.mxu1 %v1889_v33  ;;  %1763 = vmatpush3.bf16.msra.mxu0 %v1889_v33 }
  0x57   : > { %1777 = vmatprep.subr.bf16.mxu1 %v1890_v32  ;;  %1764 = vmatprep.subr.bf16.mxu0 %v1890_v32 }
  0x58   : > { %1766 = vmatprep.mubr.msk.bf16.mxu0 %vm195_vm0, %v2103_v14  ;;  %1770 = vmatprep.mubr.msk.bf16.mxu1 %vm195_vm0, %v487_v22  ;;  %v1381_v14 = vld [vmem:[%s186_s19 + $0x8] sm:$0xff] }
  0x5a   : > { %1781 = vmatpush3.bf16.msra.mxu1 %v1890_v32  ;;  %1765 = vmatpush3.bf16.msra.mxu0 %v1890_v32 }
  0x5d   : > { %1771 = vmatmul.mubr.msk.bf16.vlgmr.msra.gmra.mrb[8].mxu1 %vm195_vm0, %v1262_v37  ;;  %1767 = vmatmul.mubr.msk.bf16.vlgmr.msra.gmra.mrb[0].mxu0 %vm195_vm0, %v2111_v17 }
 0x120   : > { %v1688_v38 = vpop.f32.mrb[0].mxu1 }
 0x121   : > { %v695_v39 = vpop.f32.mrb[1].mxu1 }
 0x122   : > { %v1689_v40 = vpop.f32.mrb[2].mxu1 }
 0x123   : > { %v698_v41 = vpop.f32.mrb[3].mxu1 }
 0x128   : > { %v1692_v42 = vpop.f32.mrb[4].mxu1  ;;  %v1756_v43 = vpop.f32.mrb[4].mxu0 }
 0x129   : > { %v711_v44 = vpop.f32.mrb[5].mxu1  ;;  %v1786_v45 = vadd.f32 %v1756_v43, %v1692_v42  ;;  %v1228_v46 = vpop.f32.mrb[5].mxu0 }
 0x12a   : > { %v1693_v47 = vpop.f32.mrb[6].mxu1  ;;  %v1788_v48 = vadd.f32 %v1228_v46, %v711_v44  ;;  %v1757_v49 = vpop.f32.mrb[6].mxu0 }
 0x12b   : > { %v714_v50 = vpop.f32.mrb[7].mxu1  ;;  %v1790_v51 = vadd.f32 %v1757_v49, %v1693_v47  ;;  %v1231_v52 = vpop.f32.mrb[7].mxu0 }
 0x12c   : > { %v1792_v53 = vadd.f32 %v1231_v52, %v714_v50 }
 0x130   : > { %v1772_v54 = vpop.f32.mrb[8].mxu1  ;;  %v1768_v56 = vpop.f32.mrb[0].mxu0 }
 0x131   : > { %v1787_v58 = vadd.f32 %v1786_v45, %v1772_v54  ;;  %v1357_v59 = vpop.f32.mrb[9].mxu1  ;;  %v1782_v61 = vadd.f32 %v1768_v56, %v1688_v38  ;;  %v1341_v62 = vpop.f32.mrb[1].mxu0 }
 0x132   : > { %v1789_v0 = vadd.f32 %v1788_v48, %v1357_v59  ;;  %v1773_v1 = vpop.f32.mrb[10].mxu1  ;;  %v1783_v4 = vadd.f32 %v1341_v62, %v695_v39  ;;  %v1769_v5 = vpop.f32.mrb[2].mxu0 }
 0x133   : > { %v1394_v3 = vadd.f32 %v1787_v58, %v1386_v55  ;;  %v1791_v7 = vadd.f32 %v1790_v51, %v1773_v1  ;;  %v1360_v8 = vpop.f32.mrb[11].mxu1  ;;  %v1390_v10 = vadd.f32 %v1782_v61, %v1382_v57  ;;  %v1784_v12 = vadd.f32 %v1769_v5, %v1689_v40  ;;  %v1344_v13 = vpop.f32.mrb[3].mxu0 }
 0x134   : > { %v1392_v11 = vadd.f32 %v1789_v0, %v1384_v60  ;;  %v1793_v15 = vadd.f32 %v1792_v53, %v1360_v8  ;;  %v1388_v16 = vadd.f32 %v1783_v4, %v1380_v63  ;;  %v1785_v18 = vadd.f32 %v1344_v13, %v698_v41 }
 0x135   : > { %1402 = vst.msk [vmem:[%s2178_s22 + $0x30] sm:$0xff] %vm195_vm0, %v1394_v3  ;;  %v1395_v17 = vadd.f32 %v1791_v7, %v1387_v2  ;;  %1398 = vst.msk [vmem:[%s2178_s22 + $0x10] sm:$0xff] %vm195_vm0, %v1390_v10  ;;  %v1391_v19 = vadd.f32 %v1784_v12, %v1383_v6 }
 0x136   : > { %1400 = vst.msk [vmem:[%s2178_s22 + $0x20] sm:$0xff] %vm195_vm0, %v1392_v11  ;;  %v1393_v20 = vadd.f32 %v1793_v15, %v1385_v9  ;;  %1396 = vst.msk [vmem:[%s2178_s22] sm:$0xff] %vm195_vm0, %v1388_v16  ;;  %v1389_v21 = vadd.f32 %v1785_v18, %v1381_v14 }
 0x137   : > { %1403 = vst.msk [vmem:[%s2178_s22 + $0x38] sm:$0xff] %vm195_vm0, %v1395_v17  ;;  %1399 = vst.msk [vmem:[%s2178_s22 + $0x18] sm:$0xff] %vm195_vm0, %v1391_v19 }
 0x138   : > { %1401 = vst.msk [vmem:[%s2178_s22 + $0x28] sm:$0xff] %vm195_vm0, %v1393_v20  ;;  %1397 = vst.msk [vmem:[%s2178_s22 + $0x8] sm:$0xff] %vm195_vm0, %v1389_v21 }
 0x139 PF: > { %s13_s12 = sadd.s32 1, %s1897_s12  }
 0x13a   : > { %p10_p5 = scmp.ge.s32.totalorder %s13_s12, 4  }
 0x13c   :  { %12 = sbr.rel (!%p10_p5) target bundleno = 1 (0x1), region = 67 }

// kernel: _lambda_.14
= control target key start
LH: loop header
LB: loop body
LE: loop exit
PB: predicated region body
PF: predicated region fallthrough
CT: control target
= control target key end

     0   :  { %s1838_s12 = smov 0   ;;  %s2181_s0 = inlined_call_operand.vmem [shape: f32[2,4,4,128], index: 0, kind: input, shape index: {}]   ;;  %s2182_s1 = inlined_call_operand.vmem [shape: bf16[1152,128], index: 1, kind: input, shape index: {}]   ;;  %s2183_s2 = inlined_call_operand.vmem [shape: f32[32,128], index: 2, kind: input, shape index: {}]   ;;  %s2184_s3 = inlined_call_operand.vmem [shape: f32[32,128], index: 3, kind: output, shape index: {}]  }
   0x1 LB: > { %s1844_s13 = sadd.s32 4294967295, %s1814_s12   ;;  %p1365_p0 = scmp.ge.s32.totalorder %s1814_s12, 1  ;;  %s1814_s12 = sphi %s1838_s12, %s13_s12  }
   0x2   : > { %p148_p1 = scmp.lt.s32.totalorder %s1814_s12, 3 }
   0x4   : > { %p149_p2 = pnand %p1365_p0, %p148_p1 }
   0x5   : > { %v1718_v0 = vld [vmem:[%s2182_s1 + $0x40] sm:$0xff] (!%p149_p2)   ;;  %v1816_v1 = vmov (!%p149_p2), 0.0   ;;  %v1720_v3 = vld [vmem:[%s2182_s1 + $0x48] sm:$0xff] (!%p149_p2)   ;;  %vm1817_vm0 = vmmov (!%p149_p2), 0   ;;  %p177_p3 = scmp.lt.s32.totalorder (!%p149_p2), %s1844_s13, 1  ;;  %v1722_v5 = vld [vmem:[%s2182_s1 + $0x50] sm:$0xff] (!%p149_p2)  }
   0x6   : > { %152 = sbr.rel (%p149_p2) target bundleno = 385 (0x181), region = 32  ;;  %1528 = vmatprep.subr.bf16.mxu0 (!%p149_p2), %v1816_v1  ;;  %195 = vst [vmem:[#allocation2] sm:$0x3f] (!%p149_p2), %v1816_v1  ;;  %196 = vst [vmem:[#allocation2 + $0x8] sm:$0x3f] (!%p149_p2), %v1816_v1  ;;  %1548 = vmatprep.subr.bf16.mxu1 (!%p149_p2), %v1816_v1  ;;  %v1719_v2 = vld [vmem:[%s2182_s1] sm:$0xff] (!%p149_p2)  }
   0x7   : > { %197 = vst [vmem:[#allocation2 + $0x10] sm:$0x3f] (!%p149_p2), %v1816_v1  ;;  %198 = vst [vmem:[#allocation2 + $0x18] sm:$0x3f] (!%p149_p2), %v1816_v1  ;;  %1529 = vmatpush3.bf16.msra.mxu0 (!%p149_p2), %v1718_v0  ;;  %1544 = vmatprep.mubr.msk.bf16.mxu0 (!%p149_p2), %vm1817_vm0, %v1816_v1  ;;  %v1721_v4 = vld [vmem:[%s2182_s1 + $0x8] sm:$0xff] (!%p149_p2)   ;;  %v1723_v6 = vld [vmem:[%s2182_s1 + $0x10] sm:$0xff] (!%p149_p2)  }
   0x8   : > { %199 = vst [vmem:[#allocation2 + $0x20] sm:$0x3f] (!%p149_p2), %v1816_v1  ;;  %200 = vst [vmem:[#allocation2 + $0x28] sm:$0x3f] (!%p149_p2), %v1816_v1  ;;  %1549 = vmatpush3.bf16.msra.mxu1 (!%p149_p2), %v1719_v2  ;;  %1530 = vmatprep.subr.bf16.mxu0 (!%p149_p2), %v1816_v1  ;;  %v1724_v7 = vld [vmem:[%s2182_s1 + $0x58] sm:$0xff] (!%p149_p2)   ;;  %v1726_v9 = vld [vmem:[%s2182_s1 + $0x60] sm:$0xff] (!%p149_p2)  }
   0x9   : > { %1550 = vmatprep.subr.bf16.mxu1 (!%p149_p2), %v1816_v1  ;;  %1564 = vmatprep.mubr.msk.bf16.mxu1 (!%p149_p2), %vm1817_vm0, %v1816_v1  ;;  %v1725_v8 = vld [vmem:[%s2182_s1 + $0x18] sm:$0xff] (!%p149_p2)   ;;  %v1727_v10 = vld [vmem:[%s2182_s1 + $0x20] sm:$0xff] (!%p149_p2)   ;;  %v1728_v14 = vld [vmem:[%s2182_s1 + $0x68] sm:$0xff] (!%p149_p2)   ;;  %s1368_s14 = sshll.u32 (!%p149_p2), %s1844_s13, 1 }
   0xa   : > { %v1729_v15 = vld [vmem:[%s2182_s1 + $0x28] sm:$0xff] (!%p149_p2)   ;;  %v1730_v16 = vld [vmem:[%s2182_s1 + $0x70] sm:$0xff] (!%p149_p2)   ;;  %v1732_v18 = vld [vmem:[%s2182_s1 + $0x78] sm:$0xff] (!%p149_p2)   ;;  %p183_p4 = scmp.lt.s32.totalorder (!%p149_p2), %s1368_s14, 3 }
   0xb   : > { %1531 = vmatpush3.bf16.msra.mxu0 (!%p149_p2), %v1720_v3  ;;  %v1731_v17 = vld [vmem:[%s2182_s1 + $0x30] sm:$0xff] (!%p149_p2)   ;;  %v1733_v22 = vld [vmem:[%s2182_s1 + $0x38] sm:$0xff] (!%p149_p2)   ;;  %v1738_v26 = vld [vmem:[%s2182_s1 + $0x80] sm:$0xff] (!%p149_p2)  }
   0xc   : > { %1551 = vmatpush3.bf16.msra.mxu1 (!%p149_p2), %v1721_v4  ;;  %1532 = vmatprep.subr.bf16.mxu0 (!%p149_p2), %v1816_v1  ;;  %v1739_v27 = vld [vmem:[%s2182_s1 + $0xc0] sm:$0xff] (!%p149_p2)   ;;  %v1740_v28 = vld [vmem:[%s2182_s1 + $0x88] sm:$0xff] (!%p149_p2)   ;;  %v1742_v30 = vld [vmem:[%s2182_s1 + $0x90] sm:$0xff] (!%p149_p2)  }
   0xd   : > { %s178_s24 = scalar_select %p177_p3, %s1844_s13, 1  ;;  %1552 = vmatprep.subr.bf16.mxu1 %v1816_v1  ;;  %v1741_v29 = vld [vmem:[%s2182_s1 + $0xc8] sm:$0xff]   ;;  %v1743_v31 = vld [vmem:[%s2182_s1 + $0xd0] sm:$0xff]   ;;  %v1744_v33 = vld [vmem:[%s2182_s1 + $0x98] sm:$0xff]  }
   0xe   : > { %v1745_v34 = vld [vmem:[%s2182_s1 + $0xd8] sm:$0xff]   ;;  %v1746_v35 = vld [vmem:[%s2182_s1 + $0xa0] sm:$0xff]   ;;  %v1748_v37 = vld [vmem:[%s2182_s1 + $0xa8] sm:$0xff]   ;;  %s2186_s14 = smov (!%p183_p4, %s1368_s14), 3 }
   0xf   : > { %1533 = vmatpush3.bf16.msra.mxu0 %v1722_v5  ;;  %s1446_s29 = sshll.u32 %s178_s24, 4  ;;  %v1747_v36 = vld [vmem:[%s2182_s1 + $0xe0] sm:$0xff]   ;;  %v1749_v38 = vld [vmem:[%s2182_s1 + $0xe8] sm:$0xff]   ;;  %v1750_v39 = vld [vmem:[%s2182_s1 + $0xb0] sm:$0xff]   ;;  %s1369_s15 = sshll.u32 %s2186_s14, 3 }
  0x10   : > { %1553 = vmatpush3.bf16.msra.mxu1 %v1723_v6  ;;  %1534 = vmatprep.subr.bf16.mxu0 %v1816_v1  ;;  %s1895_s7 = scalar_lea.vmem %s2181_s0, %s1446_s29  ;;  %v1751_v40 = vld [vmem:[%s2182_s1 + $0xf0] sm:$0xff]   ;;  %v1752_v42 = vld [vmem:[%s2182_s1 + $0xb8] sm:$0xff]   ;;  %v1756_v48 = vld [vmem:[%s2182_s1 + $0x100] sm:$0xff]   ;;  %s186_s18 = scalar_lea.vmem %s2183_s2, %s1369_s15 }
  0x11   : > { %1554 = vmatprep.subr.bf16.mxu1 %v1816_v1  ;;  %v201_v11 = vld [vmem:[%s1895_s7] sm:$0xf]  ;;  %v202_v12 = vld [vmem:[%s1895_s7 + $0x4] sm:$0xf]  ;;  %v203_v13 = vld [vmem:[%s1895_s7 + $0x8] sm:$0xf]  ;;  %s192_s20 = scalar_lea.vmem %s2184_s3, %s1369_s15 }
  0x12   : > { %206 = vst [vmem:[#allocation2 + $0x9] sm:$0xf] %v201_v11  ;;  %207 = vst [vmem:[#allocation2 + $0x11] sm:$0xf] %v202_v12  ;;  %v204_v32 = vld [vmem:[%s1895_s7 + $0xc] sm:$0xf] }
  0x13   : > { %1535 = vmatpush3.bf16.msra.mxu0 %v1724_v7  ;;  %208 = vst [vmem:[#allocation2 + $0x19] sm:$0xf] %v203_v13  ;;  %209 = vst [vmem:[#allocation2 + $0x21] sm:$0xf] %v204_v32  ;;  %v1753_v46 = vld [vmem:[%s2182_s1 + $0xf8] sm:$0xff]   ;;  %v1759_v50 = vld [vmem:[%s2182_s1 + $0x140] sm:$0xff]  }
  0x14   : > { %1555 = vmatpush3.bf16.msra.mxu1 %v1725_v8  ;;  %1536 = vmatprep.subr.bf16.mxu0 %v1816_v1  ;;  %v1760_v51 = vld [vmem:[%s2182_s1 + $0x108] sm:$0xff]   ;;  %v1762_v53 = vld [vmem:[%s2182_s1 + $0x110] sm:$0xff]   ;;  %v1764_v55 = vld [vmem:[%s2182_s1 + $0x118] sm:$0xff]  }
  0x15   : > { %1556 = vmatprep.subr.bf16.mxu1 %v1816_v1  ;;  %v1761_v52 = vld [vmem:[%s2182_s1 + $0x148] sm:$0xff]   ;;  %v1763_v54 = vld [vmem:[%s2182_s1 + $0x150] sm:$0xff]   ;;  %v1765_v56 = vld [vmem:[%s2182_s1 + $0x158] sm:$0xff]  }
  0x16   : > { %v1766_v57 = vld [vmem:[%s2182_s1 + $0x120] sm:$0xff]   ;;  %v1768_v59 = vld [vmem:[%s2182_s1 + $0x128] sm:$0xff]   ;;  %v1770_v61 = vld [vmem:[%s2182_s1 + $0x130] sm:$0xff]  }
  0x17   : > { %1537 = vmatpush3.bf16.msra.mxu0 %v1726_v9  ;;  %v1767_v58 = vld [vmem:[%s2182_s1 + $0x160] sm:$0xff]   ;;  %v1769_v60 = vld [vmem:[%s2182_s1 + $0x168] sm:$0xff]   ;;  %v1771_v62 = vld [vmem:[%s2182_s1 + $0x170] sm:$0xff]  }
  0x18   : > { %1557 = vmatpush3.bf16.msra.mxu1 %v1727_v10  ;;  %1538 = vmatprep.subr.bf16.mxu0 %v1816_v1  ;;  %v1772_v0 = vld [vmem:[%s2182_s1 + $0x138] sm:$0xff]   ;;  %v1776_v7 = vld [vmem:[%s2182_s1 + $0x180] sm:$0xff]   ;;  %v1780_v10 = vld [vmem:[%s2182_s1 + $0x188] sm:$0xff]  }
  0x19   : > { %1558 = vmatprep.subr.bf16.mxu1 %v1816_v1  ;;  %v1734_v19 = vld [vmem:[#allocation2 + $0x1] ss:$8 sps:$4 sm:$0xff]   ;;  %v1773_v5 = vld [vmem:[%s2182_s1 + $0x178] sm:$0xff]   ;;  %v1782_v12 = vld [vmem:[%s2182_s1 + $0x190] sm:$0xff]  }
  0x1a   : > { %v1735_v20 = vld [vmem:[#allocation2 + $0x11] ss:$8 sps:$4 sm:$0xff]   ;;  %v1736_v21 = vld [vmem:[#allocation2] ss:$8 sps:$4 sm:$0xff]  }
  0x1b   : > { %1539 = vmatpush3.bf16.msra.mxu0 %v1728_v14  ;;  %v1737_v23 = vld [vmem:[#allocation2 + $0x10] ss:$8 sps:$4 sm:$0xff]   ;;  %v251_v24 = vpack.c.bf16 %v1735_v20, %v1734_v19  ;;  %v1754_v41 = vld [vmem:[#allocation2 + $0x2] ss:$8 sps:$4 sm:$0xff]  }
  0x1c   : > { %1559 = vmatpush3.bf16.msra.mxu1 %v1729_v15  ;;  %1540 = vmatprep.subr.bf16.mxu0 %v1816_v1  ;;  %v222_v25 = vpack.c.bf16 %v1737_v23, %v1736_v21  ;;  %v1755_v43 = vld [vmem:[#allocation2 + $0x12] ss:$8 sps:$4 sm:$0xff]   ;;  %v1779_v9 = vld [vmem:[%s2182_s1 + $0x1c0] sm:$0xff]   ;;  %v1781_v11 = vld [vmem:[%s2182_s1 + $0x1c8] sm:$0xff]  }
  0x1d   : > { %1560 = vmatprep.subr.bf16.mxu1 %v1816_v1  ;;  %v1757_v44 = vld [vmem:[#allocation2 + $0x8] ss:$8 sps:$4 sm:$0xff]   ;;  %v1758_v45 = vld [vmem:[#allocation2 + $0x18] ss:$8 sps:$4 sm:$0xff]   ;;  %v458_v47 = vpack.c.bf16 %v1755_v43, %v1754_v41 }
  0x1e   : > { %v578_v49 = vpack.c.bf16 %v1758_v45, %v1757_v44  ;;  %v1774_v63 = vld [vmem:[#allocation2 + $0x9] ss:$8 sps:$4 sm:$0xff]   ;;  %v1775_v2 = vld [vmem:[#allocation2 + $0x19] ss:$8 sps:$4 sm:$0xff]  }
  0x1f   : > { %1541 = vmatpush3.bf16.msra.mxu0 %v1730_v16  ;;  %v1777_v3 = vld [vmem:[#allocation2 + $0xa] ss:$8 sps:$4 sm:$0xff]   ;;  %v1778_v4 = vld [vmem:[#allocation2 + $0x1a] ss:$8 sps:$4 sm:$0xff]   ;;  %v698_v6 = vpack.c.bf16 %v1775_v2, %v1774_v63 }
  0x20   : > { %1561 = vmatpush3.bf16.msra.mxu1 %v1731_v17  ;;  %1542 = vmatprep.subr.bf16.mxu0 %v1816_v1  ;;  %v818_v8 = vpack.c.bf16 %v1778_v4, %v1777_v3  ;;  %v1783_v13 = vld [vmem:[%s2182_s1 + $0x1d0] sm:$0xff]   ;;  %v1784_v14 = vld [vmem:[%s2182_s1 + $0x198] sm:$0xff]   ;;  %v1786_v16 = vld [vmem:[%s2182_s1 + $0x1a0] sm:$0xff]  }
  0x21   : > { %1562 = vmatprep.subr.bf16.mxu1 %v1816_v1  ;;  %v1785_v15 = vld [vmem:[%s2182_s1 + $0x1d8] sm:$0xff]   ;;  %v1787_v17 = vld [vmem:[%s2182_s1 + $0x1e0] sm:$0xff]   ;;  %v1789_v19 = vld [vmem:[%s2182_s1 + $0x1e8] sm:$0xff]  }
  0x22   : > { %v1790_v20 = vld [vmem:[%s2182_s1 + $0x1b0] sm:$0xff]   ;;  %v1795_v23 = vld [vmem:[#allocation2 + $0x20] ss:$8 sps:$4 sm:$0xff]  }
  0x23   : > { %1543 = vmatpush3.bf16.msra.mxu0 %v1732_v18  ;;  %v1788_v18 = vld [vmem:[%s2182_s1 + $0x1a8] sm:$0xff]   ;;  %v1791_v21 = vld [vmem:[%s2182_s1 + $0x1f0] sm:$0xff]  }
  0x24   : > { %1563 = vmatpush3.bf16.msra.mxu1 %v1733_v22  ;;  %1568 = vmatprep.subr.bf16.mxu0 %v1816_v1  ;;  %v1794_v22 = vld [vmem:[#allocation2 + $0x10] ss:$8 sps:$4 sm:$0xff]  }
  0x25   : > { %1588 = vmatprep.subr.bf16.mxu1 %v1816_v1  ;;  %v1800_v32 = vld [vmem:[%s2182_s1 + $0x210] sm:$0xff]  }
  0x26   : > { %1545 = vmatmul.mubr.bf16.vlgmr.msra.gmra.mrb[0].mxu0 %v251_v24  ;;  %v1792_v24 = vld [vmem:[%s2182_s1 + $0x1b8] sm:$0xff]  }
  0x27   : > { %1565 = vmatmul.mubr.bf16.vlgmr.msra.gmra.mrb[0].mxu1 %v222_v25  ;;  %1569 = vmatpush3.bf16.msra.mxu0 %v1738_v26  ;;  %v1797_v25 = vld [vmem:[#allocation2 + $0x11] ss:$8 sps:$4 sm:$0xff]   ;;  %v1798_v26 = vld [vmem:[#allocation2 + $0x21] ss:$8 sps:$4 sm:$0xff]  }
  0x28   : > { %1589 = vmatpush3.bf16.msra.mxu1 %v1739_v27  ;;  %1570 = vmatprep.subr.bf16.mxu0 %v1816_v1  ;;  %v1793_v27 = vld [vmem:[%s2182_s1 + $0x1f8] sm:$0xff]  }
  0x29   : > { %1590 = vmatprep.subr.bf16.mxu1 %v1816_v1  ;;  %1584 = vmatprep.mubr.msk.bf16.mxu0 %vm1817_vm0, %v1816_v1 }
  0x2a   : > { %1604 = vmatprep.mubr.msk.bf16.mxu1 %vm1817_vm0, %v1816_v1 }
  0x2b   : > { %1571 = vmatpush3.bf16.msra.mxu0 %v1740_v28  ;;  %v939_v28 = vpack.c.bf16 %v1795_v23, %v1794_v22 }
  0x2c   : > { %1591 = vmatpush3.bf16.msra.mxu1 %v1741_v29  ;;  %1572 = vmatprep.subr.bf16.mxu0 %v1816_v1  ;;  %v1796_v29 = vld [vmem:[%s2182_s1 + $0x200] sm:$0xff]  }
  0x2d   : > { %1592 = vmatprep.subr.bf16.mxu1 %v1816_v1 }
  0x2f   : > { %1573 = vmatpush3.bf16.msra.mxu0 %v1742_v30  ;;  %v1059_v30 = vpack.c.bf16 %v1798_v26, %v1797_v25 }
  0x30   : > { %1593 = vmatpush3.bf16.msra.mxu1 %v1743_v31  ;;  %1574 = vmatprep.subr.bf16.mxu0 %v1816_v1  ;;  %v1799_v31 = vld [vmem:[%s2182_s1 + $0x208] sm:$0xff]  }
  0x31   : > { %1594 = vmatprep.subr.bf16.mxu1 %v1816_v1 }
  0x33   : > { %1575 = vmatpush3.bf16.msra.mxu0 %v1744_v33  ;;  %v1801_v33 = vld [vmem:[%s2182_s1 + $0x218] sm:$0xff]  }
  0x34   : > { %1595 = vmatpush3.bf16.msra.mxu1 %v1745_v34  ;;  %1576 = vmatprep.subr.bf16.mxu0 %v1816_v1  ;;  %v1802_v34 = vld [vmem:[%s2182_s1 + $0x220] sm:$0xff]  }
  0x35   : > { %1596 = vmatprep.subr.bf16.mxu1 %v1816_v1 }
  0x37   : > { %1577 = vmatpush3.bf16.msra.mxu0 %v1746_v35  ;;  %v1803_v35 = vld [vmem:[%s2182_s1 + $0x228] sm:$0xff]  }
  0x38   : > { %1597 = vmatpush3.bf16.msra.mxu1 %v1747_v36  ;;  %1578 = vmatprep.subr.bf16.mxu0 %v1816_v1  ;;  %v1804_v36 = vld [vmem:[%s2182_s1 + $0x230] sm:$0xff]  }
  0x39   : > { %1598 = vmatprep.subr.bf16.mxu1 %v1816_v1 }
  0x3b   : > { %1579 = vmatpush3.bf16.msra.mxu0 %v1748_v37  ;;  %v1806_v37 = vld [vmem:[#allocation2 + $0x12] ss:$8 sps:$4 sm:$0xff]  }
  0x3c   : > { %1599 = vmatpush3.bf16.msra.mxu1 %v1749_v38  ;;  %1580 = vmatprep.subr.bf16.mxu0 %v1816_v1  ;;  %v1807_v38 = vld [vmem:[#allocation2 + $0x22] ss:$8 sps:$4 sm:$0xff]  }
  0x3d   : > { %1600 = vmatprep.subr.bf16.mxu1 %v1816_v1 }
  0x3f   : > { %1581 = vmatpush3.bf16.msra.mxu0 %v1750_v39  ;;  %v1805_v39 = vld [vmem:[%s2182_s1 + $0x238] sm:$0xff]  }
  0x40   : > { %1601 = vmatpush3.bf16.msra.mxu1 %v1751_v40  ;;  %1582 = vmatprep.subr.bf16.mxu0 %v1816_v1  ;;  %v1179_v40 = vpack.c.bf16 %v1807_v38, %v1806_v37 }
  0x41   : > { %1602 = vmatprep.subr.bf16.mxu1 %v1816_v1 }
  0x43   : > { %1583 = vmatpush3.bf16.msra.mxu0 %v1752_v42 }
  0x44   : > { %1603 = vmatpush3.bf16.msra.mxu1 %v1753_v46  ;;  %1608 = vmatprep.subr.bf16.mxu0 %v1816_v1 }
  0x45   : > { %1628 = vmatprep.subr.bf16.mxu1 %v1816_v1 }
  0x46   : > { %1585 = vmatmul.mubr.bf16.vlgmr.msra.gmra.mrb[4].mxu0 %v458_v47 }
  0x47   : > { %1609 = vmatpush3.bf16.msra.mxu0 %v1756_v48  ;;  %1605 = vmatmul.mubr.bf16.vlgmr.msra.gmra.mrb[4].mxu1 %v578_v49 }
  0x48   : > { %1629 = vmatpush3.bf16.msra.mxu1 %v1759_v50  ;;  %1610 = vmatprep.subr.bf16.mxu0 %v1816_v1 }
  0x49   : > { %1630 = vmatprep.subr.bf16.mxu1 %v1816_v1  ;;  %1624 = vmatprep.mubr.msk.bf16.mxu0 %vm1817_vm0, %v1816_v1 }
  0x4a   : > { %1644 = vmatprep.mubr.msk.bf16.mxu1 %vm1817_vm0, %v1816_v1 }
  0x4b   : > { %1611 = vmatpush3.bf16.msra.mxu0 %v1760_v51 }
  0x4c   : > { %1631 = vmatpush3.bf16.msra.mxu1 %v1761_v52  ;;  %1612 = vmatprep.subr.bf16.mxu0 %v1816_v1 }
  0x4d   : > { %1632 = vmatprep.subr.bf16.mxu1 %v1816_v1 }
  0x4f   : > { %1613 = vmatpush3.bf16.msra.mxu0 %v1762_v53 }
  0x50   : > { %1633 = vmatpush3.bf16.msra.mxu1 %v1763_v54  ;;  %1614 = vmatprep.subr.bf16.mxu0 %v1816_v1 }
  0x51   : > { %1634 = vmatprep.subr.bf16.mxu1 %v1816_v1 }
  0x53   : > { %1615 = vmatpush3.bf16.msra.mxu0 %v1764_v55 }
  0x54   : > { %1635 = vmatpush3.bf16.msra.mxu1 %v1765_v56  ;;  %1616 = vmatprep.subr.bf16.mxu0 %v1816_v1 }
  0x55   : > { %1636 = vmatprep.subr.bf16.mxu1 %v1816_v1 }
  0x57   : > { %1617 = vmatpush3.bf16.msra.mxu0 %v1766_v57 }
  0x58   : > { %1637 = vmatpush3.bf16.msra.mxu1 %v1767_v58  ;;  %1618 = vmatprep.subr.bf16.mxu0 %v1816_v1 }
  0x59   : > { %1638 = vmatprep.subr.bf16.mxu1 %v1816_v1 }
  0x5b   : > { %1619 = vmatpush3.bf16.msra.mxu0 %v1768_v59 }
  0x5c   : > { %1639 = vmatpush3.bf16.msra.mxu1 %v1769_v60  ;;  %1620 = vmatprep.subr.bf16.mxu0 %v1816_v1 }
  0x5d   : > { %1640 = vmatprep.subr.bf16.mxu1 %v1816_v1 }
  0x5f   : > { %1621 = vmatpush3.bf16.msra.mxu0 %v1770_v61 }
  0x60   : > { %1641 = vmatpush3.bf16.msra.mxu1 %v1771_v62  ;;  %1622 = vmatprep.subr.bf16.mxu0 %v1816_v1 }
  0x61   : > { %1642 = vmatprep.subr.bf16.mxu1 %v1816_v1 }
  0x63   : > { %1623 = vmatpush3.bf16.msra.mxu0 %v1772_v0 }
  0x64   : > { %1643 = vmatpush3.bf16.msra.mxu1 %v1773_v5  ;;  %1648 = vmatprep.subr.bf16.mxu0 %v1816_v1 }
  0x65   : > { %1668 = vmatprep.subr.bf16.mxu1 %v1816_v1 }
  0x66   : > { %1625 = vmatmul.mubr.bf16.vlgmr.msra.gmra.mrb[8].mxu0 %v698_v6 }
  0x67   : > { %1649 = vmatpush3.bf16.msra.mxu0 %v1776_v7  ;;  %1645 = vmatmul.mubr.bf16.vlgmr.msra.gmra.mrb[8].mxu1 %v818_v8 }
  0x68   : > { %1669 = vmatpush3.bf16.msra.mxu1 %v1779_v9  ;;  %1650 = vmatprep.subr.bf16.mxu0 %v1816_v1 }
  0x69   : > { %1670 = vmatprep.subr.bf16.mxu1 %v1816_v1  ;;  %1664 = vmatprep.mubr.msk.bf16.mxu0 %vm1817_vm0, %v1816_v1 }
  0x6a   : > { %1684 = vmatprep.mubr.msk.bf16.mxu1 %vm1817_vm0, %v1816_v1 }
  0x6b   : > { %1651 = vmatpush3.bf16.msra.mxu0 %v1780_v10 }
  0x6c   : > { %1671 = vmatpush3.bf16.msra.mxu1 %v1781_v11  ;;  %1652 = vmatprep.subr.bf16.mxu0 %v1816_v1 }
  0x6d   : > { %1672 = vmatprep.subr.bf16.mxu1 %v1816_v1 }
  0x6f   : > { %1653 = vmatpush3.bf16.msra.mxu0 %v1782_v12 }
  0x70   : > { %1673 = vmatpush3.bf16.msra.mxu1 %v1783_v13  ;;  %1654 = vmatprep.subr.bf16.mxu0 %v1816_v1 }
  0x71   : > { %1674 = vmatprep.subr.bf16.mxu1 %v1816_v1 }
  0x73   : > { %1655 = vmatpush3.bf16.msra.mxu0 %v1784_v14 }
  0x74   : > { %1675 = vmatpush3.bf16.msra.mxu1 %v1785_v15  ;;  %1656 = vmatprep.subr.bf16.mxu0 %v1816_v1 }
  0x75   : > { %1676 = vmatprep.subr.bf16.mxu1 %v1816_v1 }
  0x77   : > { %1657 = vmatpush3.bf16.msra.mxu0 %v1786_v16 }
  0x78   : > { %1677 = vmatpush3.bf16.msra.mxu1 %v1787_v17  ;;  %1658 = vmatprep.subr.bf16.mxu0 %v1816_v1 }
  0x79   : > { %1678 = vmatprep.subr.bf16.mxu1 %v1816_v1 }
  0x7b   : > { %1659 = vmatpush3.bf16.msra.mxu0 %v1788_v18 }
  0x7c   : > { %1679 = vmatpush3.bf16.msra.mxu1 %v1789_v19  ;;  %1660 = vmatprep.subr.bf16.mxu0 %v1816_v1 }
  0x7d   : > { %1680 = vmatprep.subr.bf16.mxu1 %v1816_v1 }
  0x7f   : > { %1661 = vmatpush3.bf16.msra.mxu0 %v1790_v20 }
  0x80   : > { %1681 = vmatpush3.bf16.msra.mxu1 %v1791_v21  ;;  %1662 = vmatprep.subr.bf16.mxu0 %v1816_v1 }
  0x81   : > { %1682 = vmatprep.subr.bf16.mxu1 %v1816_v1 }
  0x83   : > { %1663 = vmatpush3.bf16.msra.mxu0 %v1792_v24  ;;  %v1287_v24 = vld [vmem:[%s186_s18] sm:$0xff] }
  0x84   : > { %1683 = vmatpush3.bf16.msra.mxu1 %v1793_v27  ;;  %1688 = vmatprep.subr.bf16.mxu0 %v1816_v1 }
  0x86   : > { %1665 = vmatmul.mubr.bf16.vlgmr.msra.gmra.mrb[12].mxu0 %v939_v28  ;;  %v1288_v28 = vld [vmem:[%s186_s18 + $0x8] sm:$0xff] }
  0x87   : > { %1689 = vmatpush3.bf16.msra.mxu0 %v1796_v29  ;;  %1685 = vmatmul.mubr.bf16.vlgmr.msra.gmra.mrb[12].mxu1 %v1059_v30 }
  0x88   : > { %1690 = vmatprep.subr.bf16.mxu0 %v1816_v1  ;;  %1704 = vmatprep.mubr.msk.bf16.mxu0 %vm1817_vm0, %v1816_v1 }
  0x8b   : > { %1691 = vmatpush3.bf16.msra.mxu0 %v1799_v31 }
  0x8c   : > { %1692 = vmatprep.subr.bf16.mxu0 %v1816_v1 }
  0x8f   : > { %1693 = vmatpush3.bf16.msra.mxu0 %v1800_v32 }
  0x90   : > { %1694 = vmatprep.subr.bf16.mxu0 %v1816_v1 }
  0x93   : > { %1695 = vmatpush3.bf16.msra.mxu0 %v1801_v33 }
  0x94   : > { %1696 = vmatprep.subr.bf16.mxu0 %v1816_v1 }
  0x97   : > { %1697 = vmatpush3.bf16.msra.mxu0 %v1802_v34 }
  0x98   : > { %1698 = vmatprep.subr.bf16.mxu0 %v1816_v1 }
  0x9b   : > { %1699 = vmatpush3.bf16.msra.mxu0 %v1803_v35 }
  0x9c   : > { %1700 = vmatprep.subr.bf16.mxu0 %v1816_v1 }
  0x9f   : > { %1701 = vmatpush3.bf16.msra.mxu0 %v1804_v36 }
  0xa0   : > { %1702 = vmatprep.subr.bf16.mxu0 %v1816_v1 }
  0xa3   : > { %1703 = vmatpush3.bf16.msra.mxu0 %v1805_v39 }
  0xa6   : > { %1705 = vmatmul.mubr.bf16.vlgmr.msra.gmra.mrb[16].mxu0 %v1179_v40 }
  0xf9   : > { %v350_v41 = vpop.f32.mrb[0].mxu0 }
  0xfa   : > { %v439_v42 = vpop.f32.mrb[0].mxu1  ;;  %v1546_v43 = vpop.f32.mrb[1].mxu0 }
  0xfb   : > { %v440_v44 = vadd.f32 %v439_v42, %v350_v41  ;;  %v1566_v45 = vpop.f32.mrb[1].mxu1  ;;  %v353_v46 = vpop.f32.mrb[2].mxu0 }
  0xfc   : > { %v442_v47 = vpop.f32.mrb[2].mxu1  ;;  %v1547_v48 = vpop.f32.mrb[3].mxu0 }
  0xfd   : > { %v443_v49 = vadd.f32 %v442_v47, %v353_v46  ;;  %v1567_v50 = vpop.f32.mrb[3].mxu1 }
 0x119   : > { %v557_v51 = vpop.f32.mrb[4].mxu0 }
 0x11a   : > { %v564_v52 = vadd.f32 %v557_v51, %v440_v44  ;;  %v1586_v53 = vpop.f32.mrb[5].mxu0  ;;  %v677_v54 = vpop.f32.mrb[4].mxu1 }
 0x11b   : > { %v560_v55 = vpop.f32.mrb[6].mxu0  ;;  %v1606_v56 = vpop.f32.mrb[5].mxu1 }
 0x11c   : > { %v565_v1 = vadd.f32 %v560_v55, %v443_v49  ;;  %v684_v57 = vadd.f32 %v677_v54, %v564_v52  ;;  %v1587_v58 = vpop.f32.mrb[7].mxu0  ;;  %v680_v59 = vpop.f32.mrb[6].mxu1 }
 0x11d   : > { %v1607_v60 = vpop.f32.mrb[7].mxu1 }
 0x11e   : > { %v685_v61 = vadd.f32 %v680_v59, %v565_v1 }
 0x139   : > { %v797_v62 = vpop.f32.mrb[8].mxu0 }
 0x13a   : > { %v804_v63 = vadd.f32 %v797_v62, %v684_v57  ;;  %v1626_v0 = vpop.f32.mrb[9].mxu0  ;;  %v917_v2 = vpop.f32.mrb[8].mxu1 }
 0x13b   : > { %v800_v3 = vpop.f32.mrb[10].mxu0  ;;  %v1646_v4 = vpop.f32.mrb[9].mxu1 }
 0x13c   : > { %v805_v5 = vadd.f32 %v800_v3, %v685_v61  ;;  %v924_v6 = vadd.f32 %v917_v2, %v804_v63  ;;  %v1627_v7 = vpop.f32.mrb[11].mxu0  ;;  %v920_v8 = vpop.f32.mrb[10].mxu1 }
 0x13d   : > { %v1647_v9 = vpop.f32.mrb[11].mxu1 }
 0x13e   : > { %v925_v10 = vadd.f32 %v920_v8, %v805_v5 }
 0x159   : > { %v1038_v11 = vpop.f32.mrb[12].mxu0 }
 0x15a   : > { %v1045_v12 = vadd.f32 %v1038_v11, %v924_v6  ;;  %v1666_v13 = vpop.f32.mrb[13].mxu0  ;;  %v1158_v14 = vpop.f32.mrb[12].mxu1 }
 0x15b   : > { %v1041_v15 = vpop.f32.mrb[14].mxu0  ;;  %v1686_v16 = vpop.f32.mrb[13].mxu1 }
 0x15c   : > { %v1046_v17 = vadd.f32 %v1041_v15, %v925_v10  ;;  %v1165_v18 = vadd.f32 %v1158_v14, %v1045_v12  ;;  %v1667_v19 = vpop.f32.mrb[15].mxu0  ;;  %v1161_v20 = vpop.f32.mrb[14].mxu1 }
 0x15d   : > { %v1687_v21 = vpop.f32.mrb[15].mxu1 }
 0x15e   : > { %v1166_v22 = vadd.f32 %v1161_v20, %v1046_v17 }
 0x179   : > { %v1278_v23 = vpop.f32.mrb[16].mxu0 }
 0x17a   : > { %v1285_v25 = vadd.f32 %v1278_v23, %v1165_v18  ;;  %v1706_v26 = vpop.f32.mrb[17].mxu0 }
 0x17b   : > { %v1281_v27 = vpop.f32.mrb[18].mxu0 }
 0x17c   : > { %v1289_v29 = vadd.f32 %v1287_v24, %v1285_v25  ;;  %v1286_v30 = vadd.f32 %v1281_v27, %v1166_v22  ;;  %v1707_v31 = vpop.f32.mrb[19].mxu0 }
 0x17e   : > { %1291 = vst [vmem:[%s192_s20] sm:$0xff] %v1289_v29  ;;  %v1290_v32 = vadd.f32 %v1288_v28, %v1286_v30 }
 0x180   : > { %1292 = vst [vmem:[%s192_s20 + $0x8] sm:$0xff] %v1290_v32 }
 0x181 PF: > { %s13_s12 = sadd.s32 1, %s1814_s12  }
 0x182   : > { %p10_p5 = scmp.ge.s32.totalorder %s13_s12, 4  }
 0x184   :  { %12 = sbr.rel (!%p10_p5) target bundleno = 1 (0x1), region = 67 }

// kernel: _lambda_.15
= control target key start
LH: loop header
LB: loop body
LE: loop exit
PB: predicated region body
PF: predicated region fallthrough
CT: control target
= control target key end

     0   :  { %v297_v3 = vmov 0.0|0.0   ;;  %vm298_vm0 = vmmov 0   ;;  %v299_v6 = vmov 0.0   ;;  %s420_s0 = inlined_call_operand.vmem [shape: f32[2,16,128], index: 0, kind: input, shape index: {}]   ;;  %s421_s1 = inlined_call_operand.vmem [shape: f32[1,128], index: 1, kind: input, shape index: {}]   ;;  %s422_s2 = inlined_call_operand.vmem [shape: f32[1,128], index: 2, kind: input, shape index: {}]   ;;  %s423_s3 = inlined_call_operand.vmem [shape: f32[128,10], index: 3, kind: input, shape index: {}]   ;;  %s424_s4 = inlined_call_operand.vmem [shape: f32[1,10], index: 4, kind: input, shape index: {}]   ;;  %s425_s5 = inlined_call_operand.hbm [shape: f32[2,10], index: 5, kind: output, shape index: {}]  }
   0x1   :  { %v76_v0 = vld [vmem:[%s423_s3] sm:$0xff]  ;;  %v77_v1 = vld [vmem:[%s423_s3 + $0x8] sm:$0xff]  ;;  %v78_v2 = vld [vmem:[%s423_s3 + $0x10] sm:$0xff]  ;;  %245 = vmatprep.subr.bf16.mxu0 %v297_v3  ;;  %242 = vmatprep.mubr.msk.f32.mxu0 %vm298_vm0, %v299_v6 }
   0x2   :  { %v246_v4 = vpack.c.bf16 %v77_v1, %v76_v0  ;;  %v79_v5 = vld [vmem:[%s423_s3 + $0x18] sm:$0xff]  ;;  %v80_v8 = vld [vmem:[%s423_s3 + $0x20] sm:$0xff]  ;;  %v81_v9 = vld [vmem:[%s423_s3 + $0x28] sm:$0xff] }
   0x3   :  { %v249_v7 = vpack.c.bf16 %v79_v5, %v78_v2  ;;  %v82_v10 = vld [vmem:[%s423_s3 + $0x30] sm:$0xff]  ;;  %v21_v11 = vld [vmem:[%s420_s0] sm:$0xff]  ;;  %v22_v12 = vld [vmem:[%s420_s0 + $0x8] sm:$0xff]  ;;  %v252_v13 = vpack.c.bf16 %v81_v9, %v80_v8 }
   0x4   :  { %247 = vmatpush3.bf16.msra.mxu0 %v246_v4  ;;  %v23_v14 = vld [vmem:[%s420_s0 + $0x10] sm:$0xff]  ;;  %v24_v15 = vld [vmem:[%s420_s0 + $0x18] sm:$0xff]  ;;  %v190_v16 = vld [vmem:[%s421_s1] ss:$0 sm:$0xff] }
   0x5   :  { %248 = vmatprep.subr.bf16.mxu0 %v297_v3  ;;  %v83_v17 = vld [vmem:[%s423_s3 + $0x38] sm:$0xff]  ;;  %v32_v18 = vmul.f32 %v190_v16, %v21_v11  ;;  %v33_v19 = vmul.f32 %v190_v16, %v22_v12  ;;  %v34_v20 = vmul.f32 %v190_v16, %v23_v14  ;;  %v35_v21 = vmul.f32 %v190_v16, %v24_v15  ;;  %v191_v22 = vld [vmem:[%s422_s2] ss:$0 sm:$0xff] }
   0x8   :  { %250 = vmatpush3.bf16.msra.mxu0 %v249_v7 }
   0x9   :  { %10 = vsyncpa [#allocation3], 0  ;;  %251 = vmatprep.subr.bf16.mxu0 %v297_v3  ;;  %v43_v23 = vadd.f32 %v191_v22, %v32_v18  ;;  %v44_v24 = vadd.f32 %v191_v22, %v33_v19  ;;  %v45_v25 = vadd.f32 %v191_v22, %v34_v20  ;;  %v46_v26 = vadd.f32 %v191_v22, %v35_v21  ;;  %v84_v28 = vld [vmem:[%s423_s3 + $0x40] sm:$0xff]  ;;  %v85_v29 = vld [vmem:[%s423_s3 + $0x48] sm:$0xff] }
   0xa   :  { %v255_v27 = vpack.c.bf16 %v83_v17, %v82_v10  ;;  %v258_v37 = vpack.c.bf16 %v85_v29, %v84_v28  ;;  %v86_v40 = vld [vmem:[%s423_s3 + $0x50] sm:$0xff]  ;;  %v87_v41 = vld [vmem:[%s423_s3 + $0x58] sm:$0xff]  ;;  %v88_v47 = vld [vmem:[%s423_s3 + $0x60] sm:$0xff]  ;;  %vm101_vm5 = vcmask 1041409   ;;  %vm174_vm6 = vcmask 74752  }
   0xb   :  { %vm47_vm1 = vcmp.ge.f32.partialorder %v43_v23, 0.0  ;;  %vm48_vm2 = vcmp.ge.f32.partialorder %v44_v24, 0.0  ;;  %vm49_vm3 = vcmp.ge.f32.partialorder %v45_v25, 0.0  ;;  %vm50_vm4 = vcmp.ge.f32.partialorder %v46_v26, 0.0  ;;  %v89_v48 = vld [vmem:[%s423_s3 + $0x68] sm:$0xff]  ;;  %v90_v54 = vld [vmem:[%s423_s3 + $0x70] sm:$0xff] }
   0xc   :  { %253 = vmatpush3.bf16.msra.mxu0 %v252_v13  ;;  %v51_v30 = vmul.f32 0.1, %v43_v23  ;;  %v52_v31 = vmul.f32 0.1, %v44_v24  ;;  %v53_v32 = vmul.f32 0.1, %v45_v25  ;;  %v261_v45 = vpack.c.bf16 %v87_v41, %v86_v40 }
   0xd   :  { %254 = vmatprep.subr.bf16.mxu0 %v297_v3  ;;  %v54_v33 = vmul.f32 0.1, %v46_v26  ;;  %v264_v52 = vpack.c.bf16 %v89_v48, %v88_v47  ;;  %v91_v55 = vld [vmem:[%s423_s3 + $0x78] sm:$0xff]  ;;  %v192_v1 = vld [vmem:[%s424_s4] ss:$0 sm:$0xff]  ;;  %s300_s3 = smov [#allocation2]  }
   0xe   :  { %v55_v34 = vsel %vm47_vm1, %v43_v23, %v51_v30  ;;  %v56_v35 = vsel %vm48_vm2, %v44_v24, %v52_v31  ;;  %v57_v36 = vsel %vm49_vm3, %v45_v25, %v53_v32  ;;  %v267_v59 = vpack.c.bf16 %v91_v55, %v90_v54  ;;  %s182_s11 = sshll.u32 %s300_s3, 4  ;;  %s183_s11 = int_to_ptr.vmem [resolvable:$true] %s182_s11 }
   0xf   :  { %v58_v38 = vsel %vm50_vm4, %v46_v26, %v54_v33  ;;  %v59_v39 = vadd.f32 %v56_v35, %v55_v34  ;;  %s273_s12 = scalar_lea.vmem %s183_s11, 32  ;;  %p278_p1 = scmp.lt.s32.totalorder %s183_s11, %s183_s11 }
  0x10   :  { %256 = vmatpush3.bf16.msra.mxu0 %v255_v27  ;;  %v66_v42 = vadd.f32 %v58_v38, %v57_v36  ;;  %p274_p0 = scmp.ne.s32.totalorder %s183_s11, %s273_s12  ;;  %p279_p2 = scmp.lt.s32.totalorder %s273_s12, %s273_s12 }
  0x11   :  { %257 = vmatprep.subr.bf16.mxu0 %v297_v3  ;;  %v60_v43 = vrot.slane %v59_v39, 4 }
  0x12   :  { %v67_v44 = vrot.slane %v66_v42, 4  ;;  %p280_p3 = por %p279_p2, %p278_p1 }
  0x13   :  { %v61_v46 = vadd.f32 %v60_v43, %v59_v39 }
  0x14   :  { %259 = vmatpush3.bf16.msra.mxu0 %v258_v37  ;;  %v68_v49 = vadd.f32 %v67_v44, %v66_v42  ;;  %p281_p4 = pnand %p280_p3, %p274_p0 }
  0x15   :  { %260 = vmatprep.subr.bf16.mxu0 %v297_v3  ;;  %v62_v50 = vrot.slane %v61_v46, 2 }
  0x16   :  { %v69_v51 = vrot.slane %v68_v49, 2 }
  0x17   :  { %v63_v53 = vadd.f32 %v62_v50, %v61_v46 }
  0x18   :  { %262 = vmatpush3.bf16.msra.mxu0 %v261_v45  ;;  %v70_v56 = vadd.f32 %v69_v51, %v68_v49 }
  0x19   :  { %263 = vmatprep.subr.bf16.mxu0 %v297_v3  ;;  %v64_v57 = vrot.slane %v63_v53, 1 }
  0x1a   :  { %v71_v58 = vrot.slane %v70_v56, 1 }
  0x1b   :  { %v65_v60 = vadd.f32 %v64_v57, %v63_v53 }
  0x1c   :  { %265 = vmatpush3.bf16.msra.mxu0 %v264_v52  ;;  %v72_v61 = vadd.f32 %v71_v58, %v70_v56 }
  0x1d   :  { %266 = vmatprep.subr.bf16.mxu0 %v297_v3  ;;  %v74_v62 = vmul.f32 0.0625, %v65_v60 }
  0x1e   :  { %v75_v63 = vmul.f32 0.0625, %v72_v61 }
  0x20   :  { %268 = vmatpush3.bf16.msra.mxu0 %v267_v59  ;;  %v102_v0 = vsel %vm101_vm5, %v75_v63, %v74_v62 }
  0x23   :  { %243 = vmatmul.mubr.f32.vlgmr.msra.gmra.mrb[0].mxu0 %v102_v0 }
  0xf6   :  { %v170_v2 = vpop.f32.mrb[0].mxu0 }
  0xf7   :  { %v171_v4 = vadd.f32 %v192_v1, %v170_v2  ;;  %v244_v5 = vpop.f32.mrb[1].mxu0 }
  0xf9   :  { %175 = vst.msk [vmem:[#allocation2] sm:$0x3] %vm174_vm6, %v171_v4 }
  0xfa   :  { %284 = shalt.err (!%p281_p4)
}
  0xfb   :  { %s285_s15 = scalar_lea.hbm %s425_s5, 32 }
  0xfc   :  { %p286_p5 = scmp.ne.s32.totalorder %s425_s5, %s285_s15  ;;  %p289_p6 = scmp.lt.u32.totalorder %s285_s15, %s425_s5 }
  0xfe   :  { %p291_p7 = pnand %p289_p6, %p286_p5 }
 0x100   :  { %294 = shalt.err (!%p291_p7)
}
 0x101   :  { %185 = dma.vmem_to_hbm [thread:$0]  %s183_s11, 32, %s425_s5, [#allocation3]  }
 0x102   :  { %295 = dma.done.wait [#allocation3], 32  }
 0x103   :  { %296 = vsyncadd [#allocation3], 4294967264 }
 0x104   :  { %189 = vsyncpa [#allocation3], 1 }

</bundles_post_ra>
